<compile_context>
chip_gen: v6e
topology: v6e:2x2x1
jax: 0.10.0
libtpu: 0.0.40
codegen_flags: <defaults>
</compile_context>

<pallas_src>
import jax
import jax.numpy as jnp
from jax.experimental import pallas as pl
from jax.experimental.pallas import tpu as pltpu

_HEAD_N = 128   # actor logits | critic value | zero-pad, packed into one lane-dense slab
_W_OFF = 8      # sublane-aligned column offset of the conv2 halo scratch (keeps the store unmasked)


# ----------------------------------------------------------------------------
# Fused kernel: one image per grid step, everything stays in VMEM.
# ----------------------------------------------------------------------------
def _fused_forward_kernel(xpad_ref, wc1_ref, bc1_ref, wc2_ref, bc2_ref,
                          w1_ref, b1_ref, w2_ref, b2_ref, wh_ref, bh_ref,
                          out_ref, x1pad_ref):
    f32 = jnp.float32
    _, Hpad, Wpad, C = xpad_ref.shape
    H, W = Hpad - 2, Wpad - 2
    Hp, Wp = H // 2, W // 2            # spatial after pool 1
    Hq, Wq = Hp // 2, Wp // 2          # spatial after pool 2
    OC1 = wc1_ref.shape[1]             # 64
    OC2 = wc2_ref.shape[1]             # 128
    D1 = w1_ref.shape[1]               # 512
    cdt = wc1_ref.dtype                # bf16 matmul-input dtype

    # ---- conv1: 3x3, pad 1 -> 9 shifted accumulating matmuls (f32 accumulation) ----
    acc1 = jnp.zeros((H * W, OC1), f32)
    for kh in range(3):
        for kw in range(3):
            t = kh * 3 + kw
            tap = xpad_ref[:, kh:kh + H, kw:kw + W, :].reshape(H * W, C)
            acc1 = acc1 + jnp.dot(tap.astype(cdt), wc1_ref[t * C:(t + 1) * C, :],
                                  preferred_element_type=f32)
    a1 = jnp.maximum(acc1 + bc1_ref[...], 0.0)                    # (H*W, 64)

    # ---- maxpool 2x2 (pairs along w, then along h); epilogue stays f32 ----
    a1 = jnp.max(a1.reshape(H * Wp, 2, OC1), axis=1)
    x1 = jnp.max(a1.reshape(Hp, 2, Wp, OC1), axis=1)              # (Hp, Wp, 64)

    # ---- zero halo for conv2, kept in VMEM (no HBM round-trip of the activation) ----
    x1pad_ref[...] = jnp.zeros_like(x1pad_ref)
    x1pad_ref[1:Hp + 1, _W_OFF:_W_OFF + Wp, :] = x1               # sublane-aligned store

    # ---- conv2: 3x3, pad 1 -> 9 shifted accumulating matmuls (K=64 each) ----
    acc2 = jnp.zeros((Hp * Wp, OC2), f32)
    for kh in range(3):
        for kw in range(3):
            t = kh * 3 + kw
            tap = x1pad_ref[kh:kh + Hp, _W_OFF - 1 + kw:_W_OFF - 1 + kw + Wp, :]
            tap = tap.reshape(Hp * Wp, OC1)
            acc2 = acc2 + jnp.dot(tap.astype(cdt), wc2_ref[t * OC1:(t + 1) * OC1, :],
                                  preferred_element_type=f32)
    a2 = jnp.maximum(acc2 + bc2_ref[...], 0.0)                    # (Hp*Wp, 128)

    # ---- maxpool 2x2 ----
    a2 = jnp.max(a2.reshape(Hp * Wq, 2, OC2), axis=1)
    x2 = jnp.max(a2.reshape(Hq, 2, Wq, OC2), axis=1)              # (Hq, Wq, 128)

    # Dropout2d(0.1) / Dropout(0.1) are identity at inference.

    # ---- Flatten + fc1 fused: accumulate (h, w, c)-ordered row blocks of w1 ----
    accf = jnp.zeros((1, D1), f32)
    for h in range(Hq):
        for w in range(Wq):
            p = h * Wq + w
            row = x2[h, w:w + 1, :]                               # (1, 128)
            accf = accf + jnp.dot(row.astype(cdt),
                                  w1_ref[p * OC2:(p + 1) * OC2, :],
                                  preferred_element_type=f32)
    h1 = jnp.maximum(accf + b1_ref[...], 0.0)                     # (1, 512)

    # ---- fc2 + fused (actor | critic | zero-pad) head, one lane-dense output ----
    h2 = jnp.maximum(jnp.dot(h1.astype(cdt), w2_ref[...],
                             preferred_element_type=f32) + b2_ref[...], 0.0)
    heads = jnp.dot(h2.astype(cdt), wh_ref[...],
                    preferred_element_type=f32) + bh_ref[...]     # (1, 128)
    out_ref[0] = heads


# ----------------------------------------------------------------------------
# pallas_call wrapper
# ----------------------------------------------------------------------------
def _fused_forward(xpad, wc1, bc1, wc2, bc2, w1, b1, w2, b2, wh, bh):
    B, Hpad, Wpad, C = xpad.shape
    H, W = Hpad - 2, Wpad - 2
    Hp, Wp = H // 2, W // 2
    OC1 = wc1.shape[1]

    def wspec(arr):
        nd = arr.ndim
        return pl.BlockSpec(arr.shape, lambda b, _nd=nd: (0,) * _nd)  # resident in VMEM

    return pl.pallas_call(
        _fused_forward_kernel,
        out_shape=jax.ShapeDtypeStruct((B, 1, _HEAD_N), jnp.float32),
        grid=(B,),
        in_specs=[
            pl.BlockSpec((1, Hpad, Wpad, C), lambda b: (b, 0, 0, 0)),
            wspec(wc1), wspec(bc1), wspec(wc2), wspec(bc2),
            wspec(w1), wspec(b1), wspec(w2), wspec(b2),
            wspec(wh), wspec(bh),
        ],
        out_specs=pl.BlockSpec((1, 1, _HEAD_N), lambda b: (b, 0, 0)),
        scratch_shapes=[
            pltpu.VMEM((Hp + 2, Wp + _W_OFF + 1, OC1), jnp.float32),  # conv2 halo buffer
        ],
        compiler_params=pltpu.CompilerParams(
            dimension_semantics=("parallel",),        # shard batch across TCs on v7x
            vmem_limit_bytes=32 * 1024 * 1024,
        ),
    )(xpad, wc1, bc1, wc2, bc2, w1, b1, w2, b2, wh, bh)


# ----------------------------------------------------------------------------
# Parameter init (PyTorch-default-like uniform(-1/sqrt(fan_in), 1/sqrt(fan_in)))
# and packing into kernel-ready form (bf16 matmul weights, fused padded head).
# ----------------------------------------------------------------------------
def init_params(key, c, h, w, num_outputs):
    def uinit(k, shape, fan_in):
        bound = 1.0 / jnp.sqrt(jnp.float32(fan_in))
        return jax.random.uniform(k, shape, jnp.float32, -bound, bound)

    flat = 128 * (h // 4) * (w // 4)
    ks = jax.random.split(key, 12)
    return {
        "wc1": uinit(ks[0], (9 * c, 64), 9 * c),      # rows ordered (kh, kw, c_in)
        "bc1": uinit(ks[1], (1, 64), 9 * c),
        "wc2": uinit(ks[2], (9 * 64, 128), 9 * 64),   # rows ordered (kh, kw, c_in)
        "bc2": uinit(ks[3], (1, 128), 9 * 64),
        "w1": uinit(ks[4], (flat, 512), flat),        # input features ordered (h, w, c)
        "b1": uinit(ks[5], (1, 512), flat),
        "w2": uinit(ks[6], (512, 256), 512),
        "b2": uinit(ks[7], (1, 256), 512),
        "wa": uinit(ks[8], (256, num_outputs), 256),
        "ba": uinit(ks[9], (1, num_outputs), 256),
        "wv": uinit(ks[10], (256, 1), 256),
        "bv": uinit(ks[11], (1, 1), 256),
    }


def _pack_params(p):
    bf16 = jnp.bfloat16
    A = p["wa"].shape[1]
    wh = jnp.zeros((p["wa"].shape[0], _HEAD_N), jnp.float32)
    wh = wh.at[:, :A].set(p["wa"]).at[:, A:A + 1].set(p["wv"])
    bh = jnp.zeros((1, _HEAD_N), jnp.float32)
    bh = bh.at[:, :A].set(p["ba"]).at[:, A:A + 1].set(p["bv"])
    return (p["wc1"].astype(bf16), p["bc1"],
            p["wc2"].astype(bf16), p["bc2"],
            p["w1"].astype(bf16), p["b1"],
            p["w2"].astype(bf16), p["b2"],
            wh.astype(bf16), bh)


# ----------------------------------------------------------------------------
# Forward pass (mirrors ActorCriticCNNModel.forward, eval mode)
# ----------------------------------------------------------------------------
@jax.jit
def actor_critic_forward(obs, params):
    """obs: (B, H, W, C) float32 (NHWC).  Returns (logits (B, A), value (B, 1)) in float32."""
    B, H, W, C = obs.shape
    A = params["wa"].shape[1]
    assert H % 4 == 0 and W % 4 == 0, "two 2x2 max-pools require H, W divisible by 4"
    assert A + 1 <= _HEAD_N

    packed = _pack_params(params)
    xpad = jnp.pad(obs, ((0, 0), (1, 1), (1, 1), (0, 0)))   # 1-pixel halo for conv1 (tiny)
    heads = _fused_forward(xpad, *packed)                   # (B, 1, 128) lane-dense slab
    heads = heads.reshape(B, _HEAD_N)
    logits = heads[:, :A]
    value = heads[:, A:A + 1]
    return logits, value


if __name__ == "__main__":
    B, H, W, C = 2, 16, 16, 4
    num_outputs = 6

    key = jax.random.PRNGKey(0)
    k_obs, k_params = jax.random.split(key)
    obs = jax.random.normal(k_obs, (B, H, W, C), jnp.float32)   # layout: NHWC
    params = init_params(k_params, C, H, W, num_outputs)

    logits, value = actor_critic_forward(obs, params)
    jax.block_until_ready((logits, value))

    assert logits.shape == (B, num_outputs) and value.shape == (B, 1)
    assert logits.dtype == jnp.float32 and value.dtype == jnp.float32
    assert bool(jnp.all(jnp.isfinite(logits))) and bool(jnp.all(jnp.isfinite(value)))
    print("KERNEL_OK")
</pallas_src>

<mosaic_0001>
module attributes {stable_mosaic.version = 11 : i64} {
  func.func @_fused_forward_kernel(%arg0: i32, %arg1: memref<1x18x18x4xf32, #tpu.memory_space<vmem>>, %arg2: memref<36x64xbf16, #tpu.memory_space<vmem>>, %arg3: memref<1x64xf32, #tpu.memory_space<vmem>>, %arg4: memref<576x128xbf16, #tpu.memory_space<vmem>>, %arg5: memref<1x128xf32, #tpu.memory_space<vmem>>, %arg6: memref<2048x512xbf16, #tpu.memory_space<vmem>>, %arg7: memref<1x512xf32, #tpu.memory_space<vmem>>, %arg8: memref<512x256xbf16, #tpu.memory_space<vmem>>, %arg9: memref<1x256xf32, #tpu.memory_space<vmem>>, %arg10: memref<256x128xbf16, #tpu.memory_space<vmem>>, %arg11: memref<1x128xf32, #tpu.memory_space<vmem>>, %arg12: memref<1x1x128xf32, #tpu.memory_space<vmem>>, %arg13: memref<10x17x64xf32, #tpu.memory_space<vmem>>) attributes {dimension_semantics = [#tpu.dimension_semantics<parallel>], iteration_bounds = array<i64: 2>, scalar_prefetch = 0 : i64, scratch_operands = 1 : i64, tpu.core_type = #tpu.core_type<tc>, window_params = [{transform_indices = @transform_0, window_bounds = array<i64: 1, 18, 18, 4>}, {pipeline_mode = #tpu.pipeline_mode<synchronous>, transform_indices = @transform_1, window_bounds = array<i64: 36, 64>}, {pipeline_mode = #tpu.pipeline_mode<synchronous>, transform_indices = @transform_2, window_bounds = array<i64: 1, 64>}, {pipeline_mode = #tpu.pipeline_mode<synchronous>, transform_indices = @transform_3, window_bounds = array<i64: 576, 128>}, {pipeline_mode = #tpu.pipeline_mode<synchronous>, transform_indices = @transform_4, window_bounds = array<i64: 1, 128>}, {pipeline_mode = #tpu.pipeline_mode<synchronous>, transform_indices = @transform_5, window_bounds = array<i64: 2048, 512>}, {pipeline_mode = #tpu.pipeline_mode<synchronous>, transform_indices = @transform_6, window_bounds = array<i64: 1, 512>}, {pipeline_mode = #tpu.pipeline_mode<synchronous>, transform_indices = @transform_7, window_bounds = array<i64: 512, 256>}, {pipeline_mode = #tpu.pipeline_mode<synchronous>, transform_indices = @transform_8, window_bounds = array<i64: 1, 256>}, {pipeline_mode = #tpu.pipeline_mode<synchronous>, transform_indices = @transform_9, window_bounds = array<i64: 256, 128>}, {pipeline_mode = #tpu.pipeline_mode<synchronous>, transform_indices = @transform_10, window_bounds = array<i64: 1, 128>}, {transform_indices = @transform_11, window_bounds = array<i64: 1, 1, 128>}]} {
    %cst = arith.constant 0.000000e+00 : f32
    %0 = vector.broadcast %cst : f32 to vector<256x64xf32>
    %c0 = arith.constant 0 : index
    %c0_0 = arith.constant 0 : index
    %c0_1 = arith.constant 0 : index
    %c0_2 = arith.constant 0 : index
    %1 = vector.load %arg1[%c0, %c0_0, %c0_1, %c0_2] : memref<1x18x18x4xf32, #tpu.memory_space<vmem>>, vector<1x16x16x4xf32>
    %2 = vector.shape_cast %1 : vector<1x16x16x4xf32> to vector<256x4xf32>
    %3 = arith.truncf %2 : vector<256x4xf32> to vector<256x4xbf16>
    %c0_3 = arith.constant 0 : index
    %c0_4 = arith.constant 0 : index
    %4 = vector.load %arg2[%c0_3, %c0_4] : memref<36x64xbf16, #tpu.memory_space<vmem>>, vector<4x64xbf16>
    %cst_5 = arith.constant dense<0.000000e+00> : vector<256x64xf32>
    %5 = tpu.matmul %3, %4, %cst_5 {dimension_numbers = #tpu.dot_dimension_numbers<[1], [0], [0], [1], [0, 0, 1, 1], [], []>} : vector<256x4xbf16>, vector<4x64xbf16>, vector<256x64xf32> -> vector<256x64xf32>
    %6 = arith.addf %0, %5 : vector<256x64xf32>
    %c0_6 = arith.constant 0 : index
    %c0_7 = arith.constant 0 : index
    %c1 = arith.constant 1 : index
    %c0_8 = arith.constant 0 : index
    %7 = vector.load %arg1[%c0_6, %c0_7, %c1, %c0_8] : memref<1x18x18x4xf32, #tpu.memory_space<vmem>>, vector<1x16x16x4xf32>
    %8 = vector.shape_cast %7 : vector<1x16x16x4xf32> to vector<256x4xf32>
    %9 = arith.truncf %8 : vector<256x4xf32> to vector<256x4xbf16>
    %c4 = arith.constant 4 : index
    %c0_9 = arith.constant 0 : index
    %10 = vector.load %arg2[%c4, %c0_9] : memref<36x64xbf16, #tpu.memory_space<vmem>>, vector<4x64xbf16>
    %cst_10 = arith.constant dense<0.000000e+00> : vector<256x64xf32>
    %11 = tpu.matmul %9, %10, %cst_10 {dimension_numbers = #tpu.dot_dimension_numbers<[1], [0], [0], [1], [0, 0, 1, 1], [], []>} : vector<256x4xbf16>, vector<4x64xbf16>, vector<256x64xf32> -> vector<256x64xf32>
    %12 = arith.addf %6, %11 : vector<256x64xf32>
    %c0_11 = arith.constant 0 : index
    %c0_12 = arith.constant 0 : index
    %c2 = arith.constant 2 : index
    %c0_13 = arith.constant 0 : index
    %13 = vector.load %arg1[%c0_11, %c0_12, %c2, %c0_13] : memref<1x18x18x4xf32, #tpu.memory_space<vmem>>, vector<1x16x16x4xf32>
    %14 = vector.shape_cast %13 : vector<1x16x16x4xf32> to vector<256x4xf32>
    %15 = arith.truncf %14 : vector<256x4xf32> to vector<256x4xbf16>
    %c8 = arith.constant 8 : index
    %c0_14 = arith.constant 0 : index
    %16 = vector.load %arg2[%c8, %c0_14] : memref<36x64xbf16, #tpu.memory_space<vmem>>, vector<4x64xbf16>
    %cst_15 = arith.constant dense<0.000000e+00> : vector<256x64xf32>
    %17 = tpu.matmul %15, %16, %cst_15 {dimension_numbers = #tpu.dot_dimension_numbers<[1], [0], [0], [1], [0, 0, 1, 1], [], []>} : vector<256x4xbf16>, vector<4x64xbf16>, vector<256x64xf32> -> vector<256x64xf32>
    %18 = arith.addf %12, %17 : vector<256x64xf32>
    %c0_16 = arith.constant 0 : index
    %c1_17 = arith.constant 1 : index
    %c0_18 = arith.constant 0 : index
    %c0_19 = arith.constant 0 : index
    %19 = vector.load %arg1[%c0_16, %c1_17, %c0_18, %c0_19] : memref<1x18x18x4xf32, #tpu.memory_space<vmem>>, vector<1x16x16x4xf32>
    %20 = vector.shape_cast %19 : vector<1x16x16x4xf32> to vector<256x4xf32>
    %21 = arith.truncf %20 : vector<256x4xf32> to vector<256x4xbf16>
    %c12 = arith.constant 12 : index
    %c0_20 = arith.constant 0 : index
    %22 = vector.load %arg2[%c12, %c0_20] : memref<36x64xbf16, #tpu.memory_space<vmem>>, vector<4x64xbf16>
    %cst_21 = arith.constant dense<0.000000e+00> : vector<256x64xf32>
    %23 = tpu.matmul %21, %22, %cst_21 {dimension_numbers = #tpu.dot_dimension_numbers<[1], [0], [0], [1], [0, 0, 1, 1], [], []>} : vector<256x4xbf16>, vector<4x64xbf16>, vector<256x64xf32> -> vector<256x64xf32>
    %24 = arith.addf %18, %23 : vector<256x64xf32>
    %c0_22 = arith.constant 0 : index
    %c1_23 = arith.constant 1 : index
    %c1_24 = arith.constant 1 : index
    %c0_25 = arith.constant 0 : index
    %25 = vector.load %arg1[%c0_22, %c1_23, %c1_24, %c0_25] : memref<1x18x18x4xf32, #tpu.memory_space<vmem>>, vector<1x16x16x4xf32>
    %26 = vector.shape_cast %25 : vector<1x16x16x4xf32> to vector<256x4xf32>
    %27 = arith.truncf %26 : vector<256x4xf32> to vector<256x4xbf16>
    %c16 = arith.constant 16 : index
    %c0_26 = arith.constant 0 : index
    %28 = vector.load %arg2[%c16, %c0_26] : memref<36x64xbf16, #tpu.memory_space<vmem>>, vector<4x64xbf16>
    %cst_27 = arith.constant dense<0.000000e+00> : vector<256x64xf32>
    %29 = tpu.matmul %27, %28, %cst_27 {dimension_numbers = #tpu.dot_dimension_numbers<[1], [0], [0], [1], [0, 0, 1, 1], [], []>} : vector<256x4xbf16>, vector<4x64xbf16>, vector<256x64xf32> -> vector<256x64xf32>
    %30 = arith.addf %24, %29 : vector<256x64xf32>
    %c0_28 = arith.constant 0 : index
    %c1_29 = arith.constant 1 : index
    %c2_30 = arith.constant 2 : index
    %c0_31 = arith.constant 0 : index
    %31 = vector.load %arg1[%c0_28, %c1_29, %c2_30, %c0_31] : memref<1x18x18x4xf32, #tpu.memory_space<vmem>>, vector<1x16x16x4xf32>
    %32 = vector.shape_cast %31 : vector<1x16x16x4xf32> to vector<256x4xf32>
    %33 = arith.truncf %32 : vector<256x4xf32> to vector<256x4xbf16>
    %c20 = arith.constant 20 : index
    %c0_32 = arith.constant 0 : index
    %34 = vector.load %arg2[%c20, %c0_32] : memref<36x64xbf16, #tpu.memory_space<vmem>>, vector<4x64xbf16>
    %cst_33 = arith.constant dense<0.000000e+00> : vector<256x64xf32>
    %35 = tpu.matmul %33, %34, %cst_33 {dimension_numbers = #tpu.dot_dimension_numbers<[1], [0], [0], [1], [0, 0, 1, 1], [], []>} : vector<256x4xbf16>, vector<4x64xbf16>, vector<256x64xf32> -> vector<256x64xf32>
    %36 = arith.addf %30, %35 : vector<256x64xf32>
    %c0_34 = arith.constant 0 : index
    %c2_35 = arith.constant 2 : index
    %c0_36 = arith.constant 0 : index
    %c0_37 = arith.constant 0 : index
    %37 = vector.load %arg1[%c0_34, %c2_35, %c0_36, %c0_37] : memref<1x18x18x4xf32, #tpu.memory_space<vmem>>, vector<1x16x16x4xf32>
    %38 = vector.shape_cast %37 : vector<1x16x16x4xf32> to vector<256x4xf32>
    %39 = arith.truncf %38 : vector<256x4xf32> to vector<256x4xbf16>
    %c24 = arith.constant 24 : index
    %c0_38 = arith.constant 0 : index
    %40 = vector.load %arg2[%c24, %c0_38] : memref<36x64xbf16, #tpu.memory_space<vmem>>, vector<4x64xbf16>
    %cst_39 = arith.constant dense<0.000000e+00> : vector<256x64xf32>
    %41 = tpu.matmul %39, %40, %cst_39 {dimension_numbers = #tpu.dot_dimension_numbers<[1], [0], [0], [1], [0, 0, 1, 1], [], []>} : vector<256x4xbf16>, vector<4x64xbf16>, vector<256x64xf32> -> vector<256x64xf32>
    %42 = arith.addf %36, %41 : vector<256x64xf32>
    %c0_40 = arith.constant 0 : index
    %c2_41 = arith.constant 2 : index
    %c1_42 = arith.constant 1 : index
    %c0_43 = arith.constant 0 : index
    %43 = vector.load %arg1[%c0_40, %c2_41, %c1_42, %c0_43] : memref<1x18x18x4xf32, #tpu.memory_space<vmem>>, vector<1x16x16x4xf32>
    %44 = vector.shape_cast %43 : vector<1x16x16x4xf32> to vector<256x4xf32>
    %45 = arith.truncf %44 : vector<256x4xf32> to vector<256x4xbf16>
    %c28 = arith.constant 28 : index
    %c0_44 = arith.constant 0 : index
    %46 = vector.load %arg2[%c28, %c0_44] : memref<36x64xbf16, #tpu.memory_space<vmem>>, vector<4x64xbf16>
    %cst_45 = arith.constant dense<0.000000e+00> : vector<256x64xf32>
    %47 = tpu.matmul %45, %46, %cst_45 {dimension_numbers = #tpu.dot_dimension_numbers<[1], [0], [0], [1], [0, 0, 1, 1], [], []>} : vector<256x4xbf16>, vector<4x64xbf16>, vector<256x64xf32> -> vector<256x64xf32>
    %48 = arith.addf %42, %47 : vector<256x64xf32>
    %c0_46 = arith.constant 0 : index
    %c2_47 = arith.constant 2 : index
    %c2_48 = arith.constant 2 : index
    %c0_49 = arith.constant 0 : index
    %49 = vector.load %arg1[%c0_46, %c2_47, %c2_48, %c0_49] : memref<1x18x18x4xf32, #tpu.memory_space<vmem>>, vector<1x16x16x4xf32>
    %50 = vector.shape_cast %49 : vector<1x16x16x4xf32> to vector<256x4xf32>
    %51 = arith.truncf %50 : vector<256x4xf32> to vector<256x4xbf16>
    %c32 = arith.constant 32 : index
    %c0_50 = arith.constant 0 : index
    %52 = vector.load %arg2[%c32, %c0_50] : memref<36x64xbf16, #tpu.memory_space<vmem>>, vector<4x64xbf16>
    %cst_51 = arith.constant dense<0.000000e+00> : vector<256x64xf32>
    %53 = tpu.matmul %51, %52, %cst_51 {dimension_numbers = #tpu.dot_dimension_numbers<[1], [0], [0], [1], [0, 0, 1, 1], [], []>} : vector<256x4xbf16>, vector<4x64xbf16>, vector<256x64xf32> -> vector<256x64xf32>
    %54 = arith.addf %48, %53 : vector<256x64xf32>
    %c0_52 = arith.constant 0 : index
    %c0_53 = arith.constant 0 : index
    %55 = vector.load %arg3[%c0_52, %c0_53] : memref<1x64xf32, #tpu.memory_space<vmem>>, vector<1x64xf32>
    %56 = vector.broadcast %55 : vector<1x64xf32> to vector<256x64xf32>
    %57 = arith.addf %54, %56 : vector<256x64xf32>
    %cst_54 = arith.constant 0.000000e+00 : f32
    %58 = vector.broadcast %cst_54 : f32 to vector<256x64xf32>
    %59 = arith.maximumf %57, %58 : vector<256x64xf32>
    %60 = vector.shape_cast %59 : vector<256x64xf32> to vector<128x2x64xf32>
    %cst_55 = arith.constant dense<0xFF800000> : vector<128x64xf32>
    %61 = vector.multi_reduction <maximumf>, %60, %cst_55 [1] : vector<128x2x64xf32> to vector<128x64xf32>
    %62 = vector.shape_cast %61 : vector<128x64xf32> to vector<8x2x8x64xf32>
    %cst_56 = arith.constant dense<0xFF800000> : vector<8x8x64xf32>
    %63 = vector.multi_reduction <maximumf>, %62, %cst_56 [1] : vector<8x2x8x64xf32> to vector<8x8x64xf32>
    %cst_57 = arith.constant 0.000000e+00 : f32
    %64 = vector.broadcast %cst_57 : f32 to vector<10x17x64xf32>
    %c0_58 = arith.constant 0 : index
    %c0_59 = arith.constant 0 : index
    %c0_60 = arith.constant 0 : index
    %65 = vector.load %arg13[%c0_58, %c0_59, %c0_60] : memref<10x17x64xf32, #tpu.memory_space<vmem>>, vector<10x17x64xf32>
    tpu.vector_store %arg13[%c0_58, %c0_59, %c0_60], %64 {strides = array<i32>} : memref<10x17x64xf32, #tpu.memory_space<vmem>>, vector<10x17x64xf32>,
    %c1_61 = arith.constant 1 : index
    %c8_62 = arith.constant 8 : index
    %c0_63 = arith.constant 0 : index
    %66 = vector.load %arg13[%c1_61, %c8_62, %c0_63] : memref<10x17x64xf32, #tpu.memory_space<vmem>>, vector<8x8x64xf32>
    tpu.vector_store %arg13[%c1_61, %c8_62, %c0_63], %63 {strides = array<i32>} : memref<10x17x64xf32, #tpu.memory_space<vmem>>, vector<8x8x64xf32>,
    %cst_64 = arith.constant 0.000000e+00 : f32
    %67 = vector.broadcast %cst_64 : f32 to vector<64x128xf32>
    %c0_65 = arith.constant 0 : index
    %c7 = arith.constant 7 : index
    %c0_66 = arith.constant 0 : index
    %68 = vector.load %arg13[%c0_65, %c7, %c0_66] : memref<10x17x64xf32, #tpu.memory_space<vmem>>, vector<8x8x64xf32>
    %69 = vector.shape_cast %68 : vector<8x8x64xf32> to vector<64x64xf32>
    %70 = arith.truncf %69 : vector<64x64xf32> to vector<64x64xbf16>
    %c0_67 = arith.constant 0 : index
    %c0_68 = arith.constant 0 : index
    %71 = vector.load %arg4[%c0_67, %c0_68] : memref<576x128xbf16, #tpu.memory_space<vmem>>, vector<64x128xbf16>
    %cst_69 = arith.constant dense<0.000000e+00> : vector<64x128xf32>
    %72 = tpu.matmul %70, %71, %cst_69 {dimension_numbers = #tpu.dot_dimension_numbers<[1], [0], [0], [1], [0, 0, 1, 1], [], []>} : vector<64x64xbf16>, vector<64x128xbf16>, vector<64x128xf32> -> vector<64x128xf32>
    %73 = arith.addf %67, %72 : vector<64x128xf32>
    %c0_70 = arith.constant 0 : index
    %c8_71 = arith.constant 8 : index
    %c0_72 = arith.constant 0 : index
    %74 = vector.load %arg13[%c0_70, %c8_71, %c0_72] : memref<10x17x64xf32, #tpu.memory_space<vmem>>, vector<8x8x64xf32>
    %75 = vector.shape_cast %74 : vector<8x8x64xf32> to vector<64x64xf32>
    %76 = arith.truncf %75 : vector<64x64xf32> to vector<64x64xbf16>
    %c64 = arith.constant 64 : index
    %c0_73 = arith.constant 0 : index
    %77 = vector.load %arg4[%c64, %c0_73] : memref<576x128xbf16, #tpu.memory_space<vmem>>, vector<64x128xbf16>
    %cst_74 = arith.constant dense<0.000000e+00> : vector<64x128xf32>
    %78 = tpu.matmul %76, %77, %cst_74 {dimension_numbers = #tpu.dot_dimension_numbers<[1], [0], [0], [1], [0, 0, 1, 1], [], []>} : vector<64x64xbf16>, vector<64x128xbf16>, vector<64x128xf32> -> vector<64x128xf32>
    %79 = arith.addf %73, %78 : vector<64x128xf32>
    %c0_75 = arith.constant 0 : index
    %c9 = arith.constant 9 : index
    %c0_76 = arith.constant 0 : index
    %80 = vector.load %arg13[%c0_75, %c9, %c0_76] : memref<10x17x64xf32, #tpu.memory_space<vmem>>, vector<8x8x64xf32>
    %81 = vector.shape_cast %80 : vector<8x8x64xf32> to vector<64x64xf32>
    %82 = arith.truncf %81 : vector<64x64xf32> to vector<64x64xbf16>
    %c128 = arith.constant 128 : index
    %c0_77 = arith.constant 0 : index
    %83 = vector.load %arg4[%c128, %c0_77] : memref<576x128xbf16, #tpu.memory_space<vmem>>, vector<64x128xbf16>
    %cst_78 = arith.constant dense<0.000000e+00> : vector<64x128xf32>
    %84 = tpu.matmul %82, %83, %cst_78 {dimension_numbers = #tpu.dot_dimension_numbers<[1], [0], [0], [1], [0, 0, 1, 1], [], []>} : vector<64x64xbf16>, vector<64x128xbf16>, vector<64x128xf32> -> vector<64x128xf32>
    %85 = arith.addf %79, %84 : vector<64x128xf32>
    %c1_79 = arith.constant 1 : index
    %c7_80 = arith.constant 7 : index
    %c0_81 = arith.constant 0 : index
    %86 = vector.load %arg13[%c1_79, %c7_80, %c0_81] : memref<10x17x64xf32, #tpu.memory_space<vmem>>, vector<8x8x64xf32>
    %87 = vector.shape_cast %86 : vector<8x8x64xf32> to vector<64x64xf32>
    %88 = arith.truncf %87 : vector<64x64xf32> to vector<64x64xbf16>
    %c192 = arith.constant 192 : index
    %c0_82 = arith.constant 0 : index
    %89 = vector.load %arg4[%c192, %c0_82] : memref<576x128xbf16, #tpu.memory_space<vmem>>, vector<64x128xbf16>
    %cst_83 = arith.constant dense<0.000000e+00> : vector<64x128xf32>
    %90 = tpu.matmul %88, %89, %cst_83 {dimension_numbers = #tpu.dot_dimension_numbers<[1], [0], [0], [1], [0, 0, 1, 1], [], []>} : vector<64x64xbf16>, vector<64x128xbf16>, vector<64x128xf32> -> vector<64x128xf32>
    %91 = arith.addf %85, %90 : vector<64x128xf32>
    %c1_84 = arith.constant 1 : index
    %c8_85 = arith.constant 8 : index
    %c0_86 = arith.constant 0 : index
    %92 = vector.load %arg13[%c1_84, %c8_85, %c0_86] : memref<10x17x64xf32, #tpu.memory_space<vmem>>, vector<8x8x64xf32>
    %93 = vector.shape_cast %92 : vector<8x8x64xf32> to vector<64x64xf32>
    %94 = arith.truncf %93 : vector<64x64xf32> to vector<64x64xbf16>
    %c256 = arith.constant 256 : index
    %c0_87 = arith.constant 0 : index
    %95 = vector.load %arg4[%c256, %c0_87] : memref<576x128xbf16, #tpu.memory_space<vmem>>, vector<64x128xbf16>
    %cst_88 = arith.constant dense<0.000000e+00> : vector<64x128xf32>
    %96 = tpu.matmul %94, %95, %cst_88 {dimension_numbers = #tpu.dot_dimension_numbers<[1], [0], [0], [1], [0, 0, 1, 1], [], []>} : vector<64x64xbf16>, vector<64x128xbf16>, vector<64x128xf32> -> vector<64x128xf32>
    %97 = arith.addf %91, %96 : vector<64x128xf32>
    %c1_89 = arith.constant 1 : index
    %c9_90 = arith.constant 9 : index
    %c0_91 = arith.constant 0 : index
    %98 = vector.load %arg13[%c1_89, %c9_90, %c0_91] : memref<10x17x64xf32, #tpu.memory_space<vmem>>, vector<8x8x64xf32>
    %99 = vector.shape_cast %98 : vector<8x8x64xf32> to vector<64x64xf32>
    %100 = arith.truncf %99 : vector<64x64xf32> to vector<64x64xbf16>
    %c320 = arith.constant 320 : index
    %c0_92 = arith.constant 0 : index
    %101 = vector.load %arg4[%c320, %c0_92] : memref<576x128xbf16, #tpu.memory_space<vmem>>, vector<64x128xbf16>
    %cst_93 = arith.constant dense<0.000000e+00> : vector<64x128xf32>
    %102 = tpu.matmul %100, %101, %cst_93 {dimension_numbers = #tpu.dot_dimension_numbers<[1], [0], [0], [1], [0, 0, 1, 1], [], []>} : vector<64x64xbf16>, vector<64x128xbf16>, vector<64x128xf32> -> vector<64x128xf32>
    %103 = arith.addf %97, %102 : vector<64x128xf32>
    %c2_94 = arith.constant 2 : index
    %c7_95 = arith.constant 7 : index
    %c0_96 = arith.constant 0 : index
    %104 = vector.load %arg13[%c2_94, %c7_95, %c0_96] : memref<10x17x64xf32, #tpu.memory_space<vmem>>, vector<8x8x64xf32>
    %105 = vector.shape_cast %104 : vector<8x8x64xf32> to vector<64x64xf32>
    %106 = arith.truncf %105 : vector<64x64xf32> to vector<64x64xbf16>
    %c384 = arith.constant 384 : index
    %c0_97 = arith.constant 0 : index
    %107 = vector.load %arg4[%c384, %c0_97] : memref<576x128xbf16, #tpu.memory_space<vmem>>, vector<64x128xbf16>
    %cst_98 = arith.constant dense<0.000000e+00> : vector<64x128xf32>
    %108 = tpu.matmul %106, %107, %cst_98 {dimension_numbers = #tpu.dot_dimension_numbers<[1], [0], [0], [1], [0, 0, 1, 1], [], []>} : vector<64x64xbf16>, vector<64x128xbf16>, vector<64x128xf32> -> vector<64x128xf32>
    %109 = arith.addf %103, %108 : vector<64x128xf32>
    %c2_99 = arith.constant 2 : index
    %c8_100 = arith.constant 8 : index
    %c0_101 = arith.constant 0 : index
    %110 = vector.load %arg13[%c2_99, %c8_100, %c0_101] : memref<10x17x64xf32, #tpu.memory_space<vmem>>, vector<8x8x64xf32>
    %111 = vector.shape_cast %110 : vector<8x8x64xf32> to vector<64x64xf32>
    %112 = arith.truncf %111 : vector<64x64xf32> to vector<64x64xbf16>
    %c448 = arith.constant 448 : index
    %c0_102 = arith.constant 0 : index
    %113 = vector.load %arg4[%c448, %c0_102] : memref<576x128xbf16, #tpu.memory_space<vmem>>, vector<64x128xbf16>
    %cst_103 = arith.constant dense<0.000000e+00> : vector<64x128xf32>
    %114 = tpu.matmul %112, %113, %cst_103 {dimension_numbers = #tpu.dot_dimension_numbers<[1], [0], [0], [1], [0, 0, 1, 1], [], []>} : vector<64x64xbf16>, vector<64x128xbf16>, vector<64x128xf32> -> vector<64x128xf32>
    %115 = arith.addf %109, %114 : vector<64x128xf32>
    %c2_104 = arith.constant 2 : index
    %c9_105 = arith.constant 9 : index
    %c0_106 = arith.constant 0 : index
    %116 = vector.load %arg13[%c2_104, %c9_105, %c0_106] : memref<10x17x64xf32, #tpu.memory_space<vmem>>, vector<8x8x64xf32>
    %117 = vector.shape_cast %116 : vector<8x8x64xf32> to vector<64x64xf32>
    %118 = arith.truncf %117 : vector<64x64xf32> to vector<64x64xbf16>
    %c512 = arith.constant 512 : index
    %c0_107 = arith.constant 0 : index
    %119 = vector.load %arg4[%c512, %c0_107] : memref<576x128xbf16, #tpu.memory_space<vmem>>, vector<64x128xbf16>
    %cst_108 = arith.constant dense<0.000000e+00> : vector<64x128xf32>
    %120 = tpu.matmul %118, %119, %cst_108 {dimension_numbers = #tpu.dot_dimension_numbers<[1], [0], [0], [1], [0, 0, 1, 1], [], []>} : vector<64x64xbf16>, vector<64x128xbf16>, vector<64x128xf32> -> vector<64x128xf32>
    %121 = arith.addf %115, %120 : vector<64x128xf32>
    %c0_109 = arith.constant 0 : index
    %c0_110 = arith.constant 0 : index
    %122 = vector.load %arg5[%c0_109, %c0_110] : memref<1x128xf32, #tpu.memory_space<vmem>>, vector<1x128xf32>
    %123 = vector.broadcast %122 : vector<1x128xf32> to vector<64x128xf32>
    %124 = arith.addf %121, %123 : vector<64x128xf32>
    %cst_111 = arith.constant 0.000000e+00 : f32
    %125 = vector.broadcast %cst_111 : f32 to vector<64x128xf32>
    %126 = arith.maximumf %124, %125 : vector<64x128xf32>
    %127 = vector.shape_cast %126 : vector<64x128xf32> to vector<32x2x128xf32>
    %cst_112 = arith.constant dense<0xFF800000> : vector<32x128xf32>
    %128 = vector.multi_reduction <maximumf>, %127, %cst_112 [1] : vector<32x2x128xf32> to vector<32x128xf32>
    %129 = vector.shape_cast %128 : vector<32x128xf32> to vector<4x2x4x128xf32>
    %cst_113 = arith.constant dense<0xFF800000> : vector<4x4x128xf32>
    %130 = vector.multi_reduction <maximumf>, %129, %cst_113 [1] : vector<4x2x4x128xf32> to vector<4x4x128xf32>
    %cst_114 = arith.constant 0.000000e+00 : f32
    %131 = vector.broadcast %cst_114 : f32 to vector<1x512xf32>
    %132 = vector.extract_strided_slice %130 {offsets = [0, 0, 0], sizes = [1, 1, 128], strides = [1, 1, 1]} : vector<4x4x128xf32> to vector<1x1x128xf32>
    %133 = vector.shape_cast %132 : vector<1x1x128xf32> to vector<1x128xf32>
    %134 = arith.truncf %133 : vector<1x128xf32> to vector<1x128xbf16>
    %c0_115 = arith.constant 0 : index
    %c0_116 = arith.constant 0 : index
    %135 = vector.load %arg6[%c0_115, %c0_116] : memref<2048x512xbf16, #tpu.memory_space<vmem>>, vector<128x512xbf16>
    %cst_117 = arith.constant dense<0.000000e+00> : vector<1x512xf32>
    %136 = tpu.matmul %134, %135, %cst_117 {dimension_numbers = #tpu.dot_dimension_numbers<[1], [0], [0], [1], [0, 0, 1, 1], [], []>} : vector<1x128xbf16>, vector<128x512xbf16>, vector<1x512xf32> -> vector<1x512xf32>
    %137 = arith.addf %131, %136 : vector<1x512xf32>
    %138 = vector.extract_strided_slice %130 {offsets = [0, 1, 0], sizes = [1, 1, 128], strides = [1, 1, 1]} : vector<4x4x128xf32> to vector<1x1x128xf32>
    %139 = vector.shape_cast %138 : vector<1x1x128xf32> to vector<1x128xf32>
    %140 = arith.truncf %139 : vector<1x128xf32> to vector<1x128xbf16>
    %c128_118 = arith.constant 128 : index
    %c0_119 = arith.constant 0 : index
    %141 = vector.load %arg6[%c128_118, %c0_119] : memref<2048x512xbf16, #tpu.memory_space<vmem>>, vector<128x512xbf16>
    %cst_120 = arith.constant dense<0.000000e+00> : vector<1x512xf32>
    %142 = tpu.matmul %140, %141, %cst_120 {dimension_numbers = #tpu.dot_dimension_numbers<[1], [0], [0], [1], [0, 0, 1, 1], [], []>} : vector<1x128xbf16>, vector<128x512xbf16>, vector<1x512xf32> -> vector<1x512xf32>
    %143 = arith.addf %137, %142 : vector<1x512xf32>
    %144 = vector.extract_strided_slice %130 {offsets = [0, 2, 0], sizes = [1, 1, 128], strides = [1, 1, 1]} : vector<4x4x128xf32> to vector<1x1x128xf32>
    %145 = vector.shape_cast %144 : vector<1x1x128xf32> to vector<1x128xf32>
    %146 = arith.truncf %145 : vector<1x128xf32> to vector<1x128xbf16>
    %c256_121 = arith.constant 256 : index
    %c0_122 = arith.constant 0 : index
    %147 = vector.load %arg6[%c256_121, %c0_122] : memref<2048x512xbf16, #tpu.memory_space<vmem>>, vector<128x512xbf16>
    %cst_123 = arith.constant dense<0.000000e+00> : vector<1x512xf32>
    %148 = tpu.matmul %146, %147, %cst_123 {dimension_numbers = #tpu.dot_dimension_numbers<[1], [0], [0], [1], [0, 0, 1, 1], [], []>} : vector<1x128xbf16>, vector<128x512xbf16>, vector<1x512xf32> -> vector<1x512xf32>
    %149 = arith.addf %143, %148 : vector<1x512xf32>
    %150 = vector.extract_strided_slice %130 {offsets = [0, 3, 0], sizes = [1, 1, 128], strides = [1, 1, 1]} : vector<4x4x128xf32> to vector<1x1x128xf32>
    %151 = vector.shape_cast %150 : vector<1x1x128xf32> to vector<1x128xf32>
    %152 = arith.truncf %151 : vector<1x128xf32> to vector<1x128xbf16>
    %c384_124 = arith.constant 384 : index
    %c0_125 = arith.constant 0 : index
    %153 = vector.load %arg6[%c384_124, %c0_125] : memref<2048x512xbf16, #tpu.memory_space<vmem>>, vector<128x512xbf16>
    %cst_126 = arith.constant dense<0.000000e+00> : vector<1x512xf32>
    %154 = tpu.matmul %152, %153, %cst_126 {dimension_numbers = #tpu.dot_dimension_numbers<[1], [0], [0], [1], [0, 0, 1, 1], [], []>} : vector<1x128xbf16>, vector<128x512xbf16>, vector<1x512xf32> -> vector<1x512xf32>
    %155 = arith.addf %149, %154 : vector<1x512xf32>
    %156 = vector.extract_strided_slice %130 {offsets = [1, 0, 0], sizes = [1, 1, 128], strides = [1, 1, 1]} : vector<4x4x128xf32> to vector<1x1x128xf32>
    %157 = vector.shape_cast %156 : vector<1x1x128xf32> to vector<1x128xf32>
    %158 = arith.truncf %157 : vector<1x128xf32> to vector<1x128xbf16>
    %c512_127 = arith.constant 512 : index
    %c0_128 = arith.constant 0 : index
    %159 = vector.load %arg6[%c512_127, %c0_128] : memref<2048x512xbf16, #tpu.memory_space<vmem>>, vector<128x512xbf16>
    %cst_129 = arith.constant dense<0.000000e+00> : vector<1x512xf32>
    %160 = tpu.matmul %158, %159, %cst_129 {dimension_numbers = #tpu.dot_dimension_numbers<[1], [0], [0], [1], [0, 0, 1, 1], [], []>} : vector<1x128xbf16>, vector<128x512xbf16>, vector<1x512xf32> -> vector<1x512xf32>
    %161 = arith.addf %155, %160 : vector<1x512xf32>
    %162 = vector.extract_strided_slice %130 {offsets = [1, 1, 0], sizes = [1, 1, 128], strides = [1, 1, 1]} : vector<4x4x128xf32> to vector<1x1x128xf32>
    %163 = vector.shape_cast %162 : vector<1x1x128xf32> to vector<1x128xf32>
    %164 = arith.truncf %163 : vector<1x128xf32> to vector<1x128xbf16>
    %c640 = arith.constant 640 : index
    %c0_130 = arith.constant 0 : index
    %165 = vector.load %arg6[%c640, %c0_130] : memref<2048x512xbf16, #tpu.memory_space<vmem>>, vector<128x512xbf16>
    %cst_131 = arith.constant dense<0.000000e+00> : vector<1x512xf32>
    %166 = tpu.matmul %164, %165, %cst_131 {dimension_numbers = #tpu.dot_dimension_numbers<[1], [0], [0], [1], [0, 0, 1, 1], [], []>} : vector<1x128xbf16>, vector<128x512xbf16>, vector<1x512xf32> -> vector<1x512xf32>
    %167 = arith.addf %161, %166 : vector<1x512xf32>
    %168 = vector.extract_strided_slice %130 {offsets = [1, 2, 0], sizes = [1, 1, 128], strides = [1, 1, 1]} : vector<4x4x128xf32> to vector<1x1x128xf32>
    %169 = vector.shape_cast %168 : vector<1x1x128xf32> to vector<1x128xf32>
    %170 = arith.truncf %169 : vector<1x128xf32> to vector<1x128xbf16>
    %c768 = arith.constant 768 : index
    %c0_132 = arith.constant 0 : index
    %171 = vector.load %arg6[%c768, %c0_132] : memref<2048x512xbf16, #tpu.memory_space<vmem>>, vector<128x512xbf16>
    %cst_133 = arith.constant dense<0.000000e+00> : vector<1x512xf32>
    %172 = tpu.matmul %170, %171, %cst_133 {dimension_numbers = #tpu.dot_dimension_numbers<[1], [0], [0], [1], [0, 0, 1, 1], [], []>} : vector<1x128xbf16>, vector<128x512xbf16>, vector<1x512xf32> -> vector<1x512xf32>
    %173 = arith.addf %167, %172 : vector<1x512xf32>
    %174 = vector.extract_strided_slice %130 {offsets = [1, 3, 0], sizes = [1, 1, 128], strides = [1, 1, 1]} : vector<4x4x128xf32> to vector<1x1x128xf32>
    %175 = vector.shape_cast %174 : vector<1x1x128xf32> to vector<1x128xf32>
    %176 = arith.truncf %175 : vector<1x128xf32> to vector<1x128xbf16>
    %c896 = arith.constant 896 : index
    %c0_134 = arith.constant 0 : index
    %177 = vector.load %arg6[%c896, %c0_134] : memref<2048x512xbf16, #tpu.memory_space<vmem>>, vector<128x512xbf16>
    %cst_135 = arith.constant dense<0.000000e+00> : vector<1x512xf32>
    %178 = tpu.matmul %176, %177, %cst_135 {dimension_numbers = #tpu.dot_dimension_numbers<[1], [0], [0], [1], [0, 0, 1, 1], [], []>} : vector<1x128xbf16>, vector<128x512xbf16>, vector<1x512xf32> -> vector<1x512xf32>
    %179 = arith.addf %173, %178 : vector<1x512xf32>
    %180 = vector.extract_strided_slice %130 {offsets = [2, 0, 0], sizes = [1, 1, 128], strides = [1, 1, 1]} : vector<4x4x128xf32> to vector<1x1x128xf32>
    %181 = vector.shape_cast %180 : vector<1x1x128xf32> to vector<1x128xf32>
    %182 = arith.truncf %181 : vector<1x128xf32> to vector<1x128xbf16>
    %c1024 = arith.constant 1024 : index
    %c0_136 = arith.constant 0 : index
    %183 = vector.load %arg6[%c1024, %c0_136] : memref<2048x512xbf16, #tpu.memory_space<vmem>>, vector<128x512xbf16>
    %cst_137 = arith.constant dense<0.000000e+00> : vector<1x512xf32>
    %184 = tpu.matmul %182, %183, %cst_137 {dimension_numbers = #tpu.dot_dimension_numbers<[1], [0], [0], [1], [0, 0, 1, 1], [], []>} : vector<1x128xbf16>, vector<128x512xbf16>, vector<1x512xf32> -> vector<1x512xf32>
    %185 = arith.addf %179, %184 : vector<1x512xf32>
    %186 = vector.extract_strided_slice %130 {offsets = [2, 1, 0], sizes = [1, 1, 128], strides = [1, 1, 1]} : vector<4x4x128xf32> to vector<1x1x128xf32>
    %187 = vector.shape_cast %186 : vector<1x1x128xf32> to vector<1x128xf32>
    %188 = arith.truncf %187 : vector<1x128xf32> to vector<1x128xbf16>
    %c1152 = arith.constant 1152 : index
    %c0_138 = arith.constant 0 : index
    %189 = vector.load %arg6[%c1152, %c0_138] : memref<2048x512xbf16, #tpu.memory_space<vmem>>, vector<128x512xbf16>
    %cst_139 = arith.constant dense<0.000000e+00> : vector<1x512xf32>
    %190 = tpu.matmul %188, %189, %cst_139 {dimension_numbers = #tpu.dot_dimension_numbers<[1], [0], [0], [1], [0, 0, 1, 1], [], []>} : vector<1x128xbf16>, vector<128x512xbf16>, vector<1x512xf32> -> vector<1x512xf32>
    %191 = arith.addf %185, %190 : vector<1x512xf32>
    %192 = vector.extract_strided_slice %130 {offsets = [2, 2, 0], sizes = [1, 1, 128], strides = [1, 1, 1]} : vector<4x4x128xf32> to vector<1x1x128xf32>
    %193 = vector.shape_cast %192 : vector<1x1x128xf32> to vector<1x128xf32>
    %194 = arith.truncf %193 : vector<1x128xf32> to vector<1x128xbf16>
    %c1280 = arith.constant 1280 : index
    %c0_140 = arith.constant 0 : index
    %195 = vector.load %arg6[%c1280, %c0_140] : memref<2048x512xbf16, #tpu.memory_space<vmem>>, vector<128x512xbf16>
    %cst_141 = arith.constant dense<0.000000e+00> : vector<1x512xf32>
    %196 = tpu.matmul %194, %195, %cst_141 {dimension_numbers = #tpu.dot_dimension_numbers<[1], [0], [0], [1], [0, 0, 1, 1], [], []>} : vector<1x128xbf16>, vector<128x512xbf16>, vector<1x512xf32> -> vector<1x512xf32>
    %197 = arith.addf %191, %196 : vector<1x512xf32>
    %198 = vector.extract_strided_slice %130 {offsets = [2, 3, 0], sizes = [1, 1, 128], strides = [1, 1, 1]} : vector<4x4x128xf32> to vector<1x1x128xf32>
    %199 = vector.shape_cast %198 : vector<1x1x128xf32> to vector<1x128xf32>
    %200 = arith.truncf %199 : vector<1x128xf32> to vector<1x128xbf16>
    %c1408 = arith.constant 1408 : index
    %c0_142 = arith.constant 0 : index
    %201 = vector.load %arg6[%c1408, %c0_142] : memref<2048x512xbf16, #tpu.memory_space<vmem>>, vector<128x512xbf16>
    %cst_143 = arith.constant dense<0.000000e+00> : vector<1x512xf32>
    %202 = tpu.matmul %200, %201, %cst_143 {dimension_numbers = #tpu.dot_dimension_numbers<[1], [0], [0], [1], [0, 0, 1, 1], [], []>} : vector<1x128xbf16>, vector<128x512xbf16>, vector<1x512xf32> -> vector<1x512xf32>
    %203 = arith.addf %197, %202 : vector<1x512xf32>
    %204 = vector.extract_strided_slice %130 {offsets = [3, 0, 0], sizes = [1, 1, 128], strides = [1, 1, 1]} : vector<4x4x128xf32> to vector<1x1x128xf32>
    %205 = vector.shape_cast %204 : vector<1x1x128xf32> to vector<1x128xf32>
    %206 = arith.truncf %205 : vector<1x128xf32> to vector<1x128xbf16>
    %c1536 = arith.constant 1536 : index
    %c0_144 = arith.constant 0 : index
    %207 = vector.load %arg6[%c1536, %c0_144] : memref<2048x512xbf16, #tpu.memory_space<vmem>>, vector<128x512xbf16>
    %cst_145 = arith.constant dense<0.000000e+00> : vector<1x512xf32>
    %208 = tpu.matmul %206, %207, %cst_145 {dimension_numbers = #tpu.dot_dimension_numbers<[1], [0], [0], [1], [0, 0, 1, 1], [], []>} : vector<1x128xbf16>, vector<128x512xbf16>, vector<1x512xf32> -> vector<1x512xf32>
    %209 = arith.addf %203, %208 : vector<1x512xf32>
    %210 = vector.extract_strided_slice %130 {offsets = [3, 1, 0], sizes = [1, 1, 128], strides = [1, 1, 1]} : vector<4x4x128xf32> to vector<1x1x128xf32>
    %211 = vector.shape_cast %210 : vector<1x1x128xf32> to vector<1x128xf32>
    %212 = arith.truncf %211 : vector<1x128xf32> to vector<1x128xbf16>
    %c1664 = arith.constant 1664 : index
    %c0_146 = arith.constant 0 : index
    %213 = vector.load %arg6[%c1664, %c0_146] : memref<2048x512xbf16, #tpu.memory_space<vmem>>, vector<128x512xbf16>
    %cst_147 = arith.constant dense<0.000000e+00> : vector<1x512xf32>
    %214 = tpu.matmul %212, %213, %cst_147 {dimension_numbers = #tpu.dot_dimension_numbers<[1], [0], [0], [1], [0, 0, 1, 1], [], []>} : vector<1x128xbf16>, vector<128x512xbf16>, vector<1x512xf32> -> vector<1x512xf32>
    %215 = arith.addf %209, %214 : vector<1x512xf32>
    %216 = vector.extract_strided_slice %130 {offsets = [3, 2, 0], sizes = [1, 1, 128], strides = [1, 1, 1]} : vector<4x4x128xf32> to vector<1x1x128xf32>
    %217 = vector.shape_cast %216 : vector<1x1x128xf32> to vector<1x128xf32>
    %218 = arith.truncf %217 : vector<1x128xf32> to vector<1x128xbf16>
    %c1792 = arith.constant 1792 : index
    %c0_148 = arith.constant 0 : index
    %219 = vector.load %arg6[%c1792, %c0_148] : memref<2048x512xbf16, #tpu.memory_space<vmem>>, vector<128x512xbf16>
    %cst_149 = arith.constant dense<0.000000e+00> : vector<1x512xf32>
    %220 = tpu.matmul %218, %219, %cst_149 {dimension_numbers = #tpu.dot_dimension_numbers<[1], [0], [0], [1], [0, 0, 1, 1], [], []>} : vector<1x128xbf16>, vector<128x512xbf16>, vector<1x512xf32> -> vector<1x512xf32>
    %221 = arith.addf %215, %220 : vector<1x512xf32>
    %222 = vector.extract_strided_slice %130 {offsets = [3, 3, 0], sizes = [1, 1, 128], strides = [1, 1, 1]} : vector<4x4x128xf32> to vector<1x1x128xf32>
    %223 = vector.shape_cast %222 : vector<1x1x128xf32> to vector<1x128xf32>
    %224 = arith.truncf %223 : vector<1x128xf32> to vector<1x128xbf16>
    %c1920 = arith.constant 1920 : index
    %c0_150 = arith.constant 0 : index
    %225 = vector.load %arg6[%c1920, %c0_150] : memref<2048x512xbf16, #tpu.memory_space<vmem>>, vector<128x512xbf16>
    %cst_151 = arith.constant dense<0.000000e+00> : vector<1x512xf32>
    %226 = tpu.matmul %224, %225, %cst_151 {dimension_numbers = #tpu.dot_dimension_numbers<[1], [0], [0], [1], [0, 0, 1, 1], [], []>} : vector<1x128xbf16>, vector<128x512xbf16>, vector<1x512xf32> -> vector<1x512xf32>
    %227 = arith.addf %221, %226 : vector<1x512xf32>
    %c0_152 = arith.constant 0 : index
    %c0_153 = arith.constant 0 : index
    %228 = vector.load %arg7[%c0_152, %c0_153] : memref<1x512xf32, #tpu.memory_space<vmem>>, vector<1x512xf32>
    %229 = arith.addf %227, %228 : vector<1x512xf32>
    %cst_154 = arith.constant 0.000000e+00 : f32
    %230 = vector.broadcast %cst_154 : f32 to vector<1x512xf32>
    %231 = arith.maximumf %229, %230 : vector<1x512xf32>
    %232 = arith.truncf %231 : vector<1x512xf32> to vector<1x512xbf16>
    %c0_155 = arith.constant 0 : index
    %c0_156 = arith.constant 0 : index
    %233 = vector.load %arg8[%c0_155, %c0_156] : memref<512x256xbf16, #tpu.memory_space<vmem>>, vector<512x256xbf16>
    %cst_157 = arith.constant dense<0.000000e+00> : vector<1x256xf32>
    %234 = tpu.matmul %232, %233, %cst_157 {dimension_numbers = #tpu.dot_dimension_numbers<[1], [0], [0], [1], [0, 0, 1, 1], [], []>} : vector<1x512xbf16>, vector<512x256xbf16>, vector<1x256xf32> -> vector<1x256xf32>
    %c0_158 = arith.constant 0 : index
    %c0_159 = arith.constant 0 : index
    %235 = vector.load %arg9[%c0_158, %c0_159] : memref<1x256xf32, #tpu.memory_space<vmem>>, vector<1x256xf32>
    %236 = arith.addf %234, %235 : vector<1x256xf32>
    %cst_160 = arith.constant 0.000000e+00 : f32
    %237 = vector.broadcast %cst_160 : f32 to vector<1x256xf32>
    %238 = arith.maximumf %236, %237 : vector<1x256xf32>
    %239 = arith.truncf %238 : vector<1x256xf32> to vector<1x256xbf16>
    %c0_161 = arith.constant 0 : index
    %c0_162 = arith.constant 0 : index
    %240 = vector.load %arg10[%c0_161, %c0_162] : memref<256x128xbf16, #tpu.memory_space<vmem>>, vector<256x128xbf16>
    %cst_163 = arith.constant dense<0.000000e+00> : vector<1x128xf32>
    %241 = tpu.matmul %239, %240, %cst_163 {dimension_numbers = #tpu.dot_dimension_numbers<[1], [0], [0], [1], [0, 0, 1, 1], [], []>} : vector<1x256xbf16>, vector<256x128xbf16>, vector<1x128xf32> -> vector<1x128xf32>
    %c0_164 = arith.constant 0 : index
    %c0_165 = arith.constant 0 : index
    %242 = vector.load %arg11[%c0_164, %c0_165] : memref<1x128xf32, #tpu.memory_space<vmem>>, vector<1x128xf32>
    %243 = arith.addf %241, %242 : vector<1x128xf32>
    %c0_166 = arith.constant 0 : index
    %c0_167 = arith.constant 0 : index
    %c0_168 = arith.constant 0 : index
    %244 = vector.load %arg12[%c0_166, %c0_167, %c0_168] : memref<1x1x128xf32, #tpu.memory_space<vmem>>, vector<1x1x128xf32>
    %245 = vector.shape_cast %244 : vector<1x1x128xf32> to vector<1x128xf32>
    %246 = vector.shape_cast %243 : vector<1x128xf32> to vector<1x1x128xf32>
    tpu.vector_store %arg12[%c0_166, %c0_167, %c0_168], %246 {strides = array<i32>} : memref<1x1x128xf32, #tpu.memory_space<vmem>>, vector<1x1x128xf32>,
    return
  }
  func.func @transform_0(%arg0: i32) -> (i32, i32, i32, i32) {
    %c0_i32 = arith.constant 0 : i32
    %c0_i32_0 = arith.constant 0 : i32
    %c0_i32_1 = arith.constant 0 : i32
    %c0_i32_2 = arith.constant 0 : i32
    return %arg0, %c0_i32, %c0_i32_0, %c0_i32_1 : i32, i32, i32, i32
  }
  func.func @transform_1(%arg0: i32) -> (i32, i32) {
    %c0_i32 = arith.constant 0 : i32
    %c0_i32_0 = arith.constant 0 : i32
    %c0_i32_1 = arith.constant 0 : i32
    return %c0_i32, %c0_i32_0 : i32, i32
  }
  func.func @transform_2(%arg0: i32) -> (i32, i32) {
    %c0_i32 = arith.constant 0 : i32
    %c0_i32_0 = arith.constant 0 : i32
    %c0_i32_1 = arith.constant 0 : i32
    return %c0_i32, %c0_i32_0 : i32, i32
  }
  func.func @transform_3(%arg0: i32) -> (i32, i32) {
    %c0_i32 = arith.constant 0 : i32
    %c0_i32_0 = arith.constant 0 : i32
    %c0_i32_1 = arith.constant 0 : i32
    return %c0_i32, %c0_i32_0 : i32, i32
  }
  func.func @transform_4(%arg0: i32) -> (i32, i32) {
    %c0_i32 = arith.constant 0 : i32
    %c0_i32_0 = arith.constant 0 : i32
    %c0_i32_1 = arith.constant 0 : i32
    return %c0_i32, %c0_i32_0 : i32, i32
  }
  func.func @transform_5(%arg0: i32) -> (i32, i32) {
    %c0_i32 = arith.constant 0 : i32
    %c0_i32_0 = arith.constant 0 : i32
    %c0_i32_1 = arith.constant 0 : i32
    return %c0_i32, %c0_i32_0 : i32, i32
  }
  func.func @transform_6(%arg0: i32) -> (i32, i32) {
    %c0_i32 = arith.constant 0 : i32
    %c0_i32_0 = arith.constant 0 : i32
    %c0_i32_1 = arith.constant 0 : i32
    return %c0_i32, %c0_i32_0 : i32, i32
  }
  func.func @transform_7(%arg0: i32) -> (i32, i32) {
    %c0_i32 = arith.constant 0 : i32
    %c0_i32_0 = arith.constant 0 : i32
    %c0_i32_1 = arith.constant 0 : i32
    return %c0_i32, %c0_i32_0 : i32, i32
  }
  func.func @transform_8(%arg0: i32) -> (i32, i32) {
    %c0_i32 = arith.constant 0 : i32
    %c0_i32_0 = arith.constant 0 : i32
    %c0_i32_1 = arith.constant 0 : i32
    return %c0_i32, %c0_i32_0 : i32, i32
  }
  func.func @transform_9(%arg0: i32) -> (i32, i32) {
    %c0_i32 = arith.constant 0 : i32
    %c0_i32_0 = arith.constant 0 : i32
    %c0_i32_1 = arith.constant 0 : i32
    return %c0_i32, %c0_i32_0 : i32, i32
  }
  func.func @transform_10(%arg0: i32) -> (i32, i32) {
    %c0_i32 = arith.constant 0 : i32
    %c0_i32_0 = arith.constant 0 : i32
    %c0_i32_1 = arith.constant 0 : i32
    return %c0_i32, %c0_i32_0 : i32, i32
  }
  func.func @transform_11(%arg0: i32) -> (i32, i32, i32) {
    %c0_i32 = arith.constant 0 : i32
    %c0_i32_0 = arith.constant 0 : i32
    %c0_i32_1 = arith.constant 0 : i32
    return %arg0, %c0_i32, %c0_i32_0 : i32, i32, i32
  }
}

</mosaic_0001>

<bundles_post_ra>
// kernel: actor_critic_forward.1
= control target key start
LH: loop header
LB: loop body
LE: loop exit
PB: predicated region body
PF: predicated region fallthrough
CT: control target
= control target key end

     0   :  { %s14519_s17 = smov 0   ;;  %s18820_s0 = inlined_call_operand.vmem [shape: f32[2,18,18,4], index: 0, kind: input, shape index: {}]   ;;  %s18821_s1 = inlined_call_operand.vmem [shape: bf16[36,64], index: 1, kind: input, shape index: {}]   ;;  %s18822_s2 = inlined_call_operand.vmem [shape: f32[1,64], index: 2, kind: input, shape index: {}]   ;;  %s18823_s3 = inlined_call_operand.vmem [shape: bf16[576,128], index: 3, kind: input, shape index: {}]   ;;  %s18824_s4 = inlined_call_operand.vmem [shape: f32[1,128], index: 4, kind: input, shape index: {}]   ;;  %s18825_s5 = inlined_call_operand.vmem [shape: bf16[2048,512], index: 5, kind: input, shape index: {}]   ;;  %s18826_s6 = inlined_call_operand.vmem [shape: f32[1,512], index: 6, kind: input, shape index: {}]   ;;  %s18827_s7 = inlined_call_operand.vmem [shape: bf16[512,256], index: 7, kind: input, shape index: {}]   ;;  %s18828_s8 = inlined_call_operand.vmem [shape: f32[1,256], index: 8, kind: input, shape index: {}]   ;;  %s18829_s9 = inlined_call_operand.vmem [shape: bf16[256,128], index: 9, kind: input, shape index: {}]   ;;  %s18830_s10 = inlined_call_operand.vmem [shape: f32[1,128], index: 10, kind: input, shape index: {}]   ;;  %s18831_s11 = inlined_call_operand.vmem [shape: f32[2,1,128], index: 11, kind: output, shape index: {}]  }
   0x1 LB: > { %s11791_s18 = sadd.s32 4294967295, %s14454_s17   ;;  %p11795_p0 = scmp.ge.s32.totalorder %s14454_s17, 1  ;;  %s14454_s17 = sphi %s14519_s17, %s21_s17  }
   0x2   : > { %p337_p1 = scmp.lt.s32.totalorder %s14454_s17, 3 }
   0x4   : > { %p338_p2 = pnand %p11795_p0, %p337_p1 }
   0x6   : > { %341 = sbr.rel (%p338_p2) target bundleno = 2242 (0x8c2), region = 64 }
   0xb   : > { %v13526_v0 = vld [vmem:[%s18821_s1] ss:$0 sps:$4 sm:$0xcc]   ;;  %vm535_vm0 = vcmask 1041408   ;;  %p375_p3 = scmp.lt.s32.totalorder %s11791_s18, 1  ;;  %vm486_vm1 = vcmask 31744  }
   0xc   : > { %v432_v1 = vld [vmem:[%s18821_s1] sm:$0x3]  ;;  %v485_v2 = vrot.slane %v13526_v0, 2  ;;  %v13527_v4 = vld [vmem:[%s18821_s1 + $0x4] ss:$0 sps:$4 sm:$0xcc]  }
   0xd   : > { %v749_v3 = vsel %vm535_vm0, %v432_v1, 0  ;;  %13506 = vmatprep.subr.msk.bf16.mxu1 %vm535_vm0, %v432_v1  ;;  %s18939_s18 = smov (!%p375_p3, %s11791_s18), 1  ;;  %v1258_v6 = vrot.slane %v13527_v4, 2  ;;  %v14570_v21 = vld [vmem:[%s18821_s1 + $0x4] sm:$0x3]  ;;  %vm4649_vm2 = vcmask 523264  }
   0xe   : > { %13503 = vmatpush3.bf16.msra.mxu1 %v749_v3  ;;  %13504 = vmatprep.subr.msk.bf16.mxu0 %vm535_vm0, %v485_v2  ;;  %v537_v5 = vsel %vm535_vm0, %v485_v2, 0  ;;  %s13514_s25 = smul.u32 432, %s18939_s18  ;;  %vm3752_vm3 = vcmask 517120   ;;  %vm4937_vm4 = vcmask 1041409   ;;  %vm4939_vm5 = vcmask 1042434   ;;  %s382_s21 = scalar_lea.vmem %s18831_s11, %s18939_s18 }
   0xf   : > { %13053 = vmatpush3.bf16.msra.mxu0 %v537_v5  ;;  %13508 = vmatprep.subr.msk.bf16.mxu1 %vm535_vm0, %v1258_v6  ;;  %v1308_v27 = vsel %vm535_vm0, %v1258_v6, 0  ;;  %vm4941_vm6 = vcmask 1043459   ;;  %vm4943_vm7 = vcmask 1044484   ;;  %vm4945_vm8 = vcmask 1045509  }
  0x10   : > { %13505 = vmatprep.subr.msk.bf16.mxu0 %vm535_vm0, %v432_v1  ;;  %s14547_s28 = scalar_lea.vmem %s18820_s0, %s13514_s25  ;;  %vm4947_vm9 = vcmask 1046534   ;;  %vm4949_vm10 = vcmask 1047559   ;;  %vm4844_vm11 = vcmask 516096  }
  0x11   : > { %v433_v7 = vld [vmem:[%s14547_s28 + $0x1] sm:$0xff]  ;;  %v434_v8 = vld [vmem:[%s14547_s28 + $0x9] sm:$0xff]  ;;  %v435_v9 = vld [vmem:[%s14547_s28 + $0x19] sm:$0xff] }
  0x12   : > { %v465_v10 = vpack.c.bf16 %v434_v8, %v433_v7  ;;  %v436_v11 = vld [vmem:[%s14547_s28 + $0x21] sm:$0xff]  ;;  %v437_v12 = vld [vmem:[%s14547_s28 + $0x31] sm:$0xff]  ;;  %v438_v13 = vld [vmem:[%s14547_s28 + $0x39] sm:$0xff] }
  0x13   : > { %v14556_v14 = vpack.c.bf16 %v436_v11, %v435_v9  ;;  %v14558_v15 = vpack.c.bf16 %v438_v13, %v437_v12  ;;  %v388_v16 = vld [vmem:[%s14547_s28 + $0x30] sm:$0xff]  ;;  %v389_v17 = vld [vmem:[%s14547_s28 + $0x38] sm:$0xff]  ;;  %v390_v19 = vld [vmem:[%s14547_s28 + $0x48] sm:$0xff] }
  0x14   : > { %13054 = vmatprep.mubr.msk.bf16.mxu0 %vm486_vm1, %v465_v10  ;;  %v14563_v18 = vpack.c.bf16 %v389_v17, %v388_v16  ;;  %v391_v20 = vld [vmem:[%s14547_s28 + $0x50] sm:$0xff]  ;;  %v392_v23 = vld [vmem:[%s14547_s28 + $0x60] sm:$0xff]  ;;  %v393_v26 = vld [vmem:[%s14547_s28 + $0x68] sm:$0xff] }
  0x15   : > { %13055 = vmatmul.mubr.msk.bf16.vlgmr.msra.gmra.mxu0 %vm486_vm1, %v14556_v14  ;;  %v14574_v22 = vpack.c.bf16 %v391_v20, %v390_v19  ;;  %v439_v24 = vld [vmem:[%s14547_s28 + $0x49] sm:$0xff]  ;;  %v440_v25 = vld [vmem:[%s14547_s28 + $0x51] sm:$0xff]  ;;  %v441_v28 = vld [vmem:[%s14547_s28 + $0x61] sm:$0xff]  ;;  %v14587_v30 = vpack.c.bf16 %v393_v26, %v392_v23 }
  0x16   : > { %13087 = vmatpush3.bf16.msra.mxu0 %v749_v3  ;;  %13058 = vmatprep.mubr.msk.bf16.mxu0 %vm486_vm1, %v14558_v15  ;;  %v442_v29 = vld [vmem:[%s14547_s28 + $0x69] sm:$0xff]  ;;  %v14593_v31 = vpack.c.bf16 %v440_v25, %v439_v24  ;;  %v394_v32 = vld [vmem:[%s14547_s28 + $0x78] sm:$0xff]  ;;  %v395_v33 = vld [vmem:[%s14547_s28 + $0x80] sm:$0xff] }
  0x17   : > { %13092 = vmatprep.mubr.msk.bf16.mxu1 %vm486_vm1, %v14563_v18  ;;  %13507 = vmatprep.subr.msk.bf16.mxu0 %vm535_vm0, %v14570_v21  ;;  %v14599_v34 = vpack.c.bf16 %v442_v29, %v441_v28  ;;  %v396_v35 = vld [vmem:[%s14547_s28 + $0x90] sm:$0xff]  ;;  %v397_v36 = vld [vmem:[%s14547_s28 + $0x98] sm:$0xff]  ;;  %v14603_v37 = vpack.c.bf16 %v395_v33, %v394_v32  ;;  %v444_v40 = vld [vmem:[%s14547_s28 + $0x81] sm:$0xff] }
  0x18   : > { %13093 = vmatmul.mubr.msk.bf16.vlgmr.msra.gmra.mxu1 %vm486_vm1, %v14574_v22  ;;  %v14607_v38 = vpack.c.bf16 %v397_v36, %v396_v35  ;;  %v443_v39 = vld [vmem:[%s14547_s28 + $0x79] sm:$0xff]  ;;  %v445_v41 = vld [vmem:[%s14547_s28 + $0x91] sm:$0xff]  ;;  %v398_v44 = vld [vmem:[%s14547_s28 + $0xa8] sm:$0xff] }
  0x19   : > { %13096 = vmatprep.mubr.msk.bf16.mxu1 %vm486_vm1, %v14587_v30  ;;  %13155 = vmatpush3.bf16.msra.mxu1 %v1308_v27  ;;  %v446_v42 = vld [vmem:[%s14547_s28 + $0x99] sm:$0xff]  ;;  %v14617_v43 = vpack.c.bf16 %v444_v40, %v443_v39  ;;  %v399_v45 = vld [vmem:[%s14547_s28 + $0xb0] sm:$0xff]  ;;  %v401_v48 = vld [vmem:[%s14547_s28 + $0xc8] sm:$0xff] }
  0x1a   : > { %v14623_v46 = vpack.c.bf16 %v446_v42, %v445_v41  ;;  %v400_v47 = vld [vmem:[%s14547_s28 + $0xc0] sm:$0xff]  ;;  %v14627_v49 = vpack.c.bf16 %v399_v45, %v398_v44  ;;  %v447_v51 = vld [vmem:[%s14547_s28 + $0xa9] sm:$0xff]  ;;  %v448_v52 = vld [vmem:[%s14547_s28 + $0xb1] sm:$0xff] }
  0x1b   : > { %v14631_v50 = vpack.c.bf16 %v401_v48, %v400_v47  ;;  %v449_v53 = vld [vmem:[%s14547_s28 + $0xc1] sm:$0xff]  ;;  %v450_v54 = vld [vmem:[%s14547_s28 + $0xc9] sm:$0xff]  ;;  %v14641_v55 = vpack.c.bf16 %v448_v52, %v447_v51  ;;  %v402_v56 = vld [vmem:[%s14547_s28 + $0xd8] sm:$0xff] }
  0x1c   : > { %v403_v57 = vld [vmem:[%s14547_s28 + $0xe0] sm:$0xff]  ;;  %v14647_v58 = vpack.c.bf16 %v450_v54, %v449_v53  ;;  %v404_v59 = vld [vmem:[%s14547_s28 + $0xf0] sm:$0xff]  ;;  %v405_v60 = vld [vmem:[%s14547_s28 + $0xf8] sm:$0xff] }
  0x1d   : > { %13059 = vmatmul.mubr.msk.bf16.gmra.mxu0 %vm486_vm1, %v14593_v31  ;;  %v14651_v61 = vpack.c.bf16 %v403_v57, %v402_v56  ;;  %v14655_v62 = vpack.c.bf16 %v405_v60, %v404_v59  ;;  %v451_v63 = vld [vmem:[%s14547_s28 + $0xd9] sm:$0xff]  ;;  %v452_v0 = vld [vmem:[%s14547_s28 + $0xe1] sm:$0xff]  ;;  %v453_v1 = vld [vmem:[%s14547_s28 + $0xf1] sm:$0xff] }
  0x1e   : > { %13062 = vmatprep.mubr.msk.bf16.mxu0 %vm486_vm1, %v14599_v34  ;;  %v454_v2 = vld [vmem:[%s14547_s28 + $0xf9] sm:$0xff]  ;;  %v406_v3 = vld [vmem:[%s14547_s28 + $0x108] sm:$0xff]  ;;  %v14666_v4 = vpack.c.bf16 %v452_v0, %v451_v63  ;;  %v407_v5 = vld [vmem:[%s14547_s28 + $0x110] sm:$0xff] }
  0x1f   : > { %v408_v6 = vld [vmem:[%s14547_s28 + $0x120] sm:$0xff]  ;;  %v13528_v7 = vld [vmem:[%s18821_s1 + $0x8] ss:$0 sps:$4 sm:$0xcc]   ;;  %v14675_v8 = vpack.c.bf16 %v454_v2, %v453_v1  ;;  %v455_v11 = vld [vmem:[%s14547_s28 + $0x109] sm:$0xff]  ;;  %v14680_v13 = vpack.c.bf16 %v407_v5, %v406_v3  ;;  %v1010_v2 = vsel %vm535_vm0, %v14570_v21, 0 }
  0x20   : > { %13097 = vmatmul.mubr.msk.bf16.gmra.mxu1 %vm486_vm1, %v14603_v37  ;;  %v409_v9 = vld [vmem:[%s14547_s28 + $0x128] sm:$0xff]  ;;  %v1848_v10 = vrot.slane %v13528_v7, 2  ;;  %v456_v12 = vld [vmem:[%s14547_s28 + $0x111] sm:$0xff]  ;;  %v411_v23 = vld [vmem:[%s14547_s28 + $0x140] sm:$0xff] }
  0x21   : > { %13100 = vmatprep.mubr.msk.bf16.mxu1 %vm486_vm1, %v14607_v38  ;;  %v457_v16 = vld [vmem:[%s14547_s28 + $0x121] sm:$0xff]  ;;  %v458_v17 = vld [vmem:[%s14547_s28 + $0x129] sm:$0xff]  ;;  %v14686_v19 = vpack.c.bf16 %v409_v9, %v408_v6  ;;  %v410_v20 = vld [vmem:[%s14547_s28 + $0x138] sm:$0xff]  ;;  %v14697_v26 = vpack.c.bf16 %v456_v12, %v455_v11 }
  0x22   : > { %13510 = vmatprep.subr.msk.bf16.mxu1 %vm535_vm0, %v1848_v10  ;;  %v412_v24 = vld [vmem:[%s14547_s28 + $0x150] sm:$0xff]  ;;  %v413_v25 = vld [vmem:[%s14547_s28 + $0x158] sm:$0xff]  ;;  %v14701_v27 = vpack.c.bf16 %v458_v17, %v457_v16  ;;  %v460_v29 = vld [vmem:[%s14547_s28 + $0x141] sm:$0xff]  ;;  %v14705_v32 = vpack.c.bf16 %v411_v23, %v410_v20  ;;  %v1898_v63 = vsel %vm535_vm0, %v1848_v10, 0 }
  0x23   : > { %v459_v28 = vld [vmem:[%s14547_s28 + $0x139] sm:$0xff]  ;;  %v461_v33 = vld [vmem:[%s14547_s28 + $0x151] sm:$0xff]  ;;  %v14711_v36 = vpack.c.bf16 %v413_v25, %v412_v24  ;;  %v414_v39 = vld [vmem:[%s14547_s28 + $0x168] sm:$0xff] }
  0x24   : > { %v462_v35 = vld [vmem:[%s14547_s28 + $0x159] sm:$0xff]  ;;  %v415_v40 = vld [vmem:[%s14547_s28 + $0x170] sm:$0xff]  ;;  %v14719_v41 = vpack.c.bf16 %v460_v29, %v459_v28  ;;  %v385_v53 = vld [vmem:[%s14547_s28 + $0x8] sm:$0xff] }
  0x25   : > { %13063 = vmatmul.mubr.msk.bf16.gmra.mxu0 %vm486_vm1, %v14617_v43  ;;  %v14723_v42 = vpack.c.bf16 %v462_v35, %v461_v33  ;;  %v386_v44 = vld [vmem:[%s14547_s28 + $0x18] sm:$0xff]  ;;  %v387_v45 = vld [vmem:[%s14547_s28 + $0x20] sm:$0xff]  ;;  %v463_v47 = vld [vmem:[%s14547_s28 + $0x169] sm:$0xff]  ;;  %v14729_v51 = vpack.c.bf16 %v415_v40, %v414_v39 }
  0x26   : > { %13066 = vmatprep.mubr.msk.bf16.mxu0 %vm486_vm1, %v14623_v46  ;;  %v464_v48 = vld [vmem:[%s14547_s28 + $0x171] sm:$0xff]  ;;  %v384_v52 = vld [vmem:[%s14547_s28] sm:$0xff]  ;;  %v417_v54 = vpack.c.bf16 %v387_v45, %v386_v44  ;;  %v1551_v1 = vld [vmem:[%s18821_s1 + $0x8] sm:$0x3] }
  0x27   : > { %v14739_v56 = vpack.c.bf16 %v464_v48, %v463_v47  ;;  %v416_v57 = vpack.c.bf16 %v385_v53, %v384_v52  ;;  %v912_v59 = vld [vmem:[%s14547_s28 + $0x2] sm:$0xff]  ;;  %v913_v60 = vld [vmem:[%s14547_s28 + $0xa] sm:$0xff]  ;;  %v914_v3 = vld [vmem:[%s14547_s28 + $0x1a] sm:$0xff]  ;;  %v1601_v12 = vsel %vm535_vm0, %v1551_v1, 0 }
  0x28   : > { %13101 = vmatmul.mubr.msk.bf16.gmra.mxu1 %vm486_vm1, %v14627_v49  ;;  %v944_v0 = vpack.c.bf16 %v913_v60, %v912_v59  ;;  %v915_v5 = vld [vmem:[%s14547_s28 + $0x22] sm:$0xff]  ;;  %v916_v6 = vld [vmem:[%s14547_s28 + $0x32] sm:$0xff]  ;;  %v917_v7 = vld [vmem:[%s14547_s28 + $0x3a] sm:$0xff] }
  0x29   : > { %13104 = vmatprep.mubr.msk.bf16.mxu1 %vm486_vm1, %v14631_v50  ;;  %v14767_v9 = vld [vmem:[%s18821_s1 + $0xc] ss:$0 sps:$4 sm:$0xcc]   ;;  %v14771_v21 = vpack.c.bf16 %v915_v5, %v914_v3  ;;  %v14776_v11 = vpack.c.bf16 %v917_v7, %v916_v6  ;;  %v919_v20 = vld [vmem:[%s14547_s28 + $0x52] sm:$0xff]  ;;  %v920_v23 = vld [vmem:[%s14547_s28 + $0x62] sm:$0xff] }
  0x2a   : > { %v2439_v10 = vrot.slane %v14767_v9, 2  ;;  %v14782_v16 = vld [vmem:[%s18821_s1 + $0xc] sm:$0x3]  ;;  %v922_v29 = vld [vmem:[%s14547_s28 + $0x7a] sm:$0xff]  ;;  %v923_v33 = vld [vmem:[%s14547_s28 + $0x82] sm:$0xff] }
  0x2b   : > { %v918_v17 = vld [vmem:[%s14547_s28 + $0x4a] sm:$0xff]  ;;  %v924_v35 = vld [vmem:[%s14547_s28 + $0x92] sm:$0xff]  ;;  %v925_v39 = vld [vmem:[%s14547_s28 + $0x9a] sm:$0xff]  ;;  %v14815_v40 = vpack.c.bf16 %v923_v33, %v922_v29 }
  0x2c   : > { %v921_v24 = vld [vmem:[%s14547_s28 + $0x6a] sm:$0xff]  ;;  %v14799_v25 = vpack.c.bf16 %v919_v20, %v918_v17  ;;  %v14819_v44 = vpack.c.bf16 %v925_v39, %v924_v35  ;;  %v927_v47 = vld [vmem:[%s14547_s28 + $0xb2] sm:$0xff]  ;;  %v928_v48 = vld [vmem:[%s14547_s28 + $0xc2] sm:$0xff] }
  0x2d   : > { %13067 = vmatmul.mubr.msk.bf16.gmra.mxu0 %vm486_vm1, %v14641_v55  ;;  %v14803_v28 = vpack.c.bf16 %v921_v24, %v920_v23  ;;  %v926_v45 = vld [vmem:[%s14547_s28 + $0xaa] sm:$0xff]  ;;  %v931_v59 = vld [vmem:[%s14547_s28 + $0xe2] sm:$0xff]  ;;  %v932_v60 = vld [vmem:[%s14547_s28 + $0xf2] sm:$0xff] }
  0x2e   : > { %13070 = vmatprep.mubr.msk.bf16.mxu0 %vm486_vm1, %v14647_v58  ;;  %v929_v52 = vld [vmem:[%s14547_s28 + $0xca] sm:$0xff]  ;;  %v14831_v53 = vpack.c.bf16 %v927_v47, %v926_v45  ;;  %v935_v3 = vld [vmem:[%s14547_s28 + $0x112] sm:$0xff]  ;;  %v936_v5 = vld [vmem:[%s14547_s28 + $0x122] sm:$0xff] }
  0x2f   : > { %v937_v6 = vld [vmem:[%s14547_s28 + $0x12a] sm:$0xff]  ;;  %v11876_v7 = vld [vmem:[%s14547_s28 + $0x180] sm:$0xff]  ;;  %v940_v33 = vld [vmem:[%s14547_s28 + $0x152] sm:$0xff] }
  0x30   : > { %13105 = vmatmul.mubr.msk.bf16.gmra.mxu1 %vm486_vm1, %v14651_v61  ;;  %v956_v20 = vpack.c.bf16 %v937_v6, %v936_v5  ;;  %v938_v23 = vld [vmem:[%s14547_s28 + $0x13a] sm:$0xff]  ;;  %v939_v24 = vld [vmem:[%s14547_s28 + $0x142] sm:$0xff]  ;;  %v942_v47 = vld [vmem:[%s14547_s28 + $0x16a] sm:$0xff] }
  0x31   : > { %13108 = vmatprep.mubr.msk.bf16.mxu1 %vm486_vm1, %v14655_v62  ;;  %v941_v35 = vld [vmem:[%s14547_s28 + $0x15a] sm:$0xff]  ;;  %v957_v39 = vpack.c.bf16 %v939_v24, %v938_v23  ;;  %v2732_v9 = vld [vmem:[%s18821_s1 + $0x10] sm:$0x3] }
  0x32   : > { %v958_v45 = vpack.c.bf16 %v941_v35, %v940_v33  ;;  %v2782_v5 = vsel %vm535_vm0, %v2732_v9, 0 }
  0x35   : > { %13071 = vmatmul.mubr.msk.bf16.gmra.mxu0 %vm486_vm1, %v14666_v4 }
  0x36   : > { %13074 = vmatprep.mubr.msk.bf16.mxu0 %vm486_vm1, %v14675_v8 }
  0x38   : > { %13109 = vmatmul.mubr.msk.bf16.gmra.mxu1 %vm486_vm1, %v14680_v13 }
  0x39   : > { %13112 = vmatprep.mubr.msk.bf16.mxu1 %vm486_vm1, %v14686_v19 }
  0x3d   : > { %13075 = vmatmul.mubr.msk.bf16.gmra.mxu0 %vm486_vm1, %v14697_v26 }
  0x3e   : > { %13078 = vmatprep.mubr.msk.bf16.mxu0 %vm486_vm1, %v14701_v27 }
  0x40   : > { %13113 = vmatmul.mubr.msk.bf16.gmra.mxu1 %vm486_vm1, %v14705_v32 }
  0x41   : > { %13116 = vmatprep.mubr.msk.bf16.mxu1 %vm486_vm1, %v14711_v36 }
  0x45   : > { %13079 = vmatmul.mubr.msk.bf16.gmra.mxu0 %vm486_vm1, %v14719_v41 }
  0x46   : > { %13082 = vmatprep.mubr.msk.bf16.mxu0 %vm486_vm1, %v14723_v42 }
  0x48   : > { %13117 = vmatmul.mubr.msk.bf16.gmra.mxu1 %vm486_vm1, %v14729_v51 }
  0x49   : > { %13156 = vmatprep.mubr.msk.bf16.mxu1 %vm486_vm1, %v417_v54 }
  0x4d   : > { %13083 = vmatmul.mubr.msk.bf16.gmra.mxu0 %vm486_vm1, %v14739_v56 }
  0x4e   : > { %13088 = vmatprep.mubr.msk.bf16.mxu0 %vm486_vm1, %v416_v57  ;;  %v930_v57 = vld [vmem:[%s14547_s28 + $0xda] sm:$0xff] }
  0x50   : > { %13157 = vmatmul.mubr.msk.bf16.vlgmr.msra.gmra.mxu1 %vm486_vm1, %v14563_v18 }
  0x51   : > { %13160 = vmatprep.mubr.msk.bf16.mxu1 %vm486_vm1, %v14574_v22  ;;  %13223 = vmatpush3.bf16.msra.mxu1 %v1898_v63  ;;  %v933_v63 = vld [vmem:[%s14547_s28 + $0xfa] sm:$0xff] }
  0x52   : > { %13512 = vmatprep.subr.msk.bf16.mxu1 %vm535_vm0, %v2439_v10 }
  0x55   : > { %13089 = vmatmul.mubr.msk.bf16.vlgmr.msra.gmra.mxu0 %vm486_vm1, %v417_v54  ;;  %v14835_v54 = vpack.c.bf16 %v929_v52, %v928_v48  ;;  %v943_v48 = vld [vmem:[%s14547_s28 + $0x172] sm:$0xff]  ;;  %v2489_v52 = vsel %vm535_vm0, %v2439_v10, 0  ;;  %v11974_v10 = vld [vmem:[%s14547_s28 + $0x18a] sm:$0xff] }
  0x56   : > { %13121 = vmatpush3.bf16.msra.mxu0 %v1010_v2  ;;  %13122 = vmatprep.mubr.msk.bf16.mxu0 %vm486_vm1, %v944_v0  ;;  %v14847_v0 = vpack.c.bf16 %v931_v59, %v930_v57  ;;  %v934_v2 = vld [vmem:[%s14547_s28 + $0x10a] sm:$0xff]  ;;  %v959_v57 = vpack.c.bf16 %v943_v48, %v942_v47  ;;  %v11925_v59 = vld [vmem:[%s14547_s28 + $0x181] sm:$0xff] }
  0x57   : > { %13509 = vmatprep.subr.msk.bf16.mxu0 %vm535_vm0, %v1551_v1  ;;  %v954_v1 = vpack.c.bf16 %v933_v63, %v932_v60  ;;  %v955_v17 = vpack.c.bf16 %v935_v3, %v934_v2  ;;  %v11926_v60 = vld [vmem:[%s14547_s28 + $0x189] sm:$0xff] }
  0x58   : > { %13161 = vmatmul.mubr.msk.bf16.gmra.mxu1 %vm486_vm1, %v14587_v30  ;;  %v14954_v63 = vpack.c.bf16 %v11926_v60, %v11925_v59 }
  0x59   : > { %13164 = vmatprep.mubr.msk.bf16.mxu1 %vm486_vm1, %v14603_v37 }
  0x5d   : > { %13123 = vmatmul.mubr.msk.bf16.vlgmr.msra.gmra.mxu0 %vm486_vm1, %v14771_v21 }
  0x5e   : > { %13189 = vmatpush3.bf16.msra.mxu0 %v1601_v12  ;;  %13126 = vmatprep.mubr.msk.bf16.mxu0 %vm486_vm1, %v14776_v11  ;;  %v11877_v12 = vld [vmem:[%s14547_s28 + $0x188] sm:$0xff] }
  0x5f   : > { %13511 = vmatprep.subr.msk.bf16.mxu0 %vm535_vm0, %v14782_v16  ;;  %v14866_v29 = vpack.c.bf16 %v11877_v12, %v11876_v7 }
  0x60   : > { %13165 = vmatmul.mubr.msk.bf16.gmra.mxu1 %vm486_vm1, %v14607_v38 }
  0x61   : > { %13168 = vmatprep.mubr.msk.bf16.mxu1 %vm486_vm1, %v14627_v49 }
  0x65   : > { %13127 = vmatmul.mubr.msk.bf16.gmra.mxu0 %vm486_vm1, %v14799_v25 }
  0x66   : > { %13130 = vmatprep.mubr.msk.bf16.mxu0 %vm486_vm1, %v14803_v28 }
  0x68   : > { %13169 = vmatmul.mubr.msk.bf16.gmra.mxu1 %vm486_vm1, %v14631_v50 }
  0x69   : > { %13172 = vmatprep.mubr.msk.bf16.mxu1 %vm486_vm1, %v14651_v61 }
  0x6d   : > { %13131 = vmatmul.mubr.msk.bf16.gmra.mxu0 %vm486_vm1, %v14815_v40 }
  0x6e   : > { %13134 = vmatprep.mubr.msk.bf16.mxu0 %vm486_vm1, %v14819_v44 }
  0x70   : > { %13173 = vmatmul.mubr.msk.bf16.gmra.mxu1 %vm486_vm1, %v14655_v62 }
  0x71   : > { %13176 = vmatprep.mubr.msk.bf16.mxu1 %vm486_vm1, %v14680_v13 }
  0x75   : > { %13135 = vmatmul.mubr.msk.bf16.gmra.mxu0 %vm486_vm1, %v14831_v53 }
  0x76   : > { %13138 = vmatprep.mubr.msk.bf16.mxu0 %vm486_vm1, %v14835_v54 }
  0x78   : > { %13177 = vmatmul.mubr.msk.bf16.gmra.mxu1 %vm486_vm1, %v14686_v19 }
  0x79   : > { %13180 = vmatprep.mubr.msk.bf16.mxu1 %vm486_vm1, %v14705_v32 }
  0x7d   : > { %13139 = vmatmul.mubr.msk.bf16.gmra.mxu0 %vm486_vm1, %v14847_v0 }
  0x7e   : > { %13142 = vmatprep.mubr.msk.bf16.mxu0 %vm486_vm1, %v954_v1 }
  0x80   : > { %13181 = vmatmul.mubr.msk.bf16.gmra.mxu1 %vm486_vm1, %v14711_v36 }
  0x81   : > { %13184 = vmatprep.mubr.msk.bf16.mxu1 %vm486_vm1, %v14729_v51 }
  0x85   : > { %13143 = vmatmul.mubr.msk.bf16.gmra.mxu0 %vm486_vm1, %v955_v17 }
  0x86   : > { %13146 = vmatprep.mubr.msk.bf16.mxu0 %vm486_vm1, %v956_v20 }
  0x88   : > { %13185 = vmatmul.mubr.msk.bf16.gmra.mxu1 %vm486_vm1, %v14866_v29 }
  0x89   : > { %13224 = vmatprep.mubr.msk.bf16.mxu1 %vm486_vm1, %v14771_v21  ;;  %v2192_v21 = vsel %vm535_vm0, %v14782_v16, 0 }
  0x8d   : > { %13147 = vmatmul.mubr.msk.bf16.gmra.mxu0 %vm486_vm1, %v957_v39 }
  0x8e   : > { %13150 = vmatprep.mubr.msk.bf16.mxu0 %vm486_vm1, %v958_v45 }
  0x90   : > { %13225 = vmatmul.mubr.msk.bf16.vlgmr.msra.gmra.mxu1 %vm486_vm1, %v14776_v11 }
  0x91   : > { %13228 = vmatprep.mubr.msk.bf16.mxu1 %vm486_vm1, %v14799_v25  ;;  %13291 = vmatpush3.bf16.msra.mxu1 %v2489_v52 }
  0x95   : > { %13151 = vmatmul.mubr.msk.bf16.gmra.mxu0 %vm486_vm1, %v959_v57 }
  0x96   : > { %13190 = vmatprep.mubr.msk.bf16.mxu0 %vm486_vm1, %v14556_v14  ;;  %v11973_v14 = vld [vmem:[%s14547_s28 + $0x182] sm:$0xff] }
  0x97   : > { %v14936_v16 = vpack.c.bf16 %v11974_v10, %v11973_v14 }
  0x98   : > { %13229 = vmatmul.mubr.msk.bf16.gmra.mxu1 %vm486_vm1, %v14803_v28 }
  0x99   : > { %13232 = vmatprep.mubr.msk.bf16.mxu1 %vm486_vm1, %v14815_v40 }
  0x9d   : > { %13191 = vmatmul.mubr.msk.bf16.vlgmr.msra.gmra.mxu0 %vm486_vm1, %v14558_v15 }
  0x9e   : > { %13257 = vmatpush3.bf16.msra.mxu0 %v2192_v21  ;;  %13194 = vmatprep.mubr.msk.bf16.mxu0 %vm486_vm1, %v14593_v31 }
  0x9f   : > { %13513 = vmatprep.subr.msk.bf16.mxu0 %vm535_vm0, %v2732_v9 }
  0xa0   : > { %13233 = vmatmul.mubr.msk.bf16.gmra.mxu1 %vm486_vm1, %v14819_v44 }
  0xa1   : > { %13236 = vmatprep.mubr.msk.bf16.mxu1 %vm486_vm1, %v14831_v53 }
  0xa5   : > { %13195 = vmatmul.mubr.msk.bf16.gmra.mxu0 %vm486_vm1, %v14599_v34 }
  0xa6   : > { %13198 = vmatprep.mubr.msk.bf16.mxu0 %vm486_vm1, %v14617_v43 }
  0xa8   : > { %13237 = vmatmul.mubr.msk.bf16.gmra.mxu1 %vm486_vm1, %v14835_v54 }
  0xa9   : > { %13240 = vmatprep.mubr.msk.bf16.mxu1 %vm486_vm1, %v14847_v0 }
  0xad   : > { %13199 = vmatmul.mubr.msk.bf16.gmra.mxu0 %vm486_vm1, %v14623_v46 }
  0xae   : > { %13202 = vmatprep.mubr.msk.bf16.mxu0 %vm486_vm1, %v14641_v55 }
  0xb0   : > { %13241 = vmatmul.mubr.msk.bf16.gmra.mxu1 %vm486_vm1, %v954_v1 }
  0xb1   : > { %13244 = vmatprep.mubr.msk.bf16.mxu1 %vm486_vm1, %v955_v17 }
  0xb5   : > { %13203 = vmatmul.mubr.msk.bf16.gmra.mxu0 %vm486_vm1, %v14647_v58 }
  0xb6   : > { %13206 = vmatprep.mubr.msk.bf16.mxu0 %vm486_vm1, %v14666_v4 }
  0xb8   : > { %13245 = vmatmul.mubr.msk.bf16.gmra.mxu1 %vm486_vm1, %v956_v20 }
  0xb9   : > { %13248 = vmatprep.mubr.msk.bf16.mxu1 %vm486_vm1, %v957_v39 }
  0xbd   : > { %13207 = vmatmul.mubr.msk.bf16.gmra.mxu0 %vm486_vm1, %v14675_v8 }
  0xbe   : > { %13210 = vmatprep.mubr.msk.bf16.mxu0 %vm486_vm1, %v14697_v26 }
  0xc0   : > { %13249 = vmatmul.mubr.msk.bf16.gmra.mxu1 %vm486_vm1, %v958_v45 }
  0xc1   : > { %13252 = vmatprep.mubr.msk.bf16.mxu1 %vm486_vm1, %v959_v57 }
  0xc5   : > { %13211 = vmatmul.mubr.msk.bf16.gmra.mxu0 %vm486_vm1, %v14701_v27 }
  0xc6   : > { %13214 = vmatprep.mubr.msk.bf16.mxu0 %vm486_vm1, %v14719_v41 }
  0xc8   : > { %13253 = vmatmul.mubr.msk.bf16.gmra.mxu1 %vm486_vm1, %v14936_v16 }
  0xc9   : > { %13292 = vmatprep.mubr.msk.bf16.mxu1 %vm486_vm1, %v14558_v15 }
  0xcd   : > { %13215 = vmatmul.mubr.msk.bf16.gmra.mxu0 %vm486_vm1, %v14723_v42 }
  0xce   : > { %13218 = vmatprep.mubr.msk.bf16.mxu0 %vm486_vm1, %v14739_v56 }
  0xd0   : > { %13293 = vmatmul.mubr.msk.bf16.vlgmr.msra.gmra.mxu1 %vm486_vm1, %v14593_v31 }
  0xd1   : > { %13296 = vmatprep.mubr.msk.bf16.mxu1 %vm486_vm1, %v14599_v34 }
  0xd5   : > { %v14958_v1 = vpop.f32.mrf.mxu0  ;;  %13219 = vmatmul.mubr.msk.bf16.gmra.mxu0 %vm486_vm1, %v14954_v63 }
  0xd6   : > { %13258 = vmatprep.mubr.msk.bf16.mxu0 %vm486_vm1, %v14563_v18 }
  0xd7   : > { %v14964_v15 = vpop.f32.mrf.mxu0 }
  0xd8   : > { %v13094_v2 = vpop.f32.mrf.mxu1  ;;  %13297 = vmatmul.mubr.msk.bf16.gmra.mxu1 %vm486_vm1, %v14617_v43 }
  0xd9   : > { %v14968_v31 = vpop.f32.mrf.mxu0  ;;  %13300 = vmatprep.mubr.msk.bf16.mxu1 %vm486_vm1, %v14623_v46 }
  0xda   : > { %v801_v34 = vpop.f32.mrf.mxu1 }
  0xdb   : > { %v14972_v3 = vpop.f32.mrf.mxu0 }
  0xdc   : > { %v13095_v6 = vpop.f32.mrf.mxu1 }
  0xdd   : > { %v13060_v7 = vpop.f32.mrf.mxu0  ;;  %13259 = vmatmul.mubr.msk.bf16.vlgmr.msra.gmra.mxu0 %vm486_vm1, %v14574_v22 }
  0xde   : > { %v14977_v18 = vadd.f32 %v13094_v2, %v13060_v7  ;;  %13325 = vmatpush3.bf16.msra.mxu0 %v2782_v5  ;;  %v804_v12 = vpop.f32.mrf.mxu1  ;;  %13262 = vmatprep.mubr.msk.bf16.mxu0 %vm486_vm1, %v14587_v30 }
  0xdf   : > { %v589_v43 = vpop.f32.mrf.mxu0 }
  0xe0   : > { %v14981_v17 = vadd.f32 %v801_v34, %v589_v43  ;;  %v13098_v46 = vpop.f32.mrf.mxu1  ;;  %13301 = vmatmul.mubr.msk.bf16.gmra.mxu1 %vm486_vm1, %v14641_v55 }
  0xe1   : > { %v13061_v20 = vpop.f32.mrf.mxu0  ;;  %13304 = vmatprep.mubr.msk.bf16.mxu1 %vm486_vm1, %v14647_v58 }
  0xe2   : > { %v14987_v23 = vadd.f32 %v13095_v6, %v13061_v20  ;;  %v817_v22 = vpop.f32.mrf.mxu1 }
  0xe3   : > { %v592_v24 = vpop.f32.mrf.mxu0 }
  0xe4   : > { %v14989_v33 = vadd.f32 %v804_v12, %v592_v24  ;;  %v13099_v35 = vpop.f32.mrf.mxu1 }
  0xe5   : > { %v13064_v39 = vpop.f32.mrf.mxu0  ;;  %13263 = vmatmul.mubr.msk.bf16.gmra.mxu0 %vm486_vm1, %v14603_v37 }
  0xe6   : > { %v14993_v30 = vadd.f32 %v13098_v46, %v13064_v39  ;;  %v820_v45 = vpop.f32.mrf.mxu1  ;;  %13266 = vmatprep.mubr.msk.bf16.mxu0 %vm486_vm1, %v14607_v38 }
  0xe7   : > { %v605_v55 = vpop.f32.mrf.mxu0 }
  0xe8   : > { %v14997_v47 = vadd.f32 %v817_v22, %v605_v55  ;;  %v13102_v58 = vpop.f32.mrf.mxu1  ;;  %13305 = vmatmul.mubr.msk.bf16.gmra.mxu1 %vm486_vm1, %v14666_v4 }
  0xe9   : > { %v13065_v48 = vpop.f32.mrf.mxu0  ;;  %13308 = vmatprep.mubr.msk.bf16.mxu1 %vm486_vm1, %v14675_v8 }
  0xea   : > { %v15003_v52 = vadd.f32 %v13099_v35, %v13065_v48  ;;  %v833_v37 = vpop.f32.mrf.mxu1 }
  0xeb   : > { %v608_v57 = vpop.f32.mrf.mxu0 }
  0xec   : > { %v15005_v9 = vadd.f32 %v820_v45, %v608_v57  ;;  %v13103_v21 = vpop.f32.mrf.mxu1  ;;  %v12070_v45 = vld [vmem:[%s14547_s28 + $0x199] sm:$0xff] }
  0xed   : > { %v13068_v14 = vpop.f32.mrf.mxu0  ;;  %13267 = vmatmul.mubr.msk.bf16.gmra.mxu0 %vm486_vm1, %v14627_v49 }
  0xee   : > { %v15009_v38 = vadd.f32 %v13102_v58, %v13068_v14  ;;  %v836_v10 = vpop.f32.mrf.mxu1  ;;  %13270 = vmatprep.mubr.msk.bf16.mxu0 %vm486_vm1, %v14631_v50 }
  0xef   : > { %v621_v4 = vpop.f32.mrf.mxu0 }
  0xf0   : > { %v15013_v59 = vadd.f32 %v833_v37, %v621_v4  ;;  %v13106_v8 = vpop.f32.mrf.mxu1  ;;  %13309 = vmatmul.mubr.msk.bf16.gmra.mxu1 %vm486_vm1, %v14697_v26 }
  0xf1   : > { %v13069_v60 = vpop.f32.mrf.mxu0  ;;  %13312 = vmatprep.mubr.msk.bf16.mxu1 %vm486_vm1, %v14701_v27 }
  0xf2   : > { %v15019_v2 = vadd.f32 %v13103_v21, %v13069_v60  ;;  %v849_v49 = vpop.f32.mrf.mxu1 }
  0xf3   : > { %v624_v34 = vpop.f32.mrf.mxu0 }
  0xf4   : > { %v15021_v5 = vadd.f32 %v836_v10, %v624_v34  ;;  %v13107_v6 = vpop.f32.mrf.mxu1 }
  0xf5   : > { %v13072_v7 = vpop.f32.mrf.mxu0  ;;  %13271 = vmatmul.mubr.msk.bf16.gmra.mxu0 %vm486_vm1, %v14651_v61 }
  0xf6   : > { %v15025_v50 = vadd.f32 %v13106_v8, %v13072_v7  ;;  %v15027_v12 = vpop.f32.mrf.mxu1  ;;  %13274 = vmatprep.mubr.msk.bf16.mxu0 %vm486_vm1, %v14655_v62  ;;  %v12022_v7 = vld [vmem:[%s14547_s28 + $0x198] sm:$0xff] }
  0xf7   : > { %v637_v26 = vpop.f32.mrf.mxu0 }
  0xf8   : > { %v15031_v27 = vadd.f32 %v849_v49, %v637_v26  ;;  %v13110_v43 = vpop.f32.mrf.mxu1  ;;  %13313 = vmatmul.mubr.msk.bf16.gmra.mxu1 %vm486_vm1, %v14719_v41  ;;  %v12023_v26 = vld [vmem:[%s14547_s28 + $0x1a0] sm:$0xff] }
  0xf9   : > { %v13073_v46 = vpop.f32.mrf.mxu0  ;;  %13316 = vmatprep.mubr.msk.bf16.mxu1 %vm486_vm1, %v14723_v42  ;;  %v12071_v42 = vld [vmem:[%s14547_s28 + $0x1a1] sm:$0xff] }
  0xfa   : > { %v15037_v61 = vadd.f32 %v13107_v6, %v13073_v46  ;;  %v865_v20 = vpop.f32.mrf.mxu1 }
  0xfb   : > { %v15039_v22 = vpop.f32.mrf.mxu0 }
  0xfc   : > { %v13111_v24 = vpop.f32.mrf.mxu1 }
  0xfd   : > { %v13076_v62 = vpop.f32.mrf.mxu0  ;;  %13275 = vmatmul.mubr.msk.bf16.gmra.mxu0 %vm486_vm1, %v14680_v13 }
  0xfe   : > { %v15043_v35 = vadd.f32 %v13110_v43, %v13076_v62  ;;  %v15045_v39 = vpop.f32.mrf.mxu1  ;;  %13278 = vmatprep.mubr.msk.bf16.mxu0 %vm486_vm1, %v14686_v19  ;;  %v2434_v19 = vpack.c.bf16 %v12071_v42, %v12070_v45  ;;  %v2141_v45 = vpack.c.bf16 %v12023_v26, %v12022_v7 }
  0xff   : > { %v653_v41 = vpop.f32.mrf.mxu0 }
 0x100   : > { %v15051_v55 = vadd.f32 %v865_v20, %v653_v41  ;;  %v13114_v58 = vpop.f32.mrf.mxu1  ;;  %13317 = vmatmul.mubr.msk.bf16.gmra.mxu1 %vm486_vm1, %v14739_v56 }
 0x101   : > { %v13077_v48 = vpop.f32.mrf.mxu0  ;;  %13320 = vmatprep.mubr.msk.bf16.mxu1 %vm486_vm1, %v14954_v63 }
 0x102   : > { %v15057_v13 = vadd.f32 %v13111_v24, %v13077_v48  ;;  %v881_v37 = vpop.f32.mrf.mxu1 }
 0x103   : > { %v15059_v57 = vpop.f32.mrf.mxu0 }
 0x104   : > { %v13115_v21 = vpop.f32.mrf.mxu1 }
 0x105   : > { %v13080_v14 = vpop.f32.mrf.mxu0  ;;  %13279 = vmatmul.mubr.msk.bf16.gmra.mxu0 %vm486_vm1, %v14705_v32 }
 0x106   : > { %v15063_v10 = vadd.f32 %v13114_v58, %v13080_v14  ;;  %v15065_v56 = vpop.f32.mrf.mxu1  ;;  %13282 = vmatprep.mubr.msk.bf16.mxu0 %vm486_vm1, %v14711_v36 }
 0x107   : > { %v669_v63 = vpop.f32.mrf.mxu0 }
 0x108   : > { %v15069_v4 = vadd.f32 %v881_v37, %v669_v63  ;;  %v13118_v8 = vpop.f32.mrf.mxu1  ;;  %13321 = vmatmul.mubr.msk.bf16.gmra.mxu1 %vm486_vm1, %v2434_v19 }
 0x109   : > { %v13081_v60 = vpop.f32.mrf.mxu0 }
 0x10a   : > { %v15072_v49 = vadd.f32 %v13115_v21, %v13081_v60  ;;  %v897_v34 = vpop.f32.mrf.mxu1 }
 0x10b   : > { %v15074_v6 = vpop.f32.mrf.mxu0 }
 0x10c   : > { %v13119_v32 = vpop.f32.mrf.mxu1 }
 0x10d   : > { %v13084_v43 = vpop.f32.mrf.mxu0  ;;  %13283 = vmatmul.mubr.msk.bf16.gmra.mxu0 %vm486_vm1, %v14729_v51 }
 0x10e   : > { %v15080_v36 = vadd.f32 %v13118_v8, %v13084_v43  ;;  %v15082_v46 = vpop.f32.mrf.mxu1  ;;  %13286 = vmatprep.mubr.msk.bf16.mxu0 %vm486_vm1, %v14866_v29 }
 0x10f   : > { %v685_v20 = vpop.f32.mrf.mxu0 }
 0x110   : > { %v15086_v24 = vadd.f32 %v897_v34, %v685_v20  ;;  %v13158_v62 = vpop.f32.mrf.mxu1 }
 0x111   : > { %v13085_v41 = vpop.f32.mrf.mxu0 }
 0x112   : > { %v15088_v42 = vadd.f32 %v13119_v32, %v13085_v41  ;;  %v1344_v58 = vpop.f32.mrf.mxu1 }
 0x113   : > { %v15090_v48 = vpop.f32.mrf.mxu0 }
 0x114   : > { %v13159_v37 = vpop.f32.mrf.mxu1 }
 0x115   : > { %v13090_v51 = vpop.f32.mrf.mxu0  ;;  %13287 = vmatmul.mubr.msk.bf16.gmra.mxu0 %vm486_vm1, %v2141_v45 }
 0x116   : > { %v794_v21 = vadd.f32 %v13090_v51, %v14958_v1  ;;  %13326 = vmatprep.mubr.msk.bf16.mxu0 %vm486_vm1, %v14776_v11  ;;  %v15096_v29 = vpop.f32.mrf.mxu1 }
 0x117   : > { %v785_v19 = vpop.f32.mrf.mxu0 }
 0x118   : > { %v786_v14 = vadd.f32 %v785_v19, %v14964_v15  ;;  %v13162_v63 = vpop.f32.mrf.mxu1 }
 0x119   : > { %v13091_v8 = vpop.f32.mrf.mxu0 }
 0x11a   : > { %v797_v60 = vadd.f32 %v13091_v8, %v14968_v31  ;;  %v1360_v34 = vpop.f32.mrf.mxu1 }
 0x11b   : > { %v788_v32 = vpop.f32.mrf.mxu0 }
 0x11c   : > { %v789_v7 = vadd.f32 %v788_v32, %v14972_v3  ;;  %v13163_v26 = vpop.f32.mrf.mxu1 }
 0x11d   : > { %v13124_v43 = vpop.f32.mrf.mxu0  ;;  %13327 = vmatmul.mubr.msk.bf16.vlgmr.msra.gmra.mxu0 %vm486_vm1, %v14799_v25 }
 0x11e   : > { %v1175_v1 = vadd.f32 %v13124_v43, %v794_v21  ;;  %13330 = vmatprep.mubr.msk.bf16.mxu0 %vm486_vm1, %v14803_v28  ;;  %v15105_v11 = vpop.f32.mrf.mxu1 }
 0x11f   : > { %v1046_v15 = vpop.f32.mrf.mxu0 }
 0x120   : > { %v1173_v20 = vadd.f32 %v1046_v15, %v786_v14  ;;  %v15107_v41 = vadd.f32 %v13158_v62, %v1175_v1  ;;  %v13166_v31 = vpop.f32.mrf.mxu1 }
 0x121   : > { %v13125_v45 = vpop.f32.mrf.mxu0 }
 0x122   : > { %v1176_v51 = vadd.f32 %v13125_v45, %v797_v60  ;;  %v15109_v19 = vadd.f32 %v1344_v58, %v1173_v20  ;;  %v1376_v3 = vpop.f32.mrf.mxu1 }
 0x123   : > { %v1049_v8 = vpop.f32.mrf.mxu0 }
 0x124   : > { %v15111_v32 = vadd.f32 %v1049_v8, %v789_v7  ;;  %v15113_v25 = vadd.f32 %v13159_v37, %v1176_v51  ;;  %v13167_v21 = vpop.f32.mrf.mxu1  ;;  %v12106_v8 = vld [vmem:[%s14547_s28 + $0xfa] sm:$0xff] }
 0x125   : > { %v13128_v43 = vpop.f32.mrf.mxu0  ;;  %13331 = vmatmul.mubr.msk.bf16.gmra.mxu0 %vm486_vm1, %v14815_v40 }
 0x126   : > { %v1179_v28 = vadd.f32 %v13128_v43, %v14977_v18  ;;  %13334 = vmatprep.mubr.msk.bf16.mxu0 %vm486_vm1, %v14819_v44  ;;  %v15120_v62 = vpop.f32.mrf.mxu1 }
 0x127   : > { %v1062_v58 = vpop.f32.mrf.mxu0 }
 0x128   : > { %v1177_v14 = vadd.f32 %v1062_v58, %v14981_v17  ;;  %v15123_v60 = vadd.f32 %v13162_v63, %v1179_v28  ;;  %v13170_v37 = vpop.f32.mrf.mxu1 }
 0x129   : > { %v13129_v7 = vpop.f32.mrf.mxu0 }
 0x12a   : > { %v1180_v1 = vadd.f32 %v13129_v7, %v14987_v23  ;;  %v15126_v15 = vadd.f32 %v1360_v34, %v1177_v14  ;;  %v1392_v40 = vpop.f32.mrf.mxu1  ;;  %v12105_v34 = vld [vmem:[%s14547_s28 + $0xf2] sm:$0xff] }
 0x12b   : > { %v1065_v18 = vpop.f32.mrf.mxu0 }
 0x12c   : > { %v15129_v20 = vadd.f32 %v1065_v18, %v14989_v33  ;;  %v15131_v44 = vadd.f32 %v13163_v26, %v1180_v1  ;;  %v13171_v45 = vpop.f32.mrf.mxu1 }
 0x12d   : > { %v13132_v51 = vpop.f32.mrf.mxu0  ;;  %13335 = vmatmul.mubr.msk.bf16.gmra.mxu0 %vm486_vm1, %v14831_v53 }
 0x12e   : > { %v1183_v17 = vadd.f32 %v13132_v51, %v14993_v30  ;;  %13338 = vmatprep.mubr.msk.bf16.mxu0 %vm486_vm1, %v14835_v54  ;;  %v15138_v23 = vpop.f32.mrf.mxu1  ;;  %v2724_v54 = vpack.c.bf16 %v12106_v8, %v12105_v34  ;;  %v12110_v34 = vld [vmem:[%s14547_s28 + $0x12a] sm:$0xff] }
 0x12f   : > { %18836 = vst [vmem:[#allocation3_spill] sm:$0xff] %v15138_v23  ;;  %v1078_v63 = vpop.f32.mrf.mxu0 }
 0x130   : > { %v1181_v33 = vadd.f32 %v1078_v63, %v14997_v47  ;;  %v15143_v26 = vadd.f32 %v13166_v31, %v1183_v17  ;;  %v13174_v43 = vpop.f32.mrf.mxu1  ;;  %v12109_v63 = vld [vmem:[%s14547_s28 + $0x122] sm:$0xff] }
 0x131   : > { %v13133_v28 = vpop.f32.mrf.mxu0 }
 0x132   : > { %v1184_v53 = vadd.f32 %v13133_v28, %v15003_v52  ;;  %v15146_v30 = vadd.f32 %v1376_v3, %v1181_v33  ;;  %v1408_v58 = vpop.f32.mrf.mxu1  ;;  %v12107_v52 = vld [vmem:[%s14547_s28 + $0x10a] sm:$0xff]  ;;  %v12108_v3 = vld [vmem:[%s14547_s28 + $0x112] sm:$0xff] }
 0x133   : > { %v1081_v14 = vpop.f32.mrf.mxu0 }
 0x134   : > { %v15149_v7 = vadd.f32 %v1081_v14, %v15005_v9  ;;  %v15151_v1 = vadd.f32 %v13167_v21, %v1184_v53  ;;  %v13175_v47 = vpop.f32.mrf.mxu1  ;;  %v2726_v53 = vpack.c.bf16 %v12110_v34, %v12109_v63  ;;  %v12113_v63 = vld [vmem:[%s14547_s28 + $0x152] sm:$0xff]  ;;  %v12114_v34 = vld [vmem:[%s14547_s28 + $0x15a] sm:$0xff] }
 0x135   : > { %v13136_v31 = vpop.f32.mrf.mxu0  ;;  %13339 = vmatmul.mubr.msk.bf16.gmra.mxu0 %vm486_vm1, %v14847_v0  ;;  %v2725_v0 = vpack.c.bf16 %v12108_v3, %v12107_v52 }
 0x136   : > { %v1187_v18 = vadd.f32 %v13136_v31, %v15009_v38  ;;  %13342 = vmatprep.mubr.msk.bf16.mxu0 %vm486_vm1, %v2724_v54  ;;  %v15159_v51 = vpop.f32.mrf.mxu1 }
 0x137   : > { %18837 = vst [vmem:[#allocation4_spill] sm:$0xff] %v15159_v51  ;;  %v1094_v17 = vpop.f32.mrf.mxu0 }
 0x138   : > { %v1185_v9 = vadd.f32 %v1094_v17, %v15013_v59  ;;  %v15164_v21 = vadd.f32 %v13170_v37, %v1187_v18  ;;  %v13178_v8 = vpop.f32.mrf.mxu1 }
 0x139   : > { %v13137_v33 = vpop.f32.mrf.mxu0 }
 0x13a   : > { %v1188_v38 = vadd.f32 %v13137_v33, %v15019_v2  ;;  %v15167_v28 = vadd.f32 %v1392_v40, %v1185_v9  ;;  %v1424_v54 = vpop.f32.mrf.mxu1  ;;  %v12111_v2 = vld [vmem:[%s14547_s28 + $0x13a] sm:$0xff]  ;;  %v12112_v40 = vld [vmem:[%s14547_s28 + $0x142] sm:$0xff] }
 0x13b   : > { %v1097_v14 = vpop.f32.mrf.mxu0 }
 0x13c   : > { %v15170_v31 = vadd.f32 %v1097_v14, %v15021_v5  ;;  %v15172_v59 = vadd.f32 %v13171_v45, %v1188_v38  ;;  %v13179_v37 = vpop.f32.mrf.mxu1 }
 0x13d   : > { %v13140_v18 = vpop.f32.mrf.mxu0  ;;  %13343 = vmatmul.mubr.msk.bf16.gmra.mxu0 %vm486_vm1, %v2725_v0  ;;  %v2727_v0 = vpack.c.bf16 %v12112_v40, %v12111_v2 }
 0x13e   : > { %v1191_v52 = vadd.f32 %v13140_v18, %v15025_v50  ;;  %13346 = vmatprep.mubr.msk.bf16.mxu0 %vm486_vm1, %v2726_v53  ;;  %v15179_v3 = vpop.f32.mrf.mxu1  ;;  %v2728_v53 = vpack.c.bf16 %v12114_v34, %v12113_v63 }
 0x13f   : > { %18838 = vst [vmem:[#allocation5_spill] sm:$0xff] %v15179_v3  ;;  %v1110_v17 = vpop.f32.mrf.mxu0 }
 0x140   : > { %v1189_v5 = vadd.f32 %v1110_v17, %v15031_v27  ;;  %v15184_v45 = vadd.f32 %v13174_v43, %v1191_v52  ;;  %v13182_v9 = vpop.f32.mrf.mxu1  ;;  %v12115_v43 = vld [vmem:[%s14547_s28 + $0x16a] sm:$0xff]  ;;  %v12116_v52 = vld [vmem:[%s14547_s28 + $0x172] sm:$0xff] }
 0x141   : > { %v13141_v33 = vpop.f32.mrf.mxu0  ;;  %v2729_v63 = vpack.c.bf16 %v12116_v52, %v12115_v43 }
 0x142   : > { %v1192_v50 = vadd.f32 %v13141_v33, %v15037_v61  ;;  %v15187_v38 = vadd.f32 %v1408_v58, %v1189_v5  ;;  %v1440_v14 = vpop.f32.mrf.mxu1 }
 0x143   : > { %v15189_v18 = vpop.f32.mrf.mxu0 }
 0x144   : > { %v15191_v3 = vadd.f32 %v13175_v47, %v1192_v50  ;;  %v13183_v51 = vpop.f32.mrf.mxu1 }
 0x145   : > { %v13144_v23 = vpop.f32.mrf.mxu0  ;;  %13347 = vmatmul.mubr.msk.bf16.gmra.mxu0 %vm486_vm1, %v2727_v0 }
 0x146   : > { %v1195_v27 = vadd.f32 %v13144_v23, %v15043_v35  ;;  %13350 = vmatprep.mubr.msk.bf16.mxu0 %vm486_vm1, %v2728_v53  ;;  %v15198_v2 = vpop.f32.mrf.mxu1  ;;  %v12120_v53 = vld [vmem:[%s14547_s28 + $0x1a2] sm:$0xff] }
 0x147   : > { %v1126_v61 = vpop.f32.mrf.mxu0 }
 0x148   : > { %v1193_v58 = vadd.f32 %v1126_v61, %v15051_v55  ;;  %v15201_v40 = vadd.f32 %v13178_v8, %v1195_v27  ;;  %v13186_v47 = vpop.f32.mrf.mxu1  ;;  %v12119_v8 = vld [vmem:[%s14547_s28 + $0x19a] sm:$0xff] }
 0x149   : > { %v13145_v17 = vpop.f32.mrf.mxu0  ;;  %v2731_v61 = vpack.c.bf16 %v12120_v53, %v12119_v8 }
 0x14a   : > { %v1196_v34 = vadd.f32 %v13145_v17, %v15057_v13  ;;  %v15204_v5 = vadd.f32 %v1424_v54, %v1193_v58  ;;  %v1456_v35 = vpop.f32.mrf.mxu1 }
 0x14b   : > { %v15206_v23 = vpop.f32.mrf.mxu0 }
 0x14c   : > { %v15208_v33 = vadd.f32 %v13179_v37, %v1196_v34  ;;  %v13187_v0 = vpop.f32.mrf.mxu1 }
 0x14d   : > { %v13148_v50 = vpop.f32.mrf.mxu0  ;;  %13351 = vmatmul.mubr.msk.bf16.gmra.mxu0 %vm486_vm1, %v2729_v63 }
 0x14e   : > { %v1199_v55 = vadd.f32 %v13148_v50, %v15063_v10  ;;  %13354 = vmatprep.mubr.msk.bf16.mxu0 %vm486_vm1, %v14936_v16  ;;  %v15216_v27 = vpop.f32.mrf.mxu1 }
 0x14f   : > { %v1142_v13 = vpop.f32.mrf.mxu0 }
 0x150   : > { %v1197_v54 = vadd.f32 %v1142_v13, %v15069_v4  ;;  %v15219_v43 = vadd.f32 %v13182_v9, %v1199_v55  ;;  %v15221_v37 = vpop.f32.mrf.mxu1 }
 0x151   : > { %18839 = vst [vmem:[#allocation6_spill] sm:$0xff] %v15221_v37  ;;  %v13149_v52 = vpop.f32.mrf.mxu0 }
 0x152   : > { %v1200_v58 = vadd.f32 %v13149_v52, %v15072_v49  ;;  %v15224_v17 = vadd.f32 %v1440_v14, %v1197_v54  ;;  %v15226_v10 = vpop.f32.mrf.mxu1 }
 0x153   : > { %18840 = vst [vmem:[#allocation7_spill] sm:$0xff] %v15226_v10  ;;  %v15228_v16 = vpop.f32.mrf.mxu0 }
 0x154   : > { %v15230_v63 = vadd.f32 %v13183_v51, %v1200_v58  ;;  %v15232_v34 = vpop.f32.mrf.mxu1 }
 0x155   : > { %18841 = vst [vmem:[#allocation8_spill] sm:$0xff] %v15232_v34  ;;  %v13152_v50 = vpop.f32.mrf.mxu0  ;;  %13355 = vmatmul.mubr.msk.bf16.gmra.mxu0 %vm486_vm1, %v2731_v61 }
 0x156   : > { %v1203_v4 = vadd.f32 %v13152_v50, %v15080_v36  ;;  %v15236_v9 = vpop.f32.mrf.mxu1 }
 0x157   : > { %18842 = vst [vmem:[#allocation9_spill] sm:$0xff] %v15236_v9  ;;  %v1158_v55 = vpop.f32.mrf.mxu0 }
 0x158   : > { %v1201_v49 = vadd.f32 %v1158_v55, %v15086_v24  ;;  %v15239_v14 = vadd.f32 %v13186_v47, %v1203_v4  ;;  %v13230_v8 = vpop.f32.mrf.mxu1 }
 0x159   : > { %v13153_v53 = vpop.f32.mrf.mxu0 }
 0x15a   : > { %v1204_v13 = vadd.f32 %v13153_v53, %v15088_v42  ;;  %v15242_v51 = vadd.f32 %v1456_v35, %v1201_v49  ;;  %v1950_v54 = vpop.f32.mrf.mxu1 }
 0x15b   : > { %v15244_v52 = vpop.f32.mrf.mxu0 }
 0x15c   : > { %v15246_v58 = vadd.f32 %v13187_v0, %v1204_v13  ;;  %v13231_v61 = vpop.f32.mrf.mxu1 }
 0x15d   : > { %v13192_v36 = vpop.f32.mrf.mxu0 }
 0x15e   : > { %v15249_v50 = vadd.f32 %v13192_v36, %v15107_v41  ;;  %v15251_v9 = vpop.f32.mrf.mxu1 }
 0x15f   : > { %18844 = vst [vmem:[#allocation11_spill] sm:$0xff] %v15251_v9  ;;  %v1637_v24 = vpop.f32.mrf.mxu0 }
 0x160   : > { %18843 = vst [vmem:[#allocation10_spill] sm:$0xff] %v15249_v50  ;;  %v15254_v47 = vadd.f32 %v1637_v24, %v15109_v19  ;;  %v13234_v4 = vpop.f32.mrf.mxu1 }
 0x161   : > { %v13193_v42 = vpop.f32.mrf.mxu0 }
 0x162   : > { %18845 = vst [vmem:[#allocation12_spill] sm:$0xff] %v15254_v47  ;;  %v15257_v35 = vadd.f32 %v13193_v42, %v15113_v25  ;;  %v1966_v55 = vpop.f32.mrf.mxu1 }
 0x163   : > { %v15259_v49 = vpop.f32.mrf.mxu0 }
 0x164   : > { %18846 = vst [vmem:[#allocation13_spill] sm:$0xff] %v15257_v35  ;;  %v13235_v0 = vpop.f32.mrf.mxu1 }
 0x165   : > { %v13196_v53 = vpop.f32.mrf.mxu0 }
 0x166   : > { %v1770_v13 = vadd.f32 %v13196_v53, %v15123_v60  ;;  %v15262_v41 = vpop.f32.mrf.mxu1 }
 0x167   : > { %18847 = vst [vmem:[#allocation14_spill] sm:$0xff] %v15262_v41  ;;  %v1653_v36 = vpop.f32.mrf.mxu0 }
 0x168   : > { %v1768_v9 = vadd.f32 %v1653_v36, %v15126_v15  ;;  %v15265_v34 = vadd.f32 %v13230_v8, %v1770_v13  ;;  %v13238_v19 = vpop.f32.mrf.mxu1 }
 0x169   : > { %v13197_v24 = vpop.f32.mrf.mxu0 }
 0x16a   : > { %v1771_v10 = vadd.f32 %v13197_v24, %v15131_v44  ;;  %v15268_v25 = vadd.f32 %v1950_v54, %v1768_v9  ;;  %v1982_v42 = vpop.f32.mrf.mxu1 }
 0x16b   : > { %v15270_v35 = vpop.f32.mrf.mxu0 }
 0x16c   : > { %v15272_v47 = vadd.f32 %v13231_v61, %v1771_v10  ;;  %v13239_v37 = vpop.f32.mrf.mxu1 }
 0x16d   : > { %v13200_v60 = vpop.f32.mrf.mxu0 }
 0x16e   : > { %v1774_v53 = vadd.f32 %v13200_v60, %v15143_v26  ;;  %v15275_v41 = vpop.f32.mrf.mxu1 }
 0x16f   : > { %18848 = vst [vmem:[#allocation15_spill] sm:$0xff] %v15275_v41  ;;  %v1669_v15 = vpop.f32.mrf.mxu0 }
 0x170   : > { %v1772_v8 = vadd.f32 %v1669_v15, %v15146_v30  ;;  %v15278_v13 = vadd.f32 %v13234_v4, %v1774_v53  ;;  %v13242_v36 = vpop.f32.mrf.mxu1 }
 0x171   : > { %v13201_v44 = vpop.f32.mrf.mxu0 }
 0x172   : > { %v1775_v9 = vadd.f32 %v13201_v44, %v15151_v1  ;;  %v15281_v54 = vadd.f32 %v1966_v55, %v1772_v8  ;;  %v1998_v24 = vpop.f32.mrf.mxu1 }
 0x173   : > { %v15283_v10 = vpop.f32.mrf.mxu0 }
 0x174   : > { %18849 = vst [vmem:[#allocation16_spill] sm:$0xff] %v15283_v10  ;;  %v15285_v61 = vadd.f32 %v13235_v0, %v1775_v9  ;;  %v13243_v50 = vpop.f32.mrf.mxu1 }
 0x175   : > { %v13204_v26 = vpop.f32.mrf.mxu0 }
 0x176   : > { %v1778_v60 = vadd.f32 %v13204_v26, %v15164_v21  ;;  %v15288_v41 = vpop.f32.mrf.mxu1 }
 0x177   : > { %18850 = vst [vmem:[#allocation17_spill] sm:$0xff] %v15288_v41  ;;  %v1685_v30 = vpop.f32.mrf.mxu0 }
 0x178   : > { %v1776_v4 = vadd.f32 %v1685_v30, %v15167_v28  ;;  %v15291_v53 = vadd.f32 %v13238_v19, %v1778_v60  ;;  %v13246_v15 = vpop.f32.mrf.mxu1 }
 0x179   : > { %v13205_v1 = vpop.f32.mrf.mxu0 }
 0x17a   : > { %v1779_v55 = vadd.f32 %v13205_v1, %v15172_v59  ;;  %v15294_v8 = vadd.f32 %v1982_v42, %v1776_v4  ;;  %v2014_v44 = vpop.f32.mrf.mxu1 }
 0x17b   : > { %v15296_v0 = vpop.f32.mrf.mxu0 }
 0x17c   : > { %18851 = vst [vmem:[#allocation18_spill] sm:$0xff] %v15296_v0  ;;  %v15298_v9 = vadd.f32 %v13239_v37, %v1779_v55  ;;  %v13247_v10 = vpop.f32.mrf.mxu1 }
 0x17d   : > { %v13208_v21 = vpop.f32.mrf.mxu0 }
 0x17e   : > { %v1782_v26 = vadd.f32 %v13208_v21, %v15184_v45  ;;  %v15301_v41 = vpop.f32.mrf.mxu1 }
 0x17f   : > { %18852 = vst [vmem:[#allocation19_spill] sm:$0xff] %v15301_v41  ;;  %v1701_v28 = vpop.f32.mrf.mxu0 }
 0x180   : > { %v1780_v19 = vadd.f32 %v1701_v28, %v15187_v38  ;;  %v15304_v60 = vadd.f32 %v13242_v36, %v1782_v26  ;;  %v13250_v30 = vpop.f32.mrf.mxu1 }
 0x181   : > { %v13209_v59 = vpop.f32.mrf.mxu0 }
 0x182   : > { %v1783_v42 = vadd.f32 %v13209_v59, %v15191_v3  ;;  %v15307_v4 = vadd.f32 %v1998_v24, %v1780_v19  ;;  %v2030_v1 = vpop.f32.mrf.mxu1 }
 0x183   : > { %v15309_v37 = vpop.f32.mrf.mxu0 }
 0x184   : > { %18853 = vst [vmem:[#allocation20_spill] sm:$0xff] %v15309_v37  ;;  %v15311_v55 = vadd.f32 %v13243_v50, %v1783_v42  ;;  %v13251_v0 = vpop.f32.mrf.mxu1 }
 0x185   : > { %v13212_v45 = vpop.f32.mrf.mxu0 }
 0x186   : > { %v1786_v21 = vadd.f32 %v13212_v45, %v15201_v40  ;;  %v15314_v41 = vpop.f32.mrf.mxu1 }
 0x187   : > { %18854 = vst [vmem:[#allocation21_spill] sm:$0xff] %v15314_v41  ;;  %v1717_v38 = vpop.f32.mrf.mxu0 }
 0x188   : > { %v1784_v36 = vadd.f32 %v1717_v38, %v15204_v5  ;;  %v15317_v26 = vadd.f32 %v13246_v15, %v1786_v21  ;;  %v13254_v28 = vpop.f32.mrf.mxu1 }
 0x189   : > { %v13213_v3 = vpop.f32.mrf.mxu0 }
 0x18a   : > { %v1787_v24 = vadd.f32 %v13213_v3, %v15208_v33  ;;  %v15320_v19 = vadd.f32 %v2014_v44, %v1784_v36  ;;  %v2046_v59 = vpop.f32.mrf.mxu1 }
 0x18b   : > { %v15322_v50 = vpop.f32.mrf.mxu0 }
 0x18c   : > { %v15324_v42 = vadd.f32 %v13247_v10, %v1787_v24  ;;  %v13255_v37 = vpop.f32.mrf.mxu1 }
 0x18d   : > { %v13216_v40 = vpop.f32.mrf.mxu0 }
 0x18e   : > { %v1790_v45 = vadd.f32 %v13216_v40, %v15219_v43  ;;  %v15327_v41 = vpop.f32.mrf.mxu1  ;;  %v18832_v43 = vmov 0.0  }
 0x18f   : > { %v1733_v5 = vpop.f32.mrf.mxu0  ;;  %4847 = vst.msk [vmem:[#allocation2 + $0x20] sm:$0xff] %vm4649_vm2, %v18832_v43  ;;  %4842 = vst.msk [vmem:[#allocation2] sm:$0xff] %vm4649_vm2, %v18832_v43 }
 0x190   : > { %v1788_v15 = vadd.f32 %v1733_v5, %v15224_v17  ;;  %v15330_v21 = vadd.f32 %v13250_v30, %v1790_v45  ;;  %v15332_v38 = vpop.f32.mrf.mxu1  ;;  %4843 = vst.msk [vmem:[#allocation2 + $0x8] sm:$0xff] %vm4649_vm2, %v18832_v43  ;;  %4846 = vst.msk [vmem:[#allocation2 + $0x18] sm:$0xff] %vm4649_vm2, %v18832_v43 }
 0x191   : > { %v13217_v33 = vpop.f32.mrf.mxu0  ;;  %4849 = vst.msk [vmem:[#allocation2 + $0x30] sm:$0xff] %vm4649_vm2, %v18832_v43  ;;  %4850 = vst.msk [vmem:[#allocation2 + $0x38] sm:$0xff] %vm4649_vm2, %v18832_v43 }
 0x192   : > { %v1791_v44 = vadd.f32 %v13217_v33, %v15230_v63  ;;  %v15335_v36 = vadd.f32 %v2030_v1, %v1788_v15  ;;  %v15337_v10 = vpop.f32.mrf.mxu1  ;;  %4852 = vst.msk [vmem:[#allocation2 + $0x48] sm:$0xff] %vm4649_vm2, %v18832_v43  ;;  %4853 = vst.msk [vmem:[#allocation2 + $0x50] sm:$0xff] %vm4649_vm2, %v18832_v43 }
 0x193   : > { %18855 = vst [vmem:[#allocation22_spill] sm:$0xff] %v15337_v10  ;;  %v15339_v3 = vpop.f32.mrf.mxu0  ;;  %4855 = vst.msk [vmem:[#allocation2 + $0x60] sm:$0xff] %vm4649_vm2, %v18832_v43 }
 0x194   : > { %4856 = vst.msk [vmem:[#allocation2 + $0x68] sm:$0xff] %vm4649_vm2, %v18832_v43  ;;  %4858 = vst.msk [vmem:[#allocation2 + $0x78] sm:$0xff] %vm4649_vm2, %v18832_v43  ;;  %v15381_v17 = vadd.f32 %v13251_v0, %v1791_v44  ;;  %v15383_v63 = vpop.f32.mrf.mxu1 }
 0x195   : > { %4859 = vst.msk [vmem:[#allocation2 + $0x80] sm:$0xff] %vm4649_vm2, %v18832_v43  ;;  %4861 = vst.msk [vmem:[#allocation2 + $0x90] sm:$0xff] %vm4649_vm2, %v18832_v43  ;;  %v13220_v30 = vpop.f32.mrf.mxu0 }
 0x196   : > { %4862 = vst.msk [vmem:[#allocation2 + $0x98] sm:$0xff] %vm4649_vm2, %v18832_v43  ;;  %4864 = vst.msk [vmem:[#allocation2 + $0xa8] sm:$0xff] %vm4649_vm2, %v18832_v43  ;;  %v1794_v1 = vadd.f32 %v13220_v30, %v15239_v14  ;;  %v15386_v24 = vpop.f32.mrf.mxu1 }
 0x197   : > { %4865 = vst.msk [vmem:[#allocation2 + $0xb0] sm:$0xff] %vm4649_vm2, %v18832_v43  ;;  %4867 = vst.msk [vmem:[#allocation2 + $0xc0] sm:$0xff] %vm4649_vm2, %v18832_v43  ;;  %v1749_v40 = vpop.f32.mrf.mxu0 }
 0x198   : > { %4868 = vst.msk [vmem:[#allocation2 + $0xc8] sm:$0xff] %vm4649_vm2, %v18832_v43  ;;  %4870 = vst.msk [vmem:[#allocation2 + $0xd8] sm:$0xff] %vm4649_vm2, %v18832_v43  ;;  %v1792_v45 = vadd.f32 %v1749_v40, %v15242_v51  ;;  %v15389_v5 = vadd.f32 %v13254_v28, %v1794_v1  ;;  %v15391_v15 = vpop.f32.mrf.mxu1 }
 0x199   : > { %4871 = vst.msk [vmem:[#allocation2 + $0xe0] sm:$0xff] %vm4649_vm2, %v18832_v43  ;;  %18856 = vst [vmem:[#allocation23_spill] sm:$0xff] %v15383_v63  ;;  %v13221_v33 = vpop.f32.mrf.mxu0 }
 0x19a   : > { %18857 = vst [vmem:[#allocation24_spill] sm:$0xff] %v15386_v24  ;;  %18858 = vst [vmem:[#allocation25_spill] sm:$0xff] %v15391_v15  ;;  %v1795_v10 = vadd.f32 %v13221_v33, %v15246_v58  ;;  %v15394_v43 = vadd.f32 %v2046_v59, %v1792_v45  ;;  %v15396_v0 = vpop.f32.mrf.mxu1 }
 0x19b   : > { %18859 = vst [vmem:[#allocation26_spill] sm:$0xff] %v15396_v0  ;;  %v15398_v44 = vpop.f32.mrf.mxu0 }
 0x19c   : > { %v15400_v63 = vadd.f32 %v13255_v37, %v1795_v10  ;;  %v15402_v14 = vpop.f32.mrf.mxu1 }
 0x19d   : > { %18860 = vst [vmem:[#allocation27_spill] sm:$0xff] %v15402_v14  ;;  %v15404_v30 = vpop.f32.mrf.mxu0 }
 0x19e   : > { %v15406_v51 = vpop.f32.mrf.mxu1 }
 0x19f   : > { %18861 = vst [vmem:[#allocation28_spill] sm:$0xff] %v15406_v51  ;;  %v15408_v28 = vpop.f32.mrf.mxu0 }
 0x1a0   : > { %v15410_v1 = vpop.f32.mrf.mxu1 }
 0x1a1   : > { %18862 = vst [vmem:[#allocation29_spill] sm:$0xff] %v15410_v1  ;;  %v15412_v40 = vpop.f32.mrf.mxu0 }
 0x1a2   : > { %v15414_v58 = vpop.f32.mrf.mxu1 }
 0x1a3   : > { %18863 = vst [vmem:[#allocation30_spill] sm:$0xff] %v15414_v58  ;;  %v15416_v59 = vpop.f32.mrf.mxu0 }
 0x1a4   : > { %v15418_v45 = vpop.f32.mrf.mxu1 }
 0x1a5   : > { %18864 = vst [vmem:[#allocation31_spill] sm:$0xff] %v15418_v45  ;;  %v13264_v37 = vpop.f32.mrf.mxu0 }
 0x1a6   : > { %v15421_v10 = vadd.f32 %v13264_v37, %v15265_v34  ;;  %v15423_v33 = vpop.f32.mrf.mxu1 }
 0x1a7   : > { %18865 = vst [vmem:[#allocation32_spill] sm:$0xff] %v15423_v33  ;;  %v2244_v14 = vpop.f32.mrf.mxu0 }
 0x1a8   : > { %v15426_v51 = vadd.f32 %v2244_v14, %v15268_v25  ;;  %v15428_v0 = vpop.f32.mrf.mxu1 }
 0x1a9   : > { %18866 = vst [vmem:[#allocation33_spill] sm:$0xff] %v15428_v0  ;;  %v13265_v1 = vpop.f32.mrf.mxu0 }
 0x1aa   : > { %v15431_v15 = vadd.f32 %v13265_v1, %v15272_v47  ;;  %v15433_v58 = vpop.f32.mrf.mxu1 }
 0x1ab   : > { %18868 = vst [vmem:[#allocation35_spill] sm:$0xff] %v15433_v58  ;;  %v15435_v24 = vpop.f32.mrf.mxu0 }
 0x1ac   : > { %18867 = vst [vmem:[#allocation34_spill] sm:$0xff] %v15431_v15  ;;  %v15437_v45 = vpop.f32.mrf.mxu1 }
 0x1ad   : > { %18869 = vst [vmem:[#allocation36_spill] sm:$0xff] %v15437_v45  ;;  %v13268_v34 = vpop.f32.mrf.mxu0 }
 0x1ae   : > { %v15440_v37 = vadd.f32 %v13268_v34, %v15278_v13  ;;  %v15442_v33 = vpop.f32.mrf.mxu1 }
 0x1af   : > { %18870 = vst [vmem:[#allocation37_spill] sm:$0xff] %v15442_v33  ;;  %v2260_v25 = vpop.f32.mrf.mxu0 }
 0x1b0   : > { %v15445_v14 = vadd.f32 %v2260_v25, %v15281_v54  ;;  %v15447_v0 = vpop.f32.mrf.mxu1 }
 0x1b1   : > { %18871 = vst [vmem:[#allocation38_spill] sm:$0xff] %v15447_v0  ;;  %v13269_v47 = vpop.f32.mrf.mxu0 }
 0x1b2   : > { %v15450_v1 = vadd.f32 %v13269_v47, %v15285_v61  ;;  %v15452_v58 = vpop.f32.mrf.mxu1 }
 0x1b3   : > { %18873 = vst [vmem:[#allocation40_spill] sm:$0xff] %v15452_v58  ;;  %v15454_v15 = vpop.f32.mrf.mxu0 }
 0x1b4   : > { %18872 = vst [vmem:[#allocation39_spill] sm:$0xff] %v15450_v1  ;;  %v15456_v45 = vpop.f32.mrf.mxu1 }
 0x1b5   : > { %18874 = vst [vmem:[#allocation41_spill] sm:$0xff] %v15456_v45  ;;  %v13272_v13 = vpop.f32.mrf.mxu0 }
 0x1b6   : > { %v15459_v34 = vadd.f32 %v13272_v13, %v15291_v53  ;;  %v15461_v33 = vpop.f32.mrf.mxu1 }
 0x1b7   : > { %18875 = vst [vmem:[#allocation42_spill] sm:$0xff] %v15461_v33  ;;  %v2276_v54 = vpop.f32.mrf.mxu0 }
 0x1b8   : > { %v15464_v25 = vadd.f32 %v2276_v54, %v15294_v8  ;;  %v15469_v47 = vpop.f32.mrf.mxu1 }
 0x1b9   : > { %v13273_v0 = vpop.f32.mrf.mxu0  ;;  %18877 = vst [vmem:[#allocation44_spill] sm:$0xff] %v15469_v47 }
 0x1ba   : > { %v15467_v61 = vadd.f32 %v13273_v0, %v15298_v9  ;;  %v15476_v53 = vpop.f32.mrf.mxu1 }
 0x1bb   : > { %v15471_v58 = vpop.f32.mrf.mxu0  ;;  %18878 = vst [vmem:[#allocation45_spill] sm:$0xff] %v15476_v53 }
 0x1bc   : > { %18876 = vst [vmem:[#allocation43_spill] sm:$0xff] %v15467_v61  ;;  %v15484_v9 = vpop.f32.mrf.mxu1 }
 0x1bd   : > { %v13276_v1 = vpop.f32.mrf.mxu0  ;;  %18879 = vst [vmem:[#allocation46_spill] sm:$0xff] %v15484_v9 }
 0x1be   : > { %v15474_v45 = vadd.f32 %v13276_v1, %v15304_v60  ;;  %v15491_v60 = vpop.f32.mrf.mxu1 }
 0x1bf   : > { %v2292_v13 = vpop.f32.mrf.mxu0 }
 0x1c0   : > { %v15479_v33 = vadd.f32 %v2292_v13, %v15307_v4 }
 0x1c1   : > { %v13277_v8 = vpop.f32.mrf.mxu0 }
 0x1c2   : > { %v15482_v54 = vadd.f32 %v13277_v8, %v15311_v55  ;;  %v15499_v55 = vpop.f32.mrf.mxu1  ;;  %v853_v8 = vadd.f32 %v15027_v12, %v15039_v22 }
 0x1c3   : > { %v15486_v0 = vpop.f32.mrf.mxu0  ;;  %18880 = vst [vmem:[#allocation47_spill] sm:$0xff] %v15499_v55 }
 0x1c5   : > { %v13280_v47 = vpop.f32.mrf.mxu0 }
 0x1c6   : > { %v15489_v61 = vadd.f32 %v13280_v47, %v15317_v26  ;;  %v869_v26 = vadd.f32 %v15045_v39, %v15059_v57  ;;  %v885_v47 = vadd.f32 %v15065_v56, %v15074_v6  ;;  %v15520_v57 = vpop.f32.mrf.mxu1  ;;  %v1476_v56 = vadd.f32 %v15105_v11, %v15129_v20  ;;  %v18883_v20 = vld [vmem:[#allocation5_spill] sm:$0xff] }
 0x1c7   : > { %v2308_v1 = vpop.f32.mrf.mxu0 }
 0x1c8   : > { %v15494_v53 = vadd.f32 %v2308_v1, %v15320_v19  ;;  %v901_v19 = vadd.f32 %v15082_v46, %v15090_v48  ;;  %v1190_v1 = vadd.f32 %v15189_v18, %v853_v8  ;;  %v1194_v55 = vadd.f32 %v15206_v23, %v869_v26 }
 0x1c9   : > { %v13281_v4 = vpop.f32.mrf.mxu0  ;;  %v1198_v12 = vadd.f32 %v15228_v16, %v885_v47  ;;  %v14457_v46 = vmov 1983009808   ;;  %v1480_v23 = vadd.f32 %v15120_v62, %v15149_v7  ;;  %v18881_v16 = vld [vmem:[#allocation3_spill] sm:$0xff]  ;;  %v1769_v26 = vadd.f32 %v15270_v35, %v1476_v56  ;;  %v18886_v62 = vld [vmem:[#allocation10_spill] sm:$0xff]  ;;  %v18890_v56 = vld [vmem:[#allocation12_spill] sm:$0xff] }
 0x1ca   : > { %v15497_v13 = vadd.f32 %v13281_v4, %v15324_v42  ;;  %v1472_v42 = vadd.f32 %v15096_v29, %v15111_v32  ;;  %v1202_v22 = vadd.f32 %v15244_v52, %v901_v19  ;;  %v3082_v48 = vunpack.c.l.s4 %v14457_v46  ;;  %v18887_v7 = vld [vmem:[#allocation6_spill] sm:$0xff] }
 0x1cb   : > { %v15503_v9 = vpop.f32.mrf.mxu0  ;;  %v3084_v29 = vlaneseq  ;;  %v1484_v52 = vadd.f32 %v18881_v16, %v15170_v31  ;;  %v1492_v47 = vadd.f32 %v18883_v20, %v1194_v55  ;;  %v1496_v19 = vadd.f32 %v15198_v2, %v1198_v12  ;;  %v18888_v31 = vld [vmem:[#allocation16_spill] sm:$0xff]  ;;  %v18891_v55 = vld [vmem:[#allocation7_spill] sm:$0xff]  ;;  %v18892_v2 = vld [vmem:[#allocation13_spill] sm:$0xff] }
 0x1cc   : > { %v1765_v32 = vadd.f32 %v15259_v49, %v1472_v42  ;;  %v1500_v49 = vadd.f32 %v15216_v27, %v1202_v22  ;;  %v15540_v42 = vpop.f32.mrf.mxu1  ;;  %v3083_v46 = vunpack.c.0.s8 %v3082_v48  ;;  %v2061_v16 = vadd.f32 %v18891_v55, %v18890_v56  ;;  %v18893_v12 = vld [vmem:[#allocation8_spill] sm:$0xff]  ;;  %v18894_v22 = vld [vmem:[#allocation9_spill] sm:$0xff]  ;;  %v18896_v20 = vld [vmem:[#allocation11_spill] sm:$0xff] }
 0x1cd   : > { %v13284_v4 = vpop.f32.mrf.mxu0  ;;  %v15545_v35 = vshrl.u32 %v3084_v29, 7  ;;  %v2064_v27 = vadd.f32 %v18893_v12, %v18892_v2  ;;  %v1789_v48 = vadd.f32 %v15339_v3, %v1496_v19  ;;  %v18899_v3 = vld [vmem:[#allocation15_spill] sm:$0xff] }
 0x1ce   : > { %v15518_v39 = vadd.f32 %v13284_v4, %v15330_v21  ;;  %v18882_v21 = vld [vmem:[#allocation4_spill] sm:$0xff]  ;;  %v2063_v4 = vadd.f32 %v18887_v7, %v18886_v62  ;;  %v1793_v7 = vadd.f32 %v15398_v44, %v1500_v49  ;;  %v2355_v56 = vadd.f32 %v15408_v28, %v2061_v16 }
 0x1cf   : > { %v2324_v6 = vpop.f32.mrf.mxu0  ;;  %v1488_v8 = vadd.f32 %v18882_v21, %v1190_v1  ;;  %18885 = vst [vmem:[#allocation4_spill] sm:$0xff] %v15540_v42  ;;  %18889 = vst [vmem:[#allocation5_spill] sm:$0xff] %v15545_v35  ;;  %v18895_v21 = vld [vmem:[#allocation18_spill] sm:$0xff]  ;;  %v2066_v42 = vadd.f32 %v18896_v20, %v1769_v26  ;;  %v15574_v28 = vsub.s32 %v3083_v46, %v15545_v35 }
 0x1d0   : > { %v15526_v18 = vadd.f32 %v2324_v6, %v15335_v36  ;;  %v1773_v6 = vadd.f32 %v18888_v31, %v1480_v23  ;;  %v1785_v23 = vadd.f32 %v15322_v50, %v1492_v47  ;;  %v2357_v31 = vadd.f32 %v15404_v30, %v2063_v4 }
 0x1d1   : > { %v13285_v11 = vpop.f32.mrf.mxu0  ;;  %v2360_v44 = vadd.f32 %v15435_v24, %v2066_v42  ;;  %v15581_v2 = vadd.f32 %v15327_v41, %v1793_v7  ;;  %v18904_v42 = vld [vmem:[#allocation22_spill] sm:$0xff] }
 0x1d2   : > { %v15538_v36 = vadd.f32 %v13285_v11, %v15381_v17  ;;  %v2062_v17 = vadd.f32 %v18894_v22, %v1765_v32  ;;  %v1777_v11 = vadd.f32 %v18895_v21, %v1484_v52  ;;  %v15563_v32 = vpop.f32.mrf.mxu1  ;;  %v18898_v52 = vld [vmem:[#allocation14_spill] sm:$0xff]  ;;  %v2654_v24 = vadd.f32 %v15332_v38, %v2357_v31  ;;  %v18913_v31 = vld [vmem:[#allocation29_spill] sm:$0xff] }
 0x1d3   : > { %v2327_v1 = vpop.f32.mrf.mxu0  ;;  %v2070_v26 = vadd.f32 %v18898_v52, %v1773_v6  ;;  %v18902_v6 = vld [vmem:[#allocation21_spill] sm:$0xff]  ;;  %18903 = vst [vmem:[#allocation10_spill] sm:$0xff] %v15581_v2  ;;  %v18909_v41 = vld [vmem:[#allocation26_spill] sm:$0xff]  ;;  %v18915_v52 = vld [vmem:[#allocation39_spill] sm:$0xff] }
 0x1d4   : > { %18884 = vst [vmem:[#allocation3_spill] sm:$0xff] %v15538_v36  ;;  %v18897_v36 = vld [vmem:[#allocation20_spill] sm:$0xff]  ;;  %v2356_v50 = vadd.f32 %v15416_v59, %v2062_v17  ;;  %v2074_v19 = vadd.f32 %v18899_v3, %v1777_v11  ;;  %v2086_v16 = vadd.f32 %v18902_v6, %v1789_v48  ;;  %v13322_v12 = vpop.f32.mrf.mxu1  ;;  %v18907_v11 = vld [vmem:[#allocation25_spill] sm:$0xff]  ;;  %v15597_v38 = vadd.f32 %v18909_v41, %v15426_v51  ;;  %v18911_v48 = vld [vmem:[#allocation27_spill] sm:$0xff] }
 0x1d5   : > { %v1781_v62 = vadd.f32 %v18897_v36, %v1488_v8  ;;  %v13288_v29 = vpop.f32.mrf.mxu0  ;;  %v2358_v8 = vadd.f32 %v15412_v40, %v2064_v27  ;;  %v18901_v36 = vld [vmem:[#allocation19_spill] sm:$0xff]  ;;  %v2364_v40 = vadd.f32 %v15454_v15, %v2070_v26  ;;  %v18906_v17 = vld [vmem:[#allocation24_spill] sm:$0xff]  ;;  %v15590_v20 = vadd.f32 %v18907_v11, %v15421_v10  ;;  %v18923_v11 = vld [vmem:[#allocation38_spill] sm:$0xff] }
 0x1d6   : > { %v15561_v55 = vadd.f32 %v13288_v29, %v15389_v5  ;;  %v18900_v5 = vld [vmem:[#allocation17_spill] sm:$0xff]  ;;  %v2082_v4 = vadd.f32 %v18901_v36, %v1785_v23  ;;  %v18905_v27 = vld [vmem:[#allocation23_spill] sm:$0xff]  ;;  %v2653_v21 = vadd.f32 %v18906_v17, %v2356_v50  ;;  %v2368_v15 = vadd.f32 %v15471_v58, %v2074_v19  ;;  %v18910_v23 = vld [vmem:[#allocation34_spill] sm:$0xff] }
 0x1d7   : > { %v2340_v47 = vpop.f32.mrf.mxu0  ;;  %v2078_v49 = vadd.f32 %v18900_v5, %v1781_v62  ;;  %v2655_v22 = vadd.f32 %v18905_v27, %v2358_v8  ;;  %v18912_v29 = vld [vmem:[#allocation28_spill] sm:$0xff]  ;;  %v15608_v10 = vadd.f32 %v18913_v31, %v15440_v37  ;;  %v18914_v58 = vld [vmem:[#allocation30_spill] sm:$0xff]  ;;  %v18916_v26 = vld [vmem:[#allocation31_spill] sm:$0xff]  ;;  %v15648_v41 = vadd.f32 %v18923_v11, %v15474_v45 }
 0x1d8   : > { %v15571_v30 = vadd.f32 %v2340_v47, %v15394_v43  ;;  %v2652_v43 = vadd.f32 %v18904_v42, %v2355_v56  ;;  %v15604_v7 = vadd.f32 %v18912_v29, %v2360_v44  ;;  %v15612_v56 = vadd.f32 %v18914_v58, %v15445_v14  ;;  %v18917_v51 = vld [vmem:[#allocation32_spill] sm:$0xff]  ;;  %v15625_v19 = vld [vmem:[%s18822_s2] ss:$0 sm:$0xff]  ;;  %v18919_v5 = vld [vmem:[#allocation35_spill] sm:$0xff] }
 0x1d9   : > { %v13289_v59 = vpop.f32.mrf.mxu0  ;;  %v15616_v8 = vadd.f32 %v18916_v26, %v18915_v52  ;;  %v15619_v50 = vadd.f32 %v18917_v51, %v2364_v40  ;;  %v2372_v47 = vadd.f32 %v15486_v0, %v2078_v49  ;;  %v13530_v37 = vld [vmem:[%s18823_s3 + $0x38] sm:$0xff]   ;;  %v18918_v14 = vld [vmem:[#allocation33_spill] sm:$0xff]  ;;  %v15636_v36 = vadd.f32 %v18919_v5, %v15464_v25  ;;  %v2637_v49 = vpop.f32.mrf.mxu1  ;;  %v18920_v40 = vld [vmem:[#allocation43_spill] sm:$0xff] }
 0x1da   : > { %v2386_v46 = vadd.f32 %v13289_v59, %v15400_v63  ;;  %v15601_v63 = vadd.f32 %v18911_v48, %v18910_v23  ;;  %v15632_v44 = vadd.f32 %v18918_v14, %v15459_v34  ;;  %v2376_v0 = vadd.f32 %v15503_v9, %v2082_v4  ;;  %v18921_v59 = vld [vmem:[#allocation36_spill] sm:$0xff]  ;;  %v18922_v27 = vld [vmem:[#allocation37_spill] sm:$0xff]  ;;  %13358 = vmatprep.subr.bf16.mxu1 %v13530_v37 }
 0x1db   : > { %v15593_v62 = vpop.f32.mrf.mxu0  ;;  %v15641_v42 = vadd.f32 %v18921_v59, %v18920_v40  ;;  %v15644_v17 = vadd.f32 %v18922_v27, %v2368_v15  ;;  %v2380_v34 = vadd.f32 %v2327_v1, %v2086_v16  ;;  %v18924_v25 = vld [vmem:[#allocation40_spill] sm:$0xff]  ;;  %v18925_v9 = vld [vmem:[#allocation41_spill] sm:$0xff]  ;;  %13359 = vmatpush3.bf16.msra.mxu1 %v13530_v37  ;;  %v18926_v15 = vld [vmem:[#allocation42_spill] sm:$0xff] }
 0x1dc   : > { %18908 = vst [vmem:[#allocation6_spill] sm:$0xff] %v15593_v62  ;;  %v15652_v48 = vadd.f32 %v18924_v25, %v15479_v33  ;;  %v15656_v4 = vadd.f32 %v18925_v9, %v15482_v54  ;;  %v15660_v31 = vadd.f32 %v18926_v15, %v2372_v47  ;;  %v18927_v45 = vld [vmem:[#allocation44_spill] sm:$0xff]  ;;  %v18928_v16 = vld [vmem:[#allocation45_spill] sm:$0xff]  ;;  %v18929_v33 = vld [vmem:[#allocation46_spill] sm:$0xff]  ;;  %v15675_v26 = vadd.f32 %v15491_v60, %v2376_v0 }
 0x1dd   : > { %v13328_v3 = vpop.f32.mrf.mxu0  ;;  %v15664_v1 = vadd.f32 %v18927_v45, %v15489_v61  ;;  %v15668_v58 = vadd.f32 %v18928_v16, %v15494_v53  ;;  %v15672_v52 = vadd.f32 %v18929_v33, %v15497_v13  ;;  %v18930_v61 = vld [vmem:[#allocation47_spill] sm:$0xff]  ;;  %v15684_v53 = vadd.f32 %v15520_v57, %v15526_v18  ;;  %v18932_v13 = vld [vmem:[#allocation4_spill] sm:$0xff] }
 0x1de   : > { %v2947_v6 = vadd.f32 %v13328_v3, %v2654_v24  ;;  %v15680_v37 = vadd.f32 %v18930_v61, %v15518_v39  ;;  %v18931_v14 = vld [vmem:[#allocation3_spill] sm:$0xff]  ;;  %v15691_v60 = vadd.f32 %v15563_v32, %v2380_v34  ;;  %v15696_v39 = vadd.f32 %v13322_v12, %v15561_v55 }
 0x1df   : > { %v2818_v23 = vpop.f32.mrf.mxu0  ;;  %v15688_v5 = vadd.f32 %v18932_v13, %v18931_v14  ;;  %v15699_v57 = vadd.f32 %v2637_v49, %v15571_v30 }
 0x1e0   : > { %v2986_v24 = vadd.f32 %v15625_v19, %v2947_v6  ;;  %v2945_v29 = vadd.f32 %v2818_v23, %v2652_v43  ;;  %v13323_v43 = vpop.f32.mrf.mxu1 }
 0x1e1   : > { %v13329_v54 = vpop.f32.mrf.mxu0  ;;  %v15701_v18 = vadd.f32 %v13323_v43, %v2386_v46 }
 0x1e2   : > { %v3018_v51 = vmax.f32 %v2986_v24, 0.0  ;;  %v2984_v47 = vadd.f32 %v15625_v19, %v2945_v29  ;;  %v2948_v3 = vadd.f32 %v13329_v54, %v2655_v22 }
 0x1e3   : > { %v2821_v0 = vpop.f32.mrf.mxu0 }
 0x1e4   : > { %v3114_v6 = vcombine.high %v3018_v51, %v3018_v51  ;;  %v3121_v40 = vrot.slane %v3018_v51, %v15574_v28  ;;  %v3016_v22 = vmax.f32 %v2984_v47, 0.0  ;;  %v2987_v59 = vadd.f32 %v15625_v19, %v2948_v3 }
 0x1e5   : > { %v2946_v27 = vadd.f32 %v2821_v0, %v2653_v21 }
 0x1e6   : > { %v3128_v11 = vrot.slane %v3114_v6, %v15574_v28  ;;  %v3129_v32 = vcombine.high %v3121_v40, %v3121_v40  ;;  %v3809_v34 = vsel %vm3752_vm3, %v3121_v40, -inf  ;;  %v3080_v23 = vcombine.high %v3016_v22, %v3016_v22 }
 0x1e7   : > { %v3810_v25 = vrot.slane %v3809_v34, 4  ;;  %v3087_v9 = vrot.slane %v3016_v22, %v15574_v28  ;;  %v15706_v24 = vmax.f32 %v2987_v59, 0.0  ;;  %v15709_v55 = vadd.f32 %v15625_v19, %v2946_v27 }
 0x1e8   : > { %v3130_v12 = vcombine.high %v3128_v11, %v3128_v11  ;;  %v3816_v30 = vsel %vm3752_vm3, %v3129_v32, -inf  ;;  %v3823_v46 = vsel %vm3752_vm3, %v3128_v11, -inf  ;;  %v3094_v21 = vrot.slane %v3080_v23, %v15574_v28 }
 0x1e9   : > { %v3811_v49 = vmax.f32 %v3809_v34, %v3810_v25  ;;  %v3817_v29 = vrot.slane %v3816_v30, 4  ;;  %v3824_v15 = vrot.slane %v3823_v46, 4  ;;  %v3095_v45 = vcombine.high %v3087_v9, %v3087_v9 }
 0x1ea   : > { %v3830_v16 = vsel %vm3752_vm3, %v3130_v12, -inf  ;;  %v3096_v33 = vcombine.high %v3094_v21, %v3094_v21  ;;  %v3753_v54 = vsel %vm3752_vm3, %v3087_v9, -inf  ;;  %v3767_v43 = vsel %vm3752_vm3, %v3094_v21, -inf }
 0x1eb   : > { %v3812_v51 = vrot.slane %v3811_v49, 2  ;;  %v3818_v47 = vmax.f32 %v3816_v30, %v3817_v29  ;;  %v3825_v3 = vmax.f32 %v3823_v46, %v3824_v15  ;;  %v3831_v61 = vrot.slane %v3830_v16, 4 }
 0x1ec   : > { %v3754_v14 = vrot.slane %v3753_v54, 4  ;;  %v3760_v13 = vsel %vm3752_vm3, %v3095_v45, -inf  ;;  %v3768_v0 = vrot.slane %v3767_v43, 4  ;;  %v3774_v6 = vsel %vm3752_vm3, %v3096_v33, -inf }
 0x1ed   : > { %v3813_v40 = vmax.f32 %v3811_v49, %v3812_v51  ;;  %v3819_v22 = vrot.slane %v3818_v47, 2  ;;  %v3826_v59 = vrot.slane %v3825_v3, 2  ;;  %v3832_v27 = vmax.f32 %v3830_v16, %v3831_v61 }
 0x1ee   : > { %v3755_v11 = vmax.f32 %v3753_v54, %v3754_v14  ;;  %v3761_v32 = vrot.slane %v3760_v13, 4  ;;  %v3769_v34 = vmax.f32 %v3767_v43, %v3768_v0  ;;  %v3775_v23 = vrot.slane %v3774_v6, 4 }
 0x1ef   : > { %v3814_v25 = vrot.slane %v3813_v40, 1  ;;  %v3820_v9 = vmax.f32 %v3818_v47, %v3819_v22  ;;  %v3827_v12 = vmax.f32 %v3825_v3, %v3826_v59  ;;  %v3833_v30 = vrot.slane %v3832_v27, 2 }
 0x1f0   : > { %v3756_v46 = vrot.slane %v3755_v11, 2  ;;  %v3762_v21 = vmax.f32 %v3760_v13, %v3761_v32  ;;  %v3770_v29 = vrot.slane %v3769_v34, 2  ;;  %v3776_v15 = vmax.f32 %v3774_v6, %v3775_v23 }
 0x1f1   : > { %v3815_v45 = vmax.f32 %v3813_v40, %v3814_v25  ;;  %v3821_v35 = vrot.slane %v3820_v9, 1  ;;  %v3828_v62 = vrot.slane %v3827_v12, 1  ;;  %v3834_v33 = vmax.f32 %v3832_v27, %v3833_v30 }
 0x1f2   : > { %v3757_v49 = vmax.f32 %v3755_v11, %v3756_v46  ;;  %v3763_v51 = vrot.slane %v3762_v21, 2  ;;  %v3771_v2 = vmax.f32 %v3769_v34, %v3770_v29  ;;  %v3777_v16 = vrot.slane %v3776_v15, 2 }
 0x1f3   : > { %v3822_v54 = vmax.f32 %v3820_v9, %v3821_v35  ;;  %v3829_v43 = vmax.f32 %v3827_v12, %v3828_v62  ;;  %v3835_v61 = vrot.slane %v3834_v33, 1  ;;  %v4651_v47 = vsel %vm4649_vm2, %v3815_v45, -inf }
 0x1f4   : > { %v3758_v3 = vrot.slane %v3757_v49, 1  ;;  %v3764_v14 = vmax.f32 %v3762_v21, %v3763_v51  ;;  %v3772_v13 = vrot.slane %v3771_v2, 1  ;;  %v3778_v0 = vmax.f32 %v3776_v15, %v3777_v16 }
 0x1f5   : > { %v3836_v6 = vmax.f32 %v3834_v33, %v3835_v61  ;;  %v4654_v40 = vsel %vm4649_vm2, %v3822_v54, -inf  ;;  %v4657_v22 = vsel %vm4649_vm2, %v3829_v43, -inf  ;;  %v3131_v59 = vcombine.high %v15706_v24, %v15706_v24 }
 0x1f6   : > { %v3759_v27 = vmax.f32 %v3757_v49, %v3758_v3  ;;  %v3765_v11 = vrot.slane %v3764_v14, 1  ;;  %v3773_v35 = vmax.f32 %v3771_v2, %v3772_v13  ;;  %v3779_v62 = vrot.slane %v3778_v0, 1 }
 0x1f7   : > { %v15725_v32 = vsel %vm4649_vm2, %v3836_v6, -inf  ;;  %v3138_v34 = vrot.slane %v15706_v24, %v15574_v28  ;;  %v3145_v23 = vrot.slane %v3131_v59, %v15574_v28  ;;  %v3017_v25 = vmax.f32 %v15709_v55, 0.0 }
 0x1f8   : > { %v3766_v9 = vmax.f32 %v3764_v14, %v3765_v11  ;;  %v3780_v12 = vmax.f32 %v3778_v0, %v3779_v62  ;;  %v4650_v30 = vsel %vm4649_vm2, %v3759_v27, -inf  ;;  %v4656_v46 = vsel %vm4649_vm2, %v3773_v35, -inf  ;;  %v15743_v14 = vpop.f32.mrf.mxu0 }
 0x1f9   : > { %v4652_v21 = vmax.f32 %v4650_v30, %v4651_v47  ;;  %v4658_v29 = vmax.f32 %v4656_v46, %v4657_v22  ;;  %v3146_v2 = vcombine.high %v3138_v34, %v3138_v34  ;;  %v3147_v15 = vcombine.high %v3145_v23, %v3145_v23 }
 0x1fa   : > { %v4653_v45 = vsel %vm4649_vm2, %v3766_v9, -inf  ;;  %v15735_v33 = vsel %vm4649_vm2, %v3780_v12, -inf  ;;  %v3837_v24 = vsel %vm3752_vm3, %v3138_v34, -inf  ;;  %v3851_v49 = vsel %vm3752_vm3, %v3145_v23, -inf }
 0x1fb   : > { %v4655_v55 = vmax.f32 %v4653_v45, %v4654_v40  ;;  %v3838_v16 = vrot.slane %v3837_v24, 4  ;;  %v3844_v54 = vsel %vm3752_vm3, %v3146_v2, -inf  ;;  %v3852_v61 = vrot.slane %v3851_v49, 4 }
 0x1fc   : > { %v3845_v43 = vrot.slane %v3844_v54, 4  ;;  %v3858_v47 = vsel %vm3752_vm3, %v3147_v15, -inf  ;;  %v3097_v3 = vcombine.high %v3017_v25, %v3017_v25  ;;  %v3104_v22 = vrot.slane %v3017_v25, %v15574_v28 }
 0x1fd   : > { %v4938_v13 = vsel %vm4937_vm4, %v4655_v55, %v4652_v21  ;;  %v3839_v0 = vmax.f32 %v3837_v24, %v3838_v16  ;;  %v3859_v6 = vrot.slane %v3858_v47, 4  ;;  %v3853_v27 = vmax.f32 %v3851_v49, %v3852_v61  ;;  %v2834_v21 = vpop.f32.mrf.mxu0 }
 0x1fe   : > { %v4940_v40 = vsel %vm4939_vm5, %v4658_v29, %v4938_v13  ;;  %v3846_v59 = vmax.f32 %v3844_v54, %v3845_v43  ;;  %v3111_v11 = vrot.slane %v3097_v3, %v15574_v28  ;;  %v3112_v34 = vcombine.high %v3104_v22, %v3104_v22 }
 0x1ff   : > { %v3840_v35 = vrot.slane %v3839_v0, 2  ;;  %v3860_v62 = vmax.f32 %v3858_v47, %v3859_v6  ;;  %v3781_v23 = vsel %vm3752_vm3, %v3104_v22, -inf  ;;  %v3854_v12 = vrot.slane %v3853_v27, 2 }
 0x200   : > { %v3847_v9 = vrot.slane %v3846_v59, 2  ;;  %v3113_v30 = vcombine.high %v3111_v11, %v3111_v11  ;;  %v3782_v46 = vrot.slane %v3781_v23, 4  ;;  %v3788_v25 = vsel %vm3752_vm3, %v3112_v34, -inf }
 0x201   : > { %v3841_v2 = vmax.f32 %v3839_v0, %v3840_v35  ;;  %v3861_v15 = vrot.slane %v3860_v62, 2  ;;  %v3795_v29 = vsel %vm3752_vm3, %v3111_v11, -inf  ;;  %v3855_v24 = vmax.f32 %v3853_v27, %v3854_v12  ;;  %v13333_v0 = vpop.f32.mrf.mxu0 }
 0x202   : > { %v3848_v45 = vmax.f32 %v3846_v59, %v3847_v9  ;;  %v3783_v49 = vmax.f32 %v3781_v23, %v3782_v46  ;;  %v3789_v55 = vrot.slane %v3788_v25, 4  ;;  %v3796_v43 = vrot.slane %v3795_v29, 4 }
 0x203   : > { %v3842_v16 = vrot.slane %v3841_v2, 1  ;;  %v3862_v54 = vmax.f32 %v3860_v62, %v3861_v15  ;;  %v3802_v61 = vsel %vm3752_vm3, %v3113_v30, -inf  ;;  %v3856_v3 = vrot.slane %v3855_v24, 1 }
 0x204   : > { %v3849_v47 = vrot.slane %v3848_v45, 1  ;;  %v3784_v13 = vrot.slane %v3783_v49, 2  ;;  %v3790_v6 = vmax.f32 %v3788_v25, %v3789_v55  ;;  %v3797_v34 = vmax.f32 %v3795_v29, %v3796_v43  ;;  %v2837_v55 = vpop.f32.mrf.mxu0 }
 0x205   : > { %v3843_v22 = vmax.f32 %v3841_v2, %v3842_v16  ;;  %v3863_v35 = vrot.slane %v3862_v54, 1  ;;  %v3803_v51 = vrot.slane %v3802_v61, 4  ;;  %v3857_v59 = vmax.f32 %v3855_v24, %v3856_v3 }
 0x206   : > { %v3850_v11 = vmax.f32 %v3848_v45, %v3849_v47  ;;  %v3785_v27 = vmax.f32 %v3783_v49, %v3784_v13  ;;  %v3791_v23 = vrot.slane %v3790_v6, 2  ;;  %v3798_v12 = vrot.slane %v3797_v34, 2 }
 0x207   : > { %v3864_v9 = vmax.f32 %v3862_v54, %v3863_v35  ;;  %v4663_v62 = vsel %vm4649_vm2, %v3843_v22, -inf  ;;  %v3804_v30 = vmax.f32 %v3802_v61, %v3803_v51  ;;  %v4669_v15 = vsel %vm4649_vm2, %v3857_v59, -inf }
 0x208   : > { %v4666_v46 = vsel %vm4649_vm2, %v3850_v11, -inf  ;;  %v3786_v25 = vrot.slane %v3785_v27, 1  ;;  %v3792_v2 = vmax.f32 %v3790_v6, %v3791_v23  ;;  %v3799_v45 = vmax.f32 %v3797_v34, %v3798_v12 }
 0x209   : > { %v4672_v29 = vsel %vm4649_vm2, %v3864_v9, -inf  ;;  %v3805_v24 = vrot.slane %v3804_v30, 2  ;;  %v18933_v49 = vmax.f32 %v15735_v33, %v15725_v32  ;;  %v2951_v43 = vadd.f32 %v15743_v14, %v15590_v20 }
 0x20a   : > { %v3787_v54 = vmax.f32 %v3785_v27, %v3786_v25  ;;  %v3793_v51 = vrot.slane %v3792_v2, 1  ;;  %v2949_v61 = vadd.f32 %v2834_v21, %v15597_v38  ;;  %v3800_v47 = vrot.slane %v3799_v45, 1 }
 0x20b   : > { %v4942_v16 = vsel %vm4941_vm6, %v18933_v49, %v4940_v40  ;;  %v3806_v3 = vmax.f32 %v3804_v30, %v3805_v24  ;;  %v2952_v13 = vadd.f32 %v13333_v0, %v15601_v63  ;;  %v2950_v6 = vadd.f32 %v2837_v55, %v15604_v7 }
 0x20c   : > { %v3794_v22 = vmax.f32 %v3792_v2, %v3793_v51  ;;  %v4662_v35 = vsel %vm4649_vm2, %v3787_v54, -inf  ;;  %v2990_v32 = vadd.f32 %v15625_v19, %v2951_v43  ;;  %v2988_v33 = vadd.f32 %v15625_v19, %v2949_v61 }
 0x20d   : > { %v3801_v40 = vmax.f32 %v3799_v45, %v3800_v47  ;;  %v3807_v34 = vrot.slane %v3806_v3, 1  ;;  %v4664_v11 = vmax.f32 %v4662_v35, %v4663_v62  ;;  %v2991_v20 = vadd.f32 %v15625_v19, %v2952_v13 }
 0x20e   : > { %v4665_v38 = vsel %vm4649_vm2, %v3794_v22, -inf  ;;  %v3022_v14 = vmax.f32 %v2990_v32, 0.0  ;;  %v3020_v21 = vmax.f32 %v2988_v33, 0.0  ;;  %v15772_v63 = vadd.f32 %v15625_v19, %v2950_v6 }
 0x20f   : > { %v3808_v7 = vmax.f32 %v3806_v3, %v3807_v34  ;;  %v4667_v0 = vmax.f32 %v4665_v38, %v4666_v46  ;;  %v4668_v59 = vsel %vm4649_vm2, %v3801_v40, -inf  ;;  %v4944_v27 = vsel %vm4943_vm7, %v4664_v11, %v4942_v16 }
 0x210   : > { %v4670_v23 = vmax.f32 %v4668_v59, %v4669_v15  ;;  %v3182_v9 = vcombine.high %v3022_v14, %v3022_v14  ;;  %v3189_v12 = vrot.slane %v3022_v14, %v15574_v28  ;;  %v3148_v62 = vcombine.high %v3020_v21, %v3020_v21 }
 0x211   : > { %v4671_v30 = vsel %vm4649_vm2, %v3808_v7, -inf  ;;  %v4946_v25 = vsel %vm4945_vm8, %v4667_v0, %v4944_v27  ;;  %v3155_v2 = vrot.slane %v3020_v21, %v15574_v28  ;;  %v15780_v55 = vmax.f32 %v2991_v20, 0.0 }
 0x212   : > { %v4673_v45 = vmax.f32 %v4671_v30, %v4672_v29  ;;  %v4948_v46 = vsel %vm4947_vm9, %v4670_v23, %v4946_v25  ;;  %v3196_v24 = vrot.slane %v3182_v9, %v15574_v28  ;;  %v3197_v49 = vcombine.high %v3189_v12, %v3189_v12 }
 0x213   : > { %v3921_v15 = vsel %vm3752_vm3, %v3189_v12, -inf  ;;  %v3162_v16 = vrot.slane %v3148_v62, %v15574_v28  ;;  %v3163_v54 = vcombine.high %v3155_v2, %v3155_v2  ;;  %v3865_v51 = vsel %vm3752_vm3, %v3155_v2, -inf }
 0x214   : > { %v4950_v43 = vsel %vm4949_vm10, %v4673_v45, %v4948_v46  ;;  %v3198_v61 = vcombine.high %v3196_v24, %v3196_v24  ;;  %v3922_v47 = vrot.slane %v3921_v15, 4  ;;  %v3928_v3 = vsel %vm3752_vm3, %v3197_v49, -inf }
 0x215   : > { %5009 = vst.msk [vmem:[#allocation2 + $0x20] sm:$0xff] %vm4649_vm2, %v4950_v43  ;;  %v3929_v29 = vrot.slane %v3928_v3, 4  ;;  %v3935_v13 = vsel %vm3752_vm3, %v3196_v24, -inf  ;;  %v3164_v6 = vcombine.high %v3162_v16, %v3162_v16  ;;  %v3866_v22 = vrot.slane %v3865_v51, 4 }
 0x216   : > { %v3923_v35 = vmax.f32 %v3921_v15, %v3922_v47  ;;  %v3936_v32 = vrot.slane %v3935_v13, 4  ;;  %v3942_v33 = vsel %vm3752_vm3, %v3198_v61, -inf  ;;  %v3872_v40 = vsel %vm3752_vm3, %v3163_v54, -inf }
 0x217   : > { %v3930_v34 = vmax.f32 %v3928_v3, %v3929_v29  ;;  %v3943_v11 = vrot.slane %v3942_v33, 4  ;;  %v3867_v20 = vmax.f32 %v3865_v51, %v3866_v22  ;;  %v3873_v38 = vrot.slane %v3872_v40, 4 }
 0x218   : > { %v3924_v14 = vrot.slane %v3923_v35, 2  ;;  %v3937_v21 = vmax.f32 %v3935_v13, %v3936_v32  ;;  %v3879_v7 = vsel %vm3752_vm3, %v3162_v16, -inf  ;;  %v3886_v0 = vsel %vm3752_vm3, %v3164_v6, -inf }
 0x219   : > { %v3931_v59 = vrot.slane %v3930_v34, 2  ;;  %v3944_v27 = vmax.f32 %v3942_v33, %v3943_v11  ;;  %v3868_v23 = vrot.slane %v3867_v20, 2  ;;  %v3874_v9 = vmax.f32 %v3872_v40, %v3873_v38 }
 0x21a   : > { %v3925_v12 = vmax.f32 %v3923_v35, %v3924_v14  ;;  %v3938_v62 = vrot.slane %v3937_v21, 2  ;;  %v3880_v30 = vrot.slane %v3879_v7, 4  ;;  %v3887_v25 = vrot.slane %v3886_v0, 4 }
 0x21b   : > { %v3932_v2 = vmax.f32 %v3930_v34, %v3931_v59  ;;  %v3945_v45 = vrot.slane %v3944_v27, 2  ;;  %v3869_v46 = vmax.f32 %v3867_v20, %v3868_v23  ;;  %v3875_v24 = vrot.slane %v3874_v9, 2 }
 0x21c   : > { %v3926_v49 = vrot.slane %v3925_v12, 1  ;;  %v3939_v15 = vmax.f32 %v3937_v21, %v3938_v62  ;;  %v3881_v54 = vmax.f32 %v3879_v7, %v3880_v30  ;;  %v3888_v51 = vmax.f32 %v3886_v0, %v3887_v25 }
 0x21d   : > { %v3933_v43 = vrot.slane %v3932_v2, 1  ;;  %v3946_v16 = vmax.f32 %v3944_v27, %v3945_v45  ;;  %v3870_v61 = vrot.slane %v3869_v46, 1  ;;  %v3876_v47 = vmax.f32 %v3874_v9, %v3875_v24  ;;  %v13336_v9 = vpop.f32.mrf.mxu0 }
 0x21e   : > { %v3927_v3 = vmax.f32 %v3925_v12, %v3926_v49  ;;  %v3940_v29 = vrot.slane %v3939_v15, 1  ;;  %v3882_v13 = vrot.slane %v3881_v54, 2  ;;  %v3889_v6 = vrot.slane %v3888_v51, 2 }
 0x21f   : > { %v3934_v22 = vmax.f32 %v3932_v2, %v3933_v43  ;;  %v3947_v35 = vrot.slane %v3946_v16, 1  ;;  %v3871_v32 = vmax.f32 %v3869_v46, %v3870_v61  ;;  %v3877_v33 = vrot.slane %v3876_v47, 1 }
 0x220   : > { %v3941_v40 = vmax.f32 %v3939_v15, %v3940_v29  ;;  %v4675_v34 = vsel %vm4649_vm2, %v3927_v3, -inf  ;;  %v3883_v11 = vmax.f32 %v3881_v54, %v3882_v13  ;;  %v3890_v20 = vmax.f32 %v3888_v51, %v3889_v6 }
 0x221   : > { %v3948_v38 = vmax.f32 %v3946_v16, %v3947_v35  ;;  %v4678_v14 = vsel %vm4649_vm2, %v3934_v22, -inf  ;;  %v3878_v21 = vmax.f32 %v3876_v47, %v3877_v33  ;;  %v4674_v7 = vsel %vm4649_vm2, %v3871_v32, -inf }
 0x222   : > { %v4681_v0 = vsel %vm4649_vm2, %v3941_v40, -inf  ;;  %v3884_v59 = vrot.slane %v3883_v11, 1  ;;  %v3891_v27 = vrot.slane %v3890_v20, 1  ;;  %v4676_v23 = vmax.f32 %v4674_v7, %v4675_v34 }
 0x223   : > { %v4684_v12 = vsel %vm4649_vm2, %v3948_v38, -inf  ;;  %v4677_v62 = vsel %vm4649_vm2, %v3878_v21, -inf  ;;  %v3199_v30 = vcombine.high %v15780_v55, %v15780_v55  ;;  %v3206_v25 = vrot.slane %v15780_v55, %v15574_v28 }
 0x224   : > { %v3885_v2 = vmax.f32 %v3883_v11, %v3884_v59  ;;  %v3892_v45 = vmax.f32 %v3890_v20, %v3891_v27  ;;  %v4679_v46 = vmax.f32 %v4677_v62, %v4678_v14  ;;  %v3021_v24 = vmax.f32 %v15772_v63, 0.0 }
 0x225   : > { %v3213_v49 = vrot.slane %v3199_v30, %v15574_v28  ;;  %v3214_v15 = vcombine.high %v3206_v25, %v3206_v25  ;;  %v3949_v54 = vsel %vm3752_vm3, %v3206_v25, -inf  ;;  %v15809_v51 = vadd.f32 %v13336_v9, %v15608_v10  ;;  %v13531_v10 = vld [vmem:[%s18823_s3 + $0x30] sm:$0xff]  }
 0x226   : > { %v4680_v43 = vsel %vm4649_vm2, %v3885_v2, -inf  ;;  %v4683_v16 = vsel %vm4649_vm2, %v3892_v45, -inf  ;;  %v4951_v61 = vsel %vm4937_vm4, %v4679_v46, %v4676_v23  ;;  %v3950_v55 = vrot.slane %v3949_v54, 4  ;;  %13360 = vmatprep.subr.bf16.mxu1 %v13531_v10 }
 0x227   : > { %v4682_v47 = vmax.f32 %v4680_v43, %v4681_v0  ;;  %v4685_v3 = vmax.f32 %v4683_v16, %v4684_v12  ;;  %v3215_v29 = vcombine.high %v3213_v49, %v3213_v49  ;;  %v3956_v63 = vsel %vm3752_vm3, %v3214_v15, -inf  ;;  %13361 = vmatpush3.bf16.msra.mxu1 %v13531_v10 }
 0x228   : > { %v3951_v13 = vmax.f32 %v3949_v54, %v3950_v55  ;;  %v3957_v6 = vrot.slane %v3956_v63, 4  ;;  %v3963_v22 = vsel %vm3752_vm3, %v3213_v49, -inf  ;;  %v3165_v35 = vcombine.high %v3021_v24, %v3021_v24 }
 0x229   : > { %v4952_v32 = vsel %vm4939_vm5, %v4682_v47, %v4951_v61  ;;  %v3964_v33 = vrot.slane %v3963_v22, 4  ;;  %v3970_v40 = vsel %vm3752_vm3, %v3215_v29, -inf  ;;  %v3172_v34 = vrot.slane %v3021_v24, %v15574_v28  ;;  %v2850_v29 = vpop.f32.mrf.mxu0 }
 0x22a   : > { %v3952_v11 = vrot.slane %v3951_v13, 2  ;;  %v3958_v20 = vmax.f32 %v3956_v63, %v3957_v6  ;;  %v3971_v38 = vrot.slane %v3970_v40, 4  ;;  %v3179_v14 = vrot.slane %v3165_v35, %v15574_v28 }
 0x22b   : > { %v3965_v21 = vmax.f32 %v3963_v22, %v3964_v33  ;;  %v3180_v7 = vcombine.high %v3172_v34, %v3172_v34  ;;  %v3893_v0 = vsel %vm3752_vm3, %v3172_v34, -inf  ;;  %v15825_v59 = vsel %vm4941_vm6, %v4685_v3, %v4952_v32 }
 0x22c   : > { %v3953_v27 = vmax.f32 %v3951_v13, %v3952_v11  ;;  %v3959_v23 = vrot.slane %v3958_v20, 2  ;;  %v3972_v9 = vmax.f32 %v3970_v40, %v3971_v38  ;;  %v3181_v12 = vcombine.high %v3179_v14, %v3179_v14 }
 0x22d   : > { %v3966_v62 = vrot.slane %v3965_v21, 2  ;;  %v3894_v30 = vrot.slane %v3893_v0, 4  ;;  %v3900_v25 = vsel %vm3752_vm3, %v3180_v7, -inf  ;;  %v3907_v2 = vsel %vm3752_vm3, %v3179_v14, -inf }
 0x22e   : > { %v3954_v45 = vrot.slane %v3953_v27, 1  ;;  %v3960_v46 = vmax.f32 %v3958_v20, %v3959_v23  ;;  %v3973_v24 = vrot.slane %v3972_v9, 2  ;;  %v3901_v49 = vrot.slane %v3900_v25, 4 }
 0x22f   : > { %v3967_v15 = vmax.f32 %v3965_v21, %v3966_v62  ;;  %v3895_v54 = vmax.f32 %v3893_v0, %v3894_v30  ;;  %v3908_v43 = vrot.slane %v3907_v2, 4  ;;  %v3914_v16 = vsel %vm3752_vm3, %v3181_v12, -inf  ;;  %v13337_v0 = vpop.f32.mrf.mxu0 }
 0x230   : > { %v3955_v61 = vmax.f32 %v3953_v27, %v3954_v45  ;;  %v3961_v55 = vrot.slane %v3960_v46, 1  ;;  %v3974_v47 = vmax.f32 %v3972_v9, %v3973_v24  ;;  %v3902_v3 = vmax.f32 %v3900_v25, %v3901_v49 }
 0x231   : > { %v3968_v63 = vrot.slane %v3967_v15, 1  ;;  %v3896_v13 = vrot.slane %v3895_v54, 2  ;;  %v3909_v6 = vmax.f32 %v3907_v2, %v3908_v43  ;;  %v3915_v22 = vrot.slane %v3914_v16, 4 }
 0x232   : > { %v3962_v35 = vmax.f32 %v3960_v46, %v3961_v55  ;;  %v3975_v10 = vrot.slane %v3974_v47, 1  ;;  %v4687_v32 = vsel %vm4649_vm2, %v3955_v61, -inf  ;;  %v3903_v33 = vrot.slane %v3902_v3, 2 }
 0x233   : > { %v3969_v40 = vmax.f32 %v3967_v15, %v3968_v63  ;;  %v3897_v34 = vmax.f32 %v3895_v54, %v3896_v13  ;;  %v3910_v11 = vrot.slane %v3909_v6, 2  ;;  %v3916_v20 = vmax.f32 %v3914_v16, %v3915_v22 }
 0x234   : > { %v3976_v38 = vmax.f32 %v3974_v47, %v3975_v10  ;;  %v4690_v14 = vsel %vm4649_vm2, %v3962_v35, -inf  ;;  %v3904_v21 = vmax.f32 %v3902_v3, %v3903_v33  ;;  %v2994_v7 = vadd.f32 %v15625_v19, %v15809_v51 }
 0x235   : > { %v4693_v27 = vsel %vm4649_vm2, %v3969_v40, -inf  ;;  %v3898_v23 = vrot.slane %v3897_v34, 1  ;;  %v3911_v9 = vmax.f32 %v3909_v6, %v3910_v11  ;;  %v3917_v12 = vrot.slane %v3916_v20, 2 }
 0x236   : > { %v4696_v62 = vsel %vm4649_vm2, %v3976_v38, -inf  ;;  %v3905_v30 = vrot.slane %v3904_v21, 1  ;;  %v3026_v25 = vmax.f32 %v2994_v7, 0.0  ;;  %v2953_v2 = vadd.f32 %v2850_v29, %v15612_v56 }
 0x237   : > { %v3899_v45 = vmax.f32 %v3897_v34, %v3898_v23  ;;  %v3912_v46 = vrot.slane %v3911_v9, 1  ;;  %v3918_v24 = vmax.f32 %v3916_v20, %v3917_v12  ;;  %v2956_v49 = vadd.f32 %v13337_v0, %v15616_v8 }
 0x238   : > { %v3906_v15 = vmax.f32 %v3904_v21, %v3905_v30  ;;  %v3250_v54 = vcombine.high %v3026_v25, %v3026_v25  ;;  %v3257_v51 = vrot.slane %v3026_v25, %v15574_v28  ;;  %v2992_v43 = vadd.f32 %v15625_v19, %v2953_v2 }
 0x239   : > { %v3913_v16 = vmax.f32 %v3911_v9, %v3912_v46  ;;  %v3919_v61 = vrot.slane %v3918_v24, 1  ;;  %v4686_v55 = vsel %vm4649_vm2, %v3899_v45, -inf  ;;  %v2995_v47 = vadd.f32 %v15625_v19, %v2956_v49 }
 0x23a   : > { %v4688_v3 = vmax.f32 %v4686_v55, %v4687_v32  ;;  %v4689_v56 = vsel %vm4649_vm2, %v3906_v15, -inf  ;;  %v3264_v29 = vrot.slane %v3250_v54, %v15574_v28  ;;  %v3265_v63 = vcombine.high %v3257_v51, %v3257_v51 }
 0x23b   : > { %v3920_v13 = vmax.f32 %v3918_v24, %v3919_v61  ;;  %v4691_v8 = vmax.f32 %v4689_v56, %v4690_v14  ;;  %v4692_v6 = vsel %vm4649_vm2, %v3913_v16, -inf  ;;  %v4033_v22 = vsel %vm3752_vm3, %v3257_v51, -inf }
 0x23c   : > { %v4694_v35 = vmax.f32 %v4692_v6, %v4693_v27  ;;  %v4954_v10 = vsel %vm4943_vm7, %v4688_v3, %v15825_v59  ;;  %v3266_v33 = vcombine.high %v3264_v29, %v3264_v29  ;;  %v4034_v40 = vrot.slane %v4033_v22, 4 }
 0x23d   : > { %v4695_v34 = vsel %vm4649_vm2, %v3920_v13, -inf  ;;  %v4955_v32 = vsel %vm4945_vm8, %v4691_v8, %v4954_v10  ;;  %v4040_v11 = vsel %vm3752_vm3, %v3265_v63, -inf  ;;  %v4047_v20 = vsel %vm3752_vm3, %v3264_v29, -inf }
 0x23e   : > { %v4697_v38 = vmax.f32 %v4695_v34, %v4696_v62  ;;  %v4956_v14 = vsel %vm4947_vm9, %v4694_v35, %v4955_v32  ;;  %v4035_v21 = vmax.f32 %v4033_v22, %v4034_v40  ;;  %v4041_v7 = vrot.slane %v4040_v11, 4 }
 0x23f   : > { %v4048_v0 = vrot.slane %v4047_v20, 4  ;;  %v4054_v27 = vsel %vm3752_vm3, %v3266_v33, -inf  ;;  %v3024_v23 = vmax.f32 %v2992_v43, 0.0  ;;  %v3027_v59 = vmax.f32 %v2995_v47, 0.0 }
 0x240   : > { %v4957_v9 = vsel %vm4949_vm10, %v4697_v38, %v4956_v14  ;;  %v4036_v12 = vrot.slane %v4035_v21, 2  ;;  %v4042_v30 = vmax.f32 %v4040_v11, %v4041_v7  ;;  %v4055_v25 = vrot.slane %v4054_v27, 4 }
 0x241   : > { %5010 = vst.msk [vmem:[#allocation2 + $0x38] sm:$0xff] %vm4649_vm2, %v4957_v9  ;;  %v4049_v2 = vmax.f32 %v4047_v20, %v4048_v0  ;;  %v3216_v45 = vcombine.high %v3024_v23, %v3024_v23  ;;  %v3223_v62 = vrot.slane %v3024_v23, %v15574_v28  ;;  %v3267_v46 = vcombine.high %v3027_v59, %v3027_v59 }
 0x242   : > { %v4037_v24 = vmax.f32 %v4035_v21, %v4036_v12  ;;  %v4043_v49 = vrot.slane %v4042_v30, 2  ;;  %v4056_v15 = vmax.f32 %v4054_v27, %v4055_v25  ;;  %v3274_v54 = vrot.slane %v3027_v59, %v15574_v28 }
 0x243   : > { %v4050_v51 = vrot.slane %v4049_v2, 2  ;;  %v3230_v43 = vrot.slane %v3216_v45, %v15574_v28  ;;  %v3231_v16 = vcombine.high %v3223_v62, %v3223_v62  ;;  %v3977_v61 = vsel %vm3752_vm3, %v3223_v62, -inf }
 0x244   : > { %v4038_v55 = vrot.slane %v4037_v24, 1  ;;  %v4044_v47 = vmax.f32 %v4042_v30, %v4043_v49  ;;  %v4057_v3 = vrot.slane %v4056_v15, 2  ;;  %v3978_v56 = vrot.slane %v3977_v61, 4 }
 0x245   : > { %v4051_v29 = vmax.f32 %v4049_v2, %v4050_v51  ;;  %v3232_v63 = vcombine.high %v3230_v43, %v3230_v43  ;;  %v3984_v13 = vsel %vm3752_vm3, %v3231_v16, -inf  ;;  %v3991_v8 = vsel %vm3752_vm3, %v3230_v43, -inf }
 0x246   : > { %v4039_v6 = vmax.f32 %v4037_v24, %v4038_v55  ;;  %v4045_v22 = vrot.slane %v4044_v47, 1  ;;  %v4058_v35 = vmax.f32 %v4056_v15, %v4057_v3  ;;  %v3979_v10 = vmax.f32 %v3977_v61, %v3978_v56 }
 0x247   : > { %v4052_v33 = vrot.slane %v4051_v29, 1  ;;  %v3985_v40 = vrot.slane %v3984_v13, 4  ;;  %v3992_v34 = vrot.slane %v3991_v8, 4  ;;  %v3998_v32 = vsel %vm3752_vm3, %v3232_v63, -inf }
 0x248   : > { %v4046_v11 = vmax.f32 %v4044_v47, %v4045_v22  ;;  %v4059_v20 = vrot.slane %v4058_v35, 1  ;;  %v4699_v38 = vsel %vm4649_vm2, %v4039_v6, -inf  ;;  %v3980_v14 = vrot.slane %v3979_v10, 2 }
 0x249   : > { %v4053_v21 = vmax.f32 %v4051_v29, %v4052_v33  ;;  %v3986_v7 = vmax.f32 %v3984_v13, %v3985_v40  ;;  %v3993_v0 = vmax.f32 %v3991_v8, %v3992_v34  ;;  %v3999_v27 = vrot.slane %v3998_v32, 4  ;;  %v2853_v8 = vpop.f32.mrf.mxu0 }
 0x24a   : > { %v4060_v23 = vmax.f32 %v4058_v35, %v4059_v20  ;;  %v4702_v59 = vsel %vm4649_vm2, %v4046_v11, -inf  ;;  %v3981_v9 = vmax.f32 %v3979_v10, %v3980_v14  ;;  %v3281_v12 = vrot.slane %v3267_v46, %v15574_v28 }
 0x24b   : > { %v4705_v30 = vsel %vm4649_vm2, %v4053_v21, -inf  ;;  %v3987_v25 = vrot.slane %v3986_v7, 2  ;;  %v3994_v2 = vrot.slane %v3993_v0, 2  ;;  %v4000_v45 = vmax.f32 %v3998_v32, %v3999_v27 }
 0x24c   : > { %v4708_v62 = vsel %vm4649_vm2, %v4060_v23, -inf  ;;  %v3982_v24 = vrot.slane %v3981_v9, 1  ;;  %v3282_v49 = vcombine.high %v3274_v54, %v3274_v54  ;;  %v3283_v15 = vcombine.high %v3281_v12, %v3281_v12  ;;  %v13340_v23 = vpop.f32.mrf.mxu0 }
 0x24d   : > { %v3988_v51 = vmax.f32 %v3986_v7, %v3987_v25  ;;  %v3995_v43 = vmax.f32 %v3993_v0, %v3994_v2  ;;  %v4001_v16 = vrot.slane %v4000_v45, 2  ;;  %v4061_v61 = vsel %vm3752_vm3, %v3274_v54, -inf }
 0x24e   : > { %v3983_v55 = vmax.f32 %v3981_v9, %v3982_v24  ;;  %v4062_v47 = vrot.slane %v4061_v61, 4  ;;  %v4068_v3 = vsel %vm3752_vm3, %v3282_v49, -inf  ;;  %v4075_v46 = vsel %vm3752_vm3, %v3281_v12, -inf }
 0x24f   : > { %v3989_v56 = vrot.slane %v3988_v51, 1  ;;  %v3996_v29 = vrot.slane %v3995_v43, 1  ;;  %v4002_v63 = vmax.f32 %v4000_v45, %v4001_v16  ;;  %v4069_v13 = vrot.slane %v4068_v3, 4 }
 0x250   : > { %v4698_v6 = vsel %vm4649_vm2, %v3983_v55, -inf  ;;  %v4063_v22 = vmax.f32 %v4061_v61, %v4062_v47  ;;  %v4076_v35 = vrot.slane %v4075_v46, 4  ;;  %v4082_v10 = vsel %vm3752_vm3, %v3283_v15, -inf }
 0x251   : > { %v3990_v33 = vmax.f32 %v3988_v51, %v3989_v56  ;;  %v3997_v40 = vmax.f32 %v3995_v43, %v3996_v29  ;;  %v4003_v54 = vrot.slane %v4002_v63, 1  ;;  %v4700_v34 = vmax.f32 %v4698_v6, %v4699_v38  ;;  %v15891_v6 = vld [vmem:[%s18822_s2] ss:$0 sm:$0xff] }
 0x252   : > { %v4064_v32 = vrot.slane %v4063_v22, 2  ;;  %v4070_v11 = vmax.f32 %v4068_v3, %v4069_v13  ;;  %v4077_v20 = vmax.f32 %v4075_v46, %v4076_v35  ;;  %v4083_v14 = vrot.slane %v4082_v10, 4 }
 0x253   : > { %v4004_v21 = vmax.f32 %v4002_v63, %v4003_v54  ;;  %v4701_v7 = vsel %vm4649_vm2, %v3990_v33, -inf  ;;  %v4704_v0 = vsel %vm4649_vm2, %v3997_v40, -inf  ;;  %v2954_v27 = vadd.f32 %v2853_v8, %v15619_v50 }
 0x254   : > { %v4703_v9 = vmax.f32 %v4701_v7, %v4702_v59  ;;  %v4706_v12 = vmax.f32 %v4704_v0, %v4705_v30  ;;  %v4065_v25 = vmax.f32 %v4063_v22, %v4064_v32  ;;  %v4071_v2 = vrot.slane %v4070_v11, 2  ;;  %v2866_v59 = vpop.f32.mrf.mxu0 }
 0x255   : > { %v4707_v45 = vsel %vm4649_vm2, %v4004_v21, -inf  ;;  %v4078_v24 = vrot.slane %v4077_v20, 2  ;;  %v4084_v38 = vmax.f32 %v4082_v10, %v4083_v14  ;;  %v2993_v49 = vadd.f32 %v15625_v19, %v2954_v27 }
 0x256   : > { %v4709_v15 = vmax.f32 %v4707_v45, %v4708_v62  ;;  %v4958_v51 = vsel %vm4937_vm4, %v4703_v9, %v4700_v34  ;;  %v4066_v43 = vrot.slane %v4065_v25, 1  ;;  %v4072_v16 = vmax.f32 %v4070_v11, %v4071_v2 }
 0x257   : > { %v4959_v61 = vsel %vm4939_vm5, %v4706_v12, %v4958_v51  ;;  %v4079_v55 = vmax.f32 %v4077_v20, %v4078_v24  ;;  %v4085_v50 = vrot.slane %v4084_v38, 2  ;;  %v3025_v47 = vmax.f32 %v2993_v49, 0.0 }
 0x258   : > { %v4067_v30 = vmax.f32 %v4065_v25, %v4066_v43  ;;  %v4073_v3 = vrot.slane %v4072_v16, 1  ;;  %v15881_v46 = vsel %vm4941_vm6, %v4709_v15, %v4959_v61  ;;  %v2959_v56 = vadd.f32 %v13340_v23, %v15632_v44 }
 0x259   : > { %v4080_v29 = vrot.slane %v4079_v55, 1  ;;  %v4086_v19 = vmax.f32 %v4084_v38, %v4085_v50  ;;  %v3233_v62 = vcombine.high %v3025_v47, %v3025_v47  ;;  %v3240_v63 = vrot.slane %v3025_v47, %v15574_v28 }
 0x25a   : > { %v4074_v13 = vmax.f32 %v4072_v16, %v4073_v3  ;;  %v15886_v8 = vsel %vm4649_vm2, %v4067_v30, -inf  ;;  %v2998_v22 = vadd.f32 %v15891_v6, %v2959_v56  ;;  %v2957_v35 = vadd.f32 %v2866_v59, %v15636_v36 }
 0x25b   : > { %v4081_v10 = vmax.f32 %v4079_v55, %v4080_v29  ;;  %v4087_v44 = vrot.slane %v4086_v19, 1  ;;  %v3247_v33 = vrot.slane %v3233_v62, %v15574_v28  ;;  %v3248_v40 = vcombine.high %v3240_v63, %v3240_v63 }
 0x25c   : > { %v15897_v54 = vsel %vm4649_vm2, %v4074_v13, -inf  ;;  %v4005_v34 = vsel %vm3752_vm3, %v3240_v63, -inf  ;;  %v3030_v32 = vmax.f32 %v2998_v22, 0.0  ;;  %v15901_v11 = vadd.f32 %v15891_v6, %v2957_v35 }
 0x25d   : > { %v4088_v20 = vmax.f32 %v4086_v19, %v4087_v44  ;;  %v15904_v14 = vsel %vm4649_vm2, %v4081_v10, -inf  ;;  %v3249_v21 = vcombine.high %v3247_v33, %v3247_v33  ;;  %v4006_v36 = vrot.slane %v4005_v34, 4 }
 0x25e   : > { %v4012_v7 = vsel %vm3752_vm3, %v3248_v40, -inf  ;;  %v4019_v0 = vsel %vm3752_vm3, %v3247_v33, -inf  ;;  %v3318_v27 = vcombine.high %v3030_v32, %v3030_v32  ;;  %v3325_v23 = vrot.slane %v3030_v32, %v15574_v28 }
 0x25f   : > { %v15910_v9 = vsel %vm4649_vm2, %v4088_v20, -inf  ;;  %v4007_v12 = vmax.f32 %v4005_v34, %v4006_v36  ;;  %v4013_v25 = vrot.slane %v4012_v7, 4  ;;  %v4020_v2 = vrot.slane %v4019_v0, 4 }
 0x260   : > { %v4026_v45 = vsel %vm3752_vm3, %v3249_v21, -inf  ;;  %v3332_v24 = vrot.slane %v3318_v27, %v15574_v28  ;;  %v3333_v38 = vcombine.high %v3325_v23, %v3325_v23  ;;  %v4145_v49 = vsel %vm3752_vm3, %v3325_v23, -inf }
 0x261   : > { %v4008_v15 = vrot.slane %v4007_v12, 2  ;;  %v4014_v51 = vmax.f32 %v4012_v7, %v4013_v25  ;;  %v4021_v43 = vmax.f32 %v4019_v0, %v4020_v2  ;;  %v4027_v16 = vrot.slane %v4026_v45, 4 }
 0x262   : > { %v3334_v61 = vcombine.high %v3332_v24, %v3332_v24  ;;  %v4146_v55 = vrot.slane %v4145_v49, 4  ;;  %v4152_v50 = vsel %vm3752_vm3, %v3333_v38, -inf  ;;  %v4159_v47 = vsel %vm3752_vm3, %v3332_v24, -inf }
 0x263   : > { %v4009_v59 = vmax.f32 %v4007_v12, %v4008_v15  ;;  %v4015_v30 = vrot.slane %v4014_v51, 2  ;;  %v4022_v3 = vrot.slane %v4021_v43, 2  ;;  %v4028_v56 = vmax.f32 %v4026_v45, %v4027_v16  ;;  %v13341_v12 = vpop.f32.mrf.mxu0 }
 0x264   : > { %v4147_v29 = vmax.f32 %v4145_v49, %v4146_v55  ;;  %v4153_v19 = vrot.slane %v4152_v50, 4  ;;  %v4160_v62 = vrot.slane %v4159_v47, 4  ;;  %v4166_v63 = vsel %vm3752_vm3, %v3334_v61, -inf }
 0x265   : > { %v4010_v13 = vrot.slane %v4009_v59, 1  ;;  %v4016_v22 = vmax.f32 %v4014_v51, %v4015_v30  ;;  %v4023_v35 = vmax.f32 %v4021_v43, %v4022_v3  ;;  %v4029_v10 = vrot.slane %v4028_v56, 2  ;;  %v2869_v3 = vpop.f32.mrf.mxu0 }
 0x266   : > { %v4148_v44 = vrot.slane %v4147_v29, 2  ;;  %v4154_v33 = vmax.f32 %v4152_v50, %v4153_v19  ;;  %v4161_v40 = vmax.f32 %v4159_v47, %v4160_v62  ;;  %v4167_v34 = vrot.slane %v4166_v63, 4 }
 0x267   : > { %v4011_v32 = vmax.f32 %v4009_v59, %v4010_v13  ;;  %v4017_v20 = vrot.slane %v4016_v22, 1  ;;  %v4024_v21 = vrot.slane %v4023_v35, 1  ;;  %v4030_v36 = vmax.f32 %v4028_v56, %v4029_v10 }
 0x268   : > { %v4149_v7 = vmax.f32 %v4147_v29, %v4148_v44  ;;  %v4155_v0 = vrot.slane %v4154_v33, 2  ;;  %v4162_v27 = vrot.slane %v4161_v40, 2  ;;  %v4168_v23 = vmax.f32 %v4166_v63, %v4167_v34 }
 0x269   : > { %v4018_v25 = vmax.f32 %v4016_v22, %v4017_v20  ;;  %v4025_v2 = vmax.f32 %v4023_v35, %v4024_v21  ;;  %v4031_v45 = vrot.slane %v4030_v36, 1  ;;  %v4710_v24 = vsel %vm4649_vm2, %v4011_v32, -inf }
 0x26a   : > { %v4712_v38 = vmax.f32 %v4710_v24, %v15886_v8  ;;  %v4150_v49 = vrot.slane %v4149_v7, 1  ;;  %v4156_v15 = vmax.f32 %v4154_v33, %v4155_v0  ;;  %v4163_v51 = vmax.f32 %v4161_v40, %v4162_v27 }
 0x26b   : > { %v4032_v43 = vmax.f32 %v4030_v36, %v4031_v45  ;;  %v4713_v16 = vsel %vm4649_vm2, %v4018_v25, -inf  ;;  %v4716_v61 = vsel %vm4649_vm2, %v4025_v2, -inf  ;;  %v4169_v55 = vrot.slane %v4168_v23, 2 }
 0x26c   : > { %v4715_v50 = vmax.f32 %v4713_v16, %v15897_v54  ;;  %v4718_v47 = vmax.f32 %v4716_v61, %v15904_v14  ;;  %v4961_v59 = vsel %vm4943_vm7, %v4712_v38, %v15881_v46  ;;  %v4151_v30 = vmax.f32 %v4149_v7, %v4150_v49 }
 0x26d   : > { %v4719_v8 = vsel %vm4649_vm2, %v4032_v43, -inf  ;;  %v4157_v56 = vrot.slane %v4156_v15, 1  ;;  %v4164_v29 = vrot.slane %v4163_v51, 1  ;;  %v4170_v19 = vmax.f32 %v4168_v23, %v4169_v55 }
 0x26e   : > { %v4721_v62 = vmax.f32 %v4719_v8, %v15910_v9  ;;  %v4962_v63 = vsel %vm4945_vm8, %v4715_v50, %v4961_v59  ;;  %v15930_v13 = vsel %vm4649_vm2, %v4151_v30, -inf  ;;  %v3028_v54 = vmax.f32 %v15901_v11, 0.0  ;;  %v13344_v9 = vpop.f32.mrf.mxu0 }
 0x26f   : > { %v4963_v14 = vsel %vm4947_vm9, %v4718_v47, %v4962_v63  ;;  %v4158_v22 = vmax.f32 %v4156_v15, %v4157_v56  ;;  %v4165_v46 = vmax.f32 %v4163_v51, %v4164_v29  ;;  %v4171_v35 = vrot.slane %v4170_v19, 1  ;;  %v13532_v51 = vld [vmem:[%s18823_s3 + $0x28] sm:$0xff]  }
 0x270   : > { %v4964_v10 = vsel %vm4949_vm10, %v4721_v62, %v4963_v14  ;;  %v3284_v44 = vcombine.high %v3028_v54, %v3028_v54  ;;  %v3291_v33 = vrot.slane %v3028_v54, %v15574_v28  ;;  %v2960_v40 = vadd.f32 %v13341_v12, %v15641_v42  ;;  %13362 = vmatprep.subr.bf16.mxu1 %v13532_v51 }
 0x271   : > { %5011 = vst.msk [vmem:[#allocation2 + $0x50] sm:$0xff] %vm4649_vm2, %v4964_v10  ;;  %v4172_v34 = vmax.f32 %v4170_v19, %v4171_v35  ;;  %v15939_v32 = vsel %vm4649_vm2, %v4158_v22, -inf  ;;  %v15942_v11 = vsel %vm4649_vm2, %v4165_v46, -inf  ;;  %v2958_v20 = vadd.f32 %v2869_v3, %v15644_v17  ;;  %13363 = vmatpush3.bf16.msra.mxu1 %v13532_v51 }
 0x272   : > { %v3298_v21 = vrot.slane %v3284_v44, %v15574_v28  ;;  %v3299_v36 = vcombine.high %v3291_v33, %v3291_v33  ;;  %v4089_v7 = vsel %vm3752_vm3, %v3291_v33, -inf  ;;  %v2999_v0 = vadd.f32 %v15891_v6, %v2960_v40 }
 0x273   : > { %v15949_v42 = vsel %vm4649_vm2, %v4172_v34, -inf  ;;  %v4090_v27 = vrot.slane %v4089_v7, 4  ;;  %v2997_v23 = vadd.f32 %v15891_v6, %v2958_v20  ;;  %v2963_v12 = vadd.f32 %v13344_v9, %v15648_v41 }
 0x274   : > { %v3300_v25 = vcombine.high %v3298_v21, %v3298_v21  ;;  %v4096_v2 = vsel %vm3752_vm3, %v3299_v36, -inf  ;;  %v4103_v17 = vsel %vm3752_vm3, %v3298_v21, -inf  ;;  %v3031_v45 = vmax.f32 %v2999_v0, 0.0 }
 0x275   : > { %v4091_v24 = vmax.f32 %v4089_v7, %v4090_v27  ;;  %v4097_v38 = vrot.slane %v4096_v2, 4  ;;  %v4104_v49 = vrot.slane %v4103_v17, 4  ;;  %v15955_v15 = vmax.f32 %v2997_v23, 0.0 }
 0x276   : > { %v4110_v43 = vsel %vm3752_vm3, %v3300_v25, -inf  ;;  %v3335_v16 = vcombine.high %v3031_v45, %v3031_v45  ;;  %v3342_v41 = vrot.slane %v3031_v45, %v15574_v28  ;;  %v15963_v61 = vadd.f32 %v15891_v6, %v2963_v12 }
 0x277   : > { %v4092_v55 = vrot.slane %v4091_v24, 2  ;;  %v4098_v50 = vmax.f32 %v4096_v2, %v4097_v38  ;;  %v4105_v47 = vmax.f32 %v4103_v17, %v4104_v49  ;;  %v4111_v59 = vrot.slane %v4110_v43, 4  ;;  %v13533_v38 = vld [vmem:[%s18823_s3 + $0x98] sm:$0xff]  }
 0x278   : > { %v3349_v30 = vrot.slane %v3335_v16, %v15574_v28  ;;  %v3350_v3 = vcombine.high %v3342_v41, %v3342_v41  ;;  %v4173_v8 = vsel %vm3752_vm3, %v3342_v41, -inf  ;;  %v3301_v56 = vcombine.high %v15955_v15, %v15955_v15  ;;  %13422 = vmatprep.subr.bf16.mxu0 %v13533_v38 }
 0x279   : > { %v4093_v29 = vmax.f32 %v4091_v24, %v4092_v55  ;;  %v4099_v19 = vrot.slane %v4098_v50, 2  ;;  %v4106_v62 = vrot.slane %v4105_v47, 2  ;;  %v4112_v63 = vmax.f32 %v4110_v43, %v4111_v59  ;;  %13423 = vmatpush3.bf16.msra.mxu0 %v13533_v38 }
 0x27a   : > { %v3351_v54 = vcombine.high %v3349_v30, %v3349_v30  ;;  %v4174_v14 = vrot.slane %v4173_v8, 4  ;;  %v4180_v22 = vsel %vm3752_vm3, %v3350_v3, -inf  ;;  %v4187_v46 = vsel %vm3752_vm3, %v3349_v30, -inf }
 0x27b   : > { %v4094_v35 = vrot.slane %v4093_v29, 1  ;;  %v4100_v10 = vmax.f32 %v4098_v50, %v4099_v19  ;;  %v4107_v44 = vmax.f32 %v4105_v47, %v4106_v62  ;;  %v4113_v33 = vrot.slane %v4112_v63, 2 }
 0x27c   : > { %v4175_v40 = vmax.f32 %v4173_v8, %v4174_v14  ;;  %v4181_v9 = vrot.slane %v4180_v22, 4  ;;  %v4188_v34 = vrot.slane %v4187_v46, 4  ;;  %v4194_v20 = vsel %vm3752_vm3, %v3351_v54, -inf }
 0x27d   : > { %v4095_v21 = vmax.f32 %v4093_v29, %v4094_v35  ;;  %v4101_v36 = vrot.slane %v4100_v10, 1  ;;  %v4108_v7 = vrot.slane %v4107_v44, 1  ;;  %v4114_v0 = vmax.f32 %v4112_v63, %v4113_v33 }
 0x27e   : > { %v4176_v27 = vrot.slane %v4175_v40, 2  ;;  %v4182_v23 = vmax.f32 %v4180_v22, %v4181_v9  ;;  %v4189_v12 = vmax.f32 %v4187_v46, %v4188_v34  ;;  %v4195_v25 = vrot.slane %v4194_v20, 4 }
 0x27f   : > { %v4102_v2 = vmax.f32 %v4100_v10, %v4101_v36  ;;  %v4109_v17 = vmax.f32 %v4107_v44, %v4108_v7  ;;  %v4115_v45 = vrot.slane %v4114_v0, 1  ;;  %v4722_v24 = vsel %vm4649_vm2, %v4095_v21, -inf }
 0x280   : > { %v4724_v49 = vmax.f32 %v4722_v24, %v15930_v13  ;;  %v4177_v51 = vmax.f32 %v4175_v40, %v4176_v27  ;;  %v4183_v43 = vrot.slane %v4182_v23, 2  ;;  %v4190_v16 = vrot.slane %v4189_v12, 2 }
 0x281   : > { %v4116_v41 = vmax.f32 %v4114_v0, %v4115_v45  ;;  %v4725_v55 = vsel %vm4649_vm2, %v4102_v2, -inf  ;;  %v4728_v50 = vsel %vm4649_vm2, %v4109_v17, -inf  ;;  %v4196_v47 = vmax.f32 %v4194_v20, %v4195_v25 }
 0x282   : > { %v4727_v59 = vmax.f32 %v4725_v55, %v15939_v32  ;;  %v4730_v30 = vmax.f32 %v4728_v50, %v15942_v11  ;;  %v4178_v3 = vrot.slane %v4177_v51, 1  ;;  %v4184_v8 = vmax.f32 %v4182_v23, %v4183_v43 }
 0x283   : > { %v4731_v29 = vsel %vm4649_vm2, %v4116_v41, -inf  ;;  %v4191_v13 = vmax.f32 %v4189_v12, %v4190_v16  ;;  %v4197_v19 = vrot.slane %v4196_v47, 2  ;;  %v3308_v62 = vrot.slane %v15955_v15, %v15574_v28  ;;  %v2882_v15 = vpop.f32.mrf.mxu0 }
 0x284   : > { %v4733_v63 = vmax.f32 %v4731_v29, %v15949_v42  ;;  %v4965_v54 = vsel %vm4937_vm4, %v4727_v59, %v4724_v49  ;;  %v4179_v14 = vmax.f32 %v4177_v51, %v4178_v3  ;;  %v4185_v22 = vrot.slane %v4184_v8, 1 }
 0x285   : > { %v4966_v32 = vsel %vm4939_vm5, %v4730_v30, %v4965_v54  ;;  %v4192_v46 = vrot.slane %v4191_v13, 1  ;;  %v4198_v11 = vmax.f32 %v4196_v47, %v4197_v19  ;;  %v3315_v35 = vrot.slane %v3301_v56, %v15574_v28  ;;  %v13345_v24 = vpop.f32.mrf.mxu0 }
 0x286   : > { %v4186_v10 = vmax.f32 %v4184_v8, %v4185_v22  ;;  %v15989_v44 = vsel %vm4649_vm2, %v4179_v14, -inf  ;;  %v3316_v33 = vcombine.high %v3308_v62, %v3308_v62  ;;  %v4117_v40 = vsel %vm3752_vm3, %v3308_v62, -inf }
 0x287   : > { %v4193_v9 = vmax.f32 %v4191_v13, %v4192_v46  ;;  %v4199_v42 = vrot.slane %v4198_v11, 1  ;;  %v3317_v34 = vcombine.high %v3315_v35, %v3315_v35  ;;  %v4118_v20 = vrot.slane %v4117_v40, 4 }
 0x288   : > { %v15993_v21 = vsel %vm4649_vm2, %v4186_v10, -inf  ;;  %v4124_v36 = vsel %vm3752_vm3, %v3316_v33, -inf  ;;  %v4131_v7 = vsel %vm3752_vm3, %v3315_v35, -inf  ;;  %v4967_v56 = vsel %vm4941_vm6, %v4733_v63, %v4966_v32 }
 0x289   : > { %v4200_v0 = vmax.f32 %v4198_v11, %v4199_v42  ;;  %v15999_v27 = vsel %vm4649_vm2, %v4193_v9, -inf  ;;  %v4119_v23 = vmax.f32 %v4117_v40, %v4118_v20  ;;  %v4125_v12 = vrot.slane %v4124_v36, 4 }
 0x28a   : > { %v4132_v25 = vrot.slane %v4131_v7, 4  ;;  %v4138_v2 = vsel %vm3752_vm3, %v3317_v34, -inf  ;;  %v3034_v17 = vmax.f32 %v15963_v61, 0.0  ;;  %v2961_v45 = vadd.f32 %v2882_v15, %v15652_v48 }
 0x28b   : > { %v16005_v38 = vsel %vm4649_vm2, %v4200_v0, -inf  ;;  %v4120_v49 = vrot.slane %v4119_v23, 2  ;;  %v4126_v51 = vmax.f32 %v4124_v36, %v4125_v12  ;;  %v4139_v43 = vrot.slane %v4138_v2, 4 }
 0x28c   : > { %v4133_v16 = vmax.f32 %v4131_v7, %v4132_v25  ;;  %v3386_v41 = vcombine.high %v3034_v17, %v3034_v17  ;;  %v3393_v55 = vrot.slane %v3034_v17, %v15574_v28  ;;  %v3000_v50 = vadd.f32 %v15891_v6, %v2961_v45  ;;  %v13534_v45 = vld [vmem:[%s18823_s3 + $0x20] sm:$0xff]  }
 0x28d   : > { %v4121_v47 = vmax.f32 %v4119_v23, %v4120_v49  ;;  %v4127_v59 = vrot.slane %v4126_v51, 2  ;;  %v4140_v30 = vmax.f32 %v4138_v2, %v4139_v43  ;;  %v2964_v61 = vadd.f32 %v13345_v24, %v15656_v4  ;;  %v13535_v24 = vld [vmem:[%s18823_s3 + $0x90] sm:$0xff]   ;;  %13364 = vmatprep.subr.bf16.mxu1 %v13534_v45 }
 0x28e   : > { %v4134_v3 = vrot.slane %v4133_v16, 2  ;;  %v3400_v48 = vrot.slane %v3386_v41, %v15574_v28  ;;  %v3401_v8 = vcombine.high %v3393_v55, %v3393_v55  ;;  %v4257_v29 = vsel %vm3752_vm3, %v3393_v55, -inf  ;;  %13424 = vmatprep.subr.bf16.mxu0 %v13535_v24  ;;  %13365 = vmatpush3.bf16.msra.mxu1 %v13534_v45 }
 0x28f   : > { %v4122_v13 = vrot.slane %v4121_v47, 1  ;;  %v4128_v19 = vmax.f32 %v4126_v51, %v4127_v59  ;;  %v4141_v62 = vrot.slane %v4140_v30, 2  ;;  %v4258_v63 = vrot.slane %v4257_v29, 4  ;;  %13425 = vmatpush3.bf16.msra.mxu0 %v13535_v24 }
 0x290   : > { %v4135_v54 = vmax.f32 %v4133_v16, %v4134_v3  ;;  %v3402_v14 = vcombine.high %v3400_v48, %v3400_v48  ;;  %v4264_v22 = vsel %vm3752_vm3, %v3401_v8, -inf  ;;  %v4271_v32 = vsel %vm3752_vm3, %v3400_v48, -inf }
 0x291   : > { %v4123_v46 = vmax.f32 %v4121_v47, %v4122_v13  ;;  %v4129_v11 = vrot.slane %v4128_v19, 1  ;;  %v4142_v35 = vmax.f32 %v4140_v30, %v4141_v62  ;;  %v4259_v4 = vmax.f32 %v4257_v29, %v4258_v63  ;;  %v2885_v13 = vpop.f32.mrf.mxu0 }
 0x292   : > { %v4136_v10 = vrot.slane %v4135_v54, 1  ;;  %v4265_v33 = vrot.slane %v4264_v22, 4  ;;  %v4272_v40 = vrot.slane %v4271_v32, 4  ;;  %v4278_v15 = vsel %vm3752_vm3, %v3402_v14, -inf }
 0x293   : > { %v4130_v9 = vmax.f32 %v4128_v19, %v4129_v11  ;;  %v4143_v42 = vrot.slane %v4142_v35, 1  ;;  %v4734_v34 = vsel %vm4649_vm2, %v4123_v46, -inf  ;;  %v4260_v20 = vrot.slane %v4259_v4, 2 }
 0x294   : > { %v4137_v36 = vmax.f32 %v4135_v54, %v4136_v10  ;;  %v4736_v7 = vmax.f32 %v4734_v34, %v15989_v44  ;;  %v4266_v0 = vmax.f32 %v4264_v22, %v4265_v33  ;;  %v4273_v23 = vmax.f32 %v4271_v32, %v4272_v40 }
 0x295   : > { %v4144_v12 = vmax.f32 %v4142_v35, %v4143_v42  ;;  %v4737_v25 = vsel %vm4649_vm2, %v4130_v9, -inf  ;;  %v4261_v2 = vmax.f32 %v4259_v4, %v4260_v20  ;;  %v4279_v17 = vrot.slane %v4278_v15, 4 }
 0x296   : > { %v4739_v49 = vmax.f32 %v4737_v25, %v15993_v21  ;;  %v4740_v51 = vsel %vm4649_vm2, %v4137_v36, -inf  ;;  %v4968_v44 = vsel %vm4943_vm7, %v4736_v7, %v4967_v56  ;;  %v4267_v43 = vrot.slane %v4266_v0, 2 }
 0x297   : > { %v4742_v16 = vmax.f32 %v4740_v51, %v15999_v27  ;;  %v4743_v41 = vsel %vm4649_vm2, %v4144_v12, -inf  ;;  %v4262_v55 = vrot.slane %v4261_v2, 1  ;;  %v4274_v47 = vrot.slane %v4273_v23, 2 }
 0x298   : > { %v4745_v59 = vmax.f32 %v4743_v41, %v16005_v38  ;;  %v4969_v30 = vsel %vm4945_vm8, %v4739_v49, %v4968_v44  ;;  %v4268_v3 = vmax.f32 %v4266_v0, %v4267_v43  ;;  %v4280_v48 = vmax.f32 %v4278_v15, %v4279_v17 }
 0x299   : > { %v4970_v21 = vsel %vm4947_vm9, %v4742_v16, %v4969_v30  ;;  %v4263_v8 = vmax.f32 %v4261_v2, %v4262_v55  ;;  %v4275_v56 = vmax.f32 %v4273_v23, %v4274_v47  ;;  %v3032_v29 = vmax.f32 %v3000_v50, 0.0 }
 0x29a   : > { %v4971_v27 = vsel %vm4949_vm10, %v4745_v59, %v4970_v21  ;;  %v4269_v19 = vrot.slane %v4268_v3, 1  ;;  %v4281_v62 = vrot.slane %v4280_v48, 2  ;;  %v3003_v63 = vadd.f32 %v15891_v6, %v2964_v61 }
 0x29b   : > { %5012 = vst.msk [vmem:[#allocation2 + $0x68] sm:$0xff] %vm4649_vm2, %v4971_v27  ;;  %v4276_v38 = vrot.slane %v4275_v56, 1  ;;  %v16036_v54 = vsel %vm4649_vm2, %v4263_v8, -inf  ;;  %v3352_v14 = vcombine.high %v3032_v29, %v3032_v29  ;;  %v3359_v22 = vrot.slane %v3032_v29, %v15574_v28 }
 0x29c   : > { %v4270_v32 = vmax.f32 %v4268_v3, %v4269_v19  ;;  %v4282_v46 = vmax.f32 %v4280_v48, %v4281_v62  ;;  %v3035_v50 = vmax.f32 %v3003_v63, 0.0  ;;  %v2962_v11 = vadd.f32 %v2885_v13, %v15660_v31 }
 0x29d   : > { %v4277_v35 = vmax.f32 %v4275_v56, %v4276_v38  ;;  %v3366_v4 = vrot.slane %v3352_v14, %v15574_v28  ;;  %v3367_v10 = vcombine.high %v3359_v22, %v3359_v22  ;;  %v4201_v61 = vsel %vm3752_vm3, %v3359_v22, -inf }
 0x29e   : > { %v4283_v33 = vrot.slane %v4282_v46, 1  ;;  %v16043_v40 = vsel %vm4649_vm2, %v4270_v32, -inf  ;;  %v4202_v15 = vrot.slane %v4201_v61, 4  ;;  %v3403_v9 = vcombine.high %v3035_v50, %v3035_v50 }
 0x29f   : > { %v16046_v42 = vsel %vm4649_vm2, %v4277_v35, -inf  ;;  %v3368_v34 = vcombine.high %v3366_v4, %v3366_v4  ;;  %v4208_v20 = vsel %vm3752_vm3, %v3367_v10, -inf  ;;  %v4215_v31 = vsel %vm3752_vm3, %v3366_v4, -inf }
 0x2a0   : > { %v4284_v36 = vmax.f32 %v4282_v46, %v4283_v33  ;;  %v4203_v7 = vmax.f32 %v4201_v61, %v4202_v15  ;;  %v4209_v0 = vrot.slane %v4208_v20, 4  ;;  %v4216_v23 = vrot.slane %v4215_v31, 4 }
 0x2a1   : > { %v4222_v12 = vsel %vm3752_vm3, %v3368_v34, -inf  ;;  %v3410_v25 = vrot.slane %v3035_v50, %v15574_v28  ;;  %v3417_v2 = vrot.slane %v3403_v9, %v15574_v28  ;;  %v3001_v17 = vadd.f32 %v15891_v6, %v2962_v11 }
 0x2a2   : > { %v16055_v45 = vsel %vm4649_vm2, %v4284_v36, -inf  ;;  %v4204_v24 = vrot.slane %v4203_v7, 2  ;;  %v4210_v49 = vmax.f32 %v4208_v20, %v4209_v0  ;;  %v4217_v51 = vmax.f32 %v4215_v31, %v4216_v23 }
 0x2a3   : > { %v4223_v44 = vrot.slane %v4222_v12, 4  ;;  %v3418_v43 = vcombine.high %v3410_v25, %v3410_v25  ;;  %v3419_v16 = vcombine.high %v3417_v2, %v3417_v2  ;;  %v4285_v41 = vsel %vm3752_vm3, %v3410_v25, -inf }
 0x2a4   : > { %v4205_v55 = vmax.f32 %v4203_v7, %v4204_v24  ;;  %v4211_v47 = vrot.slane %v4210_v49, 2  ;;  %v4218_v59 = vrot.slane %v4217_v51, 2  ;;  %v4286_v30 = vrot.slane %v4285_v41, 4 }
 0x2a5   : > { %v4224_v3 = vmax.f32 %v4222_v12, %v4223_v44  ;;  %v4292_v48 = vsel %vm3752_vm3, %v3418_v43, -inf  ;;  %v4299_v21 = vsel %vm3752_vm3, %v3417_v2, -inf  ;;  %v4306_v8 = vsel %vm3752_vm3, %v3419_v16, -inf  ;;  %v13348_v12 = vpop.f32.mrf.mxu0 }
 0x2a6   : > { %v4206_v56 = vrot.slane %v4205_v55, 1  ;;  %v4212_v29 = vmax.f32 %v4210_v49, %v4211_v47  ;;  %v4219_v13 = vmax.f32 %v4217_v51, %v4218_v59  ;;  %v4287_v27 = vmax.f32 %v4285_v41, %v4286_v30 }
 0x2a7   : > { %v4225_v19 = vrot.slane %v4224_v3, 2  ;;  %v4293_v62 = vrot.slane %v4292_v48, 4  ;;  %v4300_v63 = vrot.slane %v4299_v21, 4  ;;  %v4307_v38 = vrot.slane %v4306_v8, 4 }
 0x2a8   : > { %v4207_v14 = vmax.f32 %v4205_v55, %v4206_v56  ;;  %v4213_v22 = vrot.slane %v4212_v29, 1  ;;  %v4220_v32 = vrot.slane %v4219_v13, 1  ;;  %v4288_v46 = vrot.slane %v4287_v27, 2  ;;  %v13536_v56 = vld [vmem:[%s18823_s3 + $0x88] sm:$0xff]  }
 0x2a9   : > { %v4226_v50 = vmax.f32 %v4224_v3, %v4225_v19  ;;  %v4294_v11 = vmax.f32 %v4292_v48, %v4293_v62  ;;  %v4301_v35 = vmax.f32 %v4299_v21, %v4300_v63  ;;  %v4308_v4 = vmax.f32 %v4306_v8, %v4307_v38  ;;  %v2898_v48 = vpop.f32.mrf.mxu0  ;;  %13426 = vmatprep.subr.bf16.mxu0 %v13536_v56 }
 0x2aa   : > { %v4214_v10 = vmax.f32 %v4212_v29, %v4213_v22  ;;  %v4221_v61 = vmax.f32 %v4219_v13, %v4220_v32  ;;  %v4746_v33 = vsel %vm4649_vm2, %v4207_v14, -inf  ;;  %v4289_v15 = vmax.f32 %v4287_v27, %v4288_v46  ;;  %13427 = vmatpush3.bf16.msra.mxu0 %v13536_v56 }
 0x2ab   : > { %v4227_v9 = vrot.slane %v4226_v50, 1  ;;  %v4748_v34 = vmax.f32 %v4746_v33, %v16036_v54  ;;  %v4295_v20 = vrot.slane %v4294_v11, 2  ;;  %v4302_v31 = vrot.slane %v4301_v35, 2  ;;  %v13349_v46 = vpop.f32.mrf.mxu0 }
 0x2ac   : > { %v4749_v36 = vsel %vm4649_vm2, %v4214_v10, -inf  ;;  %v4752_v7 = vsel %vm4649_vm2, %v4221_v61, -inf  ;;  %v4290_v0 = vrot.slane %v4289_v15, 1  ;;  %v4309_v23 = vrot.slane %v4308_v4, 2  ;;  %v13537_v10 = vld [vmem:[%s18823_s3 + $0x80] sm:$0xff]  }
 0x2ad   : > { %v4228_v25 = vmax.f32 %v4226_v50, %v4227_v9  ;;  %v4751_v2 = vmax.f32 %v4749_v36, %v16043_v40  ;;  %v4754_v24 = vmax.f32 %v4752_v7, %v16046_v42  ;;  %v4296_v49 = vmax.f32 %v4294_v11, %v4295_v20  ;;  %13428 = vmatprep.subr.bf16.mxu0 %v13537_v10 }
 0x2ae   : > { %v4291_v51 = vmax.f32 %v4289_v15, %v4290_v0  ;;  %v4303_v44 = vmax.f32 %v4301_v35, %v4302_v31  ;;  %v4310_v43 = vmax.f32 %v4308_v4, %v4309_v23  ;;  %v3033_v16 = vmax.f32 %v3001_v17, 0.0  ;;  %13429 = vmatpush3.bf16.msra.mxu0 %v13537_v10 }
 0x2af   : > { %v4755_v54 = vsel %vm4649_vm2, %v4228_v25, -inf  ;;  %v4972_v41 = vsel %vm4937_vm4, %v4751_v2, %v4748_v34  ;;  %v4297_v55 = vrot.slane %v4296_v49, 1  ;;  %v2967_v47 = vadd.f32 %v13348_v12, %v15664_v1 }
 0x2b0   : > { %v4757_v59 = vmax.f32 %v4755_v54, %v16055_v45  ;;  %v4973_v30 = vsel %vm4939_vm5, %v4754_v24, %v4972_v41  ;;  %v4304_v3 = vrot.slane %v4303_v44, 1  ;;  %v4311_v40 = vrot.slane %v4310_v43, 1 }
 0x2b1   : > { %v4298_v42 = vmax.f32 %v4296_v49, %v4297_v55  ;;  %v16073_v21 = vsel %vm4649_vm2, %v4291_v51, -inf  ;;  %v3369_v8 = vcombine.high %v3033_v16, %v3033_v16  ;;  %v3376_v17 = vrot.slane %v3033_v16, %v15574_v28 }
 0x2b2   : > { %v4305_v29 = vmax.f32 %v4303_v44, %v4304_v3  ;;  %v4312_v1 = vmax.f32 %v4310_v43, %v4311_v40  ;;  %v16080_v45 = vsel %vm4941_vm6, %v4757_v59, %v4973_v30  ;;  %v3006_v13 = vadd.f32 %v15891_v6, %v2967_v47 }
 0x2b3   : > { %v16084_v27 = vsel %vm4649_vm2, %v4298_v42, -inf  ;;  %v3383_v19 = vrot.slane %v3369_v8, %v15574_v28  ;;  %v3384_v62 = vcombine.high %v3376_v17, %v3376_v17  ;;  %v4229_v63 = vsel %vm3752_vm3, %v3376_v17, -inf }
 0x2b4   : > { %v16089_v38 = vsel %vm4649_vm2, %v4305_v29, -inf  ;;  %v16092_v14 = vsel %vm4649_vm2, %v4312_v1, -inf  ;;  %v4230_v22 = vrot.slane %v4229_v63, 4  ;;  %v3038_v32 = vmax.f32 %v3006_v13, 0.0 }
 0x2b5   : > { %v3385_v50 = vcombine.high %v3383_v19, %v3383_v19  ;;  %v4236_v11 = vsel %vm3752_vm3, %v3384_v62, -inf  ;;  %v4243_v35 = vsel %vm3752_vm3, %v3383_v19, -inf  ;;  %v2965_v4 = vadd.f32 %v2898_v48, %v15668_v58 }
 0x2b6   : > { %v4231_v61 = vmax.f32 %v4229_v63, %v4230_v22  ;;  %v4237_v33 = vrot.slane %v4236_v11, 4  ;;  %v4244_v15 = vrot.slane %v4243_v35, 4  ;;  %v3454_v9 = vcombine.high %v3038_v32, %v3038_v32 }
 0x2b7   : > { %v4250_v34 = vsel %vm3752_vm3, %v3385_v50, -inf  ;;  %v3461_v20 = vrot.slane %v3038_v32, %v15574_v28  ;;  %v3004_v31 = vadd.f32 %v15891_v6, %v2965_v4  ;;  %v16104_v36 = vadd.f32 %v13349_v46, %v15672_v52 }
 0x2b8   : > { %v4232_v7 = vrot.slane %v4231_v61, 2  ;;  %v4238_v58 = vmax.f32 %v4236_v11, %v4237_v33  ;;  %v4245_v0 = vmax.f32 %v4243_v35, %v4244_v15  ;;  %v4251_v23 = vrot.slane %v4250_v34, 4 }
 0x2b9   : > { %v3468_v12 = vrot.slane %v3454_v9, %v15574_v28  ;;  %v3469_v25 = vcombine.high %v3461_v20, %v3461_v20  ;;  %v4369_v2 = vsel %vm3752_vm3, %v3461_v20, -inf  ;;  %v3036_v24 = vmax.f32 %v3004_v31, 0.0 }
 0x2ba   : > { %v4233_v49 = vmax.f32 %v4231_v61, %v4232_v7  ;;  %v4239_v51 = vrot.slane %v4238_v58, 2  ;;  %v4246_v44 = vrot.slane %v4245_v0, 2  ;;  %v4252_v43 = vmax.f32 %v4250_v34, %v4251_v23 }
 0x2bb   : > { %v3470_v16 = vcombine.high %v3468_v12, %v3468_v12  ;;  %v4370_v54 = vrot.slane %v4369_v2, 4  ;;  %v4376_v52 = vsel %vm3752_vm3, %v3469_v25, -inf  ;;  %v4383_v41 = vsel %vm3752_vm3, %v3468_v12, -inf }
 0x2bc   : > { %v4234_v55 = vrot.slane %v4233_v49, 1  ;;  %v4240_v47 = vmax.f32 %v4238_v58, %v4239_v51  ;;  %v4247_v59 = vmax.f32 %v4245_v0, %v4246_v44  ;;  %v4253_v30 = vrot.slane %v4252_v43, 2 }
 0x2bd   : > { %v4371_v3 = vmax.f32 %v4369_v2, %v4370_v54  ;;  %v4377_v40 = vrot.slane %v4376_v52, 4  ;;  %v4384_v48 = vrot.slane %v4383_v41, 4  ;;  %v4390_v42 = vsel %vm3752_vm3, %v3470_v16, -inf }
 0x2be   : > { %v4235_v8 = vmax.f32 %v4233_v49, %v4234_v55  ;;  %v4241_v17 = vrot.slane %v4240_v47, 1  ;;  %v4248_v56 = vrot.slane %v4247_v59, 1  ;;  %v4254_v29 = vmax.f32 %v4252_v43, %v4253_v30 }
 0x2bf   : > { %v4372_v1 = vrot.slane %v4371_v3, 2  ;;  %v4378_v13 = vmax.f32 %v4376_v52, %v4377_v40  ;;  %v4385_v19 = vmax.f32 %v4383_v41, %v4384_v48  ;;  %v4391_v62 = vrot.slane %v4390_v42, 4 }
 0x2c0   : > { %v4242_v63 = vmax.f32 %v4240_v47, %v4241_v17  ;;  %v4249_v22 = vmax.f32 %v4247_v59, %v4248_v56  ;;  %v4255_v32 = vrot.slane %v4254_v29, 1  ;;  %v4758_v46 = vsel %vm4649_vm2, %v4235_v8, -inf }
 0x2c1   : > { %v4760_v50 = vmax.f32 %v4758_v46, %v16073_v21  ;;  %v4373_v11 = vmax.f32 %v4371_v3, %v4372_v1  ;;  %v4379_v35 = vrot.slane %v4378_v13, 2  ;;  %v4386_v4 = vrot.slane %v4385_v19, 2  ;;  %v16147_v1 = vld [vmem:[#allocation2 + $0x20] sm:$0xff] }
 0x2c2   : > { %v4256_v10 = vmax.f32 %v4254_v29, %v4255_v32  ;;  %v4761_v61 = vsel %vm4649_vm2, %v4242_v63, -inf  ;;  %v4764_v33 = vsel %vm4649_vm2, %v4249_v22, -inf  ;;  %v4392_v15 = vmax.f32 %v4390_v42, %v4391_v62  ;;  %v5037_v29 = vld [vmem:[#allocation2 + $0x8] sm:$0xff]  ;;  %v16156_v22 = vld [vmem:[%s18823_s3 + $0xd8] sm:$0xff]  }
 0x2c3   : > { %v4763_v9 = vmax.f32 %v4761_v61, %v16084_v27  ;;  %v4766_v34 = vmax.f32 %v4764_v33, %v16089_v38  ;;  %v4975_v20 = vsel %vm4943_vm7, %v4760_v50, %v16080_v45  ;;  %v4374_v31 = vrot.slane %v4373_v11, 1  ;;  %13454 = vmatprep.subr.bf16.mxu0 %v16156_v22 }
 0x2c4   : > { %v4767_v7 = vsel %vm4649_vm2, %v4256_v10, -inf  ;;  %v4380_v21 = vmax.f32 %v4378_v13, %v4379_v35  ;;  %v4387_v58 = vmax.f32 %v4385_v19, %v4386_v4  ;;  %v4393_v0 = vrot.slane %v4392_v15, 2 }
 0x2c5   : > { %v4769_v23 = vmax.f32 %v4767_v7, %v16092_v14  ;;  %v4976_v12 = vsel %vm4945_vm8, %v4763_v9, %v4975_v20  ;;  %v4375_v25 = vmax.f32 %v4373_v11, %v4374_v31  ;;  %v3420_v2 = vcombine.high %v3036_v24, %v3036_v24 }
 0x2c6   : > { %v4977_v49 = vsel %vm4947_vm9, %v4766_v34, %v4976_v12  ;;  %v4381_v27 = vrot.slane %v4380_v21, 1  ;;  %v4388_v51 = vrot.slane %v4387_v58, 1  ;;  %v4394_v38 = vmax.f32 %v4392_v15, %v4393_v0 }
 0x2c7   : > { %v4978_v44 = vsel %vm4949_vm10, %v4769_v23, %v4977_v49  ;;  %v16125_v45 = vsel %vm4649_vm2, %v4375_v25, -inf  ;;  %v3427_v43 = vrot.slane %v3036_v24, %v15574_v28  ;;  %v3434_v16 = vrot.slane %v3420_v2, %v15574_v28  ;;  %v16137_v24 = vld [vmem:[%s18823_s3 + $0x18] sm:$0xff]  }
 0x2c8   : > { %5013 = vst.msk [vmem:[#allocation2 + $0x80] sm:$0xff] %vm4649_vm2, %v4978_v44  ;;  %v4382_v14 = vmax.f32 %v4380_v21, %v4381_v27  ;;  %v4389_v54 = vmax.f32 %v4387_v58, %v4388_v51  ;;  %v4395_v52 = vrot.slane %v4394_v38, 1  ;;  %v3007_v41 = vadd.f32 %v15891_v6, %v16104_v36  ;;  %v2901_v6 = vpop.f32.mrf.mxu0  ;;  %13374 = vmatprep.subr.bf16.mxu1 %v16137_v24 }
 0x2c9   : > { %v3435_v55 = vcombine.high %v3427_v43, %v3427_v43  ;;  %v3436_v47 = vcombine.high %v3434_v16, %v3434_v16  ;;  %v4313_v59 = vsel %vm3752_vm3, %v3427_v43, -inf  ;;  %v4327_v30 = vsel %vm3752_vm3, %v3434_v16, -inf }
 0x2ca   : > { %v4396_v3 = vmax.f32 %v4394_v38, %v4395_v52  ;;  %v16140_v40 = vsel %vm4649_vm2, %v4382_v14, -inf  ;;  %v16143_v48 = vsel %vm4649_vm2, %v4389_v54, -inf  ;;  %v4314_v42 = vrot.slane %v4313_v59, 4  ;;  %v13352_v52 = vpop.f32.mrf.mxu0 }
 0x2cb   : > { %v4320_v36 = vsel %vm3752_vm3, %v3435_v55, -inf  ;;  %v4328_v8 = vrot.slane %v4327_v30, 4  ;;  %v4334_v17 = vsel %vm3752_vm3, %v3436_v47, -inf  ;;  %v3039_v56 = vmax.f32 %v3007_v41, 0.0 }
 0x2cc   : > { %v16151_v13 = vsel %vm4649_vm2, %v4396_v3, -inf  ;;  %v4315_v19 = vmax.f32 %v4313_v59, %v4314_v42  ;;  %v4321_v62 = vrot.slane %v4320_v36, 4  ;;  %v4335_v63 = vrot.slane %v4334_v17, 4 }
 0x2cd   : > { %v4329_v32 = vmax.f32 %v4327_v30, %v4328_v8  ;;  %v3471_v46 = vcombine.high %v3039_v56, %v3039_v56  ;;  %v3478_v50 = vrot.slane %v3039_v56, %v15574_v28  ;;  %v2966_v11 = vadd.f32 %v2901_v6, %v15675_v26 }
 0x2ce   : > { %v4316_v35 = vrot.slane %v4315_v19, 2  ;;  %v4322_v4 = vmax.f32 %v4320_v36, %v4321_v62  ;;  %v4336_v10 = vmax.f32 %v4334_v17, %v4335_v63  ;;  %v5045_v61 = vpack.c.bf16 %v16147_v1, %v5037_v29 }
 0x2cf   : > { %v4330_v33 = vrot.slane %v4329_v32, 2  ;;  %v3485_v15 = vrot.slane %v3471_v46, %v15574_v28  ;;  %v3486_v9 = vcombine.high %v3478_v50, %v3478_v50  ;;  %v4397_v34 = vsel %vm3752_vm3, %v3478_v50, -inf }
 0x2d0   : > { %v4317_v20 = vmax.f32 %v4315_v19, %v4316_v35  ;;  %v4323_v31 = vrot.slane %v4322_v4, 2  ;;  %v4337_v7 = vrot.slane %v4336_v10, 2  ;;  %v4398_v21 = vrot.slane %v4397_v34, 4  ;;  %13366 = vmatprep.mubr.msk.bf16.mxu1 %vm4649_vm2, %v5045_v61  ;;  %v16179_v61 = vld [vmem:[%s18822_s2] ss:$0 sm:$0xff] }
 0x2d1   : > { %v4331_v26 = vmax.f32 %v4329_v32, %v4330_v33  ;;  %v3487_v58 = vcombine.high %v3485_v15, %v3485_v15  ;;  %v4404_v0 = vsel %vm3752_vm3, %v3486_v9, -inf  ;;  %v4411_v23 = vsel %vm3752_vm3, %v3485_v15, -inf  ;;  %v2914_v32 = vpop.f32.mrf.mxu0 }
 0x2d2   : > { %v4318_v12 = vrot.slane %v4317_v20, 1  ;;  %v4324_v25 = vmax.f32 %v4322_v4, %v4323_v31  ;;  %v4338_v2 = vmax.f32 %v4336_v10, %v4337_v7  ;;  %v4399_v49 = vmax.f32 %v4397_v34, %v4398_v21 }
 0x2d3   : > { %v4332_v27 = vrot.slane %v4331_v26, 1  ;;  %v4405_v51 = vrot.slane %v4404_v0, 4  ;;  %v4412_v38 = vrot.slane %v4411_v23, 4  ;;  %v4418_v44 = vsel %vm3752_vm3, %v3487_v58, -inf  ;;  %v13353_v21 = vpop.f32.mrf.mxu0 }
 0x2d4   : > { %v4319_v43 = vmax.f32 %v4317_v20, %v4318_v12  ;;  %v4325_v16 = vrot.slane %v4324_v25, 1  ;;  %v4339_v14 = vrot.slane %v4338_v2, 1  ;;  %v4400_v54 = vrot.slane %v4399_v49, 2 }
 0x2d5   : > { %v4333_v41 = vmax.f32 %v4331_v26, %v4332_v27  ;;  %v4406_v55 = vmax.f32 %v4404_v0, %v4405_v51  ;;  %v4413_v47 = vmax.f32 %v4411_v23, %v4412_v38  ;;  %v4419_v59 = vrot.slane %v4418_v44, 4 }
 0x2d6   : > { %v4326_v30 = vmax.f32 %v4324_v25, %v4325_v16  ;;  %v4340_v3 = vmax.f32 %v4338_v2, %v4339_v14  ;;  %v4770_v42 = vsel %vm4649_vm2, %v4319_v43, -inf  ;;  %v4401_v6 = vmax.f32 %v4399_v49, %v4400_v54 }
 0x2d7   : > { %v4772_v36 = vmax.f32 %v4770_v42, %v16125_v45  ;;  %v4776_v8 = vsel %vm4649_vm2, %v4333_v41, -inf  ;;  %v4407_v17 = vrot.slane %v4406_v55, 2  ;;  %v4414_v56 = vrot.slane %v4413_v47, 2 }
 0x2d8   : > { %v4773_v29 = vsel %vm4649_vm2, %v4326_v30, -inf  ;;  %v4778_v19 = vmax.f32 %v4776_v8, %v16143_v48  ;;  %v4779_v62 = vsel %vm4649_vm2, %v4340_v3, -inf  ;;  %v4402_v63 = vrot.slane %v4401_v6, 1 }
 0x2d9   : > { %v4775_v46 = vmax.f32 %v4773_v29, %v16140_v40  ;;  %v4781_v50 = vmax.f32 %v4779_v62, %v16151_v13  ;;  %v4408_v35 = vmax.f32 %v4406_v55, %v4407_v17  ;;  %v4415_v4 = vmax.f32 %v4413_v47, %v4414_v56 }
 0x2da   : > { %v4403_v10 = vmax.f32 %v4401_v6, %v4402_v63  ;;  %v4420_v45 = vmax.f32 %v4418_v44, %v4419_v59  ;;  %v3005_v33 = vadd.f32 %v16179_v61, %v2966_v11  ;;  %v2971_v48 = vadd.f32 %v13352_v52, %v15680_v37 }
 0x2db   : > { %v4979_v15 = vsel %vm4937_vm4, %v4775_v46, %v4772_v36  ;;  %v4409_v9 = vrot.slane %v4408_v35, 1  ;;  %v4416_v34 = vrot.slane %v4415_v4, 1  ;;  %v2969_v40 = vadd.f32 %v2914_v32, %v15684_v53 }
 0x2dc   : > { %v4980_v13 = vsel %vm4939_vm5, %v4778_v19, %v4979_v15  ;;  %v4421_v20 = vrot.slane %v4420_v45, 2  ;;  %v16187_v31 = vsel %vm4649_vm2, %v4403_v10, -inf  ;;  %v3037_v7 = vmax.f32 %v3005_v33, 0.0 }
 0x2dd   : > { %v4410_v26 = vmax.f32 %v4408_v35, %v4409_v9  ;;  %v4417_v58 = vmax.f32 %v4415_v4, %v4416_v34  ;;  %v16190_v11 = vsel %vm4941_vm6, %v4781_v50, %v4980_v13  ;;  %v3010_v37 = vadd.f32 %v16179_v61, %v2971_v48 }
 0x2de   : > { %v4422_v0 = vmax.f32 %v4420_v45, %v4421_v20  ;;  %v3437_v23 = vcombine.high %v3037_v7, %v3037_v7  ;;  %v3444_v12 = vrot.slane %v3037_v7, %v15574_v28  ;;  %v3008_v53 = vadd.f32 %v16179_v61, %v2969_v40 }
 0x2df   : > { %v16196_v25 = vsel %vm4649_vm2, %v4410_v26, -inf  ;;  %v16199_v2 = vsel %vm4649_vm2, %v4417_v58, -inf  ;;  %v3042_v49 = vmax.f32 %v3010_v37, 0.0  ;;  %v16202_v27 = vadd.f32 %v13353_v21, %v15688_v5 }
 0x2e0   : > { %v4423_v51 = vrot.slane %v4422_v0, 1  ;;  %v3451_v38 = vrot.slane %v3437_v23, %v15574_v28  ;;  %v3452_v44 = vcombine.high %v3444_v12, %v3444_v12  ;;  %v4341_v43 = vsel %vm3752_vm3, %v3444_v12, -inf }
 0x2e1   : > { %v4342_v16 = vrot.slane %v4341_v43, 4  ;;  %v3522_v14 = vcombine.high %v3042_v49, %v3042_v49  ;;  %v3529_v54 = vrot.slane %v3042_v49, %v15574_v28  ;;  %v16207_v52 = vmax.f32 %v3008_v53, 0.0 }
 0x2e2   : > { %v4424_v41 = vmax.f32 %v4422_v0, %v4423_v51  ;;  %v3453_v55 = vcombine.high %v3451_v38, %v3451_v38  ;;  %v4348_v47 = vsel %vm3752_vm3, %v3452_v44, -inf  ;;  %v4355_v59 = vsel %vm3752_vm3, %v3451_v38, -inf }
 0x2e3   : > { %v4343_v5 = vmax.f32 %v4341_v43, %v4342_v16  ;;  %v4349_v30 = vrot.slane %v4348_v47, 4  ;;  %v4356_v3 = vrot.slane %v4355_v59, 4  ;;  %v3536_v42 = vrot.slane %v3522_v14, %v15574_v28 }
 0x2e4   : > { %v16213_v6 = vsel %vm4649_vm2, %v4424_v41, -inf  ;;  %v4362_v36 = vsel %vm3752_vm3, %v3453_v55, -inf  ;;  %v3537_v8 = vcombine.high %v3529_v54, %v3529_v54  ;;  %v4481_v17 = vsel %vm3752_vm3, %v3529_v54, -inf }
 0x2e5   : > { %v4344_v56 = vrot.slane %v4343_v5, 2  ;;  %v4350_v29 = vmax.f32 %v4348_v47, %v4349_v30  ;;  %v4357_v19 = vmax.f32 %v4355_v59, %v4356_v3  ;;  %v4363_v62 = vrot.slane %v4362_v36, 4 }
 0x2e6   : > { %v3538_v63 = vcombine.high %v3536_v42, %v3536_v42  ;;  %v4482_v32 = vrot.slane %v4481_v17, 4  ;;  %v4488_v46 = vsel %vm3752_vm3, %v3537_v8, -inf  ;;  %v4495_v50 = vsel %vm3752_vm3, %v3536_v42, -inf }
 0x2e7   : > { %v4345_v35 = vmax.f32 %v4343_v5, %v4344_v56  ;;  %v4351_v4 = vrot.slane %v4350_v29, 2  ;;  %v4358_v10 = vrot.slane %v4357_v19, 2  ;;  %v4364_v45 = vmax.f32 %v4362_v36, %v4363_v62 }
 0x2e8   : > { %v4483_v33 = vmax.f32 %v4481_v17, %v4482_v32  ;;  %v4489_v48 = vrot.slane %v4488_v46, 4  ;;  %v4496_v15 = vrot.slane %v4495_v50, 4  ;;  %v4502_v9 = vsel %vm3752_vm3, %v3538_v63, -inf }
 0x2e9   : > { %v4346_v34 = vrot.slane %v4345_v35, 1  ;;  %v4352_v40 = vmax.f32 %v4350_v29, %v4351_v4  ;;  %v4359_v13 = vmax.f32 %v4357_v19, %v4358_v10  ;;  %v4365_v20 = vrot.slane %v4364_v45, 2 }
 0x2ea   : > { %v4484_v7 = vrot.slane %v4483_v33, 2  ;;  %v4490_v21 = vmax.f32 %v4488_v46, %v4489_v48  ;;  %v4497_v26 = vmax.f32 %v4495_v50, %v4496_v15  ;;  %v4503_v58 = vrot.slane %v4502_v9, 4 }
 0x2eb   : > { %v4347_v37 = vmax.f32 %v4345_v35, %v4346_v34  ;;  %v4353_v0 = vrot.slane %v4352_v40, 1  ;;  %v4360_v23 = vrot.slane %v4359_v13, 1  ;;  %v4366_v12 = vmax.f32 %v4364_v45, %v4365_v20  ;;  %v16251_v34 = vld [vmem:[#allocation2 + $0x38] sm:$0xff] }
 0x2ec   : > { %v4485_v53 = vmax.f32 %v4483_v33, %v4484_v7  ;;  %v4491_v49 = vrot.slane %v4490_v21, 2  ;;  %v4498_v51 = vrot.slane %v4497_v26, 2  ;;  %v4504_v38 = vmax.f32 %v4502_v9, %v4503_v58 }
 0x2ed   : > { %v4354_v44 = vmax.f32 %v4352_v40, %v4353_v0  ;;  %v4361_v43 = vmax.f32 %v4359_v13, %v4360_v23  ;;  %v4367_v16 = vrot.slane %v4366_v12, 1  ;;  %v4782_v14 = vsel %vm4649_vm2, %v4347_v37, -inf }
 0x2ee   : > { %v4784_v54 = vmax.f32 %v4782_v14, %v16187_v31  ;;  %v4486_v41 = vrot.slane %v4485_v53, 1  ;;  %v4492_v55 = vmax.f32 %v4490_v21, %v4491_v49  ;;  %v4499_v47 = vmax.f32 %v4497_v26, %v4498_v51 }
 0x2ef   : > { %v4368_v59 = vmax.f32 %v4366_v12, %v4367_v16  ;;  %v4785_v5 = vsel %vm4649_vm2, %v4354_v44, -inf  ;;  %v4788_v30 = vsel %vm4649_vm2, %v4361_v43, -inf  ;;  %v4505_v3 = vrot.slane %v4504_v38, 2 }
 0x2f0   : > { %v4787_v42 = vmax.f32 %v4785_v5, %v16196_v25  ;;  %v4790_v36 = vmax.f32 %v4788_v30, %v16199_v2  ;;  %v4982_v8 = vsel %vm4943_vm7, %v4784_v54, %v16190_v11  ;;  %v4487_v17 = vmax.f32 %v4485_v53, %v4486_v41  ;;  %v2917_v2 = vpop.f32.mrf.mxu0 }
 0x2f1   : > { %v4791_v56 = vsel %vm4649_vm2, %v4368_v59, -inf  ;;  %v4493_v31 = vrot.slane %v4492_v55, 1  ;;  %v4500_v29 = vrot.slane %v4499_v47, 1  ;;  %v4506_v19 = vmax.f32 %v4504_v38, %v4505_v3 }
 0x2f2   : > { %v4793_v62 = vmax.f32 %v4791_v56, %v16213_v6  ;;  %v4983_v63 = vsel %vm4945_vm8, %v4787_v42, %v4982_v8  ;;  %v16232_v32 = vsel %vm4649_vm2, %v4487_v17, -inf  ;;  %v3488_v25 = vcombine.high %v16207_v52, %v16207_v52  ;;  %v13356_v58 = vpop.f32.mrf.mxu0 }
 0x2f3   : > { %v4984_v46 = vsel %vm4947_vm9, %v4790_v36, %v4983_v63  ;;  %v4494_v11 = vmax.f32 %v4492_v55, %v4493_v31  ;;  %v4501_v50 = vmax.f32 %v4499_v47, %v4500_v29  ;;  %v4507_v35 = vrot.slane %v4506_v19, 1 }
 0x2f4   : > { %v4985_v4 = vsel %vm4949_vm10, %v4793_v62, %v4984_v46  ;;  %v3495_v10 = vrot.slane %v16207_v52, %v15574_v28  ;;  %v3502_v6 = vrot.slane %v3488_v25, %v15574_v28  ;;  %v3011_v45 = vadd.f32 %v16179_v61, %v16202_v27 }
 0x2f5   : > { %5014 = vst.msk [vmem:[#allocation2 + $0x98] sm:$0xff] %vm4649_vm2, %v4985_v4  ;;  %v4508_v33 = vmax.f32 %v4506_v19, %v4507_v35  ;;  %v16245_v48 = vsel %vm4649_vm2, %v4494_v11, -inf  ;;  %v16248_v15 = vsel %vm4649_vm2, %v4501_v50, -inf  ;;  %v2970_v9 = vadd.f32 %v2917_v2, %v15691_v60 }
 0x2f6   : > { %v3503_v40 = vcombine.high %v3495_v10, %v3495_v10  ;;  %v3504_v52 = vcombine.high %v3502_v6, %v3502_v6  ;;  %v4425_v13 = vsel %vm3752_vm3, %v3495_v10, -inf  ;;  %v4439_v20 = vsel %vm3752_vm3, %v3502_v6, -inf }
 0x2f7   : > { %v16256_v27 = vsel %vm4649_vm2, %v4508_v33, -inf  ;;  %v4426_v7 = vrot.slane %v4425_v13, 4  ;;  %v4440_v21 = vrot.slane %v4439_v20, 4  ;;  %v3043_v26 = vmax.f32 %v3011_v45, 0.0 }
 0x2f8   : > { %v4432_v37 = vsel %vm3752_vm3, %v3503_v40, -inf  ;;  %v4446_v0 = vsel %vm3752_vm3, %v3504_v52, -inf  ;;  %v3009_v60 = vadd.f32 %v16179_v61, %v2970_v9  ;;  %v5525_v23 = vpack.c.bf16 %v16251_v34, %v16147_v1 }
 0x2f9   : > { %v4427_v12 = vmax.f32 %v4425_v13, %v4426_v7  ;;  %v4433_v53 = vrot.slane %v4432_v37, 4  ;;  %v4441_v49 = vmax.f32 %v4439_v20, %v4440_v21  ;;  %v4447_v51 = vrot.slane %v4446_v0, 4 }
 0x2fa   : > { %v3539_v38 = vcombine.high %v3043_v26, %v3043_v26  ;;  %v3546_v44 = vrot.slane %v3043_v26, %v15574_v28  ;;  %v3041_v43 = vmax.f32 %v3009_v60, 0.0  ;;  %13430 = vmatprep.mubr.msk.bf16.mxu0 %vm4649_vm2, %v5525_v23  ;;  %v2975_v16 = vadd.f32 %v13356_v58, %v15696_v39 }
 0x2fb   : > { %v4428_v14 = vrot.slane %v4427_v12, 2  ;;  %v4434_v54 = vmax.f32 %v4432_v37, %v4433_v53  ;;  %v4442_v41 = vrot.slane %v4441_v49, 2  ;;  %v4448_v55 = vmax.f32 %v4446_v0, %v4447_v51 }
 0x2fc   : > { %v3553_v47 = vrot.slane %v3539_v38, %v15574_v28  ;;  %v3554_v59 = vcombine.high %v3546_v44, %v3546_v44  ;;  %v4509_v1 = vsel %vm3752_vm3, %v3546_v44, -inf  ;;  %v3505_v5 = vcombine.high %v3041_v43, %v3041_v43 }
 0x2fd   : > { %v4429_v30 = vmax.f32 %v4427_v12, %v4428_v14  ;;  %v4435_v3 = vrot.slane %v4434_v54, 2  ;;  %v4443_v42 = vmax.f32 %v4441_v49, %v4442_v41  ;;  %v4449_v36 = vrot.slane %v4448_v55, 2 }
 0x2fe   : > { %v3555_v8 = vcombine.high %v3553_v47, %v3553_v47  ;;  %v4510_v17 = vrot.slane %v4509_v1, 4  ;;  %v4516_v56 = vsel %vm3752_vm3, %v3554_v59, -inf  ;;  %v4523_v39 = vsel %vm3752_vm3, %v3553_v47, -inf }
 0x2ff   : > { %v4430_v31 = vrot.slane %v4429_v30, 1  ;;  %v4436_v29 = vmax.f32 %v4434_v54, %v4435_v3  ;;  %v4444_v19 = vrot.slane %v4443_v42, 1  ;;  %v4450_v62 = vmax.f32 %v4448_v55, %v4449_v36  ;;  %v2930_v3 = vpop.f32.mrf.mxu0 }
 0x300   : > { %v4511_v63 = vmax.f32 %v4509_v1, %v4510_v17  ;;  %v4517_v25 = vrot.slane %v4516_v56, 4  ;;  %v4524_v2 = vrot.slane %v4523_v39, 4  ;;  %v4530_v46 = vsel %vm3752_vm3, %v3555_v8, -inf }
 0x301   : > { %v4431_v11 = vmax.f32 %v4429_v30, %v4430_v31  ;;  %v4437_v50 = vrot.slane %v4436_v29, 1  ;;  %v4445_v35 = vmax.f32 %v4443_v42, %v4444_v19  ;;  %v4451_v4 = vrot.slane %v4450_v62, 1 }
 0x302   : > { %v4512_v10 = vrot.slane %v4511_v63, 2  ;;  %v4518_v6 = vmax.f32 %v4516_v56, %v4517_v25  ;;  %v4525_v45 = vmax.f32 %v4523_v39, %v4524_v2  ;;  %v4531_v33 = vrot.slane %v4530_v46, 4 }
 0x303   : > { %v4438_v9 = vmax.f32 %v4436_v29, %v4437_v50  ;;  %v4452_v40 = vmax.f32 %v4450_v62, %v4451_v4  ;;  %v4794_v52 = vsel %vm4649_vm2, %v4431_v11, -inf  ;;  %v4800_v13 = vsel %vm4649_vm2, %v4445_v35, -inf  ;;  %v13357_v11 = vpop.f32.mrf.mxu0 }
 0x304   : > { %v4796_v20 = vmax.f32 %v4794_v52, %v16232_v32  ;;  %v4802_v7 = vmax.f32 %v4800_v13, %v16248_v15  ;;  %v4513_v21 = vmax.f32 %v4511_v63, %v4512_v10  ;;  %v4519_v26 = vrot.slane %v4518_v6, 2 }
 0x305   : > { %v4797_v58 = vsel %vm4649_vm2, %v4438_v9, -inf  ;;  %v4803_v37 = vsel %vm4649_vm2, %v4452_v40, -inf  ;;  %v4526_v0 = vrot.slane %v4525_v45, 2  ;;  %v4532_v60 = vmax.f32 %v4530_v46, %v4531_v33 }
 0x306   : > { %v4799_v23 = vmax.f32 %v4797_v58, %v16245_v48  ;;  %v4805_v12 = vmax.f32 %v4803_v37, %v16256_v27  ;;  %v4514_v53 = vrot.slane %v4513_v21, 1  ;;  %v4520_v49 = vmax.f32 %v4518_v6, %v4519_v26 }
 0x307   : > { %v4527_v51 = vmax.f32 %v4525_v45, %v4526_v0  ;;  %v4533_v38 = vrot.slane %v4532_v60, 2  ;;  %v3512_v32 = vrot.slane %v3041_v43, %v15574_v28  ;;  %v3519_v15 = vrot.slane %v3505_v5, %v15574_v28 }
 0x308   : > { %v4986_v44 = vsel %vm4937_vm4, %v4799_v23, %v4796_v20  ;;  %v4515_v14 = vmax.f32 %v4513_v21, %v4514_v53  ;;  %v4521_v54 = vrot.slane %v4520_v49, 1  ;;  %v3014_v41 = vadd.f32 %v16179_v61, %v2975_v16 }
 0x309   : > { %v4987_v55 = vsel %vm4939_vm5, %v4802_v7, %v4986_v44  ;;  %v4528_v47 = vrot.slane %v4527_v51, 1  ;;  %v4534_v48 = vmax.f32 %v4532_v60, %v4533_v38  ;;  %v3520_v59 = vcombine.high %v3512_v32, %v3512_v32 }
 0x30a   : > { %v4522_v27 = vmax.f32 %v4520_v49, %v4521_v54  ;;  %v16285_v1 = vsel %vm4649_vm2, %v4515_v14, -inf  ;;  %v3521_v30 = vcombine.high %v3519_v15, %v3519_v15  ;;  %v4453_v43 = vsel %vm3752_vm3, %v3512_v32, -inf }
 0x30b   : > { %v4529_v5 = vmax.f32 %v4527_v51, %v4528_v47  ;;  %v4535_v42 = vrot.slane %v4534_v48, 1  ;;  %v4454_v36 = vrot.slane %v4453_v43, 4  ;;  %v4460_v8 = vsel %vm3752_vm3, %v3520_v59, -inf }
 0x30c   : > { %v16290_v16 = vsel %vm4649_vm2, %v4522_v27, -inf  ;;  %v4461_v17 = vrot.slane %v4460_v8, 4  ;;  %v4467_v56 = vsel %vm3752_vm3, %v3519_v15, -inf  ;;  %v4474_v39 = vsel %vm3752_vm3, %v3521_v30, -inf }
 0x30d   : > { %v4536_v31 = vmax.f32 %v4534_v48, %v4535_v42  ;;  %v4813_v29 = vsel %vm4649_vm2, %v4529_v5, -inf  ;;  %v4455_v19 = vmax.f32 %v4453_v43, %v4454_v36  ;;  %v4468_v62 = vrot.slane %v4467_v56, 4 }
 0x30e   : > { %v4462_v63 = vmax.f32 %v4460_v8, %v4461_v17  ;;  %v4475_v25 = vrot.slane %v4474_v39, 4  ;;  %v4988_v2 = vsel %vm4941_vm6, %v4805_v12, %v4987_v55  ;;  %v3046_v46 = vmax.f32 %v3014_v41, 0.0 }
 0x30f   : > { %v4816_v50 = vsel %vm4649_vm2, %v4536_v31, -inf  ;;  %v4456_v35 = vrot.slane %v4455_v19, 2  ;;  %v4469_v4 = vmax.f32 %v4467_v56, %v4468_v62  ;;  %v2973_v10 = vadd.f32 %v2930_v3, %v15699_v57 }
 0x310   : > { %v4463_v6 = vrot.slane %v4462_v63, 2  ;;  %v4476_v45 = vmax.f32 %v4474_v39, %v4475_v25  ;;  %v3590_v33 = vcombine.high %v3046_v46, %v3046_v46  ;;  %v3597_v9 = vrot.slane %v3046_v46, %v15574_v28 }
 0x311   : > { %v4457_v40 = vmax.f32 %v4455_v19, %v4456_v35  ;;  %v4470_v52 = vrot.slane %v4469_v4, 2  ;;  %v3012_v13 = vadd.f32 %v16179_v61, %v2973_v10  ;;  %v2976_v20 = vadd.f32 %v13357_v11, %v15701_v18  ;;  %v18934_v10 = vld [vmem:[#allocation10_spill] sm:$0xff] }
 0x312   : > { %v4464_v7 = vmax.f32 %v4462_v63, %v4463_v6  ;;  %v4477_v21 = vrot.slane %v4476_v45, 2  ;;  %v3604_v26 = vrot.slane %v3590_v33, %v15574_v28  ;;  %v3605_v58 = vcombine.high %v3597_v9, %v3597_v9  ;;  %v18935_v6 = vld [vmem:[#allocation6_spill] sm:$0xff] }
 0x313   : > { %v4458_v37 = vrot.slane %v4457_v40, 1  ;;  %v4471_v0 = vmax.f32 %v4469_v4, %v4470_v52  ;;  %v4593_v57 = vsel %vm3752_vm3, %v3597_v9, -inf  ;;  %v3044_v60 = vmax.f32 %v3012_v13, 0.0  ;;  %v2640_v13 = vpop.f32.mrf.mxu1 }
 0x314   : > { %v4465_v23 = vrot.slane %v4464_v7, 1  ;;  %v4478_v12 = vmax.f32 %v4476_v45, %v4477_v21  ;;  %v3606_v53 = vcombine.high %v3604_v26, %v3604_v26  ;;  %v4594_v49 = vrot.slane %v4593_v57, 4 }
 0x315   : > { %v4459_v51 = vmax.f32 %v4457_v40, %v4458_v37  ;;  %v4472_v38 = vrot.slane %v4471_v0, 1  ;;  %v4600_v32 = vsel %vm3752_vm3, %v3605_v58, -inf  ;;  %v4607_v18 = vsel %vm3752_vm3, %v3604_v26, -inf }
 0x316   : > { %v4466_v15 = vmax.f32 %v4464_v7, %v4465_v23  ;;  %v4479_v44 = vrot.slane %v4478_v12, 1  ;;  %v4595_v14 = vmax.f32 %v4593_v57, %v4594_v49  ;;  %v4601_v54 = vrot.slane %v4600_v32, 4 }
 0x317   : > { %v4473_v41 = vmax.f32 %v4471_v0, %v4472_v38  ;;  %v4806_v55 = vsel %vm4649_vm2, %v4459_v51, -inf  ;;  %v4608_v47 = vrot.slane %v4607_v18, 4  ;;  %v4614_v48 = vsel %vm3752_vm3, %v3606_v53, -inf }
 0x318   : > { %v4480_v59 = vmax.f32 %v4478_v12, %v4479_v44  ;;  %v4808_v27 = vmax.f32 %v4806_v55, %v16285_v1  ;;  %v4809_v30 = vsel %vm4649_vm2, %v4466_v15, -inf  ;;  %v4596_v43 = vrot.slane %v4595_v14, 2 }
 0x319   : > { %v4811_v3 = vmax.f32 %v4809_v30, %v16290_v16  ;;  %v4812_v5 = vsel %vm4649_vm2, %v4473_v41, -inf  ;;  %v4602_v42 = vmax.f32 %v4600_v32, %v4601_v54  ;;  %v4609_v36 = vmax.f32 %v4607_v18, %v4608_v47  ;;  %v2933_v30 = vpop.f32.mrf.mxu0 }
 0x31a   : > { %v4814_v8 = vmax.f32 %v4812_v5, %v4813_v29  ;;  %v4815_v17 = vsel %vm4649_vm2, %v4480_v59, -inf  ;;  %v4989_v56 = vsel %vm4943_vm7, %v4808_v27, %v4988_v2  ;;  %v4597_v39 = vmax.f32 %v4595_v14, %v4596_v43 }
 0x31b   : > { %v4817_v31 = vmax.f32 %v4815_v17, %v4816_v50  ;;  %v4990_v19 = vsel %vm4945_vm8, %v4811_v3, %v4989_v56  ;;  %v4603_v62 = vrot.slane %v4602_v42, 2  ;;  %v4610_v1 = vrot.slane %v4609_v36, 2 }
 0x31c   : > { %v4991_v63 = vsel %vm4947_vm9, %v4814_v8, %v4990_v19  ;;  %v4598_v25 = vrot.slane %v4597_v39, 1  ;;  %v4615_v46 = vrot.slane %v4614_v48, 4  ;;  %v3556_v16 = vcombine.high %v3044_v60, %v3044_v60 }
 0x31d   : > { %v4992_v11 = vsel %vm4949_vm10, %v4817_v31, %v4991_v63  ;;  %v4604_v35 = vmax.f32 %v4602_v42, %v4603_v62  ;;  %v4611_v4 = vmax.f32 %v4609_v36, %v4610_v1  ;;  %v3563_v29 = vrot.slane %v3044_v60, %v15574_v28 }
 0x31e   : > { %v2384_v2 = vadd.f32 %v18935_v6, %v18934_v10  ;;  %5015 = vst.msk [vmem:[#allocation2 + $0xb0] sm:$0xff] %vm4649_vm2, %v4992_v11  ;;  %v4616_v50 = vmax.f32 %v4614_v48, %v4615_v46  ;;  %v3570_v45 = vrot.slane %v3556_v16, %v15574_v28  ;;  %v4599_v33 = vmax.f32 %v4597_v39, %v4598_v25 }
 0x31f   : > { %v3571_v9 = vcombine.high %v3563_v29, %v3563_v29  ;;  %v4537_v40 = vsel %vm3752_vm3, %v3563_v29, -inf  ;;  %v3015_v52 = vadd.f32 %v16179_v61, %v2976_v20  ;;  %v4605_v7 = vrot.slane %v4604_v35, 1 }
 0x320   : > { %v4617_v21 = vrot.slane %v4616_v50, 2  ;;  %v3572_v26 = vcombine.high %v3570_v45, %v3570_v45  ;;  %v4538_v58 = vrot.slane %v4537_v40, 4  ;;  %v4612_v37 = vrot.slane %v4611_v4, 1 }
 0x321   : > { %v4544_v0 = vsel %vm3752_vm3, %v3571_v9, -inf  ;;  %v4551_v57 = vsel %vm3752_vm3, %v3570_v45, -inf  ;;  %v2681_v49 = vadd.f32 %v2640_v13, %v2384_v2  ;;  %v4819_v51 = vsel %vm4649_vm2, %v4599_v33, -inf }
 0x322   : > { %v4618_v60 = vmax.f32 %v4616_v50, %v4617_v21  ;;  %v4539_v23 = vmax.f32 %v4537_v40, %v4538_v58  ;;  %v4545_v12 = vrot.slane %v4544_v0, 4  ;;  %v4552_v53 = vrot.slane %v4551_v57, 4  ;;  %v5040_v21 = vld [vmem:[#allocation2 + $0x50] sm:$0xff] }
 0x323   : > { %v4558_v38 = vsel %vm3752_vm3, %v3572_v26, -inf  ;;  %v3047_v20 = vmax.f32 %v3015_v52, 0.0  ;;  %v4606_v32 = vmax.f32 %v4604_v35, %v4605_v7  ;;  %v4613_v14 = vmax.f32 %v4611_v4, %v4612_v37 }
 0x324   : > { %v4540_v18 = vrot.slane %v4539_v23, 2  ;;  %v4546_v15 = vmax.f32 %v4544_v0, %v4545_v12  ;;  %v4553_v44 = vmax.f32 %v4551_v57, %v4552_v53  ;;  %v4559_v54 = vrot.slane %v4558_v38, 4 }
 0x325   : > { %v3607_v41 = vcombine.high %v3047_v20, %v3047_v20  ;;  %v3614_v55 = vrot.slane %v3047_v20, %v15574_v28  ;;  %v4619_v47 = vrot.slane %v4618_v60, 1  ;;  %v4822_v36 = vsel %vm4649_vm2, %v4606_v32, -inf  ;;  %v13539_v20 = vld [vmem:[%s18823_s3 + $0x10] sm:$0xff]  }
 0x326   : > { %v4541_v48 = vmax.f32 %v4539_v23, %v4540_v18  ;;  %v4547_v59 = vrot.slane %v4546_v15, 2  ;;  %v4554_v27 = vrot.slane %v4553_v44, 2  ;;  %v4560_v43 = vmax.f32 %v4558_v38, %v4559_v54  ;;  %v5520_v23 = vld [vmem:[#allocation2 + $0x68] sm:$0xff]  ;;  %v5042_v38 = vld [vmem:[#allocation2 + $0x80] sm:$0xff]  ;;  %v5522_v54 = vld [vmem:[#allocation2 + $0x98] sm:$0xff] }
 0x327   : > { %v3621_v3 = vrot.slane %v3607_v41, %v15574_v28  ;;  %v3622_v5 = vcombine.high %v3614_v55, %v3614_v55  ;;  %v4621_v42 = vsel %vm3752_vm3, %v3614_v55, -inf  ;;  %v2974_v62 = vadd.f32 %v2933_v30, %v2681_v49 }
 0x328   : > { %v4542_v8 = vrot.slane %v4541_v48, 1  ;;  %v4548_v17 = vmax.f32 %v4546_v15, %v4547_v59  ;;  %v4555_v56 = vmax.f32 %v4553_v44, %v4554_v27  ;;  %v4561_v39 = vrot.slane %v4560_v43, 2 }
 0x329   : > { %v3623_v31 = vcombine.high %v3621_v3, %v3621_v3  ;;  %v4628_v19 = vsel %vm3752_vm3, %v3622_v5, -inf  ;;  %v4622_v46 = vrot.slane %v4621_v42, 4  ;;  %v4620_v16 = vmax.f32 %v4618_v60, %v4619_v47 }
 0x32a   : > { %v4543_v1 = vmax.f32 %v4541_v48, %v4542_v8  ;;  %v4549_v63 = vrot.slane %v4548_v17, 1  ;;  %v4556_v25 = vrot.slane %v4555_v56, 1  ;;  %v4562_v11 = vmax.f32 %v4560_v43, %v4561_v39  ;;  %v16360_v48 = vld [vmem:[#allocation2 + $0xb0] sm:$0xff]  ;;  %v13540_v43 = vld [vmem:[%s18823_s3 + $0x8] sm:$0xff]   ;;  %v16375_v39 = vld [vmem:[#allocation2 + $0x1f] sm:$0xff] }
 0x32b   : > { %v4635_v35 = vsel %vm3752_vm3, %v3621_v3, -inf  ;;  %v4642_v4 = vsel %vm3752_vm3, %v3623_v31, -inf  ;;  %v4629_v2 = vrot.slane %v4628_v19, 4  ;;  %v4825_v50 = vsel %vm4649_vm2, %v4613_v14, -inf  ;;  %v13545_v31 = vld [vmem:[%s18823_s3 + $0xc8] sm:$0xff]  }
 0x32c   : > { %v4550_v29 = vmax.f32 %v4548_v17, %v4549_v63  ;;  %v4557_v10 = vmax.f32 %v4555_v56, %v4556_v25  ;;  %v4818_v6 = vsel %vm4649_vm2, %v4543_v1, -inf  ;;  %v4563_v45 = vrot.slane %v4562_v11, 1  ;;  %v5017_v56 = vld [vmem:[#allocation2 + $0x7] sm:$0xff] }
 0x32d   : > { %v4820_v33 = vmax.f32 %v4818_v6, %v4819_v51  ;;  %v4636_v9 = vrot.slane %v4635_v35, 4  ;;  %v4623_v13 = vmax.f32 %v4621_v42, %v4622_v46  ;;  %v4643_v7 = vrot.slane %v4642_v4, 4  ;;  %v13542_v46 = vld [vmem:[%s18823_s3] sm:$0xff]  }
 0x32e   : > { %v4821_v40 = vsel %vm4649_vm2, %v4550_v29, -inf  ;;  %v4824_v52 = vsel %vm4649_vm2, %v4557_v10, -inf  ;;  %v4564_v26 = vmax.f32 %v4562_v11, %v4563_v45  ;;  %v4828_v0 = vsel %vm4649_vm2, %v4620_v16, -inf }
 0x32f   : > { %v4823_v58 = vmax.f32 %v4821_v40, %v4822_v36  ;;  %v4826_v37 = vmax.f32 %v4824_v52, %v4825_v50  ;;  %v4630_v57 = vmax.f32 %v4628_v19, %v4629_v2  ;;  %v3013_v60 = vadd.f32 %v16179_v61, %v2974_v62  ;;  %v13547_v2 = vld [vmem:[%s18823_s3 + $0xc0] sm:$0xff]  }
 0x330   : > { %v4827_v12 = vsel %vm4649_vm2, %v4564_v26, -inf  ;;  %v4637_v49 = vmax.f32 %v4635_v35, %v4636_v9  ;;  %v16343_v51 = vpack.c.bf16 %v5040_v21, %v16251_v34  ;;  %v4624_v15 = vrot.slane %v4623_v13, 2  ;;  %v13543_v34 = vld [vmem:[%s18823_s3 + $0xd0] sm:$0xff]  }
 0x331   : > { %v4993_v53 = vsel %vm4937_vm4, %v4823_v58, %v4820_v33  ;;  %v4829_v32 = vmax.f32 %v4827_v12, %v4828_v0  ;;  %v4644_v44 = vmax.f32 %v4642_v4, %v4643_v7  ;;  %v3045_v61 = vmax.f32 %v3013_v60, 0.0  ;;  %v16399_v0 = vld [vmem:[#allocation2 + $0x7f] sm:$0xff] }
 0x332   : > { %v4994_v18 = vsel %vm4939_vm5, %v4826_v37, %v4993_v53  ;;  %13367 = vmatmul.mubr.msk.bf16.vlgmr.msra.gmra.mxu1 %vm4649_vm2, %v16343_v51  ;;  %v5526_v14 = vpack.c.bf16 %v5520_v23, %v5040_v21  ;;  %v4631_v41 = vrot.slane %v4630_v57, 2  ;;  %v16357_v47 = vpack.c.bf16 %v5042_v38, %v5520_v23  ;;  %v16397_v37 = vld [vmem:[#allocation2 + $0x4f] sm:$0xff]  ;;  %v16424_v12 = vld [vmem:[%s18823_s3 + $0x118] sm:$0xff]  }
 0x333   : > { %v16355_v55 = vsel %vm4941_vm6, %v4829_v32, %v4994_v18  ;;  %13375 = vmatpush3.bf16.msra.mxu1 %v16137_v24  ;;  %v4638_v59 = vrot.slane %v4637_v49, 2  ;;  %v3573_v27 = vcombine.high %v3045_v61, %v3045_v61  ;;  %v3580_v30 = vrot.slane %v3045_v61, %v15574_v28  ;;  %v16426_v32 = vld [vmem:[#allocation2 + $0x37] sm:$0xff]  ;;  %v16428_v18 = vld [vmem:[#allocation2 + $0x67] sm:$0xff] }
 0x334   : > { %13431 = vmatmul.mubr.msk.bf16.vlgmr.msra.gmra.mxu0 %vm4649_vm2, %v5526_v14  ;;  %13376 = vmatprep.subr.bf16.mxu1 %v13539_v20  ;;  %v4625_v3 = vmax.f32 %v4623_v13, %v4624_v15  ;;  %v4645_v5 = vrot.slane %v4644_v44, 2  ;;  %v5527_v42 = vpack.c.bf16 %v5522_v54, %v5042_v38  ;;  %v16373_v17 = vpack.c.bf16 %v16360_v48, %v5522_v54  ;;  %v13544_v13 = vld [vmem:[%s18823_s3 + $0x58] sm:$0xff]   ;;  %v13546_v54 = vld [vmem:[%s18823_s3 + $0x50] sm:$0xff]  }
 0x335   : > { %13370 = vmatprep.mubr.msk.bf16.mxu1 %vm4649_vm2, %v16357_v47  ;;  %13455 = vmatpush3.bf16.msra.mxu0 %v16156_v22  ;;  %v3587_v24 = vrot.slane %v3573_v27, %v15574_v28  ;;  %v3588_v36 = vcombine.high %v3580_v30, %v3580_v30  ;;  %v4565_v8 = vsel %vm3752_vm3, %v3580_v30, -inf  ;;  %v4632_v19 = vmax.f32 %v4630_v57, %v4631_v41 }
 0x336   : > { %13456 = vmatprep.subr.bf16.mxu0 %v13543_v34  ;;  %v4566_v62 = vrot.slane %v4565_v8, 4  ;;  %13434 = vmatprep.mubr.msk.bf16.mxu0 %vm4649_vm2, %v5527_v42  ;;  %v4639_v22 = vmax.f32 %v4637_v49, %v4638_v59  ;;  %v5025_v4 = vpack.c.bf16 %v16375_v39, %v5017_v56  ;;  %v4626_v29 = vrot.slane %v4625_v3, 1  ;;  %v13548_v56 = vld [vmem:[%s18823_s3 + $0x48] sm:$0xff]  }
 0x337   : > { %13377 = vmatpush3.bf16.msra.mxu1 %v13539_v20  ;;  %v3589_v1 = vcombine.high %v3587_v24, %v3587_v24  ;;  %v4572_v63 = vsel %vm3752_vm3, %v3588_v36, -inf  ;;  %v4579_v25 = vsel %vm3752_vm3, %v3587_v24, -inf  ;;  %v4646_v10 = vmax.f32 %v4644_v44, %v4645_v5 }
 0x338   : > { %13378 = vmatprep.subr.bf16.mxu1 %v13540_v43  ;;  %v4567_v16 = vmax.f32 %v4565_v8, %v4566_v62  ;;  %v4573_v11 = vrot.slane %v4572_v63, 4  ;;  %v4580_v35 = vrot.slane %v4579_v25, 4  ;;  %v4633_v40 = vrot.slane %v4632_v19, 1 }
 0x339   : > { %13457 = vmatpush3.bf16.msra.mxu0 %v13543_v34  ;;  %v4586_v6 = vsel %vm3752_vm3, %v3589_v1, -inf  ;;  %v4640_v52 = vrot.slane %v4639_v22, 1  ;;  %v18936_v57 = vmov 0.0   ;;  %v4627_v60 = vmax.f32 %v4625_v3, %v4626_v29  ;;  %v16455_v1 = vld [vmem:[#allocation2 + $0xaf] sm:$0xff]  ;;  %v16463_v29 = vld [vmem:[#allocation2 + $0x97] sm:$0xff] }
 0x33a   : > { %13371 = vmatmul.mubr.msk.bf16.gmra.mxu1 %vm4649_vm2, %v16373_v17  ;;  %13458 = vmatprep.subr.bf16.mxu0 %v13545_v31  ;;  %v4568_v50 = vrot.slane %v4567_v16, 2  ;;  %v4574_v45 = vmax.f32 %v4572_v63, %v4573_v11  ;;  %v4581_v33 = vmax.f32 %v4579_v25, %v4580_v35  ;;  %v4587_v9 = vrot.slane %v4586_v6, 4  ;;  %4845 = vst.msk [vmem:[#allocation2 + $0x10] sm:$0x1] %vm4844_vm11, %v18936_v57 }
 0x33b   : > { %13379 = vmatpush3.bf16.msra.mxu1 %v13540_v43  ;;  %13382 = vmatprep.mubr.msk.bf16.mxu1 %vm4649_vm2, %v5025_v4  ;;  %4848 = vst.msk [vmem:[#allocation2 + $0x28] sm:$0x1] %vm4844_vm11, %v18936_v57  ;;  %4851 = vst.msk [vmem:[#allocation2 + $0x40] sm:$0x1] %vm4844_vm11, %v18936_v57  ;;  %v4647_v23 = vrot.slane %v4646_v10, 1  ;;  %v4634_v15 = vmax.f32 %v4632_v19, %v4633_v40  ;;  %v4641_v44 = vmax.f32 %v4639_v22, %v4640_v52 }
 0x33c   : > { %13380 = vmatprep.subr.bf16.mxu1 %v13542_v46  ;;  %v4569_v7 = vmax.f32 %v4567_v16, %v4568_v50  ;;  %v4575_v21 = vrot.slane %v4574_v45, 2  ;;  %v4582_v26 = vrot.slane %v4581_v33, 2  ;;  %v4588_v58 = vmax.f32 %v4586_v6, %v4587_v9  ;;  %4854 = vst.msk [vmem:[#allocation2 + $0x58] sm:$0x1] %vm4844_vm11, %v18936_v57  ;;  %4857 = vst.msk [vmem:[#allocation2 + $0x70] sm:$0x1] %vm4844_vm11, %v18936_v57 }
 0x33d   : > { %13459 = vmatpush3.bf16.msra.mxu0 %v13545_v31  ;;  %4860 = vst.msk [vmem:[#allocation2 + $0x88] sm:$0x1] %vm4844_vm11, %v18936_v57  ;;  %4863 = vst.msk [vmem:[#allocation2 + $0xa0] sm:$0x1] %vm4844_vm11, %v18936_v57  ;;  %v16432_v61 = vpack.c.bf16 %v16397_v37, %v16426_v32  ;;  %v16436_v14 = vpack.c.bf16 %v16399_v0, %v16428_v18  ;;  %v4648_v30 = vmax.f32 %v4646_v10, %v4647_v23  ;;  %v13552_v9 = vld [vmem:[%s18823_s3 + $0x78] sm:$0xff]   ;;  %v13556_v23 = vld [vmem:[%s18823_s3 + $0x68] sm:$0xff]  }
 0x33e   : > { %4866 = vst.msk [vmem:[#allocation2 + $0xb8] sm:$0x1] %vm4844_vm11, %v18936_v57  ;;  %4869 = vst.msk [vmem:[#allocation2 + $0xd0] sm:$0x1] %vm4844_vm11, %v18936_v57  ;;  %13460 = vmatprep.subr.bf16.mxu0 %v13547_v2  ;;  %v4570_v53 = vrot.slane %v4569_v7, 1  ;;  %v4576_v49 = vmax.f32 %v4574_v45, %v4575_v21  ;;  %v4583_v38 = vmax.f32 %v4581_v33, %v4582_v26  ;;  %v4589_v20 = vrot.slane %v4588_v58, 2 }
 0x33f   : > { %4872 = vst.msk [vmem:[#allocation2 + $0xe8] sm:$0x1] %vm4844_vm11, %v18936_v57  ;;  %13381 = vmatpush3.bf16.msra.mxu1 %v13542_v46  ;;  %v4831_v43 = vsel %vm4649_vm2, %v4627_v60, -inf  ;;  %v4834_v36 = vsel %vm4649_vm2, %v4634_v15, -inf  ;;  %v4837_v31 = vsel %vm4649_vm2, %v4641_v44, -inf  ;;  %v4840_v35 = vsel %vm4649_vm2, %v4648_v30, -inf }
 0x340   : > { %13390 = vmatprep.subr.bf16.mxu1 %v13544_v13  ;;  %v4571_v34 = vmax.f32 %v4569_v7, %v4570_v53  ;;  %v4577_v41 = vrot.slane %v4576_v49, 1  ;;  %v4584_v59 = vrot.slane %v4583_v38, 1  ;;  %v4590_v27 = vmax.f32 %v4588_v58, %v4589_v20  ;;  %v13554_v26 = vld [vmem:[%s18823_s3 + $0x70] sm:$0xff]   ;;  %v13558_v44 = vld [vmem:[%s18823_s3 + $0xb8] sm:$0xff]  }
 0x341   : > { %13461 = vmatpush3.bf16.msra.mxu0 %v13547_v2  ;;  %v5259_v16 = vld [vmem:[#allocation2 + $0x9] sm:$0xff]  ;;  %v5028_v2 = vpack.c.bf16 %v16455_v1, %v16463_v29  ;;  %v5396_v20 = vpack.c.bf16 %v16426_v32, %v16375_v39 }
 0x342   : > { %13383 = vmatmul.mubr.msk.bf16.vlgmr.msra.gmra.mxu1 %vm4649_vm2, %v16432_v61  ;;  %13486 = vmatprep.subr.bf16.mxu0 %v16424_v12  ;;  %v4578_v3 = vmax.f32 %v4576_v49, %v4577_v41  ;;  %v4585_v5 = vmax.f32 %v4583_v38, %v4584_v59  ;;  %v4591_v42 = vrot.slane %v4590_v27, 1  ;;  %v4830_v24 = vsel %vm4649_vm2, %v4571_v34, -inf  ;;  %v16459_v11 = vld [vmem:[#allocation2 + $0x21] sm:$0xff]  ;;  %v13551_v15 = vld [vmem:[%s18823_s3 + $0x110] sm:$0xff]  }
 0x343   : > { %13391 = vmatpush3.bf16.msra.mxu1 %v13544_v13  ;;  %13386 = vmatprep.mubr.msk.bf16.mxu1 %vm4649_vm2, %v16436_v14  ;;  %v4832_v8 = vmax.f32 %v4830_v24, %v4831_v43  ;;  %v5267_v45 = vpack.c.bf16 %v16459_v11, %v5259_v16  ;;  %v16480_v40 = vld [vmem:[#allocation2 + $0x51] sm:$0xff]  ;;  %v5261_v13 = vld [vmem:[#allocation2 + $0x39] sm:$0xff]  ;;  %v16485_v21 = vld [vmem:[#allocation2 + $0x69] sm:$0xff] }
 0x344   : > { %13392 = vmatprep.subr.bf16.mxu1 %v13546_v54  ;;  %v4592_v19 = vmax.f32 %v4590_v27, %v4591_v42  ;;  %v4833_v62 = vsel %vm4649_vm2, %v4578_v3, -inf  ;;  %v4836_v22 = vsel %vm4649_vm2, %v4585_v5, -inf  ;;  %v16482_v52 = vld [vmem:[#allocation2 + $0x81] sm:$0xff]  ;;  %v5268_v7 = vpack.c.bf16 %v16480_v40, %v5261_v13  ;;  %v5265_v49 = vld [vmem:[#allocation2 + $0x99] sm:$0xff]  ;;  %v13563_v5 = vld [vmem:[%s18823_s3 + $0xf0] sm:$0xff]  }
 0x345   : > { %v4835_v63 = vmax.f32 %v4833_v62, %v4834_v36  ;;  %v4838_v25 = vmax.f32 %v4836_v22, %v4837_v31  ;;  %v4996_v46 = vsel %vm4943_vm7, %v4832_v8, %v16355_v55  ;;  %v13550_v55 = vld [vmem:[%s18823_s3 + $0x40] sm:$0xff]   ;;  %v5269_v58 = vpack.c.bf16 %v16482_v52, %v16485_v21  ;;  %v16502_v53 = vld [vmem:[#allocation2 + $0xb1] sm:$0xff]  ;;  %v13553_v39 = vld [vmem:[%s18823_s3 + $0x108] sm:$0xff]  }
 0x346   : > { %v4839_v4 = vsel %vm4649_vm2, %v4592_v19, -inf  ;;  %v13557_v38 = vld [vmem:[%s18823_s3 + $0x60] sm:$0xff]   ;;  %v5654_v59 = vpack.c.bf16 %v5261_v13, %v16459_v11  ;;  %v13562_v27 = vld [vmem:[%s18823_s3 + $0xf8] sm:$0xff]   ;;  %v5655_v3 = vpack.c.bf16 %v16485_v21, %v16480_v40  ;;  %v5656_v42 = vpack.c.bf16 %v5265_v49, %v16482_v52  ;;  %v13564_v36 = vld [vmem:[%s18823_s3 + $0xe8] sm:$0xff]  }
 0x347   : > { %13393 = vmatpush3.bf16.msra.mxu1 %v13546_v54  ;;  %v4841_v10 = vmax.f32 %v4839_v4, %v4840_v35  ;;  %v4997_v6 = vsel %vm4945_vm8, %v4835_v63, %v4996_v46  ;;  %v5397_v54 = vpack.c.bf16 %v16428_v18, %v16397_v37  ;;  %v13555_v41 = vld [vmem:[%s18823_s3 + $0x100] sm:$0xff]   ;;  %v13560_v37 = vld [vmem:[%s18823_s3 + $0xa8] sm:$0xff]  }
 0x348   : > { %13394 = vmatprep.subr.bf16.mxu1 %v13548_v56  ;;  %v4998_v50 = vsel %vm4947_vm9, %v4838_v25, %v4997_v6  ;;  %v13561_v18 = vld [vmem:[%s18823_s3 + $0xa0] sm:$0xff]   ;;  %v13575_v63 = vld [vmem:[%s18825_s5 + $0x1c8] ss:$16 sps:$4 sm:$0xff]   ;;  %v13577_v25 = vld [vmem:[%s18825_s5 + $0x1cc] ss:$16 sps:$4 sm:$0xff]  }
 0x349   : > { %v4999_v33 = vsel %vm4949_vm10, %v4841_v10, %v4998_v50  ;;  %v6041_v43 = vld [vmem:[#allocation2 + $0xe1] sm:$0xff] }
 0x34a   : > { %13387 = vmatmul.mubr.msk.bf16.gmra.mxu1 %vm4649_vm2, %v5028_v2  ;;  %5016 = vst.msk [vmem:[#allocation2 + $0xc8] sm:$0xff] %vm4649_vm2, %v4999_v33  ;;  %v5912_v31 = vld [vmem:[#allocation2 + $0xe0] sm:$0xff]  ;;  %v13581_v50 = vld [vmem:[%s18825_s5 + $0x1a8] ss:$16 sps:$4 sm:$0xff]   ;;  %v13583_v33 = vld [vmem:[%s18825_s5 + $0x1ac] ss:$16 sps:$4 sm:$0xff]  }
 0x34b   : > { %13395 = vmatpush3.bf16.msra.mxu1 %v13548_v56  ;;  %13398 = vmatprep.mubr.msk.bf16.mxu1 %vm4649_vm2, %v5267_v45  ;;  %v13565_v56 = vld [vmem:[%s18823_s3 + $0xe0] sm:$0xff]  }
 0x34c   : > { %13396 = vmatprep.subr.bf16.mxu1 %v13550_v55  ;;  %v13566_v62 = vld [vmem:[%s18825_s5 + $0x1e0] ss:$16 sps:$4 sm:$0xff]  }
 0x34d   : > { %v13572_v22 = vld [vmem:[%s18825_s5 + $0x1c0] ss:$16 sps:$4 sm:$0xff]  }
 0x34f   : > { %13397 = vmatpush3.bf16.msra.mxu1 %v13550_v55  ;;  %v13580_v55 = vld [vmem:[%s18825_s5 + $0x1a4] ss:$16 sps:$4 sm:$0xff]  }
 0x350   : > { %13406 = vmatprep.subr.bf16.mxu1 %v13552_v9 }
 0x351   : > { %v16492_v57 = vld [vmem:[#allocation2 + $0xc8] sm:$0xff] }
 0x352   : > { %13399 = vmatmul.mubr.msk.bf16.vlgmr.msra.gmra.mxu1 %vm4649_vm2, %v5268_v7  ;;  %v5528_v60 = vpack.c.bf16 %v16492_v57, %v16360_v48  ;;  %v5270_v48 = vpack.c.bf16 %v16502_v53, %v5265_v49  ;;  %v5782_v32 = vld [vmem:[#allocation2 + $0xc7] sm:$0xff]  ;;  %v5916_v19 = vpack.c.bf16 %v5912_v31, %v16492_v57 }
 0x353   : > { %13407 = vmatpush3.bf16.msra.mxu1 %v13552_v9  ;;  %13402 = vmatprep.mubr.msk.bf16.mxu1 %vm4649_vm2, %v5269_v58  ;;  %v6040_v30 = vld [vmem:[#allocation2 + $0xc9] sm:$0xff] }
 0x354   : > { %13408 = vmatprep.subr.bf16.mxu1 %v13554_v26  ;;  %13435 = vmatmul.mubr.msk.bf16.gmra.mxu0 %vm4649_vm2, %v5528_v60  ;;  %v6045_v24 = vpack.c.bf16 %v6041_v43, %v6040_v30  ;;  %v5657_v8 = vpack.c.bf16 %v6040_v30, %v16502_v53  ;;  %v13589_v53 = vld [vmem:[%s18825_s5 + $0x18c] ss:$16 sps:$4 sm:$0xff]   ;;  %v13604_v30 = vld [vmem:[%s18825_s5 + $0x124] ss:$16 sps:$4 sm:$0xff]  }
 0x355   : > { %13462 = vmatprep.mubr.msk.bf16.mxu0 %vm4649_vm2, %v16432_v61  ;;  %v5783_v61 = vld [vmem:[#allocation2 + $0xdf] sm:$0xff] }
 0x356   : > { %v5787_v34 = vpack.c.bf16 %v5783_v61, %v5782_v32  ;;  %v13593_v61 = vld [vmem:[%s18825_s5 + $0x168] ss:$16 sps:$4 sm:$0xff]   ;;  %v13607_v43 = vld [vmem:[%s18825_s5 + $0x12c] ss:$16 sps:$4 sm:$0xff]  }
 0x357   : > { %13409 = vmatpush3.bf16.msra.mxu1 %v13554_v26 }
 0x358   : > { %13410 = vmatprep.subr.bf16.mxu1 %v13556_v23 }
 0x35a   : > { %13403 = vmatmul.mubr.msk.bf16.gmra.mxu1 %vm4649_vm2, %v5270_v48 }
 0x35b   : > { %13411 = vmatpush3.bf16.msra.mxu1 %v13556_v23  ;;  %13414 = vmatprep.mubr.msk.bf16.mxu1 %vm4649_vm2, %v5396_v20  ;;  %v13586_v23 = vld [vmem:[%s18825_s5 + $0x184] ss:$16 sps:$4 sm:$0xff]  }
 0x35c   : > { %13412 = vmatprep.subr.bf16.mxu1 %v13557_v38  ;;  %13463 = vmatmul.mubr.msk.bf16.vlgmr.msra.gmra.mxu0 %vm4649_vm2, %v16436_v14  ;;  %v13559_v14 = vld [vmem:[%s18823_s3 + $0xb0] sm:$0xff]  }
 0x35d   : > { %13466 = vmatprep.mubr.msk.bf16.mxu0 %vm4649_vm2, %v5028_v2  ;;  %13487 = vmatpush3.bf16.msra.mxu0 %v16424_v12  ;;  %v5398_v12 = vpack.c.bf16 %v16463_v29, %v16399_v0  ;;  %v5399_v0 = vpack.c.bf16 %v5782_v32, %v16455_v1  ;;  %v13574_v1 = vld [vmem:[%s18825_s5 + $0x1c4] ss:$16 sps:$4 sm:$0xff]   ;;  %v13578_v2 = vld [vmem:[%s18825_s5 + $0x1a0] ss:$16 sps:$4 sm:$0xff]  }
 0x35e   : > { %13488 = vmatprep.subr.bf16.mxu0 %v13551_v15  ;;  %v13592_v32 = vld [vmem:[%s18825_s5 + $0x164] ss:$16 sps:$4 sm:$0xff]  }
 0x35f   : > { %13413 = vmatpush3.bf16.msra.mxu1 %v13557_v38  ;;  %v13587_v38 = vld [vmem:[%s18825_s5 + $0x188] ss:$16 sps:$4 sm:$0xff]  }
 0x360   : > { %13438 = vmatprep.subr.bf16.mxu1 %v13558_v44 }
 0x361   : > { %13489 = vmatpush3.bf16.msra.mxu0 %v13551_v15 }
 0x362   : > { %13415 = vmatmul.mubr.msk.bf16.vlgmr.msra.gmra.mxu1 %vm4649_vm2, %v5397_v54  ;;  %13490 = vmatprep.subr.bf16.mxu0 %v13553_v39 }
 0x363   : > { %13439 = vmatpush3.bf16.msra.mxu1 %v13558_v44  ;;  %13418 = vmatprep.mubr.msk.bf16.mxu1 %vm4649_vm2, %v5398_v12  ;;  %v13598_v12 = vld [vmem:[%s18825_s5 + $0x144] ss:$16 sps:$4 sm:$0xff]  }
 0x364   : > { %13440 = vmatprep.subr.bf16.mxu1 %v13559_v14  ;;  %13467 = vmatmul.mubr.msk.bf16.gmra.mxu0 %vm4649_vm2, %v5787_v34  ;;  %v13601_v34 = vld [vmem:[%s18825_s5 + $0x14c] ss:$16 sps:$4 sm:$0xff]  }
 0x365   : > { %13491 = vmatpush3.bf16.msra.mxu0 %v13553_v39  ;;  %13494 = vmatprep.mubr.msk.bf16.mxu0 %vm4649_vm2, %v5268_v7  ;;  %v13590_v39 = vld [vmem:[%s18825_s5 + $0x160] ss:$16 sps:$4 sm:$0xff]  }
 0x366   : > { %13492 = vmatprep.subr.bf16.mxu0 %v13555_v41 }
 0x367   : > { %13441 = vmatpush3.bf16.msra.mxu1 %v13559_v14  ;;  %v13595_v14 = vld [vmem:[%s18825_s5 + $0x16c] ss:$16 sps:$4 sm:$0xff]  }
 0x368   : > { %13442 = vmatprep.subr.bf16.mxu1 %v13560_v37 }
 0x369   : > { %13493 = vmatpush3.bf16.msra.mxu0 %v13555_v41 }
 0x36a   : > { %13419 = vmatmul.mubr.msk.bf16.gmra.mxu1 %vm4649_vm2, %v5399_v0 }
 0x36b   : > { %13443 = vmatpush3.bf16.msra.mxu1 %v13560_v37  ;;  %13446 = vmatprep.mubr.msk.bf16.mxu1 %vm4649_vm2, %v5654_v59  ;;  %v13599_v59 = vld [vmem:[%s18825_s5 + $0x148] ss:$16 sps:$4 sm:$0xff]  }
 0x36c   : > { %13444 = vmatprep.subr.bf16.mxu1 %v13561_v18  ;;  %13495 = vmatmul.mubr.msk.bf16.vlgmr.msra.gmra.mxu0 %vm4649_vm2, %v5269_v58 }
 0x36d   : > { %13498 = vmatprep.mubr.msk.bf16.mxu0 %vm4649_vm2, %v5270_v48  ;;  %v13584_v48 = vld [vmem:[%s18825_s5 + $0x180] ss:$16 sps:$4 sm:$0xff]  }
 0x36f   : > { %13445 = vmatpush3.bf16.msra.mxu1 %v13561_v18  ;;  %v13596_v18 = vld [vmem:[%s18825_s5 + $0x140] ss:$16 sps:$4 sm:$0xff]  }
 0x370   : > { %13470 = vmatprep.subr.bf16.mxu1 %v13562_v27 }
 0x372   : > { %13447 = vmatmul.mubr.msk.bf16.vlgmr.msra.gmra.mxu1 %vm4649_vm2, %v5655_v3 }
 0x373   : > { %13471 = vmatpush3.bf16.msra.mxu1 %v13562_v27  ;;  %13450 = vmatprep.mubr.msk.bf16.mxu1 %vm4649_vm2, %v5656_v42 }
 0x374   : > { %13472 = vmatprep.subr.bf16.mxu1 %v13563_v5  ;;  %13499 = vmatmul.mubr.msk.bf16.gmra.mxu0 %vm4649_vm2, %v6045_v24 }
 0x377   : > { %13473 = vmatpush3.bf16.msra.mxu1 %v13563_v5  ;;  %v14458_v5 = vmov 0  }
 0x378   : > { %13474 = vmatprep.subr.bf16.mxu1 %v13564_v36  ;;  %6901 = vmatprep.mubr.bf16.mxu0 %v14458_v5 }
 0x37a   : > { %13451 = vmatmul.mubr.msk.bf16.gmra.mxu1 %vm4649_vm2, %v5657_v8  ;;  %v13602_v8 = vld [vmem:[%s18825_s5 + $0x120] ss:$16 sps:$4 sm:$0xff]  }
 0x37b   : > { %13475 = vmatpush3.bf16.msra.mxu1 %v13564_v36  ;;  %13478 = vmatprep.mubr.msk.bf16.mxu1 %vm4649_vm2, %v16343_v51  ;;  %v13568_v51 = vld [vmem:[%s18825_s5 + $0x1e4] ss:$16 sps:$4 sm:$0xff]  }
 0x37c   : > { %13476 = vmatprep.subr.bf16.mxu1 %v13565_v56 }
 0x37f   : > { %13477 = vmatpush3.bf16.msra.mxu1 %v13565_v56  ;;  %v13605_v56 = vld [vmem:[%s18825_s5 + $0x128] ss:$16 sps:$4 sm:$0xff]  }
 0x380   : > { %6828 = vmatprep.subr.bf16.mxu1 %v13568_v51 }
 0x382   : > { %13479 = vmatmul.mubr.msk.bf16.vlgmr.msra.gmra.mxu1 %vm4649_vm2, %v16357_v47  ;;  %v13569_v47 = vld [vmem:[%s18825_s5 + $0x1e8] ss:$16 sps:$4 sm:$0xff]  }
 0x383   : > { %13482 = vmatprep.mubr.msk.bf16.mxu1 %vm4649_vm2, %v16373_v17  ;;  %v13571_v17 = vld [vmem:[%s18825_s5 + $0x1ec] ss:$16 sps:$4 sm:$0xff]   ;;  %6829 = vmatpush1.bf16.msra.mxu1 %v13566_v62 }
 0x384   : > { %6869 = vmatprep.subr.bf16.mxu0 %v13571_v17  ;;  %6830 = vmatprep.subr.bf16.mxu1 %v13574_v1  ;;  %v13613_v62 = vld [vmem:[%s18825_s5 + $0x10c] ss:$16 sps:$4 sm:$0xff]   ;;  %v13611_v1 = vld [vmem:[%s18825_s5 + $0x108] ss:$16 sps:$4 sm:$0xff]  }
 0x385   : > { %6870 = vmatpush1.bf16.msra.mxu0 %v13569_v47 }
 0x386   : > { %6871 = vmatprep.subr.bf16.mxu0 %v13577_v25 }
 0x387   : > { %6831 = vmatpush1.bf16.msra.mxu1 %v13572_v22  ;;  %v13608_v22 = vld [vmem:[%s18825_s5 + $0x100] ss:$16 sps:$4 sm:$0xff]  }
 0x388   : > { %6832 = vmatprep.subr.bf16.mxu1 %v13580_v55 }
 0x389   : > { %6872 = vmatpush1.bf16.msra.mxu0 %v13575_v63 }
 0x38a   : > { %13483 = vmatmul.mubr.msk.bf16.gmra.mxu1 %vm4649_vm2, %v5916_v19  ;;  %6873 = vmatprep.subr.bf16.mxu0 %v13583_v33  ;;  %v13610_v19 = vld [vmem:[%s18825_s5 + $0x104] ss:$16 sps:$4 sm:$0xff]  }
 0x38b   : > { %6833 = vmatpush1.bf16.msra.mxu1 %v13578_v2  ;;  %6860 = vmatprep.mubr.bf16.mxu1 %v14458_v5 }
 0x38c   : > { %6834 = vmatprep.subr.bf16.mxu1 %v13586_v23 }
 0x38d   : > { %6874 = vmatpush1.bf16.msra.mxu0 %v13581_v50 }
 0x38e   : > { %6875 = vmatprep.subr.bf16.mxu0 %v13589_v53 }
 0x38f   : > { %6835 = vmatpush1.bf16.msra.mxu1 %v13584_v48 }
 0x390   : > { %6836 = vmatprep.subr.bf16.mxu1 %v13592_v32 }
 0x391   : > { %6876 = vmatpush1.bf16.msra.mxu0 %v13587_v38 }
 0x392   : > { %6877 = vmatprep.subr.bf16.mxu0 %v13595_v14 }
 0x393   : > { %6837 = vmatpush1.bf16.msra.mxu1 %v13590_v39 }
 0x394   : > { %6838 = vmatprep.subr.bf16.mxu1 %v13598_v12 }
 0x395   : > { %6878 = vmatpush1.bf16.msra.mxu0 %v13593_v61 }
 0x396   : > { %6879 = vmatprep.subr.bf16.mxu0 %v13601_v34 }
 0x397   : > { %6839 = vmatpush1.bf16.msra.mxu1 %v13596_v18 }
 0x398   : > { %6840 = vmatprep.subr.bf16.mxu1 %v13604_v30 }
 0x399   : > { %6880 = vmatpush1.bf16.msra.mxu0 %v13599_v59 }
 0x39a   : > { %6881 = vmatprep.subr.bf16.mxu0 %v13607_v43 }
 0x39b   : > { %6841 = vmatpush1.bf16.msra.mxu1 %v13602_v8 }
 0x39c   : > { %6842 = vmatprep.subr.bf16.mxu1 %v13610_v19 }
 0x39d   : > { %6882 = vmatpush1.bf16.msra.mxu0 %v13605_v56 }
 0x39e   : > { %6883 = vmatprep.subr.bf16.mxu0 %v13613_v62 }
 0x39f   : > { %6843 = vmatpush1.bf16.msra.mxu1 %v13608_v22 }
 0x3a1   : > { %6884 = vmatpush1.bf16.msra.mxu0 %v13611_v1 }
 0x3f2   : > { %v13368_v46 = vpop.f32.mrf.mxu1 }
 0x3f4   : > { %v16605_v16 = vpop.f32.mrf.mxu1  ;;  %v16625_v13 = vpop.f32.mrf.mxu0 }
 0x3f6   : > { %v13369_v11 = vpop.f32.mrf.mxu1  ;;  %v16629_v58 = vpop.f32.mrf.mxu0 }
 0x3f8   : > { %v16607_v35 = vpop.f32.mrf.mxu1  ;;  %v16643_v15 = vpop.f32.mrf.mxu0 }
 0x3fa   : > { %v13372_v4 = vpop.f32.mrf.mxu1  ;;  %v16663_v37 = vpop.f32.mrf.mxu0 }
 0x3fc   : > { %v5143_v29 = vpop.f32.mrf.mxu1 }
 0x3fe   : > { %v13373_v10 = vpop.f32.mrf.mxu1 }
 0x400   : > { %v16609_v6 = vpop.f32.mrf.mxu1 }
 0x402   : > { %v13384_v45 = vpop.f32.mrf.mxu1 }
 0x403   : > { %v5237_v9 = vadd.f32 %v13384_v45, %v13368_v46  ;;  %v13616_v46 = vld [vmem:[%s18825_s5 + $0xe4] ss:$16 sps:$4 sm:$0xff]  }
 0x404   : > { %v16623_v40 = vpop.f32.mrf.mxu1  ;;  %7070 = vmatprep.subr.bf16.mxu1 %v13616_v46 }
 0x406   : > { %v13385_v52 = vpop.f32.mrf.mxu1 }
 0x407   : > { %v5240_v7 = vadd.f32 %v13385_v52, %v13369_v11  ;;  %v13619_v11 = vld [vmem:[%s18825_s5 + $0xec] ss:$16 sps:$4 sm:$0xff]  }
 0x408   : > { %v16627_v21 = vpop.f32.mrf.mxu1  ;;  %7111 = vmatprep.subr.bf16.mxu0 %v13619_v11 }
 0x40a   : > { %v13388_v26 = vpop.f32.mrf.mxu1 }
 0x40b   : > { %v5253_v57 = vadd.f32 %v13388_v26, %v13372_v4 }
 0x40c   : > { %v5244_v60 = vpop.f32.mrf.mxu1 }
 0x40d   : > { %v5245_v49 = vadd.f32 %v5244_v60, %v5143_v29 }
 0x40e   : > { %v13389_v20 = vpop.f32.mrf.mxu1 }
 0x40f   : > { %v5256_v44 = vadd.f32 %v13389_v20, %v13373_v10 }
 0x410   : > { %v5247_v54 = vpop.f32.mrf.mxu1 }
 0x411   : > { %v5248_v10 = vadd.f32 %v5247_v54, %v16609_v6 }
 0x412   : > { %v13400_v41 = vpop.f32.mrf.mxu1 }
 0x413   : > { %v5382_v0 = vadd.f32 %v13400_v41, %v5237_v9 }
 0x414   : > { %v16671_v27 = vpop.f32.mrf.mxu1  ;;  %v13436_v3 = vpop.f32.mrf.mxu0 }
 0x416   : > { %v13401_v42 = vpop.f32.mrf.mxu1  ;;  %v5623_v24 = vpop.f32.mrf.mxu0 }
 0x417   : > { %v5383_v36 = vadd.f32 %v13401_v42, %v5240_v7 }
 0x418   : > { %v16687_v31 = vpop.f32.mrf.mxu1  ;;  %v13437_v51 = vpop.f32.mrf.mxu0 }
 0x41a   : > { %v13404_v47 = vpop.f32.mrf.mxu1  ;;  %v5626_v63 = vpop.f32.mrf.mxu0 }
 0x41b   : > { %v5386_v17 = vadd.f32 %v13404_v47, %v5253_v57 }
 0x41c   : > { %v5365_v25 = vpop.f32.mrf.mxu1  ;;  %v13464_v55 = vpop.f32.mrf.mxu0 }
 0x41d   : > { %v5384_v4 = vadd.f32 %v5365_v25, %v5245_v49 }
 0x41e   : > { %v13405_v29 = vpop.f32.mrf.mxu1  ;;  %v5866_v52 = vpop.f32.mrf.mxu0 }
 0x41f   : > { %v5387_v2 = vadd.f32 %v13405_v29, %v5256_v44 }
 0x420   : > { %v5368_v50 = vpop.f32.mrf.mxu1  ;;  %v13465_v23 = vpop.f32.mrf.mxu0 }
 0x421   : > { %v5385_v45 = vadd.f32 %v5368_v50, %v5248_v10 }
 0x422   : > { %v13416_v33 = vpop.f32.mrf.mxu1  ;;  %v16710_v38 = vpop.f32.mrf.mxu0 }
 0x423   : > { %v5511_v9 = vadd.f32 %v13416_v33, %v5382_v0 }
 0x424   : > { %v5478_v7 = vpop.f32.mrf.mxu1  ;;  %v13468_v14 = vpop.f32.mrf.mxu0 }
 0x425   : > { %v5640_v26 = vadd.f32 %v16625_v13, %v5511_v9 }
 0x426   : > { %v13417_v57 = vpop.f32.mrf.mxu1  ;;  %v5882_v59 = vpop.f32.mrf.mxu0 }
 0x427   : > { %v5512_v60 = vadd.f32 %v13417_v57, %v5383_v36 }
 0x428   : > { %v5481_v53 = vpop.f32.mrf.mxu1  ;;  %v13469_v8 = vpop.f32.mrf.mxu0 }
 0x429   : > { %v5641_v6 = vadd.f32 %v16643_v15, %v5512_v60  ;;  %v5229_v15 = vadd.f32 %v16623_v40, %v16605_v16 }
 0x42a   : > { %v13420_v49 = vpop.f32.mrf.mxu1 }
 0x42b   : > { %v5515_v48 = vadd.f32 %v13420_v49, %v5386_v17  ;;  %v5380_v36 = vadd.f32 %v16671_v27, %v5229_v15  ;;  %v5885_v17 = vpop.f32.mrf.mxu0 }
 0x42c   : > { %v5494_v20 = vpop.f32.mrf.mxu1 }
 0x42d   : > { %v5513_v44 = vadd.f32 %v5494_v20, %v5384_v4  ;;  %v5644_v39 = vadd.f32 %v13436_v3, %v5515_v48  ;;  %v13496_v4 = vpop.f32.mrf.mxu0 }
 0x42e   : > { %v13421_v32 = vpop.f32.mrf.mxu1 }
 0x42f   : > { %v5516_v61 = vadd.f32 %v13421_v32, %v5387_v2  ;;  %v5642_v54 = vadd.f32 %v5623_v24, %v5513_v44  ;;  %v5509_v24 = vadd.f32 %v5478_v7, %v5380_v36 }
 0x430   : > { %v5497_v12 = vpop.f32.mrf.mxu1 }
 0x431   : > { %v5514_v34 = vadd.f32 %v5497_v12, %v5385_v45  ;;  %v5645_v13 = vadd.f32 %v13437_v51, %v5516_v61  ;;  %v5232_v51 = vadd.f32 %v16627_v21, %v16607_v35  ;;  %v5638_v1 = vadd.f32 %v16629_v58, %v5509_v24  ;;  %v6124_v58 = vpop.f32.mrf.mxu0 }
 0x432   : > { %v13448_v41 = vpop.f32.mrf.mxu1 }
 0x433   : > { %v5769_v0 = vadd.f32 %v13448_v41, %v5640_v26  ;;  %v5643_v18 = vadd.f32 %v5626_v63, %v5514_v34  ;;  %v5381_v40 = vadd.f32 %v16687_v31, %v5232_v51  ;;  %v16729_v31 = vld [vmem:[%s18824_s4] ss:$0 sm:$0xff] }
 0x434   : > { %v5736_v30 = vpop.f32.mrf.mxu1 }
 0x435   : > { %v5899_v43 = vadd.f32 %v13464_v55, %v5769_v0  ;;  %v5767_v27 = vadd.f32 %v5736_v30, %v5638_v1  ;;  %v5510_v29 = vadd.f32 %v5481_v53, %v5381_v40 }
 0x436   : > { %v13449_v42 = vpop.f32.mrf.mxu1 }
 0x437   : > { %v5770_v3 = vadd.f32 %v13449_v42, %v5641_v6  ;;  %v5897_v50 = vadd.f32 %v5866_v52, %v5767_v27  ;;  %v5639_v33 = vadd.f32 %v16663_v37, %v5510_v29  ;;  %v13497_v52 = vpop.f32.mrf.mxu0 }
 0x438   : > { %v5739_v56 = vpop.f32.mrf.mxu1 }
 0x439   : > { %v5900_v19 = vadd.f32 %v13465_v23, %v5770_v3  ;;  %v5768_v57 = vadd.f32 %v5739_v56, %v5639_v33  ;;  %v6127_v36 = vpop.f32.mrf.mxu0 }
 0x43a   : > { %v13452_v62 = vpop.f32.mrf.mxu1 }
 0x43b   : > { %v5773_v47 = vadd.f32 %v13452_v62, %v5644_v39  ;;  %v5898_v44 = vadd.f32 %v16710_v38, %v5768_v57 }
 0x43c   : > { %v5752_v22 = vpop.f32.mrf.mxu1 }
 0x43d   : > { %v5771_v63 = vadd.f32 %v5752_v22, %v5642_v54  ;;  %v5903_v16 = vadd.f32 %v13468_v14, %v5773_v47 }
 0x43e   : > { %v13453_v25 = vpop.f32.mrf.mxu1 }
 0x43f   : > { %v5774_v46 = vadd.f32 %v13453_v25, %v5645_v13  ;;  %v16719_v11 = vadd.f32 %v5882_v59, %v5771_v63 }
 0x440   : > { %v5755_v10 = vpop.f32.mrf.mxu1 }
 0x441   : > { %v5772_v2 = vadd.f32 %v5755_v10, %v5643_v18  ;;  %v16721_v55 = vadd.f32 %v13469_v8, %v5774_v46 }
 0x442   : > { %v13480_v35 = vpop.f32.mrf.mxu1 }
 0x443   : > { %v6028_v21 = vadd.f32 %v13480_v35, %v5899_v43  ;;  %v16723_v45 = vadd.f32 %v5885_v17, %v5772_v2 }
 0x444   : > { %v5995_v9 = vpop.f32.mrf.mxu1 }
 0x445   : > { %v6157_v7 = vadd.f32 %v13496_v4, %v6028_v21  ;;  %v6026_v26 = vadd.f32 %v5995_v9, %v5897_v50  ;;  %v13500_v9 = vpop.f32.mrf.mxu0 }
 0x446   : > { %v13481_v60 = vpop.f32.mrf.mxu1 }
 0x447   : > { %v6172_v23 = vadd.f32 %v16729_v31, %v6157_v7  ;;  %v6155_v53 = vadd.f32 %v6124_v58, %v6026_v26  ;;  %v6029_v6 = vadd.f32 %v13481_v60, %v5900_v19 }
 0x448   : > { %v5998_v49 = vpop.f32.mrf.mxu1 }
 0x449   : > { %v6180_v48 = vmax.f32 %v6172_v23, 0.0  ;;  %v6170_v20 = vadd.f32 %v16729_v31, %v6155_v53  ;;  %v6158_v37 = vadd.f32 %v13497_v52, %v6029_v6  ;;  %v6027_v12 = vadd.f32 %v5998_v49, %v5898_v44 }
 0x44a   : > { %v13484_v39 = vpop.f32.mrf.mxu1 }
 0x44b   : > { %v6228_v32 = vcombine.high %v6180_v48, %v6180_v48  ;;  %v6235_v61 = vrot.slane %v6180_v48, %v15574_v28  ;;  %v6178_v54 = vmax.f32 %v6170_v20, 0.0  ;;  %v6173_v14 = vadd.f32 %v16729_v31, %v6158_v37 }
 0x44c   : > { %v6032_v34 = vadd.f32 %v13484_v39, %v5903_v16  ;;  %v6156_v47 = vadd.f32 %v6127_v36, %v6027_v12 }
 0x44d   : > { %v6242_v13 = vrot.slane %v6228_v32, %v15574_v28  ;;  %v6243_v41 = vcombine.high %v6235_v61, %v6235_v61  ;;  %v6418_v0 = vsel %vm535_vm0, %v6235_v61, -inf  ;;  %v6194_v18 = vcombine.high %v6178_v54, %v6178_v54 }
 0x44e   : > { %v6419_v59 = vrot.slane %v6418_v0, 4  ;;  %v6201_v30 = vrot.slane %v6178_v54, %v15574_v28  ;;  %v6181_v2 = vmax.f32 %v6173_v14, 0.0  ;;  %v6171_v35 = vadd.f32 %v16729_v31, %v6156_v47  ;;  %v6140_v47 = vpop.f32.mrf.mxu0 }
 0x44f   : > { %v6244_v15 = vcombine.high %v6242_v13, %v6242_v13  ;;  %v6425_v38 = vsel %vm535_vm0, %v6243_v41, -inf  ;;  %v6432_v43 = vsel %vm535_vm0, %v6242_v13, -inf  ;;  %v6208_v42 = vrot.slane %v6194_v18, %v15574_v28 }
 0x450   : > { %v6420_v3 = vmax.f32 %v6418_v0, %v6419_v59  ;;  %v6426_v8 = vrot.slane %v6425_v38, 4  ;;  %v6433_v56 = vrot.slane %v6432_v43, 4  ;;  %v6209_v24 = vcombine.high %v6201_v30, %v6201_v30  ;;  %v6011_v59 = vpop.f32.mrf.mxu1 }
 0x451   : > { %v6439_v19 = vsel %vm535_vm0, %v6244_v15, -inf  ;;  %v6362_v62 = vsel %vm535_vm0, %v6201_v30, -inf  ;;  %v6210_v22 = vcombine.high %v6208_v42, %v6208_v42  ;;  %v6376_v1 = vsel %vm535_vm0, %v6208_v42, -inf }
 0x452   : > { %v6421_v51 = vrot.slane %v6420_v3, 2  ;;  %v6427_v17 = vmax.f32 %v6425_v38, %v6426_v8  ;;  %v6434_v63 = vmax.f32 %v6432_v43, %v6433_v56  ;;  %v6440_v16 = vrot.slane %v6439_v19, 4 }
 0x453   : > { %v6363_v40 = vrot.slane %v6362_v62, 4  ;;  %v6369_v25 = vsel %vm535_vm0, %v6209_v24, -inf  ;;  %v6377_v29 = vrot.slane %v6376_v1, 4  ;;  %v6383_v10 = vsel %vm535_vm0, %v6210_v22, -inf }
 0x454   : > { %v6422_v27 = vmax.f32 %v6420_v3, %v6421_v51  ;;  %v6428_v46 = vrot.slane %v6427_v17, 2  ;;  %v6370_v4 = vrot.slane %v6369_v25, 4  ;;  %v6435_v21 = vrot.slane %v6434_v63, 2 }
 0x455   : > { %v6441_v50 = vmax.f32 %v6439_v19, %v6440_v16  ;;  %v16748_v58 = vmax.f32 %v6362_v62, %v6363_v40  ;;  %v6378_v57 = vmax.f32 %v6376_v1, %v6377_v29  ;;  %v6384_v60 = vrot.slane %v6383_v10, 4 }
 0x456   : > { %v6371_v33 = vmax.f32 %v6369_v25, %v6370_v4  ;;  %v6423_v7 = vrot.slane %v6422_v27, 1  ;;  %v16750_v26 = vmax.f32 %v6427_v17, %v6428_v46  ;;  %v6245_v23 = vcombine.high %v6181_v2, %v6181_v2 }
 0x457   : > { %v6252_v53 = vrot.slane %v6181_v2, %v15574_v28  ;;  %v6179_v6 = vmax.f32 %v6171_v35, 0.0  ;;  %v6161_v52 = vadd.f32 %v13500_v9, %v6032_v34  ;;  %v16753_v49 = vmax.f32 %v6434_v63, %v6435_v21  ;;  %v13485_v63 = vpop.f32.mrf.mxu1  ;;  %v13501_v9 = vpop.f32.mrf.mxu0 }
 0x458   : > { %v6442_v48 = vrot.slane %v6441_v50, 2  ;;  %v6365_v20 = vrot.slane %v16748_v58, 2  ;;  %v6372_v37 = vrot.slane %v6371_v33, 2  ;;  %v6259_v44 = vrot.slane %v6245_v23, %v15574_v28 }
 0x459   : > { %v6260_v39 = vcombine.high %v6252_v53, %v6252_v53  ;;  %v6446_v32 = vsel %vm535_vm0, %v6252_v53, -inf  ;;  %v6211_v61 = vcombine.high %v6179_v6, %v6179_v6  ;;  %v6379_v54 = vrot.slane %v6378_v57, 2  ;;  %v6014_v53 = vpop.f32.mrf.mxu1 }
 0x45a   : > { %v6385_v14 = vmax.f32 %v6383_v10, %v6384_v60  ;;  %v6447_v12 = vrot.slane %v6446_v32, 4  ;;  %v6218_v13 = vrot.slane %v6179_v6, %v15574_v28  ;;  %v6261_v41 = vcombine.high %v6259_v44, %v6259_v44 }
 0x45b   : > { %v6453_v34 = vsel %vm535_vm0, %v6260_v39, -inf  ;;  %v6460_v0 = vsel %vm535_vm0, %v6259_v44, -inf  ;;  %v6225_v18 = vrot.slane %v6211_v61, %v15574_v28  ;;  %v6373_v30 = vmax.f32 %v6371_v33, %v6372_v37 }
 0x45c   : > { %v6448_v15 = vmax.f32 %v6446_v32, %v6447_v12  ;;  %v6454_v38 = vrot.slane %v6453_v34, 4  ;;  %v6461_v43 = vrot.slane %v6460_v0, 4  ;;  %v6467_v42 = vsel %vm535_vm0, %v6261_v41, -inf }
 0x45d   : > { %v6226_v36 = vcombine.high %v6218_v13, %v6218_v13  ;;  %v6227_v3 = vcombine.high %v6225_v18, %v6225_v18  ;;  %v6390_v8 = vsel %vm535_vm0, %v6218_v13, -inf  ;;  %v16764_v56 = vmax.f32 %v6422_v27, %v6423_v7 }
 0x45e   : > { %v6449_v24 = vrot.slane %v6448_v15, 2  ;;  %v6455_v19 = vmax.f32 %v6453_v34, %v6454_v38  ;;  %v6462_v62 = vmax.f32 %v6460_v0, %v6461_v43  ;;  %v16766_v51 = vmax.f32 %v6378_v57, %v6379_v54 }
 0x45f   : > { %v6468_v17 = vrot.slane %v6467_v42, 4  ;;  %v6397_v22 = vsel %vm535_vm0, %v6226_v36, -inf  ;;  %v6404_v1 = vsel %vm535_vm0, %v6225_v18, -inf  ;;  %v6374_v16 = vrot.slane %v6373_v30, 1 }
 0x460   : > { %v6386_v40 = vrot.slane %v6385_v14, 2  ;;  %v6391_v25 = vrot.slane %v6390_v8, 4  ;;  %v6411_v46 = vsel %vm535_vm0, %v6227_v3, -inf  ;;  %v6450_v4 = vmax.f32 %v6448_v15, %v6449_v24 }
 0x461   : > { %v6456_v27 = vrot.slane %v6455_v19, 2  ;;  %v6398_v29 = vrot.slane %v6397_v22, 4  ;;  %v6405_v10 = vrot.slane %v6404_v1, 4  ;;  %v6430_v2 = vrot.slane %v16750_v26, 1 }
 0x462   : > { %v6437_v35 = vrot.slane %v16753_v49, 1  ;;  %v16773_v21 = vmax.f32 %v6441_v50, %v6442_v48  ;;  %v6463_v33 = vrot.slane %v6462_v62, 2  ;;  %v6469_v7 = vmax.f32 %v6467_v42, %v6468_v17 }
 0x463   : > { %v6399_v57 = vmax.f32 %v6397_v22, %v6398_v29  ;;  %v6406_v60 = vmax.f32 %v6404_v1, %v6405_v10  ;;  %v6412_v23 = vrot.slane %v6411_v46, 4  ;;  %v16776_v6 = vmax.f32 %v16748_v58, %v6365_v20  ;;  %v6143_v20 = vpop.f32.mrf.mxu0 }
 0x464   : > { %v16778_v37 = vmax.f32 %v6373_v30, %v6374_v16  ;;  %v6381_v44 = vrot.slane %v16766_v51, 1  ;;  %v16781_v39 = vmax.f32 %v6385_v14, %v6386_v40  ;;  %v6451_v32 = vrot.slane %v6450_v4, 1 }
 0x465   : > { %v16783_v61 = vmax.f32 %v6455_v19, %v6456_v27  ;;  %v6392_v50 = vmax.f32 %v6390_v8, %v6391_v25  ;;  %v6400_v48 = vrot.slane %v6399_v57, 2  ;;  %v6176_v54 = vadd.f32 %v16729_v31, %v6161_v52 }
 0x466   : > { %v6030_v12 = vadd.f32 %v6011_v59, %v16719_v11  ;;  %v6033_v13 = vadd.f32 %v13485_v63, %v16721_v55  ;;  %v6031_v58 = vadd.f32 %v6014_v53, %v16723_v45  ;;  %v16789_v41 = vmax.f32 %v6462_v62, %v6463_v33 }
 0x467   : > { %v6470_v34 = vrot.slane %v6469_v7, 2  ;;  %v6407_v0 = vrot.slane %v6406_v60, 2  ;;  %v6413_v14 = vmax.f32 %v6411_v46, %v6412_v23  ;;  %v6184_v18 = vmax.f32 %v6176_v54, 0.0 }
 0x468   : > { %v6159_v30 = vadd.f32 %v6140_v47, %v6030_v12  ;;  %v6162_v15 = vadd.f32 %v13501_v9, %v6033_v13  ;;  %v6160_v38 = vadd.f32 %v6143_v20, %v6031_v58  ;;  %v16791_v43 = vmax.f32 %v6450_v4, %v6451_v32 }
 0x469   : > { %v6458_v52 = vrot.slane %v16783_v61, 1  ;;  %v6393_v42 = vrot.slane %v6392_v50, 2  ;;  %v6401_v11 = vmax.f32 %v6399_v57, %v6400_v48  ;;  %v6296_v59 = vcombine.high %v6184_v18, %v6184_v18 }
 0x46a   : > { %v6303_v55 = vrot.slane %v6184_v18, %v15574_v28  ;;  %v6174_v45 = vadd.f32 %v16729_v31, %v6159_v30  ;;  %v6177_v36 = vadd.f32 %v16729_v31, %v6162_v15  ;;  %v6465_v3 = vrot.slane %v16789_v41, 1 }
 0x46b   : > { %v6408_v8 = vmax.f32 %v6406_v60, %v6407_v0  ;;  %v6414_v24 = vrot.slane %v6413_v14, 2  ;;  %v6175_v19 = vadd.f32 %v16729_v31, %v6160_v38  ;;  %v6310_v62 = vrot.slane %v6296_v59, %v15574_v28 }
 0x46c   : > { %v6311_v47 = vcombine.high %v6303_v55, %v6303_v55  ;;  %v6530_v17 = vsel %vm535_vm0, %v6303_v55, -inf  ;;  %v6182_v22 = vmax.f32 %v6174_v45, 0.0  ;;  %v16801_v1 = vmax.f32 %v6469_v7, %v6470_v34 }
 0x46d   : > { %v16803_v63 = vmax.f32 %v6392_v50, %v6393_v42  ;;  %v6402_v16 = vrot.slane %v6401_v11, 1  ;;  %v6531_v40 = vrot.slane %v6530_v17, 4  ;;  %v6312_v25 = vcombine.high %v6310_v62, %v6310_v62 }
 0x46e   : > { %v6537_v46 = vsel %vm535_vm0, %v6311_v47, -inf  ;;  %v6544_v4 = vsel %vm535_vm0, %v6310_v62, -inf  ;;  %v6262_v27 = vcombine.high %v6182_v22, %v6182_v22  ;;  %v6269_v33 = vrot.slane %v6182_v22, %v15574_v28 }
 0x46f   : > { %v6532_v29 = vmax.f32 %v6530_v17, %v6531_v40  ;;  %v6538_v31 = vrot.slane %v6537_v46, 4  ;;  %v6545_v10 = vrot.slane %v6544_v4, 4  ;;  %v6409_v9 = vrot.slane %v6408_v8, 1 }
 0x470   : > { %v16808_v57 = vmax.f32 %v6413_v14, %v6414_v24  ;;  %v6551_v7 = vsel %vm535_vm0, %v6312_v25, -inf  ;;  %v6276_v60 = vrot.slane %v6262_v27, %v15574_v28  ;;  %v6185_v50 = vmax.f32 %v6177_v36, 0.0 }
 0x471   : > { %v6533_v23 = vrot.slane %v6532_v29, 2  ;;  %v6539_v53 = vmax.f32 %v6537_v46, %v6538_v31  ;;  %v6552_v32 = vrot.slane %v6551_v7, 4  ;;  %v6277_v48 = vcombine.high %v6269_v33, %v6269_v33 }
 0x472   : > { %v6278_v54 = vcombine.high %v6276_v60, %v6276_v60  ;;  %v6474_v12 = vsel %vm535_vm0, %v6269_v33, -inf  ;;  %v6488_v13 = vsel %vm535_vm0, %v6276_v60, -inf  ;;  %v6403_v58 = vmax.f32 %v6401_v11, %v6402_v16 }
 0x473   : > { %v6534_v20 = vmax.f32 %v6532_v29, %v6533_v23  ;;  %v6540_v34 = vrot.slane %v6539_v53, 2  ;;  %v6546_v0 = vmax.f32 %v6544_v4, %v6545_v10  ;;  %v6475_v14 = vrot.slane %v6474_v12, 4 }
 0x474   : > { %v6481_v18 = vsel %vm535_vm0, %v6277_v48, -inf  ;;  %v6489_v30 = vrot.slane %v6488_v13, 4  ;;  %v6495_v15 = vsel %vm535_vm0, %v6278_v54, -inf  ;;  %v6553_v38 = vmax.f32 %v6551_v7, %v6552_v32 }
 0x475   : > { %v6313_v42 = vcombine.high %v6185_v50, %v6185_v50  ;;  %v6320_v59 = vrot.slane %v6185_v50, %v15574_v28  ;;  %v6183_v55 = vmax.f32 %v6175_v19, 0.0  ;;  %v6476_v45 = vmax.f32 %v6474_v12, %v6475_v14 }
 0x476   : > { %v6482_v36 = vrot.slane %v6481_v18, 4  ;;  %v6490_v24 = vmax.f32 %v6488_v13, %v6489_v30  ;;  %v6496_v62 = vrot.slane %v6495_v15, 4  ;;  %v6547_v47 = vrot.slane %v6546_v0, 2 }
 0x477   : > { %v6587_v11 = vmax.f32 %v16778_v37, %v6403_v58  ;;  %v16821_v17 = vmax.f32 %v16766_v51, %v6381_v44  ;;  %v16823_v22 = vmax.f32 %v6408_v8, %v6409_v9  ;;  %v6535_v16 = vrot.slane %v6534_v20, 1 }
 0x478   : > { %v16825_v40 = vmax.f32 %v6539_v53, %v6540_v34  ;;  %v6477_v25 = vrot.slane %v6476_v45, 2  ;;  %v6483_v46 = vmax.f32 %v6481_v18, %v6482_v36  ;;  %v6554_v19 = vrot.slane %v6553_v38, 2  ;;  %v13625_v36 = vld [vmem:[%s18825_s5 + $0xcc] ss:$16 sps:$4 sm:$0xff]  }
 0x479   : > { %v6327_v4 = vrot.slane %v6313_v42, %v15574_v28  ;;  %v6328_v27 = vcombine.high %v6320_v59, %v6320_v59  ;;  %v6558_v29 = vsel %vm535_vm0, %v6320_v59, -inf  ;;  %v6491_v37 = vrot.slane %v6490_v24, 2 }
 0x47a   : > { %v6478_v31 = vmax.f32 %v6476_v45, %v6477_v25  ;;  %v6497_v10 = vmax.f32 %v6495_v15, %v6496_v62  ;;  %v6279_v33 = vcombine.high %v6183_v55, %v6183_v55  ;;  %v6559_v51 = vrot.slane %v6558_v29, 4  ;;  %v13617_v15 = vld [vmem:[%s18825_s5 + $0xe8] ss:$16 sps:$4 sm:$0xff]  }
 0x47b   : > { %v6329_v7 = vcombine.high %v6327_v4, %v6327_v4  ;;  %v6565_v44 = vsel %vm535_vm0, %v6328_v27, -inf  ;;  %v6572_v8 = vsel %vm535_vm0, %v6327_v4, -inf  ;;  %v16831_v9 = vmax.f32 %v6534_v20, %v6535_v16  ;;  %v13614_v20 = vld [vmem:[%s18825_s5 + $0xe0] ss:$16 sps:$4 sm:$0xff]  }
 0x47c   : > { %v6542_v60 = vrot.slane %v16825_v40, 1  ;;  %v16834_v23 = vmax.f32 %v6546_v0, %v6547_v47  ;;  %v6484_v53 = vrot.slane %v6483_v46, 2  ;;  %v6560_v32 = vmax.f32 %v6558_v29, %v6559_v51 }
 0x47d   : > { %v6566_v50 = vrot.slane %v6565_v44, 4  ;;  %v6573_v48 = vrot.slane %v6572_v8, 4  ;;  %v6579_v54 = vsel %vm535_vm0, %v6329_v7, -inf  ;;  %v16837_v12 = vmax.f32 %v6553_v38, %v6554_v19  ;;  %v13620_v19 = vld [vmem:[%s18825_s5 + $0xc0] ss:$16 sps:$4 sm:$0xff]  }
 0x47e   : > { %v16839_v13 = vmax.f32 %v6490_v24, %v6491_v37  ;;  %v6580_v58 = vrot.slane %v6579_v54, 4  ;;  %v6286_v34 = vrot.slane %v6183_v55, %v15574_v28  ;;  %v6479_v14 = vrot.slane %v6478_v31, 1  ;;  %v13622_v55 = vld [vmem:[%s18825_s5 + $0xc4] ss:$16 sps:$4 sm:$0xff]  }
 0x47f   : > { %v6498_v0 = vrot.slane %v6497_v10, 2  ;;  %v6561_v18 = vrot.slane %v6560_v32, 2  ;;  %v6293_v30 = vrot.slane %v6279_v33, %v15574_v28  ;;  %v16849_v38 = vmax.f32 %v6483_v46, %v6484_v53  ;;  %v13623_v33 = vld [vmem:[%s18825_s5 + $0xc8] ss:$16 sps:$4 sm:$0xff]   ;;  %v13628_v7 = vld [vmem:[%s18825_s5 + $0xa4] ss:$16 sps:$4 sm:$0xff]  }
 0x480   : > { %v6294_v42 = vcombine.high %v6286_v34, %v6286_v34  ;;  %v6502_v59 = vsel %vm535_vm0, %v6286_v34, -inf  ;;  %v6635_v45 = vpack.c.bf16 %v6587_v11, %v6587_v11  ;;  %v6567_v24 = vmax.f32 %v6565_v44, %v6566_v50 }
 0x481   : > { %v6574_v28 = vmax.f32 %v6572_v8, %v6573_v48  ;;  %v16858_v62 = vmax.f32 %v6579_v54, %v6580_v58  ;;  %v6295_v47 = vcombine.high %v6293_v30, %v6293_v30  ;;  %v16860_v16 = vmax.f32 %v6560_v32, %v6561_v18  ;;  %v13629_v18 = vld [vmem:[%s18825_s5 + $0xa8] ss:$16 sps:$4 sm:$0xff]  }
 0x482   : > { %v6503_v25 = vrot.slane %v6502_v59, 4  ;;  %v6509_v46 = vsel %vm535_vm0, %v6294_v42, -inf  ;;  %v6516_v11 = vsel %vm535_vm0, %v6293_v30, -inf  ;;  %6861 = vmatmul.mubr.bf16.vlgmr.msra.gmra.mxu1 %v6635_v45  ;;  %6902 = vmatmul.mubr.bf16.vlgmr.msra.gmra.mxu0 %v6635_v45  ;;  %v16867_v4 = vmax.f32 %v6478_v31, %v6479_v14  ;;  %v13626_v14 = vld [vmem:[%s18825_s5 + $0xa0] ss:$16 sps:$4 sm:$0xff]  }
 0x483   : > { %v6493_v27 = vrot.slane %v16839_v13, 1  ;;  %v16870_v29 = vmax.f32 %v6497_v10, %v6498_v0  ;;  %v6510_v37 = vrot.slane %v6509_v46, 4  ;;  %7071 = vmatpush1.bf16.msra.mxu1 %v13614_v20  ;;  %7112 = vmatpush1.bf16.msra.mxu0 %v13617_v15  ;;  %v6486_v51 = vrot.slane %v16849_v38, 1  ;;  %v13631_v10 = vld [vmem:[%s18825_s5 + $0xac] ss:$16 sps:$4 sm:$0xff]  }
 0x484   : > { %v6504_v44 = vmax.f32 %v6502_v59, %v6503_v25  ;;  %v6517_v31 = vrot.slane %v6516_v11, 4  ;;  %v6523_v8 = vsel %vm535_vm0, %v6295_v47, -inf  ;;  %7072 = vmatprep.subr.bf16.mxu1 %v13622_v55  ;;  %7113 = vmatprep.subr.bf16.mxu0 %v13625_v36  ;;  %v6568_v53 = vrot.slane %v6567_v24, 2  ;;  %v13634_v36 = vld [vmem:[%s18825_s5 + $0x84] ss:$16 sps:$4 sm:$0xff]  }
 0x485   : > { %v6575_v32 = vrot.slane %v6574_v28, 2  ;;  %v6582_v50 = vrot.slane %v16858_v62, 2  ;;  %v6511_v48 = vmax.f32 %v6509_v46, %v6510_v37  ;;  %7102 = vmatprep.mubr.bf16.mxu1 %v14458_v5  ;;  %7143 = vmatprep.mubr.bf16.mxu0 %v14458_v5  ;;  %v6563_v54 = vrot.slane %v16860_v16, 1  ;;  %v13637_v47 = vld [vmem:[%s18825_s5 + $0x8c] ss:$16 sps:$4 sm:$0xff]  }
 0x486   : > { %v6505_v58 = vrot.slane %v6504_v44, 2  ;;  %v6518_v34 = vmax.f32 %v6516_v11, %v6517_v31  ;;  %v6524_v20 = vrot.slane %v6523_v8, 4  ;;  %v16895_v30 = vmax.f32 %v16821_v17, %v16823_v22  ;;  %v13632_v31 = vld [vmem:[%s18825_s5 + $0x80] ss:$16 sps:$4 sm:$0xff]  }
 0x487   : > { %v6512_v0 = vrot.slane %v6511_v48, 2  ;;  %7073 = vmatpush1.bf16.msra.mxu1 %v13620_v19  ;;  %7114 = vmatpush1.bf16.msra.mxu0 %v13623_v33  ;;  %v6388_v15 = vrot.slane %v16781_v39, 1  ;;  %v6416_v42 = vrot.slane %v16808_v57, 1  ;;  %v16907_v17 = vmax.f32 %v16764_v56, %v16791_v43  ;;  %v13635_v56 = vld [vmem:[%s18825_s5 + $0x88] ss:$16 sps:$4 sm:$0xff]  }
 0x488   : > { %v6506_v59 = vmax.f32 %v6504_v44, %v6505_v58  ;;  %v6519_v45 = vrot.slane %v6518_v34, 2  ;;  %v6525_v55 = vmax.f32 %v6523_v8, %v6524_v20  ;;  %7074 = vmatprep.subr.bf16.mxu1 %v13628_v7  ;;  %7115 = vmatprep.subr.bf16.mxu0 %v13631_v10  ;;  %v6569_v22 = vmax.f32 %v6567_v24, %v6568_v53  ;;  %v13640_v53 = vld [vmem:[%s18825_s5 + $0x64] ss:$16 sps:$4 sm:$0xff]  }
 0x489   : > { %v6513_v25 = vmax.f32 %v6511_v48, %v6512_v0  ;;  %v6389_v46 = vmax.f32 %v16781_v39, %v6388_v15  ;;  %v6417_v11 = vmax.f32 %v16808_v57, %v6416_v42  ;;  %v16911_v19 = vmax.f32 %v6574_v28, %v6575_v32  ;;  %v13643_v32 = vld [vmem:[%s18825_s5 + $0x6c] ss:$16 sps:$4 sm:$0xff]  }
 0x48a   : > { %v6507_v37 = vrot.slane %v6506_v59, 1  ;;  %v6520_v33 = vmax.f32 %v6518_v34, %v6519_v45  ;;  %v6526_v7 = vrot.slane %v6525_v55, 2  ;;  %v6431_v39 = vmax.f32 %v16750_v26, %v6430_v2 }
 0x48b   : > { %v6514_v44 = vrot.slane %v6513_v25, 1  ;;  %7075 = vmatpush1.bf16.msra.mxu1 %v13626_v14  ;;  %7116 = vmatpush1.bf16.msra.mxu0 %v13629_v18  ;;  %v16919_v43 = vmax.f32 %v6389_v46, %v6417_v11  ;;  %v6459_v57 = vmax.f32 %v16783_v61, %v6458_v52  ;;  %v6564_v24 = vmax.f32 %v16860_v16, %v6563_v54  ;;  %v13655_v46 = vld [vmem:[%s18825_s5 + $0x2c] ss:$16 sps:$4 sm:$0xff]  }
 0x48c   : > { %v6508_v28 = vmax.f32 %v6506_v59, %v6507_v37  ;;  %v6521_v8 = vrot.slane %v6520_v33, 1  ;;  %v6527_v10 = vmax.f32 %v6525_v55, %v6526_v7  ;;  %7076 = vmatprep.subr.bf16.mxu1 %v13634_v36  ;;  %7117 = vmatprep.subr.bf16.mxu0 %v13637_v47  ;;  %v6438_v2 = vmax.f32 %v16753_v49, %v6437_v35  ;;  %v13638_v49 = vld [vmem:[%s18825_s5 + $0x60] ss:$16 sps:$4 sm:$0xff]   ;;  %v13641_v35 = vld [vmem:[%s18825_s5 + $0x68] ss:$16 sps:$4 sm:$0xff]  }
 0x48d   : > { %v16934_v26 = vmax.f32 %v6431_v39, %v6459_v57  ;;  %v6466_v61 = vmax.f32 %v16789_v41, %v6465_v3  ;;  %v6444_v52 = vrot.slane %v16773_v21, 1  ;;  %v6472_v16 = vrot.slane %v16801_v1, 1  ;;  %v13647_v36 = vld [vmem:[%s18825_s5 + $0x48] ss:$16 sps:$4 sm:$0xff]  }
 0x48e   : > { %v16945_v48 = vmax.f32 %v16867_v4, %v6508_v28  ;;  %v6487_v54 = vmax.f32 %v16849_v38, %v6486_v51  ;;  %v6515_v58 = vmax.f32 %v6513_v25, %v6514_v44  ;;  %v6570_v34 = vrot.slane %v6569_v22, 1  ;;  %v13646_v38 = vld [vmem:[%s18825_s5 + $0x44] ss:$16 sps:$4 sm:$0xff]   ;;  %v13659_v28 = vld [vmem:[%s18825_s5 + $0x8] ss:$16 sps:$4 sm:$0xff]  }
 0x48f   : > { %v6583_v20 = vmax.f32 %v16858_v62, %v6582_v50  ;;  %7077 = vmatpush1.bf16.msra.mxu1 %v13632_v31  ;;  %7118 = vmatpush1.bf16.msra.mxu0 %v13635_v56  ;;  %v16957_v41 = vmax.f32 %v6438_v2, %v6466_v61  ;;  %v6500_v3 = vrot.slane %v16870_v29, 1  ;;  %v13649_v62 = vld [vmem:[%s18825_s5 + $0x4c] ss:$16 sps:$4 sm:$0xff]   ;;  %v6445_v4 = vmax.f32 %v16773_v21, %v6444_v52  ;;  %v13652_v25 = vld [vmem:[%s18825_s5 + $0x24] ss:$16 sps:$4 sm:$0xff]  }
 0x490   : > { %7078 = vmatprep.subr.bf16.mxu1 %v13640_v53  ;;  %7119 = vmatprep.subr.bf16.mxu0 %v13643_v32  ;;  %v6473_v51 = vmax.f32 %v16801_v1, %v6472_v16  ;;  %v16968_v50 = vmax.f32 %v6487_v54, %v6515_v58  ;;  %v6528_v14 = vrot.slane %v6527_v10, 1  ;;  %v6549_v0 = vrot.slane %v16834_v23, 1  ;;  %v13644_v1 = vld [vmem:[%s18825_s5 + $0x40] ss:$16 sps:$4 sm:$0xff]   ;;  %v13653_v56 = vld [vmem:[%s18825_s5 + $0x28] ss:$16 sps:$4 sm:$0xff]  }
 0x491   : > { %v6577_v18 = vrot.slane %v16911_v19, 1  ;;  %v6494_v15 = vmax.f32 %v16839_v13, %v6493_v27  ;;  %v6522_v42 = vmax.f32 %v6520_v33, %v6521_v8  ;;  %v6501_v45 = vmax.f32 %v16870_v29, %v6500_v3  ;;  %v13650_v31 = vld [vmem:[%s18825_s5 + $0x20] ss:$16 sps:$4 sm:$0xff]   ;;  %v13665_v32 = vld [vmem:[%s18825_s5 + $0x2e8] ss:$16 sps:$4 sm:$0xff]  }
 0x492   : > { %v16975_v59 = vmax.f32 %v6445_v4, %v6473_v51  ;;  %v6529_v55 = vmax.f32 %v6527_v10, %v6528_v14  ;;  %v16979_v21 = vmax.f32 %v16831_v9, %v6564_v24  ;;  %v6543_v27 = vmax.f32 %v16825_v40, %v6542_v60  ;;  %v13664_v10 = vld [vmem:[%s18825_s5 + $0x2e4] ss:$16 sps:$4 sm:$0xff]   ;;  %v13662_v53 = vld [vmem:[%s18825_s5 + $0x2e0] ss:$16 sps:$4 sm:$0xff]   ;;  %v13673_v52 = vld [vmem:[%s18825_s5 + $0x2cc] ss:$16 sps:$4 sm:$0xff]  }
 0x493   : > { %7079 = vmatpush1.bf16.msra.mxu1 %v13638_v49  ;;  %7120 = vmatpush1.bf16.msra.mxu0 %v13641_v35  ;;  %v16987_v13 = vmax.f32 %v6494_v15, %v6522_v42  ;;  %v6571_v29 = vmax.f32 %v6569_v22, %v6570_v34  ;;  %v6556_v9 = vrot.slane %v16837_v12, 1  ;;  %v6395_v47 = vrot.slane %v16803_v63, 1  ;;  %v13670_v61 = vld [vmem:[%s18825_s5 + $0x2c4] ss:$16 sps:$4 sm:$0xff]   ;;  %v13668_v16 = vld [vmem:[%s18825_s5 + $0x2c0] ss:$16 sps:$4 sm:$0xff]  }
 0x494   : > { %7080 = vmatprep.subr.bf16.mxu1 %v13646_v38  ;;  %7121 = vmatprep.subr.bf16.mxu0 %v13649_v62  ;;  %v17000_v11 = vmax.f32 %v6501_v45, %v6529_v55  ;;  %v6584_v37 = vrot.slane %v6583_v20, 1  ;;  %v6550_v40 = vmax.f32 %v16834_v23, %v6549_v0  ;;  %v6578_v60 = vmax.f32 %v16911_v19, %v6577_v18  ;;  %v13661_v19 = vld [vmem:[%s18825_s5 + $0xc] ss:$16 sps:$4 sm:$0xff]   ;;  %v13671_v54 = vld [vmem:[%s18825_s5 + $0x2c8] ss:$16 sps:$4 sm:$0xff]  }
 0x495   : > { %v17002_v33 = vmax.f32 %v6543_v27, %v6571_v29  ;;  %v6367_v22 = vrot.slane %v16776_v6, 1  ;;  %v6557_v7 = vmax.f32 %v16837_v12, %v6556_v9  ;;  %v6396_v23 = vmax.f32 %v16803_v63, %v6395_v47  ;;  %v13658_v12 = vld [vmem:[%s18825_s5 + $0x4] ss:$16 sps:$4 sm:$0xff]   ;;  %v13656_v63 = vld [vmem:[%s18825_s5] ss:$16 sps:$4 sm:$0xff]  }
 0x496   : > { %v6585_v44 = vmax.f32 %v6583_v20, %v6584_v37  ;;  %v17014_v39 = vmax.f32 %v6550_v40, %v6578_v60  ;;  %v13676_v58 = vld [vmem:[%s18825_s5 + $0x2a4] ss:$16 sps:$4 sm:$0xff]   ;;  %v13679_v34 = vld [vmem:[%s18825_s5 + $0x2ac] ss:$16 sps:$4 sm:$0xff]   ;;  %v13674_v20 = vld [vmem:[%s18825_s5 + $0x2a0] ss:$16 sps:$4 sm:$0xff]  }
 0x497   : > { %7081 = vmatpush1.bf16.msra.mxu1 %v13644_v1  ;;  %7122 = vmatpush1.bf16.msra.mxu0 %v13647_v36  ;;  %v6368_v24 = vmax.f32 %v16776_v6, %v6367_v22  ;;  %v13667_v6 = vld [vmem:[%s18825_s5 + $0x2ec] ss:$16 sps:$4 sm:$0xff]   ;;  %v13677_v49 = vld [vmem:[%s18825_s5 + $0x2a8] ss:$16 sps:$4 sm:$0xff]   ;;  %v13682_v35 = vld [vmem:[%s18825_s5 + $0x284] ss:$16 sps:$4 sm:$0xff]   ;;  %v7152_v22 = vpack.c.bf16 %v16895_v30, %v16895_v30 }
 0x498   : > { %7082 = vmatprep.subr.bf16.mxu1 %v13652_v25  ;;  %7123 = vmatprep.subr.bf16.mxu0 %v13655_v46  ;;  %v17023_v57 = vmax.f32 %v6557_v7, %v6585_v44  ;;  %v13685_v3 = vld [vmem:[%s18825_s5 + $0x28c] ss:$16 sps:$4 sm:$0xff]   ;;  %v13680_v38 = vld [vmem:[%s18825_s5 + $0x280] ss:$16 sps:$4 sm:$0xff]   ;;  %v13683_v62 = vld [vmem:[%s18825_s5 + $0x288] ss:$16 sps:$4 sm:$0xff]  }
 0x499   : > { %v6586_v8 = vmax.f32 %v6368_v24, %v6396_v23  ;;  %v13688_v4 = vld [vmem:[%s18825_s5 + $0x264] ss:$16 sps:$4 sm:$0xff]   ;;  %v13691_v51 = vld [vmem:[%s18825_s5 + $0x26c] ss:$16 sps:$4 sm:$0xff]   ;;  %v13686_v14 = vld [vmem:[%s18825_s5 + $0x260] ss:$16 sps:$4 sm:$0xff]  }
 0x49a   : > { %v13689_v0 = vld [vmem:[%s18825_s5 + $0x268] ss:$16 sps:$4 sm:$0xff]   ;;  %v13694_v18 = vld [vmem:[%s18825_s5 + $0x244] ss:$16 sps:$4 sm:$0xff]   ;;  %v13697_v15 = vld [vmem:[%s18825_s5 + $0x24c] ss:$16 sps:$4 sm:$0xff]  }
 0x49b   : > { %7083 = vmatpush1.bf16.msra.mxu1 %v13650_v31  ;;  %7124 = vmatpush1.bf16.msra.mxu0 %v13653_v56  ;;  %v6602_v2 = vpack.c.bf16 %v6586_v8, %v6586_v8  ;;  %v13692_v42 = vld [vmem:[%s18825_s5 + $0x240] ss:$16 sps:$4 sm:$0xff]   ;;  %v13695_v45 = vld [vmem:[%s18825_s5 + $0x248] ss:$16 sps:$4 sm:$0xff]   ;;  %v13700_v55 = vld [vmem:[%s18825_s5 + $0x224] ss:$16 sps:$4 sm:$0xff]  }
 0x49c   : > { %7084 = vmatprep.subr.bf16.mxu1 %v13658_v12  ;;  %7125 = vmatprep.subr.bf16.mxu0 %v13661_v19  ;;  %v13703_v1 = vld [vmem:[%s18825_s5 + $0x22c] ss:$16 sps:$4 sm:$0xff]   ;;  %v13698_v36 = vld [vmem:[%s18825_s5 + $0x220] ss:$16 sps:$4 sm:$0xff]   ;;  %v13701_v27 = vld [vmem:[%s18825_s5 + $0x228] ss:$16 sps:$4 sm:$0xff]  }
 0x49d   : > { %v13706_v29 = vld [vmem:[%s18825_s5 + $0x204] ss:$16 sps:$4 sm:$0xff]   ;;  %v13709_v9 = vld [vmem:[%s18825_s5 + $0x20c] ss:$16 sps:$4 sm:$0xff]   ;;  %v13704_v47 = vld [vmem:[%s18825_s5 + $0x200] ss:$16 sps:$4 sm:$0xff]  }
 0x49e   : > { %v13707_v25 = vld [vmem:[%s18825_s5 + $0x208] ss:$16 sps:$4 sm:$0xff]   ;;  %v13712_v46 = vld [vmem:[%s18825_s5 + $0x3e4] ss:$16 sps:$4 sm:$0xff]   ;;  %v13715_v37 = vld [vmem:[%s18825_s5 + $0x3ec] ss:$16 sps:$4 sm:$0xff]  }
 0x49f   : > { %7085 = vmatpush1.bf16.msra.mxu1 %v13656_v63  ;;  %7126 = vmatpush1.bf16.msra.mxu0 %v13659_v28  ;;  %v13710_v40 = vld [vmem:[%s18825_s5 + $0x3e0] ss:$16 sps:$4 sm:$0xff]   ;;  %v13713_v60 = vld [vmem:[%s18825_s5 + $0x3e8] ss:$16 sps:$4 sm:$0xff]   ;;  %v13718_v7 = vld [vmem:[%s18825_s5 + $0x3c4] ss:$16 sps:$4 sm:$0xff]  }
 0x4a0   : > { %7345 = vmatprep.subr.bf16.mxu1 %v13664_v10  ;;  %7386 = vmatprep.subr.bf16.mxu0 %v13667_v6  ;;  %v13721_v44 = vld [vmem:[%s18825_s5 + $0x3cc] ss:$16 sps:$4 sm:$0xff]   ;;  %v13716_v31 = vld [vmem:[%s18825_s5 + $0x3c0] ss:$16 sps:$4 sm:$0xff]   ;;  %v13719_v30 = vld [vmem:[%s18825_s5 + $0x3c8] ss:$16 sps:$4 sm:$0xff]  }
 0x4a1   : > { %v13724_v56 = vld [vmem:[%s18825_s5 + $0x3a4] ss:$16 sps:$4 sm:$0xff]   ;;  %v13727_v23 = vld [vmem:[%s18825_s5 + $0x3ac] ss:$16 sps:$4 sm:$0xff]   ;;  %v13722_v12 = vld [vmem:[%s18825_s5 + $0x3a0] ss:$16 sps:$4 sm:$0xff]  }
 0x4a2   : > { %7103 = vmatmul.mubr.bf16.vlgmr.msra.gmra.mxu1 %v6602_v2  ;;  %7144 = vmatmul.mubr.bf16.vlgmr.msra.gmra.mxu0 %v6602_v2  ;;  %v13725_v19 = vld [vmem:[%s18825_s5 + $0x3a8] ss:$16 sps:$4 sm:$0xff]   ;;  %v13730_v24 = vld [vmem:[%s18825_s5 + $0x384] ss:$16 sps:$4 sm:$0xff]   ;;  %v13733_v63 = vld [vmem:[%s18825_s5 + $0x38c] ss:$16 sps:$4 sm:$0xff]  }
 0x4a3   : > { %7346 = vmatpush1.bf16.msra.mxu1 %v13662_v53  ;;  %7387 = vmatpush1.bf16.msra.mxu0 %v13665_v32  ;;  %v13728_v28 = vld [vmem:[%s18825_s5 + $0x380] ss:$16 sps:$4 sm:$0xff]   ;;  %v13731_v8 = vld [vmem:[%s18825_s5 + $0x388] ss:$16 sps:$4 sm:$0xff]   ;;  %v13736_v10 = vld [vmem:[%s18825_s5 + $0x364] ss:$16 sps:$4 sm:$0xff]  }
 0x4a4   : > { %7347 = vmatprep.subr.bf16.mxu1 %v13670_v61  ;;  %7388 = vmatprep.subr.bf16.mxu0 %v13673_v52  ;;  %v13739_v6 = vld [vmem:[%s18825_s5 + $0x36c] ss:$16 sps:$4 sm:$0xff]   ;;  %v13734_v53 = vld [vmem:[%s18825_s5 + $0x360] ss:$16 sps:$4 sm:$0xff]   ;;  %v13737_v32 = vld [vmem:[%s18825_s5 + $0x368] ss:$16 sps:$4 sm:$0xff]  }
 0x4a5   : > { %7377 = vmatprep.mubr.bf16.mxu1 %v14458_v5  ;;  %7418 = vmatprep.mubr.bf16.mxu0 %v14458_v5  ;;  %v13742_v2 = vld [vmem:[%s18825_s5 + $0x344] ss:$16 sps:$4 sm:$0xff]   ;;  %v13745_v61 = vld [vmem:[%s18825_s5 + $0x34c] ss:$16 sps:$4 sm:$0xff]   ;;  %v13740_v52 = vld [vmem:[%s18825_s5 + $0x340] ss:$16 sps:$4 sm:$0xff]  }
 0x4a7   : > { %7348 = vmatpush1.bf16.msra.mxu1 %v13668_v16  ;;  %7389 = vmatpush1.bf16.msra.mxu0 %v13671_v54  ;;  %v13743_v16 = vld [vmem:[%s18825_s5 + $0x348] ss:$16 sps:$4 sm:$0xff]   ;;  %v13748_v54 = vld [vmem:[%s18825_s5 + $0x324] ss:$16 sps:$4 sm:$0xff]  }
 0x4a8   : > { %7349 = vmatprep.subr.bf16.mxu1 %v13676_v58  ;;  %7390 = vmatprep.subr.bf16.mxu0 %v13679_v34  ;;  %v13751_v58 = vld [vmem:[%s18825_s5 + $0x32c] ss:$16 sps:$4 sm:$0xff]   ;;  %v13746_v34 = vld [vmem:[%s18825_s5 + $0x320] ss:$16 sps:$4 sm:$0xff]  }
 0x4ab   : > { %7350 = vmatpush1.bf16.msra.mxu1 %v13674_v20  ;;  %7391 = vmatpush1.bf16.msra.mxu0 %v13677_v49  ;;  %v13749_v20 = vld [vmem:[%s18825_s5 + $0x328] ss:$16 sps:$4 sm:$0xff]   ;;  %v13754_v49 = vld [vmem:[%s18825_s5 + $0x304] ss:$16 sps:$4 sm:$0xff]  }
 0x4ac   : > { %7351 = vmatprep.subr.bf16.mxu1 %v13682_v35  ;;  %7392 = vmatprep.subr.bf16.mxu0 %v13685_v3  ;;  %v13757_v35 = vld [vmem:[%s18825_s5 + $0x30c] ss:$16 sps:$4 sm:$0xff]   ;;  %v13752_v3 = vld [vmem:[%s18825_s5 + $0x300] ss:$16 sps:$4 sm:$0xff]  }
 0x4af   : > { %7352 = vmatpush1.bf16.msra.mxu1 %v13680_v38  ;;  %7393 = vmatpush1.bf16.msra.mxu0 %v13683_v62  ;;  %v13755_v38 = vld [vmem:[%s18825_s5 + $0x308] ss:$16 sps:$4 sm:$0xff]   ;;  %v13760_v62 = vld [vmem:[%s18825_s5 + $0x4e4] ss:$16 sps:$4 sm:$0xff]  }
 0x4b0   : > { %7353 = vmatprep.subr.bf16.mxu1 %v13688_v4  ;;  %7394 = vmatprep.subr.bf16.mxu0 %v13691_v51  ;;  %v13763_v4 = vld [vmem:[%s18825_s5 + $0x4ec] ss:$16 sps:$4 sm:$0xff]   ;;  %v13758_v51 = vld [vmem:[%s18825_s5 + $0x4e0] ss:$16 sps:$4 sm:$0xff]  }
 0x4b3   : > { %7354 = vmatpush1.bf16.msra.mxu1 %v13686_v14  ;;  %7395 = vmatpush1.bf16.msra.mxu0 %v13689_v0  ;;  %v13761_v14 = vld [vmem:[%s18825_s5 + $0x4e8] ss:$16 sps:$4 sm:$0xff]   ;;  %v7431_v0 = vpack.c.bf16 %v16919_v43, %v16919_v43 }
 0x4b4   : > { %7355 = vmatprep.subr.bf16.mxu1 %v13694_v18  ;;  %7396 = vmatprep.subr.bf16.mxu0 %v13697_v15  ;;  %v13766_v18 = vld [vmem:[%s18825_s5 + $0x4c4] ss:$16 sps:$4 sm:$0xff]   ;;  %v13769_v15 = vld [vmem:[%s18825_s5 + $0x4cc] ss:$16 sps:$4 sm:$0xff]   ;;  %v13767_v43 = vld [vmem:[%s18825_s5 + $0x4c8] ss:$16 sps:$4 sm:$0xff]  }
 0x4b7   : > { %7356 = vmatpush1.bf16.msra.mxu1 %v13692_v42  ;;  %7397 = vmatpush1.bf16.msra.mxu0 %v13695_v45  ;;  %v13764_v42 = vld [vmem:[%s18825_s5 + $0x4c0] ss:$16 sps:$4 sm:$0xff]   ;;  %v13772_v45 = vld [vmem:[%s18825_s5 + $0x4a4] ss:$16 sps:$4 sm:$0xff]  }
 0x4b8   : > { %7357 = vmatprep.subr.bf16.mxu1 %v13700_v55  ;;  %7398 = vmatprep.subr.bf16.mxu0 %v13703_v1  ;;  %v13775_v55 = vld [vmem:[%s18825_s5 + $0x4ac] ss:$16 sps:$4 sm:$0xff]   ;;  %v13770_v1 = vld [vmem:[%s18825_s5 + $0x4a0] ss:$16 sps:$4 sm:$0xff]  }
 0x4bb   : > { %7358 = vmatpush1.bf16.msra.mxu1 %v13698_v36  ;;  %7399 = vmatpush1.bf16.msra.mxu0 %v13701_v27  ;;  %v13773_v36 = vld [vmem:[%s18825_s5 + $0x4a8] ss:$16 sps:$4 sm:$0xff]   ;;  %v13778_v27 = vld [vmem:[%s18825_s5 + $0x484] ss:$16 sps:$4 sm:$0xff]  }
 0x4bc   : > { %7359 = vmatprep.subr.bf16.mxu1 %v13706_v29  ;;  %7400 = vmatprep.subr.bf16.mxu0 %v13709_v9  ;;  %v13781_v29 = vld [vmem:[%s18825_s5 + $0x48c] ss:$16 sps:$4 sm:$0xff]   ;;  %v13776_v9 = vld [vmem:[%s18825_s5 + $0x480] ss:$16 sps:$4 sm:$0xff]  }
 0x4bf   : > { %7360 = vmatpush1.bf16.msra.mxu1 %v13704_v47  ;;  %7401 = vmatpush1.bf16.msra.mxu0 %v13707_v25  ;;  %v13779_v47 = vld [vmem:[%s18825_s5 + $0x488] ss:$16 sps:$4 sm:$0xff]   ;;  %v13784_v25 = vld [vmem:[%s18825_s5 + $0x464] ss:$16 sps:$4 sm:$0xff]  }
 0x4c0   : > { %7624 = vmatprep.subr.bf16.mxu1 %v13712_v46  ;;  %7665 = vmatprep.subr.bf16.mxu0 %v13715_v37  ;;  %v13787_v46 = vld [vmem:[%s18825_s5 + $0x46c] ss:$16 sps:$4 sm:$0xff]   ;;  %v13782_v37 = vld [vmem:[%s18825_s5 + $0x460] ss:$16 sps:$4 sm:$0xff]  }
 0x4c2   : > { %7378 = vmatmul.mubr.bf16.vlgmr.msra.gmra.mxu1 %v7152_v22  ;;  %7419 = vmatmul.mubr.bf16.vlgmr.msra.gmra.mxu0 %v7152_v22  ;;  %v13793_v22 = vld [vmem:[%s18825_s5 + $0x44c] ss:$16 sps:$4 sm:$0xff]  }
 0x4c3   : > { %7625 = vmatpush1.bf16.msra.mxu1 %v13710_v40  ;;  %7666 = vmatpush1.bf16.msra.mxu0 %v13713_v60  ;;  %v13785_v40 = vld [vmem:[%s18825_s5 + $0x468] ss:$16 sps:$4 sm:$0xff]   ;;  %v13790_v60 = vld [vmem:[%s18825_s5 + $0x444] ss:$16 sps:$4 sm:$0xff]  }
 0x4c4   : > { %7626 = vmatprep.subr.bf16.mxu1 %v13718_v7  ;;  %7667 = vmatprep.subr.bf16.mxu0 %v13721_v44  ;;  %v13788_v7 = vld [vmem:[%s18825_s5 + $0x440] ss:$16 sps:$4 sm:$0xff]   ;;  %v13791_v44 = vld [vmem:[%s18825_s5 + $0x448] ss:$16 sps:$4 sm:$0xff]  }
 0x4c5   : > { %7656 = vmatprep.mubr.bf16.mxu1 %v14458_v5  ;;  %7697 = vmatprep.mubr.bf16.mxu0 %v14458_v5 }
 0x4c7   : > { %7627 = vmatpush1.bf16.msra.mxu1 %v13716_v31  ;;  %7668 = vmatpush1.bf16.msra.mxu0 %v13719_v30  ;;  %v13796_v31 = vld [vmem:[%s18825_s5 + $0x424] ss:$16 sps:$4 sm:$0xff]   ;;  %v13799_v30 = vld [vmem:[%s18825_s5 + $0x42c] ss:$16 sps:$4 sm:$0xff]  }
 0x4c8   : > { %7628 = vmatprep.subr.bf16.mxu1 %v13724_v56  ;;  %7669 = vmatprep.subr.bf16.mxu0 %v13727_v23  ;;  %v13794_v56 = vld [vmem:[%s18825_s5 + $0x420] ss:$16 sps:$4 sm:$0xff]   ;;  %v13797_v23 = vld [vmem:[%s18825_s5 + $0x428] ss:$16 sps:$4 sm:$0xff]  }
 0x4cb   : > { %7629 = vmatpush1.bf16.msra.mxu1 %v13722_v12  ;;  %7670 = vmatpush1.bf16.msra.mxu0 %v13725_v19  ;;  %v13802_v12 = vld [vmem:[%s18825_s5 + $0x404] ss:$16 sps:$4 sm:$0xff]   ;;  %v13805_v19 = vld [vmem:[%s18825_s5 + $0x40c] ss:$16 sps:$4 sm:$0xff]  }
 0x4cc   : > { %7630 = vmatprep.subr.bf16.mxu1 %v13730_v24  ;;  %7671 = vmatprep.subr.bf16.mxu0 %v13733_v63  ;;  %v13800_v24 = vld [vmem:[%s18825_s5 + $0x400] ss:$16 sps:$4 sm:$0xff]   ;;  %v13803_v63 = vld [vmem:[%s18825_s5 + $0x408] ss:$16 sps:$4 sm:$0xff]  }
 0x4cf   : > { %7631 = vmatpush1.bf16.msra.mxu1 %v13728_v28  ;;  %7672 = vmatpush1.bf16.msra.mxu0 %v13731_v8  ;;  %v13808_v28 = vld [vmem:[%s18825_s5 + $0x5e4] ss:$16 sps:$4 sm:$0xff]   ;;  %v13811_v8 = vld [vmem:[%s18825_s5 + $0x5ec] ss:$16 sps:$4 sm:$0xff]  }
 0x4d0   : > { %7632 = vmatprep.subr.bf16.mxu1 %v13736_v10  ;;  %7673 = vmatprep.subr.bf16.mxu0 %v13739_v6  ;;  %v13806_v10 = vld [vmem:[%s18825_s5 + $0x5e0] ss:$16 sps:$4 sm:$0xff]   ;;  %v13809_v6 = vld [vmem:[%s18825_s5 + $0x5e8] ss:$16 sps:$4 sm:$0xff]  }
 0x4d3   : > { %7633 = vmatpush1.bf16.msra.mxu1 %v13734_v53  ;;  %7674 = vmatpush1.bf16.msra.mxu0 %v13737_v32  ;;  %v7710_v53 = vpack.c.bf16 %v16907_v17, %v16907_v17  ;;  %v13814_v32 = vld [vmem:[%s18825_s5 + $0x5c4] ss:$16 sps:$4 sm:$0xff]   ;;  %v13815_v17 = vld [vmem:[%s18825_s5 + $0x5c8] ss:$16 sps:$4 sm:$0xff]  }
 0x4d4   : > { %7634 = vmatprep.subr.bf16.mxu1 %v13742_v2  ;;  %7675 = vmatprep.subr.bf16.mxu0 %v13745_v61  ;;  %v13817_v2 = vld [vmem:[%s18825_s5 + $0x5cc] ss:$16 sps:$4 sm:$0xff]   ;;  %v13812_v61 = vld [vmem:[%s18825_s5 + $0x5c0] ss:$16 sps:$4 sm:$0xff]  }
 0x4d7   : > { %7635 = vmatpush1.bf16.msra.mxu1 %v13740_v52  ;;  %7676 = vmatpush1.bf16.msra.mxu0 %v13743_v16  ;;  %v13820_v52 = vld [vmem:[%s18825_s5 + $0x5a4] ss:$16 sps:$4 sm:$0xff]   ;;  %v13823_v16 = vld [vmem:[%s18825_s5 + $0x5ac] ss:$16 sps:$4 sm:$0xff]  }
 0x4d8   : > { %7636 = vmatprep.subr.bf16.mxu1 %v13748_v54  ;;  %7677 = vmatprep.subr.bf16.mxu0 %v13751_v58  ;;  %v13818_v54 = vld [vmem:[%s18825_s5 + $0x5a0] ss:$16 sps:$4 sm:$0xff]   ;;  %v13821_v58 = vld [vmem:[%s18825_s5 + $0x5a8] ss:$16 sps:$4 sm:$0xff]  }
 0x4db   : > { %7637 = vmatpush1.bf16.msra.mxu1 %v13746_v34  ;;  %7678 = vmatpush1.bf16.msra.mxu0 %v13749_v20  ;;  %v13826_v34 = vld [vmem:[%s18825_s5 + $0x584] ss:$16 sps:$4 sm:$0xff]   ;;  %v13829_v20 = vld [vmem:[%s18825_s5 + $0x58c] ss:$16 sps:$4 sm:$0xff]  }
 0x4dc   : > { %7638 = vmatprep.subr.bf16.mxu1 %v13754_v49  ;;  %7679 = vmatprep.subr.bf16.mxu0 %v13757_v35  ;;  %v13824_v49 = vld [vmem:[%s18825_s5 + $0x580] ss:$16 sps:$4 sm:$0xff]   ;;  %v13827_v35 = vld [vmem:[%s18825_s5 + $0x588] ss:$16 sps:$4 sm:$0xff]  }
 0x4df   : > { %7639 = vmatpush1.bf16.msra.mxu1 %v13752_v3  ;;  %7680 = vmatpush1.bf16.msra.mxu0 %v13755_v38  ;;  %v13832_v3 = vld [vmem:[%s18825_s5 + $0x564] ss:$16 sps:$4 sm:$0xff]   ;;  %v13835_v38 = vld [vmem:[%s18825_s5 + $0x56c] ss:$16 sps:$4 sm:$0xff]  }
 0x4e0   : > { %7903 = vmatprep.subr.bf16.mxu1 %v13760_v62  ;;  %7944 = vmatprep.subr.bf16.mxu0 %v13763_v4  ;;  %v13830_v62 = vld [vmem:[%s18825_s5 + $0x560] ss:$16 sps:$4 sm:$0xff]   ;;  %v13833_v4 = vld [vmem:[%s18825_s5 + $0x568] ss:$16 sps:$4 sm:$0xff]  }
 0x4e2   : > { %7657 = vmatmul.mubr.bf16.vlgmr.msra.gmra.mxu1 %v7431_v0  ;;  %7698 = vmatmul.mubr.bf16.vlgmr.msra.gmra.mxu0 %v7431_v0  ;;  %v13836_v0 = vld [vmem:[%s18825_s5 + $0x540] ss:$16 sps:$4 sm:$0xff]  }
 0x4e3   : > { %7904 = vmatpush1.bf16.msra.mxu1 %v13758_v51  ;;  %7945 = vmatpush1.bf16.msra.mxu0 %v13761_v14  ;;  %v13838_v51 = vld [vmem:[%s18825_s5 + $0x544] ss:$16 sps:$4 sm:$0xff]   ;;  %v13841_v14 = vld [vmem:[%s18825_s5 + $0x54c] ss:$16 sps:$4 sm:$0xff]  }
 0x4e4   : > { %7905 = vmatprep.subr.bf16.mxu1 %v13766_v18  ;;  %7946 = vmatprep.subr.bf16.mxu0 %v13769_v15  ;;  %v13839_v18 = vld [vmem:[%s18825_s5 + $0x548] ss:$16 sps:$4 sm:$0xff]   ;;  %v13844_v15 = vld [vmem:[%s18825_s5 + $0x524] ss:$16 sps:$4 sm:$0xff]  }
 0x4e5   : > { %7935 = vmatprep.mubr.bf16.mxu1 %v14458_v5  ;;  %7976 = vmatprep.mubr.bf16.mxu0 %v14458_v5 }
 0x4e7   : > { %7906 = vmatpush1.bf16.msra.mxu1 %v13764_v42  ;;  %7947 = vmatpush1.bf16.msra.mxu0 %v13767_v43  ;;  %v13847_v42 = vld [vmem:[%s18825_s5 + $0x52c] ss:$16 sps:$4 sm:$0xff]   ;;  %v13842_v43 = vld [vmem:[%s18825_s5 + $0x520] ss:$16 sps:$4 sm:$0xff]  }
 0x4e8   : > { %7907 = vmatprep.subr.bf16.mxu1 %v13772_v45  ;;  %7948 = vmatprep.subr.bf16.mxu0 %v13775_v55  ;;  %v13845_v45 = vld [vmem:[%s18825_s5 + $0x528] ss:$16 sps:$4 sm:$0xff]   ;;  %v13850_v55 = vld [vmem:[%s18825_s5 + $0x504] ss:$16 sps:$4 sm:$0xff]  }
 0x4eb   : > { %7908 = vmatpush1.bf16.msra.mxu1 %v13770_v1  ;;  %7949 = vmatpush1.bf16.msra.mxu0 %v13773_v36  ;;  %v13853_v1 = vld [vmem:[%s18825_s5 + $0x50c] ss:$16 sps:$4 sm:$0xff]   ;;  %v13848_v36 = vld [vmem:[%s18825_s5 + $0x500] ss:$16 sps:$4 sm:$0xff]  }
 0x4ec   : > { %7909 = vmatprep.subr.bf16.mxu1 %v13778_v27  ;;  %7950 = vmatprep.subr.bf16.mxu0 %v13781_v29  ;;  %v13851_v27 = vld [vmem:[%s18825_s5 + $0x508] ss:$16 sps:$4 sm:$0xff]   ;;  %v13856_v29 = vld [vmem:[%s18825_s5 + $0x6e4] ss:$16 sps:$4 sm:$0xff]  }
 0x4ef   : > { %7910 = vmatpush1.bf16.msra.mxu1 %v13776_v9  ;;  %7951 = vmatpush1.bf16.msra.mxu0 %v13779_v47  ;;  %v13859_v9 = vld [vmem:[%s18825_s5 + $0x6ec] ss:$16 sps:$4 sm:$0xff]   ;;  %v13854_v47 = vld [vmem:[%s18825_s5 + $0x6e0] ss:$16 sps:$4 sm:$0xff]  }
 0x4f0   : > { %7911 = vmatprep.subr.bf16.mxu1 %v13784_v25  ;;  %7952 = vmatprep.subr.bf16.mxu0 %v13787_v46  ;;  %v13857_v25 = vld [vmem:[%s18825_s5 + $0x6e8] ss:$16 sps:$4 sm:$0xff]   ;;  %v7989_v46 = vpack.c.bf16 %v16934_v26, %v16934_v26 }
 0x4f1   : > { %v13863_v26 = vld [vmem:[%s18825_s5 + $0x6c8] ss:$16 sps:$4 sm:$0xff]  }
 0x4f3   : > { %7912 = vmatpush1.bf16.msra.mxu1 %v13782_v37  ;;  %7953 = vmatpush1.bf16.msra.mxu0 %v13785_v40  ;;  %v13862_v37 = vld [vmem:[%s18825_s5 + $0x6c4] ss:$16 sps:$4 sm:$0xff]   ;;  %v13865_v40 = vld [vmem:[%s18825_s5 + $0x6cc] ss:$16 sps:$4 sm:$0xff]  }
 0x4f4   : > { %7913 = vmatprep.subr.bf16.mxu1 %v13790_v60  ;;  %7954 = vmatprep.subr.bf16.mxu0 %v13793_v22  ;;  %v13860_v60 = vld [vmem:[%s18825_s5 + $0x6c0] ss:$16 sps:$4 sm:$0xff]   ;;  %v13868_v22 = vld [vmem:[%s18825_s5 + $0x6a4] ss:$16 sps:$4 sm:$0xff]  }
 0x4f7   : > { %7914 = vmatpush1.bf16.msra.mxu1 %v13788_v7  ;;  %7955 = vmatpush1.bf16.msra.mxu0 %v13791_v44  ;;  %v13871_v7 = vld [vmem:[%s18825_s5 + $0x6ac] ss:$16 sps:$4 sm:$0xff]   ;;  %v13866_v44 = vld [vmem:[%s18825_s5 + $0x6a0] ss:$16 sps:$4 sm:$0xff]  }
 0x4f8   : > { %7915 = vmatprep.subr.bf16.mxu1 %v13796_v31  ;;  %7956 = vmatprep.subr.bf16.mxu0 %v13799_v30  ;;  %v13869_v31 = vld [vmem:[%s18825_s5 + $0x6a8] ss:$16 sps:$4 sm:$0xff]   ;;  %v13874_v30 = vld [vmem:[%s18825_s5 + $0x684] ss:$16 sps:$4 sm:$0xff]  }
 0x4fb   : > { %7916 = vmatpush1.bf16.msra.mxu1 %v13794_v56  ;;  %7957 = vmatpush1.bf16.msra.mxu0 %v13797_v23  ;;  %v13877_v56 = vld [vmem:[%s18825_s5 + $0x68c] ss:$16 sps:$4 sm:$0xff]   ;;  %v13872_v23 = vld [vmem:[%s18825_s5 + $0x680] ss:$16 sps:$4 sm:$0xff]  }
 0x4fc   : > { %7917 = vmatprep.subr.bf16.mxu1 %v13802_v12  ;;  %7958 = vmatprep.subr.bf16.mxu0 %v13805_v19  ;;  %v13875_v12 = vld [vmem:[%s18825_s5 + $0x688] ss:$16 sps:$4 sm:$0xff]   ;;  %v13880_v19 = vld [vmem:[%s18825_s5 + $0x664] ss:$16 sps:$4 sm:$0xff]  }
 0x4ff   : > { %7918 = vmatpush1.bf16.msra.mxu1 %v13800_v24  ;;  %7959 = vmatpush1.bf16.msra.mxu0 %v13803_v63  ;;  %v13883_v24 = vld [vmem:[%s18825_s5 + $0x66c] ss:$16 sps:$4 sm:$0xff]   ;;  %v13878_v63 = vld [vmem:[%s18825_s5 + $0x660] ss:$16 sps:$4 sm:$0xff]  }
 0x500   : > { %8182 = vmatprep.subr.bf16.mxu1 %v13808_v28  ;;  %8223 = vmatprep.subr.bf16.mxu0 %v13811_v8  ;;  %v13881_v28 = vld [vmem:[%s18825_s5 + $0x668] ss:$16 sps:$4 sm:$0xff]   ;;  %v13886_v8 = vld [vmem:[%s18825_s5 + $0x644] ss:$16 sps:$4 sm:$0xff]  }
 0x502   : > { %7936 = vmatmul.mubr.bf16.vlgmr.msra.gmra.mxu1 %v7710_v53  ;;  %7977 = vmatmul.mubr.bf16.vlgmr.msra.gmra.mxu0 %v7710_v53  ;;  %v13887_v53 = vld [vmem:[%s18825_s5 + $0x648] ss:$16 sps:$4 sm:$0xff]  }
 0x503   : > { %8183 = vmatpush1.bf16.msra.mxu1 %v13806_v10  ;;  %8224 = vmatpush1.bf16.msra.mxu0 %v13809_v6  ;;  %v13889_v10 = vld [vmem:[%s18825_s5 + $0x64c] ss:$16 sps:$4 sm:$0xff]   ;;  %v13884_v6 = vld [vmem:[%s18825_s5 + $0x640] ss:$16 sps:$4 sm:$0xff]  }
 0x504   : > { %8184 = vmatprep.subr.bf16.mxu1 %v13814_v32  ;;  %8225 = vmatprep.subr.bf16.mxu0 %v13817_v2  ;;  %v13892_v32 = vld [vmem:[%s18825_s5 + $0x624] ss:$16 sps:$4 sm:$0xff]   ;;  %v13895_v2 = vld [vmem:[%s18825_s5 + $0x62c] ss:$16 sps:$4 sm:$0xff]  }
 0x505   : > { %8214 = vmatprep.mubr.bf16.mxu1 %v14458_v5  ;;  %8255 = vmatprep.mubr.bf16.mxu0 %v14458_v5 }
 0x507   : > { %8185 = vmatpush1.bf16.msra.mxu1 %v13812_v61  ;;  %8226 = vmatpush1.bf16.msra.mxu0 %v13815_v17  ;;  %v13890_v61 = vld [vmem:[%s18825_s5 + $0x620] ss:$16 sps:$4 sm:$0xff]   ;;  %v13893_v17 = vld [vmem:[%s18825_s5 + $0x628] ss:$16 sps:$4 sm:$0xff]  }
 0x508   : > { %8186 = vmatprep.subr.bf16.mxu1 %v13820_v52  ;;  %8227 = vmatprep.subr.bf16.mxu0 %v13823_v16  ;;  %v13898_v52 = vld [vmem:[%s18825_s5 + $0x604] ss:$16 sps:$4 sm:$0xff]   ;;  %v13901_v16 = vld [vmem:[%s18825_s5 + $0x60c] ss:$16 sps:$4 sm:$0xff]  }
 0x50b   : > { %8187 = vmatpush1.bf16.msra.mxu1 %v13818_v54  ;;  %8228 = vmatpush1.bf16.msra.mxu0 %v13821_v58  ;;  %v13896_v54 = vld [vmem:[%s18825_s5 + $0x600] ss:$16 sps:$4 sm:$0xff]   ;;  %v13899_v58 = vld [vmem:[%s18825_s5 + $0x608] ss:$16 sps:$4 sm:$0xff]  }
 0x50c   : > { %8188 = vmatprep.subr.bf16.mxu1 %v13826_v34  ;;  %8229 = vmatprep.subr.bf16.mxu0 %v13829_v20  ;;  %v13904_v34 = vld [vmem:[%s18825_s5 + $0x7e4] ss:$16 sps:$4 sm:$0xff]   ;;  %v13907_v20 = vld [vmem:[%s18825_s5 + $0x7ec] ss:$16 sps:$4 sm:$0xff]  }
 0x50f   : > { %8189 = vmatpush1.bf16.msra.mxu1 %v13824_v49  ;;  %8230 = vmatpush1.bf16.msra.mxu0 %v13827_v35  ;;  %v13902_v49 = vld [vmem:[%s18825_s5 + $0x7e0] ss:$16 sps:$4 sm:$0xff]   ;;  %v13905_v35 = vld [vmem:[%s18825_s5 + $0x7e8] ss:$16 sps:$4 sm:$0xff]  }
 0x510   : > { %8190 = vmatprep.subr.bf16.mxu1 %v13832_v3  ;;  %8231 = vmatprep.subr.bf16.mxu0 %v13835_v38  ;;  %v8268_v3 = vpack.c.bf16 %v16957_v41, %v16957_v41  ;;  %v13910_v38 = vld [vmem:[%s18825_s5 + $0x7c4] ss:$16 sps:$4 sm:$0xff]   ;;  %v13908_v41 = vld [vmem:[%s18825_s5 + $0x7c0] ss:$16 sps:$4 sm:$0xff]  }
 0x513   : > { %8191 = vmatpush1.bf16.msra.mxu1 %v13830_v62  ;;  %8232 = vmatpush1.bf16.msra.mxu0 %v13833_v4  ;;  %v13913_v62 = vld [vmem:[%s18825_s5 + $0x7cc] ss:$16 sps:$4 sm:$0xff]  }
 0x514   : > { %8192 = vmatprep.subr.bf16.mxu1 %v13838_v51  ;;  %8233 = vmatprep.subr.bf16.mxu0 %v13841_v14  ;;  %v13911_v14 = vld [vmem:[%s18825_s5 + $0x7c8] ss:$16 sps:$4 sm:$0xff]  }
 0x517   : > { %8193 = vmatpush1.bf16.msra.mxu1 %v13836_v0  ;;  %8234 = vmatpush1.bf16.msra.mxu0 %v13839_v18 }
 0x518   : > { %8194 = vmatprep.subr.bf16.mxu1 %v13844_v15  ;;  %8235 = vmatprep.subr.bf16.mxu0 %v13847_v42  ;;  %v13916_v15 = vld [vmem:[%s18825_s5 + $0x7a4] ss:$16 sps:$4 sm:$0xff]   ;;  %v13919_v42 = vld [vmem:[%s18825_s5 + $0x7ac] ss:$16 sps:$4 sm:$0xff]  }
 0x51b   : > { %8195 = vmatpush1.bf16.msra.mxu1 %v13842_v43  ;;  %8236 = vmatpush1.bf16.msra.mxu0 %v13845_v45 }
 0x51c   : > { %8196 = vmatprep.subr.bf16.mxu1 %v13850_v55  ;;  %8237 = vmatprep.subr.bf16.mxu0 %v13853_v1  ;;  %v13914_v55 = vld [vmem:[%s18825_s5 + $0x7a0] ss:$16 sps:$4 sm:$0xff]   ;;  %v13917_v1 = vld [vmem:[%s18825_s5 + $0x7a8] ss:$16 sps:$4 sm:$0xff]  }
 0x51f   : > { %8197 = vmatpush1.bf16.msra.mxu1 %v13848_v36  ;;  %8238 = vmatpush1.bf16.msra.mxu0 %v13851_v27 }
 0x520   : > { %8461 = vmatprep.subr.bf16.mxu1 %v13856_v29  ;;  %8502 = vmatprep.subr.bf16.mxu0 %v13859_v9  ;;  %v13922_v29 = vld [vmem:[%s18825_s5 + $0x784] ss:$16 sps:$4 sm:$0xff]   ;;  %v13925_v9 = vld [vmem:[%s18825_s5 + $0x78c] ss:$16 sps:$4 sm:$0xff]  }
 0x522   : > { %8215 = vmatmul.mubr.bf16.vlgmr.msra.gmra.mxu1 %v7989_v46  ;;  %8256 = vmatmul.mubr.bf16.vlgmr.msra.gmra.mxu0 %v7989_v46  ;;  %v13928_v46 = vld [vmem:[%s18825_s5 + $0x764] ss:$16 sps:$4 sm:$0xff]  }
 0x523   : > { %8462 = vmatpush1.bf16.msra.mxu1 %v13854_v47  ;;  %8503 = vmatpush1.bf16.msra.mxu0 %v13857_v25  ;;  %v13920_v47 = vld [vmem:[%s18825_s5 + $0x780] ss:$16 sps:$4 sm:$0xff]   ;;  %v13923_v25 = vld [vmem:[%s18825_s5 + $0x788] ss:$16 sps:$4 sm:$0xff]  }
 0x524   : > { %8463 = vmatprep.subr.bf16.mxu1 %v13862_v37  ;;  %8504 = vmatprep.subr.bf16.mxu0 %v13865_v40  ;;  %v13931_v37 = vld [vmem:[%s18825_s5 + $0x76c] ss:$16 sps:$4 sm:$0xff]   ;;  %v13926_v40 = vld [vmem:[%s18825_s5 + $0x760] ss:$16 sps:$4 sm:$0xff]  }
 0x525   : > { %8493 = vmatprep.mubr.bf16.mxu1 %v14458_v5  ;;  %8534 = vmatprep.mubr.bf16.mxu0 %v14458_v5 }
 0x527   : > { %8464 = vmatpush1.bf16.msra.mxu1 %v13860_v60  ;;  %8505 = vmatpush1.bf16.msra.mxu0 %v13863_v26  ;;  %v13929_v60 = vld [vmem:[%s18825_s5 + $0x768] ss:$16 sps:$4 sm:$0xff]   ;;  %v13934_v26 = vld [vmem:[%s18825_s5 + $0x744] ss:$16 sps:$4 sm:$0xff]  }
 0x528   : > { %8465 = vmatprep.subr.bf16.mxu1 %v13868_v22  ;;  %8506 = vmatprep.subr.bf16.mxu0 %v13871_v7  ;;  %v13937_v22 = vld [vmem:[%s18825_s5 + $0x74c] ss:$16 sps:$4 sm:$0xff]   ;;  %v13932_v7 = vld [vmem:[%s18825_s5 + $0x740] ss:$16 sps:$4 sm:$0xff]  }
 0x52b   : > { %8466 = vmatpush1.bf16.msra.mxu1 %v13866_v44  ;;  %8507 = vmatpush1.bf16.msra.mxu0 %v13869_v31  ;;  %v13935_v44 = vld [vmem:[%s18825_s5 + $0x748] ss:$16 sps:$4 sm:$0xff]   ;;  %v13940_v31 = vld [vmem:[%s18825_s5 + $0x724] ss:$16 sps:$4 sm:$0xff]  }
 0x52c   : > { %8467 = vmatprep.subr.bf16.mxu1 %v13874_v30  ;;  %8508 = vmatprep.subr.bf16.mxu0 %v13877_v56  ;;  %v13943_v30 = vld [vmem:[%s18825_s5 + $0x72c] ss:$16 sps:$4 sm:$0xff]   ;;  %v13938_v56 = vld [vmem:[%s18825_s5 + $0x720] ss:$16 sps:$4 sm:$0xff]  }
 0x52f   : > { %8468 = vmatpush1.bf16.msra.mxu1 %v13872_v23  ;;  %8509 = vmatpush1.bf16.msra.mxu0 %v13875_v12  ;;  %v13941_v23 = vld [vmem:[%s18825_s5 + $0x728] ss:$16 sps:$4 sm:$0xff]   ;;  %v13946_v12 = vld [vmem:[%s18825_s5 + $0x704] ss:$16 sps:$4 sm:$0xff]  }
 0x530   : > { %8469 = vmatprep.subr.bf16.mxu1 %v13880_v19  ;;  %8510 = vmatprep.subr.bf16.mxu0 %v13883_v24  ;;  %v13949_v19 = vld [vmem:[%s18825_s5 + $0x70c] ss:$16 sps:$4 sm:$0xff]   ;;  %v13944_v24 = vld [vmem:[%s18825_s5 + $0x700] ss:$16 sps:$4 sm:$0xff]  }
 0x533   : > { %8470 = vmatpush1.bf16.msra.mxu1 %v13878_v63  ;;  %8511 = vmatpush1.bf16.msra.mxu0 %v13881_v28  ;;  %v13947_v63 = vld [vmem:[%s18825_s5 + $0x708] ss:$16 sps:$4 sm:$0xff]   ;;  %v13952_v28 = vld [vmem:[%s18825_s5 + $0x8e4] ss:$16 sps:$4 sm:$0xff]  }
 0x534   : > { %8471 = vmatprep.subr.bf16.mxu1 %v13886_v8  ;;  %8512 = vmatprep.subr.bf16.mxu0 %v13889_v10  ;;  %v13955_v8 = vld [vmem:[%s18825_s5 + $0x8ec] ss:$16 sps:$4 sm:$0xff]   ;;  %v13950_v10 = vld [vmem:[%s18825_s5 + $0x8e0] ss:$16 sps:$4 sm:$0xff]  }
 0x537   : > { %8472 = vmatpush1.bf16.msra.mxu1 %v13884_v6  ;;  %8513 = vmatpush1.bf16.msra.mxu0 %v13887_v53  ;;  %v13953_v6 = vld [vmem:[%s18825_s5 + $0x8e8] ss:$16 sps:$4 sm:$0xff]   ;;  %v8547_v53 = vpack.c.bf16 %v16975_v59, %v16975_v59  ;;  %v13956_v59 = vld [vmem:[%s18825_s5 + $0x8c0] ss:$16 sps:$4 sm:$0xff]  }
 0x538   : > { %8473 = vmatprep.subr.bf16.mxu1 %v13892_v32  ;;  %8514 = vmatprep.subr.bf16.mxu0 %v13895_v2  ;;  %v13958_v32 = vld [vmem:[%s18825_s5 + $0x8c4] ss:$16 sps:$4 sm:$0xff]   ;;  %v13961_v2 = vld [vmem:[%s18825_s5 + $0x8cc] ss:$16 sps:$4 sm:$0xff]  }
 0x53b   : > { %8474 = vmatpush1.bf16.msra.mxu1 %v13890_v61  ;;  %8515 = vmatpush1.bf16.msra.mxu0 %v13893_v17 }
 0x53c   : > { %8475 = vmatprep.subr.bf16.mxu1 %v13898_v52  ;;  %8516 = vmatprep.subr.bf16.mxu0 %v13901_v16 }
 0x53f   : > { %8476 = vmatpush1.bf16.msra.mxu1 %v13896_v54  ;;  %8517 = vmatpush1.bf16.msra.mxu0 %v13899_v58  ;;  %v13959_v54 = vld [vmem:[%s18825_s5 + $0x8c8] ss:$16 sps:$4 sm:$0xff]  }
 0x540   : > { %8740 = vmatprep.subr.bf16.mxu1 %v13904_v34  ;;  %8781 = vmatprep.subr.bf16.mxu0 %v13907_v20  ;;  %v13964_v20 = vld [vmem:[%s18825_s5 + $0x8a4] ss:$16 sps:$4 sm:$0xff]  }
 0x542   : > { %8494 = vmatmul.mubr.bf16.vlgmr.msra.gmra.mxu1 %v8268_v3  ;;  %8535 = vmatmul.mubr.bf16.vlgmr.msra.gmra.mxu0 %v8268_v3  ;;  %v17550_v4 = vpop.f32.mrf.mxu1  ;;  %v17552_v51 = vpop.f32.mrf.mxu0 }
 0x543   : > { %8741 = vmatpush1.bf16.msra.mxu1 %v13902_v49  ;;  %8782 = vmatpush1.bf16.msra.mxu0 %v13905_v35  ;;  %v13967_v49 = vld [vmem:[%s18825_s5 + $0x8ac] ss:$16 sps:$4 sm:$0xff]  }
 0x544   : > { %v17560_v0 = vpop.f32.mrf.mxu1  ;;  %v17562_v18 = vpop.f32.mrf.mxu0  ;;  %8742 = vmatprep.subr.bf16.mxu1 %v13910_v38  ;;  %8783 = vmatprep.subr.bf16.mxu0 %v13913_v62 }
 0x545   : > { %8772 = vmatprep.mubr.bf16.mxu1 %v14458_v5  ;;  %8813 = vmatprep.mubr.bf16.mxu0 %v14458_v5 }
 0x546   : > { %v6866_v43 = vpop.f32.mrf.mxu1  ;;  %v6907_v45 = vpop.f32.mrf.mxu0 }
 0x547   : > { %8743 = vmatpush1.bf16.msra.mxu1 %v13908_v41  ;;  %8784 = vmatpush1.bf16.msra.mxu0 %v13911_v14  ;;  %v13976_v43 = vld [vmem:[%s18825_s5 + $0x864] ss:$16 sps:$4 sm:$0xff]   ;;  %v13979_v45 = vld [vmem:[%s18825_s5 + $0x86c] ss:$16 sps:$4 sm:$0xff]  }
 0x548   : > { %v6867_v36 = vpop.f32.mrf.mxu1  ;;  %v6908_v27 = vpop.f32.mrf.mxu0  ;;  %8744 = vmatprep.subr.bf16.mxu1 %v13916_v15  ;;  %8785 = vmatprep.subr.bf16.mxu0 %v13919_v42  ;;  %v13968_v15 = vld [vmem:[%s18825_s5 + $0x880] ss:$16 sps:$4 sm:$0xff]   ;;  %v13971_v42 = vld [vmem:[%s18825_s5 + $0x888] ss:$16 sps:$4 sm:$0xff]  }
 0x549   : > { %v13982_v36 = vld [vmem:[%s18825_s5 + $0x844] ss:$16 sps:$4 sm:$0xff]   ;;  %v13985_v27 = vld [vmem:[%s18825_s5 + $0x84c] ss:$16 sps:$4 sm:$0xff]  }
 0x54b   : > { %8745 = vmatpush1.bf16.msra.mxu1 %v13914_v55  ;;  %8786 = vmatpush1.bf16.msra.mxu0 %v13917_v1  ;;  %v13974_v55 = vld [vmem:[%s18825_s5 + $0x860] ss:$16 sps:$4 sm:$0xff]   ;;  %v13977_v1 = vld [vmem:[%s18825_s5 + $0x868] ss:$16 sps:$4 sm:$0xff]  }
 0x54c   : > { %8746 = vmatprep.subr.bf16.mxu1 %v13922_v29  ;;  %8787 = vmatprep.subr.bf16.mxu0 %v13925_v9  ;;  %v13980_v29 = vld [vmem:[%s18825_s5 + $0x840] ss:$16 sps:$4 sm:$0xff]   ;;  %v13983_v9 = vld [vmem:[%s18825_s5 + $0x848] ss:$16 sps:$4 sm:$0xff]  }
 0x54f   : > { %8747 = vmatpush1.bf16.msra.mxu1 %v13920_v47  ;;  %8788 = vmatpush1.bf16.msra.mxu0 %v13923_v25  ;;  %v13988_v47 = vld [vmem:[%s18825_s5 + $0x824] ss:$16 sps:$4 sm:$0xff]   ;;  %v13991_v25 = vld [vmem:[%s18825_s5 + $0x82c] ss:$16 sps:$4 sm:$0xff]  }
 0x550   : > { %8748 = vmatprep.subr.bf16.mxu1 %v13928_v46  ;;  %8789 = vmatprep.subr.bf16.mxu0 %v13931_v37  ;;  %v13986_v46 = vld [vmem:[%s18825_s5 + $0x820] ss:$16 sps:$4 sm:$0xff]   ;;  %v13989_v37 = vld [vmem:[%s18825_s5 + $0x828] ss:$16 sps:$4 sm:$0xff]  }
 0x553   : > { %8749 = vmatpush1.bf16.msra.mxu1 %v13926_v40  ;;  %8790 = vmatpush1.bf16.msra.mxu0 %v13929_v60  ;;  %v13994_v40 = vld [vmem:[%s18825_s5 + $0x804] ss:$16 sps:$4 sm:$0xff]   ;;  %v13997_v60 = vld [vmem:[%s18825_s5 + $0x80c] ss:$16 sps:$4 sm:$0xff]  }
 0x554   : > { %8750 = vmatprep.subr.bf16.mxu1 %v13934_v26  ;;  %8791 = vmatprep.subr.bf16.mxu0 %v13937_v22  ;;  %v13992_v26 = vld [vmem:[%s18825_s5 + $0x800] ss:$16 sps:$4 sm:$0xff]   ;;  %v13995_v22 = vld [vmem:[%s18825_s5 + $0x808] ss:$16 sps:$4 sm:$0xff]  }
 0x557   : > { %8751 = vmatpush1.bf16.msra.mxu1 %v13932_v7  ;;  %8792 = vmatpush1.bf16.msra.mxu0 %v13935_v44  ;;  %v14000_v7 = vld [vmem:[%s18825_s5 + $0x9e4] ss:$16 sps:$4 sm:$0xff]   ;;  %v14003_v44 = vld [vmem:[%s18825_s5 + $0x9ec] ss:$16 sps:$4 sm:$0xff]  }
 0x558   : > { %8752 = vmatprep.subr.bf16.mxu1 %v13940_v31  ;;  %8793 = vmatprep.subr.bf16.mxu0 %v13943_v30  ;;  %v13998_v31 = vld [vmem:[%s18825_s5 + $0x9e0] ss:$16 sps:$4 sm:$0xff]   ;;  %v14001_v30 = vld [vmem:[%s18825_s5 + $0x9e8] ss:$16 sps:$4 sm:$0xff]  }
 0x55b   : > { %8753 = vmatpush1.bf16.msra.mxu1 %v13938_v56  ;;  %8794 = vmatpush1.bf16.msra.mxu0 %v13941_v23  ;;  %v8826_v56 = vpack.c.bf16 %v16945_v48, %v16945_v48  ;;  %v14006_v23 = vld [vmem:[%s18825_s5 + $0x9c4] ss:$16 sps:$4 sm:$0xff]   ;;  %v14004_v48 = vld [vmem:[%s18825_s5 + $0x9c0] ss:$16 sps:$4 sm:$0xff]  }
 0x55c   : > { %8754 = vmatprep.subr.bf16.mxu1 %v13946_v12  ;;  %8795 = vmatprep.subr.bf16.mxu0 %v13949_v19  ;;  %v14009_v12 = vld [vmem:[%s18825_s5 + $0x9cc] ss:$16 sps:$4 sm:$0xff]  }
 0x55f   : > { %8755 = vmatpush1.bf16.msra.mxu1 %v13944_v24  ;;  %8796 = vmatpush1.bf16.msra.mxu0 %v13947_v63 }
 0x560   : > { %9019 = vmatprep.subr.bf16.mxu1 %v13952_v28  ;;  %9060 = vmatprep.subr.bf16.mxu0 %v13955_v8  ;;  %v14007_v8 = vld [vmem:[%s18825_s5 + $0x9c8] ss:$16 sps:$4 sm:$0xff]  }
 0x562   : > { %v7104_v61 = vpop.f32.mrf.mxu1  ;;  %v7145_v17 = vpop.f32.mrf.mxu0  ;;  %8773 = vmatmul.mubr.bf16.vlgmr.msra.gmra.mxu1 %v8547_v53  ;;  %8814 = vmatmul.mubr.bf16.vlgmr.msra.gmra.mxu0 %v8547_v53  ;;  %v14012_v53 = vld [vmem:[%s18825_s5 + $0x9a4] ss:$16 sps:$4 sm:$0xff]  }
 0x563   : > { %v17659_v52 = vadd.f32 %v7104_v61, %v17550_v4  ;;  %v17662_v16 = vadd.f32 %v7145_v17, %v17552_v51  ;;  %9020 = vmatpush1.bf16.msra.mxu1 %v13950_v10  ;;  %9061 = vmatpush1.bf16.msra.mxu0 %v13953_v6  ;;  %v13962_v4 = vld [vmem:[%s18825_s5 + $0x8a0] ss:$16 sps:$4 sm:$0xff]   ;;  %v13965_v51 = vld [vmem:[%s18825_s5 + $0x8a8] ss:$16 sps:$4 sm:$0xff]  }
 0x564   : > { %v7106_v58 = vpop.f32.mrf.mxu1  ;;  %v7147_v34 = vpop.f32.mrf.mxu0  ;;  %9021 = vmatprep.subr.bf16.mxu1 %v13958_v32  ;;  %9062 = vmatprep.subr.bf16.mxu0 %v13961_v2  ;;  %v14015_v32 = vld [vmem:[%s18825_s5 + $0x9ac] ss:$16 sps:$4 sm:$0xff]  }
 0x565   : > { %v17677_v35 = vadd.f32 %v7106_v58, %v17560_v0  ;;  %v17680_v3 = vadd.f32 %v7147_v34, %v17562_v18  ;;  %9051 = vmatprep.mubr.bf16.mxu1 %v14458_v5  ;;  %9092 = vmatprep.mubr.bf16.mxu0 %v14458_v5  ;;  %v13970_v0 = vld [vmem:[%s18825_s5 + $0x884] ss:$16 sps:$4 sm:$0xff]   ;;  %v13973_v18 = vld [vmem:[%s18825_s5 + $0x88c] ss:$16 sps:$4 sm:$0xff]  }
 0x566   : > { %v7108_v38 = vpop.f32.mrf.mxu1  ;;  %v7149_v62 = vpop.f32.mrf.mxu0  ;;  %v14018_v34 = vld [vmem:[%s18825_s5 + $0x984] ss:$16 sps:$4 sm:$0xff]  }
 0x567   : > { %9022 = vmatpush1.bf16.msra.mxu1 %v13956_v59  ;;  %9063 = vmatpush1.bf16.msra.mxu0 %v13959_v54  ;;  %v14013_v59 = vld [vmem:[%s18825_s5 + $0x9a8] ss:$16 sps:$4 sm:$0xff]   ;;  %v14027_v38 = vld [vmem:[%s18825_s5 + $0x96c] ss:$16 sps:$4 sm:$0xff]   ;;  %v14022_v62 = vld [vmem:[%s18825_s5 + $0x960] ss:$16 sps:$4 sm:$0xff]  }
 0x568   : > { %v7109_v41 = vpop.f32.mrf.mxu1  ;;  %v7150_v14 = vpop.f32.mrf.mxu0  ;;  %9023 = vmatprep.subr.bf16.mxu1 %v13964_v20  ;;  %9064 = vmatprep.subr.bf16.mxu0 %v13967_v49  ;;  %v14021_v20 = vld [vmem:[%s18825_s5 + $0x98c] ss:$16 sps:$4 sm:$0xff]   ;;  %v14016_v49 = vld [vmem:[%s18825_s5 + $0x980] ss:$16 sps:$4 sm:$0xff]  }
 0x569   : > { %v14033_v41 = vld [vmem:[%s18825_s5 + $0x94c] ss:$16 sps:$4 sm:$0xff]   ;;  %v14028_v14 = vld [vmem:[%s18825_s5 + $0x940] ss:$16 sps:$4 sm:$0xff]  }
 0x56b   : > { %9024 = vmatpush1.bf16.msra.mxu1 %v13962_v4  ;;  %9065 = vmatpush1.bf16.msra.mxu0 %v13965_v51  ;;  %v14025_v4 = vld [vmem:[%s18825_s5 + $0x968] ss:$16 sps:$4 sm:$0xff]   ;;  %v14030_v51 = vld [vmem:[%s18825_s5 + $0x944] ss:$16 sps:$4 sm:$0xff]  }
 0x56c   : > { %9025 = vmatprep.subr.bf16.mxu1 %v13970_v0  ;;  %9066 = vmatprep.subr.bf16.mxu0 %v13973_v18  ;;  %v14031_v0 = vld [vmem:[%s18825_s5 + $0x948] ss:$16 sps:$4 sm:$0xff]   ;;  %v14036_v18 = vld [vmem:[%s18825_s5 + $0x924] ss:$16 sps:$4 sm:$0xff]  }
 0x56f   : > { %9026 = vmatpush1.bf16.msra.mxu1 %v13968_v15  ;;  %9067 = vmatpush1.bf16.msra.mxu0 %v13971_v42  ;;  %v14039_v15 = vld [vmem:[%s18825_s5 + $0x92c] ss:$16 sps:$4 sm:$0xff]   ;;  %v14034_v42 = vld [vmem:[%s18825_s5 + $0x920] ss:$16 sps:$4 sm:$0xff]  }
 0x570   : > { %9027 = vmatprep.subr.bf16.mxu1 %v13976_v43  ;;  %9068 = vmatprep.subr.bf16.mxu0 %v13979_v45  ;;  %v14037_v43 = vld [vmem:[%s18825_s5 + $0x928] ss:$16 sps:$4 sm:$0xff]   ;;  %v14042_v45 = vld [vmem:[%s18825_s5 + $0x904] ss:$16 sps:$4 sm:$0xff]  }
 0x573   : > { %9028 = vmatpush1.bf16.msra.mxu1 %v13974_v55  ;;  %9069 = vmatpush1.bf16.msra.mxu0 %v13977_v1  ;;  %v14045_v55 = vld [vmem:[%s18825_s5 + $0x90c] ss:$16 sps:$4 sm:$0xff]   ;;  %v14040_v1 = vld [vmem:[%s18825_s5 + $0x900] ss:$16 sps:$4 sm:$0xff]  }
 0x574   : > { %9029 = vmatprep.subr.bf16.mxu1 %v13982_v36  ;;  %9070 = vmatprep.subr.bf16.mxu0 %v13985_v27  ;;  %v14043_v36 = vld [vmem:[%s18825_s5 + $0x908] ss:$16 sps:$4 sm:$0xff]   ;;  %v14048_v27 = vld [vmem:[%s18825_s5 + $0xae4] ss:$16 sps:$4 sm:$0xff]  }
 0x577   : > { %9030 = vmatpush1.bf16.msra.mxu1 %v13980_v29  ;;  %9071 = vmatpush1.bf16.msra.mxu0 %v13983_v9  ;;  %v14051_v29 = vld [vmem:[%s18825_s5 + $0xaec] ss:$16 sps:$4 sm:$0xff]   ;;  %v14046_v9 = vld [vmem:[%s18825_s5 + $0xae0] ss:$16 sps:$4 sm:$0xff]  }
 0x578   : > { %9031 = vmatprep.subr.bf16.mxu1 %v13988_v47  ;;  %9072 = vmatprep.subr.bf16.mxu0 %v13991_v25  ;;  %v14049_v47 = vld [vmem:[%s18825_s5 + $0xae8] ss:$16 sps:$4 sm:$0xff]   ;;  %v9105_v25 = vpack.c.bf16 %v16968_v50, %v16968_v50  ;;  %v14052_v50 = vld [vmem:[%s18825_s5 + $0xac0] ss:$16 sps:$4 sm:$0xff]  }
 0x57b   : > { %9032 = vmatpush1.bf16.msra.mxu1 %v13986_v46  ;;  %9073 = vmatpush1.bf16.msra.mxu0 %v13989_v37  ;;  %v14054_v46 = vld [vmem:[%s18825_s5 + $0xac4] ss:$16 sps:$4 sm:$0xff]   ;;  %v14057_v37 = vld [vmem:[%s18825_s5 + $0xacc] ss:$16 sps:$4 sm:$0xff]  }
 0x57c   : > { %9033 = vmatprep.subr.bf16.mxu1 %v13994_v40  ;;  %9074 = vmatprep.subr.bf16.mxu0 %v13997_v60 }
 0x57f   : > { %9034 = vmatpush1.bf16.msra.mxu1 %v13992_v26  ;;  %9075 = vmatpush1.bf16.msra.mxu0 %v13995_v22 }
 0x580   : > { %9298 = vmatprep.subr.bf16.mxu1 %v14000_v7  ;;  %9339 = vmatprep.subr.bf16.mxu0 %v14003_v44  ;;  %v14055_v7 = vld [vmem:[%s18825_s5 + $0xac8] ss:$16 sps:$4 sm:$0xff]  }
 0x582   : > { %v7379_v19 = vpop.f32.mrf.mxu1  ;;  %v7420_v24 = vpop.f32.mrf.mxu0  ;;  %9052 = vmatmul.mubr.bf16.vlgmr.msra.gmra.mxu1 %v8826_v56  ;;  %9093 = vmatmul.mubr.bf16.vlgmr.msra.gmra.mxu0 %v8826_v56  ;;  %v14063_v56 = vld [vmem:[%s18825_s5 + $0xaac] ss:$16 sps:$4 sm:$0xff]  }
 0x583   : > { %v17771_v63 = vadd.f32 %v7379_v19, %v17659_v52  ;;  %v17774_v28 = vadd.f32 %v7420_v24, %v17662_v16  ;;  %9299 = vmatpush1.bf16.msra.mxu1 %v13998_v31  ;;  %9340 = vmatpush1.bf16.msra.mxu0 %v14001_v30  ;;  %v14010_v16 = vld [vmem:[%s18825_s5 + $0x9a0] ss:$16 sps:$4 sm:$0xff]   ;;  %v14060_v30 = vld [vmem:[%s18825_s5 + $0xaa4] ss:$16 sps:$4 sm:$0xff]  }
 0x584   : > { %v7381_v10 = vpop.f32.mrf.mxu1  ;;  %v7422_v6 = vpop.f32.mrf.mxu0  ;;  %9300 = vmatprep.subr.bf16.mxu1 %v14006_v23  ;;  %9341 = vmatprep.subr.bf16.mxu0 %v14009_v12 }
 0x585   : > { %v17789_v2 = vadd.f32 %v7381_v10, %v17677_v35  ;;  %v17792_v61 = vadd.f32 %v7422_v6, %v17680_v3  ;;  %9330 = vmatprep.mubr.bf16.mxu1 %v14458_v5  ;;  %9371 = vmatprep.mubr.bf16.mxu0 %v14458_v5  ;;  %v14019_v35 = vld [vmem:[%s18825_s5 + $0x988] ss:$16 sps:$4 sm:$0xff]   ;;  %v14024_v3 = vld [vmem:[%s18825_s5 + $0x964] ss:$16 sps:$4 sm:$0xff]   ;;  %v14069_v6 = vld [vmem:[%s18825_s5 + $0xa8c] ss:$16 sps:$4 sm:$0xff]  }
 0x586   : > { %v7383_v17 = vpop.f32.mrf.mxu1  ;;  %v7424_v52 = vpop.f32.mrf.mxu0  ;;  %v14066_v10 = vld [vmem:[%s18825_s5 + $0xa84] ss:$16 sps:$4 sm:$0xff]  }
 0x587   : > { %9301 = vmatpush1.bf16.msra.mxu1 %v14004_v48  ;;  %9342 = vmatpush1.bf16.msra.mxu0 %v14007_v8  ;;  %v14070_v17 = vld [vmem:[%s18825_s5 + $0xa60] ss:$16 sps:$4 sm:$0xff]   ;;  %v14073_v52 = vld [vmem:[%s18825_s5 + $0xa68] ss:$16 sps:$4 sm:$0xff]  }
 0x588   : > { %v7384_v54 = vpop.f32.mrf.mxu1  ;;  %v7425_v58 = vpop.f32.mrf.mxu0  ;;  %9302 = vmatprep.subr.bf16.mxu1 %v14012_v53  ;;  %9343 = vmatprep.subr.bf16.mxu0 %v14015_v32  ;;  %v14064_v53 = vld [vmem:[%s18825_s5 + $0xa80] ss:$16 sps:$4 sm:$0xff]   ;;  %v14067_v32 = vld [vmem:[%s18825_s5 + $0xa88] ss:$16 sps:$4 sm:$0xff]  }
 0x589   : > { %v14076_v54 = vld [vmem:[%s18825_s5 + $0xa40] ss:$16 sps:$4 sm:$0xff]   ;;  %v14079_v58 = vld [vmem:[%s18825_s5 + $0xa48] ss:$16 sps:$4 sm:$0xff]  }
 0x58b   : > { %9303 = vmatpush1.bf16.msra.mxu1 %v14010_v16  ;;  %9344 = vmatpush1.bf16.msra.mxu0 %v14013_v59  ;;  %v14078_v16 = vld [vmem:[%s18825_s5 + $0xa44] ss:$16 sps:$4 sm:$0xff]   ;;  %v14081_v59 = vld [vmem:[%s18825_s5 + $0xa4c] ss:$16 sps:$4 sm:$0xff]  }
 0x58c   : > { %9304 = vmatprep.subr.bf16.mxu1 %v14018_v34  ;;  %9345 = vmatprep.subr.bf16.mxu0 %v14021_v20  ;;  %v14084_v34 = vld [vmem:[%s18825_s5 + $0xa24] ss:$16 sps:$4 sm:$0xff]   ;;  %v14087_v20 = vld [vmem:[%s18825_s5 + $0xa2c] ss:$16 sps:$4 sm:$0xff]  }
 0x58f   : > { %9305 = vmatpush1.bf16.msra.mxu1 %v14016_v49  ;;  %9346 = vmatpush1.bf16.msra.mxu0 %v14019_v35  ;;  %v14082_v49 = vld [vmem:[%s18825_s5 + $0xa20] ss:$16 sps:$4 sm:$0xff]   ;;  %v14085_v35 = vld [vmem:[%s18825_s5 + $0xa28] ss:$16 sps:$4 sm:$0xff]  }
 0x590   : > { %9306 = vmatprep.subr.bf16.mxu1 %v14024_v3  ;;  %9347 = vmatprep.subr.bf16.mxu0 %v14027_v38  ;;  %v14090_v3 = vld [vmem:[%s18825_s5 + $0xa04] ss:$16 sps:$4 sm:$0xff]   ;;  %v14093_v38 = vld [vmem:[%s18825_s5 + $0xa0c] ss:$16 sps:$4 sm:$0xff]  }
 0x593   : > { %9307 = vmatpush1.bf16.msra.mxu1 %v14022_v62  ;;  %9348 = vmatpush1.bf16.msra.mxu0 %v14025_v4  ;;  %v14088_v62 = vld [vmem:[%s18825_s5 + $0xa00] ss:$16 sps:$4 sm:$0xff]   ;;  %v14091_v4 = vld [vmem:[%s18825_s5 + $0xa08] ss:$16 sps:$4 sm:$0xff]  }
 0x594   : > { %9308 = vmatprep.subr.bf16.mxu1 %v14030_v51  ;;  %9349 = vmatprep.subr.bf16.mxu0 %v14033_v41  ;;  %v14096_v51 = vld [vmem:[%s18825_s5 + $0xbe4] ss:$16 sps:$4 sm:$0xff]   ;;  %v14099_v41 = vld [vmem:[%s18825_s5 + $0xbec] ss:$16 sps:$4 sm:$0xff]  }
 0x597   : > { %9309 = vmatpush1.bf16.msra.mxu1 %v14028_v14  ;;  %9350 = vmatpush1.bf16.msra.mxu0 %v14031_v0  ;;  %v14094_v14 = vld [vmem:[%s18825_s5 + $0xbe0] ss:$16 sps:$4 sm:$0xff]   ;;  %v14097_v0 = vld [vmem:[%s18825_s5 + $0xbe8] ss:$16 sps:$4 sm:$0xff]  }
 0x598   : > { %9310 = vmatprep.subr.bf16.mxu1 %v14036_v18  ;;  %9351 = vmatprep.subr.bf16.mxu0 %v14039_v15  ;;  %v9384_v18 = vpack.c.bf16 %v16987_v13, %v16987_v13  ;;  %v14102_v15 = vld [vmem:[%s18825_s5 + $0xbc4] ss:$16 sps:$4 sm:$0xff]   ;;  %v14100_v13 = vld [vmem:[%s18825_s5 + $0xbc0] ss:$16 sps:$4 sm:$0xff]  }
 0x59b   : > { %9311 = vmatpush1.bf16.msra.mxu1 %v14034_v42  ;;  %9352 = vmatpush1.bf16.msra.mxu0 %v14037_v43  ;;  %v14105_v42 = vld [vmem:[%s18825_s5 + $0xbcc] ss:$16 sps:$4 sm:$0xff]  }
 0x59c   : > { %9312 = vmatprep.subr.bf16.mxu1 %v14042_v45  ;;  %9353 = vmatprep.subr.bf16.mxu0 %v14045_v55 }
 0x59f   : > { %9313 = vmatpush1.bf16.msra.mxu1 %v14040_v1  ;;  %9354 = vmatpush1.bf16.msra.mxu0 %v14043_v36  ;;  %v14103_v36 = vld [vmem:[%s18825_s5 + $0xbc8] ss:$16 sps:$4 sm:$0xff]  }
 0x5a0   : > { %9577 = vmatprep.subr.bf16.mxu1 %v14048_v27  ;;  %9618 = vmatprep.subr.bf16.mxu0 %v14051_v29 }
 0x5a2   : > { %v7658_v40 = vpop.f32.mrf.mxu1  ;;  %v7699_v60 = vpop.f32.mrf.mxu0  ;;  %9331 = vmatmul.mubr.bf16.vlgmr.msra.gmra.mxu1 %v9105_v25  ;;  %9372 = vmatmul.mubr.bf16.vlgmr.msra.gmra.mxu0 %v9105_v25 }
 0x5a3   : > { %v17883_v26 = vadd.f32 %v7658_v40, %v17771_v63  ;;  %v17886_v22 = vadd.f32 %v7699_v60, %v17774_v28  ;;  %9578 = vmatpush1.bf16.msra.mxu1 %v14046_v9  ;;  %9619 = vmatpush1.bf16.msra.mxu0 %v14049_v47  ;;  %v14058_v63 = vld [vmem:[%s18825_s5 + $0xaa0] ss:$16 sps:$4 sm:$0xff]   ;;  %v14061_v28 = vld [vmem:[%s18825_s5 + $0xaa8] ss:$16 sps:$4 sm:$0xff]   ;;  %v14108_v9 = vld [vmem:[%s18825_s5 + $0xba4] ss:$16 sps:$4 sm:$0xff]  }
 0x5a4   : > { %v7660_v44 = vpop.f32.mrf.mxu1  ;;  %v7701_v31 = vpop.f32.mrf.mxu0  ;;  %9579 = vmatprep.subr.bf16.mxu1 %v14054_v46  ;;  %9620 = vmatprep.subr.bf16.mxu0 %v14057_v37  ;;  %v14111_v47 = vld [vmem:[%s18825_s5 + $0xbac] ss:$16 sps:$4 sm:$0xff]   ;;  %v14106_v60 = vld [vmem:[%s18825_s5 + $0xba0] ss:$16 sps:$4 sm:$0xff]  }
 0x5a5   : > { %v17901_v23 = vadd.f32 %v7660_v44, %v17789_v2  ;;  %v17904_v12 = vadd.f32 %v7701_v31, %v17792_v61  ;;  %9609 = vmatprep.mubr.bf16.mxu1 %v14458_v5  ;;  %9650 = vmatprep.mubr.bf16.mxu0 %v14458_v5  ;;  %v14072_v2 = vld [vmem:[%s18825_s5 + $0xa64] ss:$16 sps:$4 sm:$0xff]   ;;  %v14075_v61 = vld [vmem:[%s18825_s5 + $0xa6c] ss:$16 sps:$4 sm:$0xff]   ;;  %v14112_v31 = vld [vmem:[%s18825_s5 + $0xb80] ss:$16 sps:$4 sm:$0xff]  }
 0x5a6   : > { %v7662_v19 = vpop.f32.mrf.mxu1  ;;  %v7703_v24 = vpop.f32.mrf.mxu0  ;;  %v14117_v44 = vld [vmem:[%s18825_s5 + $0xb8c] ss:$16 sps:$4 sm:$0xff]  }
 0x5a7   : > { %9580 = vmatpush1.bf16.msra.mxu1 %v14052_v50  ;;  %9621 = vmatpush1.bf16.msra.mxu0 %v14055_v7  ;;  %v14114_v7 = vld [vmem:[%s18825_s5 + $0xb84] ss:$16 sps:$4 sm:$0xff]   ;;  %v14121_v19 = vld [vmem:[%s18825_s5 + $0xb68] ss:$16 sps:$4 sm:$0xff]  }
 0x5a8   : > { %v7663_v48 = vpop.f32.mrf.mxu1  ;;  %v7704_v8 = vpop.f32.mrf.mxu0  ;;  %9581 = vmatprep.subr.bf16.mxu1 %v14060_v30  ;;  %9622 = vmatprep.subr.bf16.mxu0 %v14063_v56  ;;  %v14115_v30 = vld [vmem:[%s18825_s5 + $0xb88] ss:$16 sps:$4 sm:$0xff]   ;;  %v14120_v56 = vld [vmem:[%s18825_s5 + $0xb64] ss:$16 sps:$4 sm:$0xff]  }
 0x5a9   : > { %v14126_v24 = vld [vmem:[%s18825_s5 + $0xb44] ss:$16 sps:$4 sm:$0xff]   ;;  %v14127_v48 = vld [vmem:[%s18825_s5 + $0xb48] ss:$16 sps:$4 sm:$0xff]  }
 0x5aa   : > { %v14132_v8 = vld [vmem:[%s18825_s5 + $0xb24] ss:$16 sps:$4 sm:$0xff]  }
 0x5ab   : > { %9582 = vmatpush1.bf16.msra.mxu1 %v14058_v63  ;;  %9623 = vmatpush1.bf16.msra.mxu0 %v14061_v28  ;;  %v14129_v63 = vld [vmem:[%s18825_s5 + $0xb4c] ss:$16 sps:$4 sm:$0xff]   ;;  %v14124_v28 = vld [vmem:[%s18825_s5 + $0xb40] ss:$16 sps:$4 sm:$0xff]  }
 0x5ac   : > { %9583 = vmatprep.subr.bf16.mxu1 %v14066_v10  ;;  %9624 = vmatprep.subr.bf16.mxu0 %v14069_v6  ;;  %v14135_v10 = vld [vmem:[%s18825_s5 + $0xb2c] ss:$16 sps:$4 sm:$0xff]   ;;  %v14130_v6 = vld [vmem:[%s18825_s5 + $0xb20] ss:$16 sps:$4 sm:$0xff]  }
 0x5af   : > { %9584 = vmatpush1.bf16.msra.mxu1 %v14064_v53  ;;  %9625 = vmatpush1.bf16.msra.mxu0 %v14067_v32  ;;  %v14133_v53 = vld [vmem:[%s18825_s5 + $0xb28] ss:$16 sps:$4 sm:$0xff]   ;;  %v14138_v32 = vld [vmem:[%s18825_s5 + $0xb04] ss:$16 sps:$4 sm:$0xff]  }
 0x5b0   : > { %9585 = vmatprep.subr.bf16.mxu1 %v14072_v2  ;;  %9626 = vmatprep.subr.bf16.mxu0 %v14075_v61  ;;  %v14141_v2 = vld [vmem:[%s18825_s5 + $0xb0c] ss:$16 sps:$4 sm:$0xff]   ;;  %v14136_v61 = vld [vmem:[%s18825_s5 + $0xb00] ss:$16 sps:$4 sm:$0xff]  }
 0x5b3   : > { %9586 = vmatpush1.bf16.msra.mxu1 %v14070_v17  ;;  %9627 = vmatpush1.bf16.msra.mxu0 %v14073_v52  ;;  %v14139_v17 = vld [vmem:[%s18825_s5 + $0xb08] ss:$16 sps:$4 sm:$0xff]   ;;  %v14144_v52 = vld [vmem:[%s18825_s5 + $0xce4] ss:$16 sps:$4 sm:$0xff]  }
 0x5b4   : > { %9587 = vmatprep.subr.bf16.mxu1 %v14078_v16  ;;  %9628 = vmatprep.subr.bf16.mxu0 %v14081_v59  ;;  %v14147_v16 = vld [vmem:[%s18825_s5 + $0xcec] ss:$16 sps:$4 sm:$0xff]   ;;  %v14142_v59 = vld [vmem:[%s18825_s5 + $0xce0] ss:$16 sps:$4 sm:$0xff]  }
 0x5b7   : > { %9588 = vmatpush1.bf16.msra.mxu1 %v14076_v54  ;;  %9629 = vmatpush1.bf16.msra.mxu0 %v14079_v58  ;;  %v14145_v54 = vld [vmem:[%s18825_s5 + $0xce8] ss:$16 sps:$4 sm:$0xff]   ;;  %v9663_v58 = vpack.c.bf16 %v17000_v11, %v17000_v11  ;;  %v14148_v11 = vld [vmem:[%s18825_s5 + $0xcc0] ss:$16 sps:$4 sm:$0xff]  }
 0x5b8   : > { %9589 = vmatprep.subr.bf16.mxu1 %v14084_v34  ;;  %9630 = vmatprep.subr.bf16.mxu0 %v14087_v20  ;;  %v14150_v34 = vld [vmem:[%s18825_s5 + $0xcc4] ss:$16 sps:$4 sm:$0xff]   ;;  %v14153_v20 = vld [vmem:[%s18825_s5 + $0xccc] ss:$16 sps:$4 sm:$0xff]  }
 0x5bb   : > { %9590 = vmatpush1.bf16.msra.mxu1 %v14082_v49  ;;  %9631 = vmatpush1.bf16.msra.mxu0 %v14085_v35 }
 0x5bc   : > { %9591 = vmatprep.subr.bf16.mxu1 %v14090_v3  ;;  %9632 = vmatprep.subr.bf16.mxu0 %v14093_v38 }
 0x5bf   : > { %9592 = vmatpush1.bf16.msra.mxu1 %v14088_v62  ;;  %9633 = vmatpush1.bf16.msra.mxu0 %v14091_v4  ;;  %v14151_v62 = vld [vmem:[%s18825_s5 + $0xcc8] ss:$16 sps:$4 sm:$0xff]  }
 0x5c0   : > { %9856 = vmatprep.subr.bf16.mxu1 %v14096_v51  ;;  %9897 = vmatprep.subr.bf16.mxu0 %v14099_v41  ;;  %v14156_v41 = vld [vmem:[%s18825_s5 + $0xca4] ss:$16 sps:$4 sm:$0xff]  }
 0x5c2   : > { %v7937_v43 = vpop.f32.mrf.mxu1  ;;  %v7978_v45 = vpop.f32.mrf.mxu0  ;;  %9610 = vmatmul.mubr.bf16.vlgmr.msra.gmra.mxu1 %v9384_v18  ;;  %9651 = vmatmul.mubr.bf16.vlgmr.msra.gmra.mxu0 %v9384_v18 }
 0x5c3   : > { %v17995_v55 = vadd.f32 %v7937_v43, %v17883_v26  ;;  %v17998_v1 = vadd.f32 %v7978_v45, %v17886_v22  ;;  %9857 = vmatpush1.bf16.msra.mxu1 %v14094_v14  ;;  %9898 = vmatpush1.bf16.msra.mxu0 %v14097_v0  ;;  %v14109_v26 = vld [vmem:[%s18825_s5 + $0xba8] ss:$16 sps:$4 sm:$0xff]   ;;  %v14159_v14 = vld [vmem:[%s18825_s5 + $0xcac] ss:$16 sps:$4 sm:$0xff]   ;;  %v14154_v43 = vld [vmem:[%s18825_s5 + $0xca0] ss:$16 sps:$4 sm:$0xff]  }
 0x5c4   : > { %v7939_v27 = vpop.f32.mrf.mxu1  ;;  %v7980_v29 = vpop.f32.mrf.mxu0  ;;  %9858 = vmatprep.subr.bf16.mxu1 %v14102_v15  ;;  %9899 = vmatprep.subr.bf16.mxu0 %v14105_v42  ;;  %v14157_v45 = vld [vmem:[%s18825_s5 + $0xca8] ss:$16 sps:$4 sm:$0xff]  }
 0x5c5   : > { %v18013_v25 = vadd.f32 %v7939_v27, %v17901_v23  ;;  %v18016_v46 = vadd.f32 %v7980_v29, %v17904_v12  ;;  %9888 = vmatprep.mubr.bf16.mxu1 %v14458_v5  ;;  %9929 = vmatprep.mubr.bf16.mxu0 %v14458_v5  ;;  %v14123_v23 = vld [vmem:[%s18825_s5 + $0xb6c] ss:$16 sps:$4 sm:$0xff]   ;;  %v14118_v12 = vld [vmem:[%s18825_s5 + $0xb60] ss:$16 sps:$4 sm:$0xff]   ;;  %v14163_v29 = vld [vmem:[%s18825_s5 + $0xc88] ss:$16 sps:$4 sm:$0xff]  }
 0x5c6   : > { %v7941_v37 = vpop.f32.mrf.mxu1  ;;  %v7982_v40 = vpop.f32.mrf.mxu0  ;;  %v14160_v27 = vld [vmem:[%s18825_s5 + $0xc80] ss:$16 sps:$4 sm:$0xff]  }
 0x5c7   : > { %9859 = vmatpush1.bf16.msra.mxu1 %v14100_v13  ;;  %9900 = vmatpush1.bf16.msra.mxu0 %v14103_v36  ;;  %v14162_v13 = vld [vmem:[%s18825_s5 + $0xc84] ss:$16 sps:$4 sm:$0xff]   ;;  %v14165_v36 = vld [vmem:[%s18825_s5 + $0xc8c] ss:$16 sps:$4 sm:$0xff]  }
 0x5c8   : > { %v7942_v22 = vpop.f32.mrf.mxu1  ;;  %v7983_v50 = vpop.f32.mrf.mxu0  ;;  %9860 = vmatprep.subr.bf16.mxu1 %v14108_v9  ;;  %9901 = vmatprep.subr.bf16.mxu0 %v14111_v47  ;;  %v14168_v9 = vld [vmem:[%s18825_s5 + $0xc64] ss:$16 sps:$4 sm:$0xff]   ;;  %v14171_v47 = vld [vmem:[%s18825_s5 + $0xc6c] ss:$16 sps:$4 sm:$0xff]  }
 0x5c9   : > { %v14174_v37 = vld [vmem:[%s18825_s5 + $0xc44] ss:$16 sps:$4 sm:$0xff]   ;;  %v14177_v40 = vld [vmem:[%s18825_s5 + $0xc4c] ss:$16 sps:$4 sm:$0xff]  }
 0x5ca   : > { %v14180_v22 = vld [vmem:[%s18825_s5 + $0xc24] ss:$16 sps:$4 sm:$0xff]   ;;  %v14183_v50 = vld [vmem:[%s18825_s5 + $0xc2c] ss:$16 sps:$4 sm:$0xff]  }
 0x5cb   : > { %9861 = vmatpush1.bf16.msra.mxu1 %v14106_v60  ;;  %9902 = vmatpush1.bf16.msra.mxu0 %v14109_v26  ;;  %v14172_v60 = vld [vmem:[%s18825_s5 + $0xc40] ss:$16 sps:$4 sm:$0xff]   ;;  %v14175_v26 = vld [vmem:[%s18825_s5 + $0xc48] ss:$16 sps:$4 sm:$0xff]  }
 0x5cc   : > { %9862 = vmatprep.subr.bf16.mxu1 %v14114_v7  ;;  %9903 = vmatprep.subr.bf16.mxu0 %v14117_v44  ;;  %v14178_v7 = vld [vmem:[%s18825_s5 + $0xc20] ss:$16 sps:$4 sm:$0xff]   ;;  %v14181_v44 = vld [vmem:[%s18825_s5 + $0xc28] ss:$16 sps:$4 sm:$0xff]  }
 0x5cf   : > { %9863 = vmatpush1.bf16.msra.mxu1 %v14112_v31  ;;  %9904 = vmatpush1.bf16.msra.mxu0 %v14115_v30  ;;  %v14186_v31 = vld [vmem:[%s18825_s5 + $0xc04] ss:$16 sps:$4 sm:$0xff]   ;;  %v14189_v30 = vld [vmem:[%s18825_s5 + $0xc0c] ss:$16 sps:$4 sm:$0xff]  }
 0x5d0   : > { %9864 = vmatprep.subr.bf16.mxu1 %v14120_v56  ;;  %9905 = vmatprep.subr.bf16.mxu0 %v14123_v23  ;;  %v14184_v56 = vld [vmem:[%s18825_s5 + $0xc00] ss:$16 sps:$4 sm:$0xff]   ;;  %v14187_v23 = vld [vmem:[%s18825_s5 + $0xc08] ss:$16 sps:$4 sm:$0xff]  }
 0x5d3   : > { %9865 = vmatpush1.bf16.msra.mxu1 %v14118_v12  ;;  %9906 = vmatpush1.bf16.msra.mxu0 %v14121_v19  ;;  %v14192_v12 = vld [vmem:[%s18825_s5 + $0xde4] ss:$16 sps:$4 sm:$0xff]   ;;  %v14195_v19 = vld [vmem:[%s18825_s5 + $0xdec] ss:$16 sps:$4 sm:$0xff]  }
 0x5d4   : > { %9866 = vmatprep.subr.bf16.mxu1 %v14126_v24  ;;  %9907 = vmatprep.subr.bf16.mxu0 %v14129_v63  ;;  %v14190_v24 = vld [vmem:[%s18825_s5 + $0xde0] ss:$16 sps:$4 sm:$0xff]   ;;  %v14193_v63 = vld [vmem:[%s18825_s5 + $0xde8] ss:$16 sps:$4 sm:$0xff]  }
 0x5d7   : > { %9867 = vmatpush1.bf16.msra.mxu1 %v14124_v28  ;;  %9908 = vmatpush1.bf16.msra.mxu0 %v14127_v48  ;;  %v9942_v28 = vpack.c.bf16 %v16979_v21, %v16979_v21  ;;  %v14198_v48 = vld [vmem:[%s18825_s5 + $0xdc4] ss:$16 sps:$4 sm:$0xff]   ;;  %v14196_v21 = vld [vmem:[%s18825_s5 + $0xdc0] ss:$16 sps:$4 sm:$0xff]  }
 0x5d8   : > { %9868 = vmatprep.subr.bf16.mxu1 %v14132_v8  ;;  %9909 = vmatprep.subr.bf16.mxu0 %v14135_v10  ;;  %v14201_v8 = vld [vmem:[%s18825_s5 + $0xdcc] ss:$16 sps:$4 sm:$0xff]  }
 0x5db   : > { %9869 = vmatpush1.bf16.msra.mxu1 %v14130_v6  ;;  %9910 = vmatpush1.bf16.msra.mxu0 %v14133_v53 }
 0x5dc   : > { %9870 = vmatprep.subr.bf16.mxu1 %v14138_v32  ;;  %9911 = vmatprep.subr.bf16.mxu0 %v14141_v2  ;;  %v14199_v2 = vld [vmem:[%s18825_s5 + $0xdc8] ss:$16 sps:$4 sm:$0xff]  }
 0x5df   : > { %9871 = vmatpush1.bf16.msra.mxu1 %v14136_v61  ;;  %9912 = vmatpush1.bf16.msra.mxu0 %v14139_v17 }
 0x5e0   : > { %10135 = vmatprep.subr.bf16.mxu1 %v14144_v52  ;;  %10176 = vmatprep.subr.bf16.mxu0 %v14147_v16  ;;  %v14204_v52 = vld [vmem:[%s18825_s5 + $0xda4] ss:$16 sps:$4 sm:$0xff]   ;;  %v14207_v16 = vld [vmem:[%s18825_s5 + $0xdac] ss:$16 sps:$4 sm:$0xff]  }
 0x5e2   : > { %v8216_v49 = vpop.f32.mrf.mxu1  ;;  %v8257_v35 = vpop.f32.mrf.mxu0  ;;  %9889 = vmatmul.mubr.bf16.vlgmr.msra.gmra.mxu1 %v9663_v58  ;;  %9930 = vmatmul.mubr.bf16.vlgmr.msra.gmra.mxu0 %v9663_v58 }
 0x5e3   : > { %v18107_v3 = vadd.f32 %v8216_v49, %v17995_v55  ;;  %v18110_v38 = vadd.f32 %v8257_v35, %v17998_v1  ;;  %10136 = vmatpush1.bf16.msra.mxu1 %v14142_v59  ;;  %10177 = vmatpush1.bf16.msra.mxu0 %v14145_v54  ;;  %v14205_v49 = vld [vmem:[%s18825_s5 + $0xda8] ss:$16 sps:$4 sm:$0xff]  }
 0x5e4   : > { %v8218_v4 = vpop.f32.mrf.mxu1  ;;  %v8259_v51 = vpop.f32.mrf.mxu0  ;;  %10137 = vmatprep.subr.bf16.mxu1 %v14150_v34  ;;  %10178 = vmatprep.subr.bf16.mxu0 %v14153_v20  ;;  %v14202_v20 = vld [vmem:[%s18825_s5 + $0xda0] ss:$16 sps:$4 sm:$0xff]  }
 0x5e5   : > { %v18125_v0 = vadd.f32 %v8218_v4, %v18013_v25  ;;  %v18128_v18 = vadd.f32 %v8259_v51, %v18016_v46  ;;  %10167 = vmatprep.mubr.bf16.mxu1 %v14458_v5  ;;  %10208 = vmatprep.mubr.bf16.mxu0 %v14458_v5  ;;  %v14166_v25 = vld [vmem:[%s18825_s5 + $0xc60] ss:$16 sps:$4 sm:$0xff]   ;;  %v14169_v46 = vld [vmem:[%s18825_s5 + $0xc68] ss:$16 sps:$4 sm:$0xff]   ;;  %v14216_v51 = vld [vmem:[%s18825_s5 + $0xd64] ss:$16 sps:$4 sm:$0xff]  }
 0x5e6   : > { %v8220_v15 = vpop.f32.mrf.mxu1  ;;  %v8261_v42 = vpop.f32.mrf.mxu0  ;;  %v14211_v4 = vld [vmem:[%s18825_s5 + $0xd88] ss:$16 sps:$4 sm:$0xff]  }
 0x5e7   : > { %10138 = vmatpush1.bf16.msra.mxu1 %v14148_v11  ;;  %10179 = vmatpush1.bf16.msra.mxu0 %v14151_v62  ;;  %v14213_v11 = vld [vmem:[%s18825_s5 + $0xd8c] ss:$16 sps:$4 sm:$0xff]   ;;  %v14208_v62 = vld [vmem:[%s18825_s5 + $0xd80] ss:$16 sps:$4 sm:$0xff]  }
 0x5e8   : > { %v8221_v55 = vpop.f32.mrf.mxu1  ;;  %v8262_v1 = vpop.f32.mrf.mxu0  ;;  %10139 = vmatprep.subr.bf16.mxu1 %v14156_v41  ;;  %10180 = vmatprep.subr.bf16.mxu0 %v14159_v14  ;;  %v14219_v41 = vld [vmem:[%s18825_s5 + $0xd6c] ss:$16 sps:$4 sm:$0xff]   ;;  %v14214_v14 = vld [vmem:[%s18825_s5 + $0xd60] ss:$16 sps:$4 sm:$0xff]  }
 0x5e9   : > { %v14225_v15 = vld [vmem:[%s18825_s5 + $0xd4c] ss:$16 sps:$4 sm:$0xff]   ;;  %v14220_v42 = vld [vmem:[%s18825_s5 + $0xd40] ss:$16 sps:$4 sm:$0xff]  }
 0x5ea   : > { %v14231_v55 = vld [vmem:[%s18825_s5 + $0xd2c] ss:$16 sps:$4 sm:$0xff]   ;;  %v14226_v1 = vld [vmem:[%s18825_s5 + $0xd20] ss:$16 sps:$4 sm:$0xff]  }
 0x5eb   : > { %10140 = vmatpush1.bf16.msra.mxu1 %v14154_v43  ;;  %10181 = vmatpush1.bf16.msra.mxu0 %v14157_v45  ;;  %v14223_v43 = vld [vmem:[%s18825_s5 + $0xd48] ss:$16 sps:$4 sm:$0xff]   ;;  %v14228_v45 = vld [vmem:[%s18825_s5 + $0xd24] ss:$16 sps:$4 sm:$0xff]  }
 0x5ec   : > { %10141 = vmatprep.subr.bf16.mxu1 %v14162_v13  ;;  %10182 = vmatprep.subr.bf16.mxu0 %v14165_v36  ;;  %v14229_v13 = vld [vmem:[%s18825_s5 + $0xd28] ss:$16 sps:$4 sm:$0xff]   ;;  %v14234_v36 = vld [vmem:[%s18825_s5 + $0xd04] ss:$16 sps:$4 sm:$0xff]  }
 0x5ef   : > { %10142 = vmatpush1.bf16.msra.mxu1 %v14160_v27  ;;  %10183 = vmatpush1.bf16.msra.mxu0 %v14163_v29  ;;  %v14237_v27 = vld [vmem:[%s18825_s5 + $0xd0c] ss:$16 sps:$4 sm:$0xff]   ;;  %v14232_v29 = vld [vmem:[%s18825_s5 + $0xd00] ss:$16 sps:$4 sm:$0xff]  }
 0x5f0   : > { %10143 = vmatprep.subr.bf16.mxu1 %v14168_v9  ;;  %10184 = vmatprep.subr.bf16.mxu0 %v14171_v47  ;;  %v14235_v9 = vld [vmem:[%s18825_s5 + $0xd08] ss:$16 sps:$4 sm:$0xff]   ;;  %v14240_v47 = vld [vmem:[%s18825_s5 + $0xee4] ss:$16 sps:$4 sm:$0xff]  }
 0x5f3   : > { %10144 = vmatpush1.bf16.msra.mxu1 %v14166_v25  ;;  %10185 = vmatpush1.bf16.msra.mxu0 %v14169_v46  ;;  %v14243_v25 = vld [vmem:[%s18825_s5 + $0xeec] ss:$16 sps:$4 sm:$0xff]   ;;  %v14238_v46 = vld [vmem:[%s18825_s5 + $0xee0] ss:$16 sps:$4 sm:$0xff]  }
 0x5f4   : > { %10145 = vmatprep.subr.bf16.mxu1 %v14174_v37  ;;  %10186 = vmatprep.subr.bf16.mxu0 %v14177_v40  ;;  %v14241_v37 = vld [vmem:[%s18825_s5 + $0xee8] ss:$16 sps:$4 sm:$0xff]   ;;  %v10221_v40 = vpack.c.bf16 %v17002_v33, %v17002_v33  ;;  %v14244_v33 = vld [vmem:[%s18825_s5 + $0xec0] ss:$16 sps:$4 sm:$0xff]  }
 0x5f7   : > { %10146 = vmatpush1.bf16.msra.mxu1 %v14172_v60  ;;  %10187 = vmatpush1.bf16.msra.mxu0 %v14175_v26  ;;  %v14246_v60 = vld [vmem:[%s18825_s5 + $0xec4] ss:$16 sps:$4 sm:$0xff]   ;;  %v14249_v26 = vld [vmem:[%s18825_s5 + $0xecc] ss:$16 sps:$4 sm:$0xff]  }
 0x5f8   : > { %10147 = vmatprep.subr.bf16.mxu1 %v14180_v22  ;;  %10188 = vmatprep.subr.bf16.mxu0 %v14183_v50 }
 0x5fb   : > { %10148 = vmatpush1.bf16.msra.mxu1 %v14178_v7  ;;  %10189 = vmatpush1.bf16.msra.mxu0 %v14181_v44 }
 0x5fc   : > { %10149 = vmatprep.subr.bf16.mxu1 %v14186_v31  ;;  %10190 = vmatprep.subr.bf16.mxu0 %v14189_v30  ;;  %v14247_v31 = vld [vmem:[%s18825_s5 + $0xec8] ss:$16 sps:$4 sm:$0xff]  }
 0x5ff   : > { %10150 = vmatpush1.bf16.msra.mxu1 %v14184_v56  ;;  %10191 = vmatpush1.bf16.msra.mxu0 %v14187_v23  ;;  %v14252_v23 = vld [vmem:[%s18825_s5 + $0xea4] ss:$16 sps:$4 sm:$0xff]  }
 0x600   : > { %10414 = vmatprep.subr.bf16.mxu1 %v14192_v12  ;;  %10455 = vmatprep.subr.bf16.mxu0 %v14195_v19  ;;  %v14255_v12 = vld [vmem:[%s18825_s5 + $0xeac] ss:$16 sps:$4 sm:$0xff]  }
 0x602   : > { %v8495_v10 = vpop.f32.mrf.mxu1  ;;  %v8536_v6 = vpop.f32.mrf.mxu0  ;;  %10168 = vmatmul.mubr.bf16.vlgmr.msra.gmra.mxu1 %v9942_v28  ;;  %10209 = vmatmul.mubr.bf16.vlgmr.msra.gmra.mxu0 %v9942_v28 }
 0x603   : > { %v18219_v53 = vadd.f32 %v8495_v10, %v18107_v3  ;;  %v18222_v32 = vadd.f32 %v8536_v6, %v18110_v38  ;;  %10415 = vmatpush1.bf16.msra.mxu1 %v14190_v24  ;;  %10456 = vmatpush1.bf16.msra.mxu0 %v14193_v63  ;;  %v14210_v38 = vld [vmem:[%s18825_s5 + $0xd84] ss:$16 sps:$4 sm:$0xff]  }
 0x604   : > { %v8497_v61 = vpop.f32.mrf.mxu1  ;;  %v8538_v17 = vpop.f32.mrf.mxu0  ;;  %10416 = vmatprep.subr.bf16.mxu1 %v14198_v48  ;;  %10457 = vmatprep.subr.bf16.mxu0 %v14201_v8  ;;  %v14250_v48 = vld [vmem:[%s18825_s5 + $0xea0] ss:$16 sps:$4 sm:$0xff]   ;;  %v14253_v8 = vld [vmem:[%s18825_s5 + $0xea8] ss:$16 sps:$4 sm:$0xff]  }
 0x605   : > { %v18237_v59 = vadd.f32 %v8497_v61, %v18125_v0  ;;  %v18240_v54 = vadd.f32 %v8538_v17, %v18128_v18  ;;  %10446 = vmatprep.mubr.bf16.mxu1 %v14458_v5  ;;  %10487 = vmatprep.mubr.bf16.mxu0 %v14458_v5  ;;  %v14217_v0 = vld [vmem:[%s18825_s5 + $0xd68] ss:$16 sps:$4 sm:$0xff]   ;;  %v14222_v18 = vld [vmem:[%s18825_s5 + $0xd44] ss:$16 sps:$4 sm:$0xff]   ;;  %v14267_v17 = vld [vmem:[%s18825_s5 + $0xe6c] ss:$16 sps:$4 sm:$0xff]  }
 0x606   : > { %v8499_v58 = vpop.f32.mrf.mxu1  ;;  %v8540_v34 = vpop.f32.mrf.mxu0  ;;  %v14264_v61 = vld [vmem:[%s18825_s5 + $0xe64] ss:$16 sps:$4 sm:$0xff]  }
 0x607   : > { %10417 = vmatpush1.bf16.msra.mxu1 %v14196_v21  ;;  %10458 = vmatpush1.bf16.msra.mxu0 %v14199_v2  ;;  %v14256_v21 = vld [vmem:[%s18825_s5 + $0xe80] ss:$16 sps:$4 sm:$0xff]   ;;  %v14259_v2 = vld [vmem:[%s18825_s5 + $0xe88] ss:$16 sps:$4 sm:$0xff]  }
 0x608   : > { %v8500_v35 = vpop.f32.mrf.mxu1  ;;  %v8541_v3 = vpop.f32.mrf.mxu0  ;;  %10418 = vmatprep.subr.bf16.mxu1 %v14204_v52  ;;  %10459 = vmatprep.subr.bf16.mxu0 %v14207_v16  ;;  %v14262_v52 = vld [vmem:[%s18825_s5 + $0xe60] ss:$16 sps:$4 sm:$0xff]   ;;  %v14265_v16 = vld [vmem:[%s18825_s5 + $0xe68] ss:$16 sps:$4 sm:$0xff]  }
 0x609   : > { %v14268_v58 = vld [vmem:[%s18825_s5 + $0xe40] ss:$16 sps:$4 sm:$0xff]   ;;  %v14271_v34 = vld [vmem:[%s18825_s5 + $0xe48] ss:$16 sps:$4 sm:$0xff]  }
 0x60a   : > { %v14274_v35 = vld [vmem:[%s18825_s5 + $0xe20] ss:$16 sps:$4 sm:$0xff]   ;;  %v14277_v3 = vld [vmem:[%s18825_s5 + $0xe28] ss:$16 sps:$4 sm:$0xff]  }
 0x60b   : > { %10419 = vmatpush1.bf16.msra.mxu1 %v14202_v20  ;;  %10460 = vmatpush1.bf16.msra.mxu0 %v14205_v49  ;;  %v14276_v20 = vld [vmem:[%s18825_s5 + $0xe24] ss:$16 sps:$4 sm:$0xff]   ;;  %v14279_v49 = vld [vmem:[%s18825_s5 + $0xe2c] ss:$16 sps:$4 sm:$0xff]  }
 0x60c   : > { %10420 = vmatprep.subr.bf16.mxu1 %v14210_v38  ;;  %10461 = vmatprep.subr.bf16.mxu0 %v14213_v11  ;;  %v14282_v38 = vld [vmem:[%s18825_s5 + $0xe04] ss:$16 sps:$4 sm:$0xff]   ;;  %v14285_v11 = vld [vmem:[%s18825_s5 + $0xe0c] ss:$16 sps:$4 sm:$0xff]  }
 0x60f   : > { %10421 = vmatpush1.bf16.msra.mxu1 %v14208_v62  ;;  %10462 = vmatpush1.bf16.msra.mxu0 %v14211_v4  ;;  %v14280_v62 = vld [vmem:[%s18825_s5 + $0xe00] ss:$16 sps:$4 sm:$0xff]   ;;  %v14283_v4 = vld [vmem:[%s18825_s5 + $0xe08] ss:$16 sps:$4 sm:$0xff]  }
 0x610   : > { %10422 = vmatprep.subr.bf16.mxu1 %v14216_v51  ;;  %10463 = vmatprep.subr.bf16.mxu0 %v14219_v41  ;;  %v14288_v51 = vld [vmem:[%s18825_s5 + $0xfe4] ss:$16 sps:$4 sm:$0xff]   ;;  %v14291_v41 = vld [vmem:[%s18825_s5 + $0xfec] ss:$16 sps:$4 sm:$0xff]  }
 0x613   : > { %10423 = vmatpush1.bf16.msra.mxu1 %v14214_v14  ;;  %10464 = vmatpush1.bf16.msra.mxu0 %v14217_v0  ;;  %v14286_v14 = vld [vmem:[%s18825_s5 + $0xfe0] ss:$16 sps:$4 sm:$0xff]   ;;  %v14289_v0 = vld [vmem:[%s18825_s5 + $0xfe8] ss:$16 sps:$4 sm:$0xff]  }
 0x614   : > { %10424 = vmatprep.subr.bf16.mxu1 %v14222_v18  ;;  %10465 = vmatprep.subr.bf16.mxu0 %v14225_v15  ;;  %v10500_v18 = vpack.c.bf16 %v17014_v39, %v17014_v39  ;;  %v14294_v15 = vld [vmem:[%s18825_s5 + $0xfc4] ss:$16 sps:$4 sm:$0xff]   ;;  %v14292_v39 = vld [vmem:[%s18825_s5 + $0xfc0] ss:$16 sps:$4 sm:$0xff]  }
 0x617   : > { %10425 = vmatpush1.bf16.msra.mxu1 %v14220_v42  ;;  %10466 = vmatpush1.bf16.msra.mxu0 %v14223_v43  ;;  %v14297_v42 = vld [vmem:[%s18825_s5 + $0xfcc] ss:$16 sps:$4 sm:$0xff]  }
 0x618   : > { %10426 = vmatprep.subr.bf16.mxu1 %v14228_v45  ;;  %10467 = vmatprep.subr.bf16.mxu0 %v14231_v55 }
 0x61b   : > { %10427 = vmatpush1.bf16.msra.mxu1 %v14226_v1  ;;  %10468 = vmatpush1.bf16.msra.mxu0 %v14229_v13  ;;  %v14295_v13 = vld [vmem:[%s18825_s5 + $0xfc8] ss:$16 sps:$4 sm:$0xff]  }
 0x61c   : > { %10428 = vmatprep.subr.bf16.mxu1 %v14234_v36  ;;  %10469 = vmatprep.subr.bf16.mxu0 %v14237_v27 }
 0x61f   : > { %10429 = vmatpush1.bf16.msra.mxu1 %v14232_v29  ;;  %10470 = vmatpush1.bf16.msra.mxu0 %v14235_v9  ;;  %v14300_v29 = vld [vmem:[%s18825_s5 + $0xfa4] ss:$16 sps:$4 sm:$0xff]   ;;  %v14303_v9 = vld [vmem:[%s18825_s5 + $0xfac] ss:$16 sps:$4 sm:$0xff]  }
 0x620   : > { %10693 = vmatprep.subr.bf16.mxu1 %v14240_v47  ;;  %10734 = vmatprep.subr.bf16.mxu0 %v14243_v25 }
 0x622   : > { %v8774_v22 = vpop.f32.mrf.mxu1  ;;  %v8815_v50 = vpop.f32.mrf.mxu0  ;;  %10447 = vmatmul.mubr.bf16.vlgmr.msra.gmra.mxu1 %v10221_v40  ;;  %10488 = vmatmul.mubr.bf16.vlgmr.msra.gmra.mxu0 %v10221_v40  ;;  %v14298_v40 = vld [vmem:[%s18825_s5 + $0xfa0] ss:$16 sps:$4 sm:$0xff]  }
 0x623   : > { %v18331_v7 = vadd.f32 %v8774_v22, %v18219_v53  ;;  %v18334_v44 = vadd.f32 %v8815_v50, %v18222_v32  ;;  %10694 = vmatpush1.bf16.msra.mxu1 %v14238_v46  ;;  %10735 = vmatpush1.bf16.msra.mxu0 %v14241_v37  ;;  %v14258_v53 = vld [vmem:[%s18825_s5 + $0xe84] ss:$16 sps:$4 sm:$0xff]   ;;  %v14261_v32 = vld [vmem:[%s18825_s5 + $0xe8c] ss:$16 sps:$4 sm:$0xff]  }
 0x624   : > { %v8776_v30 = vpop.f32.mrf.mxu1  ;;  %v8817_v56 = vpop.f32.mrf.mxu0  ;;  %10695 = vmatprep.subr.bf16.mxu1 %v14246_v60  ;;  %10736 = vmatprep.subr.bf16.mxu0 %v14249_v26  ;;  %v14301_v60 = vld [vmem:[%s18825_s5 + $0xfa8] ss:$16 sps:$4 sm:$0xff]   ;;  %v14309_v50 = vld [vmem:[%s18825_s5 + $0xf8c] ss:$16 sps:$4 sm:$0xff]  }
 0x625   : > { %v18349_v19 = vadd.f32 %v8776_v30, %v18237_v59  ;;  %v18352_v24 = vadd.f32 %v8817_v56, %v18240_v54  ;;  %10725 = vmatprep.mubr.bf16.mxu1 %v14458_v5  ;;  %10766 = vmatprep.mubr.bf16.mxu0 %v14458_v5  ;;  %v14270_v59 = vld [vmem:[%s18825_s5 + $0xe44] ss:$16 sps:$4 sm:$0xff]   ;;  %v14273_v54 = vld [vmem:[%s18825_s5 + $0xe4c] ss:$16 sps:$4 sm:$0xff]   ;;  %v14310_v30 = vld [vmem:[%s18825_s5 + $0xf60] ss:$16 sps:$4 sm:$0xff]  }
 0x626   : > { %v8778_v63 = vpop.f32.mrf.mxu1  ;;  %v8819_v28 = vpop.f32.mrf.mxu0  ;;  %v14313_v56 = vld [vmem:[%s18825_s5 + $0xf68] ss:$16 sps:$4 sm:$0xff]  }
 0x627   : > { %10696 = vmatpush1.bf16.msra.mxu1 %v14244_v33  ;;  %10737 = vmatpush1.bf16.msra.mxu0 %v14247_v31  ;;  %v14312_v33 = vld [vmem:[%s18825_s5 + $0xf64] ss:$16 sps:$4 sm:$0xff]   ;;  %v14315_v31 = vld [vmem:[%s18825_s5 + $0xf6c] ss:$16 sps:$4 sm:$0xff]  }
 0x628   : > { %v8779_v10 = vpop.f32.mrf.mxu1  ;;  %v8820_v6 = vpop.f32.mrf.mxu0  ;;  %10697 = vmatprep.subr.bf16.mxu1 %v14252_v23  ;;  %10738 = vmatprep.subr.bf16.mxu0 %v14255_v12  ;;  %v14318_v23 = vld [vmem:[%s18825_s5 + $0xf44] ss:$16 sps:$4 sm:$0xff]   ;;  %v14321_v12 = vld [vmem:[%s18825_s5 + $0xf4c] ss:$16 sps:$4 sm:$0xff]  }
 0x629   : > { %v14324_v63 = vld [vmem:[%s18825_s5 + $0xf24] ss:$16 sps:$4 sm:$0xff]   ;;  %v14327_v28 = vld [vmem:[%s18825_s5 + $0xf2c] ss:$16 sps:$4 sm:$0xff]  }
 0x62a   : > { %v14330_v10 = vld [vmem:[%s18825_s5 + $0xf04] ss:$16 sps:$4 sm:$0xff]   ;;  %v14333_v6 = vld [vmem:[%s18825_s5 + $0xf0c] ss:$16 sps:$4 sm:$0xff]  }
 0x62b   : > { %10698 = vmatpush1.bf16.msra.mxu1 %v14250_v48  ;;  %10739 = vmatpush1.bf16.msra.mxu0 %v14253_v8  ;;  %v14322_v48 = vld [vmem:[%s18825_s5 + $0xf20] ss:$16 sps:$4 sm:$0xff]   ;;  %v14325_v8 = vld [vmem:[%s18825_s5 + $0xf28] ss:$16 sps:$4 sm:$0xff]  }
 0x62c   : > { %10699 = vmatprep.subr.bf16.mxu1 %v14258_v53  ;;  %10740 = vmatprep.subr.bf16.mxu0 %v14261_v32  ;;  %v14328_v53 = vld [vmem:[%s18825_s5 + $0xf00] ss:$16 sps:$4 sm:$0xff]   ;;  %v14331_v32 = vld [vmem:[%s18825_s5 + $0xf08] ss:$16 sps:$4 sm:$0xff]  }
 0x62f   : > { %10700 = vmatpush1.bf16.msra.mxu1 %v14256_v21  ;;  %10741 = vmatpush1.bf16.msra.mxu0 %v14259_v2  ;;  %v10779_v21 = vpack.c.bf16 %v17023_v57, %v17023_v57  ;;  %v14334_v57 = vld [vmem:[%s18827_s7 + $0x70] ss:$8 sps:$4 sm:$0xff]  }
 0x630   : > { %10701 = vmatprep.subr.bf16.mxu1 %v14264_v61  ;;  %10742 = vmatprep.subr.bf16.mxu0 %v14267_v17 }
 0x633   : > { %10702 = vmatpush1.bf16.msra.mxu1 %v14262_v52  ;;  %10743 = vmatpush1.bf16.msra.mxu0 %v14265_v16 }
 0x634   : > { %10703 = vmatprep.subr.bf16.mxu1 %v14270_v59  ;;  %10744 = vmatprep.subr.bf16.mxu0 %v14273_v54 }
 0x637   : > { %10704 = vmatpush1.bf16.msra.mxu1 %v14268_v58  ;;  %10745 = vmatpush1.bf16.msra.mxu0 %v14271_v34 }
 0x638   : > { %10705 = vmatprep.subr.bf16.mxu1 %v14276_v20  ;;  %10746 = vmatprep.subr.bf16.mxu0 %v14279_v49 }
 0x63b   : > { %10706 = vmatpush1.bf16.msra.mxu1 %v14274_v35  ;;  %10747 = vmatpush1.bf16.msra.mxu0 %v14277_v3  ;;  %v14336_v3 = vld [vmem:[%s18827_s7 + $0x74] ss:$8 sps:$4 sm:$0xff]  }
 0x63c   : > { %10707 = vmatprep.subr.bf16.mxu1 %v14282_v38  ;;  %10748 = vmatprep.subr.bf16.mxu0 %v14285_v11  ;;  %v14337_v38 = vld [vmem:[%s18827_s7 + $0x170] ss:$8 sps:$4 sm:$0xff]   ;;  %v14339_v11 = vld [vmem:[%s18827_s7 + $0x174] ss:$8 sps:$4 sm:$0xff]  }
 0x63f   : > { %10708 = vmatpush1.bf16.msra.mxu1 %v14280_v62  ;;  %10749 = vmatpush1.bf16.msra.mxu0 %v14283_v4  ;;  %v14342_v62 = vld [vmem:[%s18827_s7 + $0x64] ss:$8 sps:$4 sm:$0xff]  }
 0x640   : > { %10972 = vmatprep.subr.bf16.mxu1 %v14288_v51  ;;  %11013 = vmatprep.subr.bf16.mxu0 %v14291_v41  ;;  %v14345_v4 = vld [vmem:[%s18827_s7 + $0x164] ss:$8 sps:$4 sm:$0xff]   ;;  %v14340_v51 = vld [vmem:[%s18827_s7 + $0x60] ss:$8 sps:$4 sm:$0xff]  }
 0x641   : > { %v14343_v41 = vld [vmem:[%s18827_s7 + $0x160] ss:$8 sps:$4 sm:$0xff]  }
 0x642   : > { %v9053_v43 = vpop.f32.mrf.mxu1  ;;  %v9094_v45 = vpop.f32.mrf.mxu0  ;;  %10726 = vmatmul.mubr.bf16.vlgmr.msra.gmra.mxu1 %v10500_v18  ;;  %10767 = vmatmul.mubr.bf16.vlgmr.msra.gmra.mxu0 %v10500_v18  ;;  %v14346_v18 = vld [vmem:[%s18827_s7 + $0x50] ss:$8 sps:$4 sm:$0xff]  }
 0x643   : > { %v18443_v55 = vadd.f32 %v9053_v43, %v18331_v7  ;;  %v18446_v1 = vadd.f32 %v9094_v45, %v18334_v44  ;;  %10973 = vmatpush1.bf16.msra.mxu1 %v14286_v14  ;;  %11014 = vmatpush1.bf16.msra.mxu0 %v14289_v0  ;;  %v14304_v7 = vld [vmem:[%s18825_s5 + $0xf80] ss:$16 sps:$4 sm:$0xff]   ;;  %v14307_v44 = vld [vmem:[%s18825_s5 + $0xf88] ss:$16 sps:$4 sm:$0xff]   ;;  %v14348_v14 = vld [vmem:[%s18827_s7 + $0x54] ss:$8 sps:$4 sm:$0xff]  }
 0x644   : > { %v9055_v36 = vpop.f32.mrf.mxu1  ;;  %v9096_v27 = vpop.f32.mrf.mxu0  ;;  %10974 = vmatprep.subr.bf16.mxu1 %v14294_v15  ;;  %11015 = vmatprep.subr.bf16.mxu0 %v14297_v42  ;;  %v14351_v0 = vld [vmem:[%s18827_s7 + $0x154] ss:$8 sps:$4 sm:$0xff]   ;;  %v14349_v15 = vld [vmem:[%s18827_s7 + $0x150] ss:$8 sps:$4 sm:$0xff]   ;;  %v14354_v42 = vld [vmem:[%s18827_s7 + $0x44] ss:$8 sps:$4 sm:$0xff]  }
 0x645   : > { %v18461_v47 = vadd.f32 %v9055_v36, %v18349_v19  ;;  %v18464_v25 = vadd.f32 %v9096_v27, %v18352_v24  ;;  %11004 = vmatprep.mubr.bf16.mxu1 %v14458_v5  ;;  %11045 = vmatprep.mubr.bf16.mxu0 %v14458_v5  ;;  %v14306_v5 = vld [vmem:[%s18825_s5 + $0xf84] ss:$16 sps:$4 sm:$0xff]   ;;  %v14316_v19 = vld [vmem:[%s18825_s5 + $0xf40] ss:$16 sps:$4 sm:$0xff]   ;;  %v14319_v24 = vld [vmem:[%s18825_s5 + $0xf48] ss:$16 sps:$4 sm:$0xff]  }
 0x646   : > { %v9057_v46 = vpop.f32.mrf.mxu1  ;;  %v9098_v37 = vpop.f32.mrf.mxu0  ;;  %v14357_v43 = vld [vmem:[%s18827_s7 + $0x144] ss:$8 sps:$4 sm:$0xff]   ;;  %v14352_v45 = vld [vmem:[%s18827_s7 + $0x40] ss:$8 sps:$4 sm:$0xff]   ;;  %v14361_v36 = vld [vmem:[%s18827_s7 + $0x130] ss:$8 sps:$4 sm:$0xff]  }
 0x647   : > { %10975 = vmatpush1.bf16.msra.mxu1 %v14292_v39  ;;  %11016 = vmatpush1.bf16.msra.mxu0 %v14295_v13  ;;  %v14363_v39 = vld [vmem:[%s18827_s7 + $0x134] ss:$8 sps:$4 sm:$0xff]   ;;  %v14358_v13 = vld [vmem:[%s18827_s7 + $0x30] ss:$8 sps:$4 sm:$0xff]   ;;  %v14366_v46 = vld [vmem:[%s18827_s7 + $0x24] ss:$8 sps:$4 sm:$0xff]  }
 0x648   : > { %v9058_v26 = vpop.f32.mrf.mxu1  ;;  %v9099_v22 = vpop.f32.mrf.mxu0  ;;  %10976 = vmatprep.subr.bf16.mxu1 %v14300_v29  ;;  %11017 = vmatprep.subr.bf16.mxu0 %v14303_v9  ;;  %v14367_v37 = vld [vmem:[%s18827_s7 + $0x120] ss:$8 sps:$4 sm:$0xff]  }
 0x649   : > { %v14369_v26 = vld [vmem:[%s18827_s7 + $0x124] ss:$8 sps:$4 sm:$0xff]  }
 0x64b   : > { %10977 = vmatpush1.bf16.msra.mxu1 %v14298_v40  ;;  %11018 = vmatpush1.bf16.msra.mxu0 %v14301_v60 }
 0x64c   : > { %10978 = vmatprep.subr.bf16.mxu1 %v14306_v5  ;;  %11019 = vmatprep.subr.bf16.mxu0 %v14309_v50 }
 0x64f   : > { %10979 = vmatpush1.bf16.msra.mxu1 %v14304_v7  ;;  %11020 = vmatpush1.bf16.msra.mxu0 %v14307_v44  ;;  %v14370_v44 = vld [vmem:[%s18827_s7 + $0x10] ss:$8 sps:$4 sm:$0xff]  }
 0x650   : > { %10980 = vmatprep.subr.bf16.mxu1 %v14312_v33  ;;  %11021 = vmatprep.subr.bf16.mxu0 %v14315_v31  ;;  %v14372_v33 = vld [vmem:[%s18827_s7 + $0x14] ss:$8 sps:$4 sm:$0xff]   ;;  %v14373_v31 = vld [vmem:[%s18827_s7 + $0x110] ss:$8 sps:$4 sm:$0xff]  }
 0x653   : > { %10981 = vmatpush1.bf16.msra.mxu1 %v14310_v30  ;;  %11022 = vmatpush1.bf16.msra.mxu0 %v14313_v56  ;;  %v14375_v30 = vld [vmem:[%s18827_s7 + $0x114] ss:$8 sps:$4 sm:$0xff]  }
 0x654   : > { %10982 = vmatprep.subr.bf16.mxu1 %v14318_v23  ;;  %11023 = vmatprep.subr.bf16.mxu0 %v14321_v12  ;;  %v14378_v12 = vld [vmem:[%s18827_s7 + $0x4] ss:$8 sps:$4 sm:$0xff]  }
 0x657   : > { %10983 = vmatpush1.bf16.msra.mxu1 %v14316_v19  ;;  %11024 = vmatpush1.bf16.msra.mxu0 %v14319_v24  ;;  %v14381_v19 = vld [vmem:[%s18827_s7 + $0x104] ss:$8 sps:$4 sm:$0xff]   ;;  %v14376_v24 = vld [vmem:[%s18827_s7] ss:$8 sps:$4 sm:$0xff]  }
 0x658   : > { %10984 = vmatprep.subr.bf16.mxu1 %v14324_v63  ;;  %11025 = vmatprep.subr.bf16.mxu0 %v14327_v28  ;;  %v14379_v63 = vld [vmem:[%s18827_s7 + $0x100] ss:$8 sps:$4 sm:$0xff]   ;;  %v14384_v28 = vld [vmem:[%s18827_s7 + $0xf4] ss:$8 sps:$4 sm:$0xff]  }
 0x65b   : > { %10985 = vmatpush1.bf16.msra.mxu1 %v14322_v48  ;;  %11026 = vmatpush1.bf16.msra.mxu0 %v14325_v8  ;;  %v14387_v48 = vld [vmem:[%s18827_s7 + $0x1f4] ss:$8 sps:$4 sm:$0xff]   ;;  %v14382_v8 = vld [vmem:[%s18827_s7 + $0xf0] ss:$8 sps:$4 sm:$0xff]  }
 0x65c   : > { %10986 = vmatprep.subr.bf16.mxu1 %v14330_v10  ;;  %11027 = vmatprep.subr.bf16.mxu0 %v14333_v6  ;;  %v14385_v10 = vld [vmem:[%s18827_s7 + $0x1f0] ss:$8 sps:$4 sm:$0xff]   ;;  %v14390_v6 = vld [vmem:[%s18827_s7 + $0xe4] ss:$8 sps:$4 sm:$0xff]  }
 0x65f   : > { %10987 = vmatpush1.bf16.msra.mxu1 %v14328_v53  ;;  %11028 = vmatpush1.bf16.msra.mxu0 %v14331_v32  ;;  %v14393_v53 = vld [vmem:[%s18827_s7 + $0x1e4] ss:$8 sps:$4 sm:$0xff]   ;;  %v14388_v32 = vld [vmem:[%s18827_s7 + $0xe0] ss:$8 sps:$4 sm:$0xff]  }
 0x660   : > { %11488 = vmatprep.subr.bf16.mxu1 %v14336_v3  ;;  %11529 = vmatprep.subr.bf16.mxu0 %v14339_v11 }
 0x662   : > { %v9332_v2 = vpop.f32.mrf.mxu1  ;;  %v9373_v61 = vpop.f32.mrf.mxu0  ;;  %11005 = vmatmul.mubr.bf16.vlgmr.msra.gmra.mxu1 %v10779_v21  ;;  %11046 = vmatmul.mubr.bf16.vlgmr.msra.gmra.mxu0 %v10779_v21  ;;  %v14391_v21 = vld [vmem:[%s18827_s7 + $0x1e0] ss:$8 sps:$4 sm:$0xff]  }
 0x663   : > { %v9380_v17 = vadd.f32 %v9332_v2, %v18443_v55  ;;  %v9382_v52 = vadd.f32 %v9373_v61, %v18446_v1  ;;  %11489 = vmatpush1.bf16.msra.mxu1 %v14334_v57  ;;  %11530 = vmatpush1.bf16.msra.mxu0 %v14337_v38  ;;  %v14355_v55 = vld [vmem:[%s18827_s7 + $0x140] ss:$8 sps:$4 sm:$0xff]   ;;  %v14360_v1 = vld [vmem:[%s18827_s7 + $0x34] ss:$8 sps:$4 sm:$0xff]  }
 0x664   : > { %v9334_v16 = vpop.f32.mrf.mxu1  ;;  %v9375_v59 = vpop.f32.mrf.mxu0  ;;  %11490 = vmatprep.subr.bf16.mxu1 %v14342_v62  ;;  %11531 = vmatprep.subr.bf16.mxu0 %v14345_v4  ;;  %v14396_v2 = vld [vmem:[%s18827_s7 + $0xd4] ss:$8 sps:$4 sm:$0xff]  }
 0x665   : > { %v9381_v54 = vadd.f32 %v9334_v16, %v18461_v47  ;;  %v9383_v58 = vadd.f32 %v9375_v59, %v18464_v25  ;;  %v14364_v25 = vld [vmem:[%s18827_s7 + $0x20] ss:$8 sps:$4 sm:$0xff]   ;;  %v14399_v61 = vld [vmem:[%s18827_s7 + $0x1d4] ss:$8 sps:$4 sm:$0xff]   ;;  %v14402_v16 = vld [vmem:[%s18827_s7 + $0xc4] ss:$8 sps:$4 sm:$0xff]  }
 0x666   : > { %v9336_v34 = vpop.f32.mrf.mxu1  ;;  %v9377_v20 = vpop.f32.mrf.mxu0  ;;  %v14405_v59 = vld [vmem:[%s18827_s7 + $0x1c4] ss:$8 sps:$4 sm:$0xff]  }
 0x667   : > { %11491 = vmatpush1.bf16.msra.mxu1 %v14340_v51  ;;  %11532 = vmatpush1.bf16.msra.mxu0 %v14343_v41  ;;  %v14408_v34 = vld [vmem:[%s18827_s7 + $0xb4] ss:$8 sps:$4 sm:$0xff]  }
 0x668   : > { %v9337_v49 = vpop.f32.mrf.mxu1  ;;  %v9378_v35 = vpop.f32.mrf.mxu0  ;;  %11492 = vmatprep.subr.bf16.mxu1 %v14348_v14  ;;  %11533 = vmatprep.subr.bf16.mxu0 %v14351_v0  ;;  %v14411_v20 = vld [vmem:[%s18827_s7 + $0x1b4] ss:$8 sps:$4 sm:$0xff]  }
 0x669   : > { %v14406_v49 = vld [vmem:[%s18827_s7 + $0xb0] ss:$8 sps:$4 sm:$0xff]  }
 0x66a   : > { %v14409_v35 = vld [vmem:[%s18827_s7 + $0x1b0] ss:$8 sps:$4 sm:$0xff]  }
 0x66b   : > { %11493 = vmatpush1.bf16.msra.mxu1 %v14346_v18  ;;  %11534 = vmatpush1.bf16.msra.mxu0 %v14349_v15 }
 0x66c   : > { %11494 = vmatprep.subr.bf16.mxu1 %v14354_v42  ;;  %11535 = vmatprep.subr.bf16.mxu0 %v14357_v43  ;;  %v14412_v42 = vld [vmem:[%s18827_s7 + $0xa0] ss:$8 sps:$4 sm:$0xff]   ;;  %v14414_v43 = vld [vmem:[%s18827_s7 + $0xa4] ss:$8 sps:$4 sm:$0xff]  }
 0x66f   : > { %11495 = vmatpush1.bf16.msra.mxu1 %v14352_v45  ;;  %11536 = vmatpush1.bf16.msra.mxu0 %v14355_v55  ;;  %v14415_v45 = vld [vmem:[%s18827_s7 + $0x1a0] ss:$8 sps:$4 sm:$0xff]   ;;  %v14417_v55 = vld [vmem:[%s18827_s7 + $0x1a4] ss:$8 sps:$4 sm:$0xff]  }
 0x670   : > { %11496 = vmatprep.subr.bf16.mxu1 %v14360_v1  ;;  %11537 = vmatprep.subr.bf16.mxu0 %v14363_v39  ;;  %v14420_v1 = vld [vmem:[%s18827_s7 + $0x94] ss:$8 sps:$4 sm:$0xff]   ;;  %v14418_v39 = vld [vmem:[%s18827_s7 + $0x90] ss:$8 sps:$4 sm:$0xff]  }
 0x673   : > { %11497 = vmatpush1.bf16.msra.mxu1 %v14358_v13  ;;  %11538 = vmatpush1.bf16.msra.mxu0 %v14361_v36  ;;  %v14423_v13 = vld [vmem:[%s18827_s7 + $0x194] ss:$8 sps:$4 sm:$0xff]   ;;  %v14421_v36 = vld [vmem:[%s18827_s7 + $0x190] ss:$8 sps:$4 sm:$0xff]  }
 0x674   : > { %11498 = vmatprep.subr.bf16.mxu1 %v14366_v46  ;;  %11539 = vmatprep.subr.bf16.mxu0 %v14369_v26 }
 0x677   : > { %11499 = vmatpush1.bf16.msra.mxu1 %v14364_v25  ;;  %11540 = vmatpush1.bf16.msra.mxu0 %v14367_v37  ;;  %v14430_v25 = vld [vmem:[%s18829_s9 + $0x78] sm:$0xff]  }
 0x678   : > { %11500 = vmatprep.subr.bf16.mxu1 %v14372_v33  ;;  %11541 = vmatprep.subr.bf16.mxu0 %v14375_v30 }
 0x67b   : > { %11501 = vmatpush1.bf16.msra.mxu1 %v14370_v44  ;;  %11542 = vmatpush1.bf16.msra.mxu0 %v14373_v31 }
 0x67c   : > { %11502 = vmatprep.subr.bf16.mxu1 %v14378_v12  ;;  %11543 = vmatprep.subr.bf16.mxu0 %v14381_v19 }
 0x67f   : > { %11503 = vmatpush1.bf16.msra.mxu1 %v14376_v24  ;;  %11544 = vmatpush1.bf16.msra.mxu0 %v14379_v63 }
 0x680   : > { %11504 = vmatprep.subr.bf16.mxu1 %v14384_v28  ;;  %11545 = vmatprep.subr.bf16.mxu0 %v14387_v48 }
 0x682   : > { %v9611_v27 = vpop.f32.mrf.mxu1  ;;  %v9652_v29 = vpop.f32.mrf.mxu0 }
 0x683   : > { %v18600_v9 = vadd.f32 %v9611_v27, %v9380_v17  ;;  %v18602_v47 = vadd.f32 %v9652_v29, %v9382_v52  ;;  %11505 = vmatpush2.bf16.msra.mxu1 %v14382_v8  ;;  %11546 = vmatpush2.bf16.msra.mxu0 %v14385_v10  ;;  %v14394_v17 = vld [vmem:[%s18827_s7 + $0xd0] ss:$8 sps:$4 sm:$0xff]   ;;  %v14426_v27 = vld [vmem:[%s18827_s7 + $0x84] ss:$8 sps:$4 sm:$0xff]  }
 0x684   : > { %v9613_v40 = vpop.f32.mrf.mxu1  ;;  %v9654_v60 = vpop.f32.mrf.mxu0  ;;  %11506 = vmatprep.subr.bf16.mxu1 %v14390_v6  ;;  %11547 = vmatprep.subr.bf16.mxu0 %v14393_v53  ;;  %v14397_v52 = vld [vmem:[%s18827_s7 + $0x1d0] ss:$8 sps:$4 sm:$0xff]   ;;  %v14429_v29 = vld [vmem:[%s18827_s7 + $0x184] ss:$8 sps:$4 sm:$0xff]  }
 0x685   : > { %v18616_v22 = vadd.f32 %v9613_v40, %v9381_v54  ;;  %v18618_v5 = vadd.f32 %v9654_v60, %v9383_v58  ;;  %v14400_v54 = vld [vmem:[%s18827_s7 + $0xc0] ss:$8 sps:$4 sm:$0xff]  }
 0x686   : > { %v9615_v50 = vpop.f32.mrf.mxu1  ;;  %v9656_v7 = vpop.f32.mrf.mxu0  ;;  %v14403_v58 = vld [vmem:[%s18827_s7 + $0x1c0] ss:$8 sps:$4 sm:$0xff]  }
 0x687   : > { %11507 = vmatpush2.bf16.msra.mxu1 %v14388_v32  ;;  %11548 = vmatpush2.bf16.msra.mxu0 %v14391_v21 }
 0x688   : > { %v9616_v56 = vpop.f32.mrf.mxu1  ;;  %v9657_v23 = vpop.f32.mrf.mxu0  ;;  %11508 = vmatprep.subr.bf16.mxu1 %v14396_v2  ;;  %11549 = vmatprep.subr.bf16.mxu0 %v14399_v61  ;;  %v18937_v61 = vld [vmem:[#allocation5_spill] sm:$0xff] }
 0x68b   : > { %11509 = vmatpush2.bf16.msra.mxu1 %v14394_v17  ;;  %11550 = vmatpush2.bf16.msra.mxu0 %v14397_v52  ;;  %v11062_v17 = vsub.s32 0, %v18937_v61  ;;  %v11070_v52 = vsub.s32 2, %v18937_v61 }
 0x68c   : > { %11510 = vmatprep.subr.bf16.mxu1 %v14402_v16  ;;  %11551 = vmatprep.subr.bf16.mxu0 %v14405_v59  ;;  %v11058_v16 = vld [vmem:[%s18826_s6] sm:$0xf]  ;;  %v11066_v59 = vsub.s32 1, %v18937_v61 }
 0x68f   : > { %11511 = vmatpush2.bf16.msra.mxu1 %v14400_v54  ;;  %11552 = vmatpush2.bf16.msra.mxu0 %v14403_v58  ;;  %v11074_v54 = vsub.s32 3, %v18937_v61 }
 0x690   : > { %11512 = vmatprep.subr.bf16.mxu1 %v14408_v34  ;;  %11553 = vmatprep.subr.bf16.mxu0 %v14411_v20  ;;  %v11063_v20 = vrot.slane %v11058_v16, %v11062_v17 }
 0x693   : > { %11513 = vmatpush2.bf16.msra.mxu1 %v14406_v49  ;;  %11554 = vmatpush2.bf16.msra.mxu0 %v14409_v35  ;;  %v11071_v49 = vrot.slane %v11058_v16, %v11070_v52 }
 0x694   : > { %11514 = vmatprep.subr.bf16.mxu1 %v14414_v43  ;;  %11555 = vmatprep.subr.bf16.mxu0 %v14417_v55 }
 0x697   : > { %11515 = vmatpush2.bf16.msra.mxu1 %v14412_v42  ;;  %11556 = vmatpush2.bf16.msra.mxu0 %v14415_v45 }
 0x698   : > { %11516 = vmatprep.subr.bf16.mxu1 %v14420_v1  ;;  %11557 = vmatprep.subr.bf16.mxu0 %v14423_v13 }
 0x69b   : > { %11517 = vmatpush2.bf16.msra.mxu1 %v14418_v39  ;;  %11558 = vmatpush2.bf16.msra.mxu0 %v14421_v36 }
 0x69c   : > { %11518 = vmatprep.subr.bf16.mxu1 %v14426_v27  ;;  %11559 = vmatprep.subr.bf16.mxu0 %v14429_v29 }
 0x6a2   : > { %v9890_v57 = vpop.f32.mrf.mxu1  ;;  %v9931_v3 = vpop.f32.mrf.mxu0 }
 0x6a3   : > { %v9938_v38 = vadd.f32 %v9890_v57, %v18600_v9  ;;  %v9940_v11 = vadd.f32 %v9931_v3, %v18602_v47  ;;  %v14424_v9 = vld [vmem:[%s18827_s7 + $0x80] ss:$8 sps:$4 sm:$0xff]  }
 0x6a4   : > { %v9892_v62 = vpop.f32.mrf.mxu1  ;;  %v9933_v4 = vpop.f32.mrf.mxu0  ;;  %v14427_v47 = vld [vmem:[%s18827_s7 + $0x180] ss:$8 sps:$4 sm:$0xff]   ;;  %11519 = vmatpush2.bf16.msra.mxu1 %v14424_v9 }
 0x6a5   : > { %v9939_v51 = vadd.f32 %v9892_v62, %v18616_v22  ;;  %v9941_v41 = vadd.f32 %v9933_v4, %v18618_v5  ;;  %11560 = vmatpush2.bf16.msra.mxu0 %v14427_v47  ;;  %13030 = vmatprep.subr.bf16.mxu1 %v14430_v25  ;;  %v11067_v4 = vrot.slane %v11058_v16, %v11066_v59 }
 0x6a6   : > { %v9894_v14 = vpop.f32.mrf.mxu1  ;;  %v9935_v0 = vpop.f32.mrf.mxu0 }
 0x6a8   : > { %v9895_v18 = vpop.f32.mrf.mxu1  ;;  %v9936_v15 = vpop.f32.mrf.mxu0 }
 0x6c2   : > { %v10169_v46 = vpop.f32.mrf.mxu1  ;;  %v10210_v37 = vpop.f32.mrf.mxu0 }
 0x6c3   : > { %v10217_v40 = vadd.f32 %v10169_v46, %v9938_v38  ;;  %v10219_v60 = vadd.f32 %v10210_v37, %v9940_v11 }
 0x6c4   : > { %v10171_v26 = vpop.f32.mrf.mxu1  ;;  %v10212_v22 = vpop.f32.mrf.mxu0 }
 0x6c5   : > { %v10218_v5 = vadd.f32 %v10171_v26, %v9939_v51  ;;  %v10220_v50 = vadd.f32 %v10212_v22, %v9941_v41  ;;  %v11075_v51 = vrot.slane %v11058_v16, %v11074_v54  ;;  %v14431_v26 = vld [vmem:[%s18829_s9 + $0x38] sm:$0xff]  }
 0x6c6   : > { %v10173_v7 = vpop.f32.mrf.mxu1  ;;  %v10214_v44 = vpop.f32.mrf.mxu0 }
 0x6c7   : > { %v14433_v7 = vld [vmem:[%s18829_s9 + $0x30] sm:$0xff]   ;;  %v14434_v44 = vld [vmem:[%s18829_s9 + $0x68] sm:$0xff]  }
 0x6c8   : > { %v10174_v33 = vpop.f32.mrf.mxu1  ;;  %v10215_v31 = vpop.f32.mrf.mxu0 }
 0x6c9   : > { %v14435_v33 = vld [vmem:[%s18829_s9 + $0x28] sm:$0xff]   ;;  %v14436_v31 = vld [vmem:[%s18829_s9 + $0x60] sm:$0xff]  }
 0x6e2   : > { %v10448_v30 = vpop.f32.mrf.mxu1  ;;  %v10489_v56 = vpop.f32.mrf.mxu0 }
 0x6e3   : > { %v10496_v58 = vadd.f32 %v10448_v30, %v10217_v40  ;;  %v10498_v34 = vadd.f32 %v10489_v56, %v10219_v60  ;;  %v14437_v30 = vld [vmem:[%s18829_s9 + $0x20] sm:$0xff]   ;;  %v14438_v56 = vld [vmem:[%s18829_s9 + $0x58] sm:$0xff]  }
 0x6e4   : > { %v10450_v23 = vpop.f32.mrf.mxu1  ;;  %v10491_v12 = vpop.f32.mrf.mxu0 }
 0x6e5   : > { %v10497_v35 = vadd.f32 %v10450_v23, %v10218_v5  ;;  %v10499_v57 = vadd.f32 %v10491_v12, %v10220_v50  ;;  %v14432_v50 = vld [vmem:[%s18829_s9 + $0x70] sm:$0xff]   ;;  %v14439_v23 = vld [vmem:[%s18829_s9 + $0x18] sm:$0xff]  }
 0x6e6   : > { %v10452_v19 = vpop.f32.mrf.mxu1  ;;  %v10493_v24 = vpop.f32.mrf.mxu0  ;;  %v14440_v12 = vld [vmem:[%s18829_s9 + $0x50] sm:$0xff]  }
 0x6e7   : > { %v14441_v19 = vld [vmem:[%s18829_s9 + $0x10] sm:$0xff]   ;;  %v14442_v24 = vld [vmem:[%s18829_s9 + $0x48] sm:$0xff]  }
 0x6e8   : > { %v10453_v63 = vpop.f32.mrf.mxu1  ;;  %v10494_v28 = vpop.f32.mrf.mxu0 }
 0x6e9   : > { %v14443_v63 = vld [vmem:[%s18829_s9 + $0x8] sm:$0xff]   ;;  %v14444_v28 = vld [vmem:[%s18829_s9 + $0x40] sm:$0xff]  }
 0x702   : > { %v10727_v48 = vpop.f32.mrf.mxu1  ;;  %v10768_v8 = vpop.f32.mrf.mxu0 }
 0x703   : > { %v10775_v3 = vadd.f32 %v10727_v48, %v10496_v58  ;;  %v10777_v38 = vadd.f32 %v10768_v8, %v10498_v34  ;;  %v14445_v48 = vld [vmem:[%s18829_s9] sm:$0xff]  }
 0x704   : > { %v10729_v10 = vpop.f32.mrf.mxu1  ;;  %v10770_v6 = vpop.f32.mrf.mxu0  ;;  %v11156_v8 = vld [vmem:[%s18828_s8] sm:$0x3] }
 0x705   : > { %v10776_v41 = vadd.f32 %v10729_v10, %v10497_v35  ;;  %v10778_v14 = vadd.f32 %v10770_v6, %v10499_v57  ;;  %v11481_v10 = vrot.slane %v11156_v8, %v11062_v17  ;;  %v11485_v6 = vrot.slane %v11156_v8, %v11066_v59  ;;  %v11606_v59 = vld [vmem:[%s18830_s10] sm:$0x1] }
 0x706   : > { %v10731_v53 = vpop.f32.mrf.mxu1  ;;  %v10772_v32 = vpop.f32.mrf.mxu0 }
 0x708   : > { %v10732_v21 = vpop.f32.mrf.mxu1  ;;  %v10773_v2 = vpop.f32.mrf.mxu0 }
 0x722   : > { %v11006_v11 = vpop.f32.mrf.mxu1  ;;  %v11047_v62 = vpop.f32.mrf.mxu0 }
 0x723   : > { %v11054_v0 = vadd.f32 %v11006_v11, %v10775_v3  ;;  %v11056_v18 = vadd.f32 %v11047_v62, %v10777_v38 }
 0x724   : > { %v11008_v15 = vpop.f32.mrf.mxu1  ;;  %v11049_v42 = vpop.f32.mrf.mxu0 }
 0x725   : > { %v11080_v43 = vadd.f32 %v11063_v20, %v11054_v0  ;;  %v11082_v45 = vadd.f32 %v11071_v49, %v11056_v18  ;;  %v11055_v55 = vadd.f32 %v11008_v15, %v10776_v41  ;;  %v11057_v1 = vadd.f32 %v11049_v42, %v10778_v14 }
 0x726   : > { %v11010_v39 = vpop.f32.mrf.mxu1  ;;  %v11051_v13 = vpop.f32.mrf.mxu0 }
 0x727   : > { %v11081_v36 = vadd.f32 %v11067_v4, %v11055_v55  ;;  %v11083_v27 = vadd.f32 %v11075_v51, %v11057_v1  ;;  %v11084_v29 = vmax.f32 %v11080_v43, 0.0  ;;  %v11086_v9 = vmax.f32 %v11082_v45, 0.0 }
 0x728   : > { %v11011_v47 = vpop.f32.mrf.mxu1  ;;  %v11052_v25 = vpop.f32.mrf.mxu0 }
 0x729   : > { %v11085_v46 = vmax.f32 %v11081_v36, 0.0  ;;  %v11087_v37 = vmax.f32 %v11083_v27, 0.0  ;;  %v11088_v22 = vpack.c.bf16 %v11084_v29, %v11084_v29  ;;  %v11090_v5 = vpack.c.bf16 %v11086_v9, %v11086_v9 }
 0x72b   : > { %v11089_v40 = vpack.c.bf16 %v11085_v46, %v11085_v46  ;;  %v11091_v60 = vpack.c.bf16 %v11087_v37, %v11087_v37 }
 0x72d   : > { %11520 = vmatprep.mubr.bf16.mxu1 %v11089_v40  ;;  %11561 = vmatprep.mubr.bf16.mxu0 %v11091_v60 }
 0x72e   : > { %11521 = vmatmul.mubr.bf16.vlgmr.msra.gmra.mxu1 %v11088_v22  ;;  %11562 = vmatmul.mubr.bf16.vlgmr.msra.gmra.mxu0 %v11090_v5 }
 0x72f   : > { %13031 = vmatpush3.bf16.msra.mxu1 %v14431_v26 }
 0x730   : > { %13032 = vmatprep.subr.bf16.mxu1 %v14432_v50 }
 0x733   : > { %13033 = vmatpush3.bf16.msra.mxu1 %v14433_v7 }
 0x734   : > { %13034 = vmatprep.subr.bf16.mxu1 %v14434_v44 }
 0x737   : > { %13035 = vmatpush3.bf16.msra.mxu1 %v14435_v33 }
 0x738   : > { %13036 = vmatprep.subr.bf16.mxu1 %v14436_v31 }
 0x73b   : > { %13037 = vmatpush3.bf16.msra.mxu1 %v14437_v30 }
 0x73c   : > { %13038 = vmatprep.subr.bf16.mxu1 %v14438_v56 }
 0x73f   : > { %13039 = vmatpush3.bf16.msra.mxu1 %v14439_v23 }
 0x740   : > { %13040 = vmatprep.subr.bf16.mxu1 %v14440_v12 }
 0x743   : > { %13041 = vmatpush3.bf16.msra.mxu1 %v14441_v19 }
 0x744   : > { %13042 = vmatprep.subr.bf16.mxu1 %v14442_v24 }
 0x747   : > { %13043 = vmatpush3.bf16.msra.mxu1 %v14443_v63 }
 0x748   : > { %13044 = vmatprep.subr.bf16.mxu1 %v14444_v28 }
 0x74b   : > { %13045 = vmatpush3.bf16.msra.mxu1 %v14445_v48 }
 0x7ee   : > { %v11522_v53 = vpop.f32.mrf.mxu1  ;;  %v11563_v32 = vpop.f32.mrf.mxu0 }
 0x7ef   : > { %v11523_v21 = vadd.f32 %v11522_v53, %v11481_v10 }
 0x7f0   : > { %v11524_v2 = vpop.f32.mrf.mxu1  ;;  %v11565_v52 = vpop.f32.mrf.mxu0 }
 0x7f1   : > { %v11564_v16 = vadd.f32 %v11563_v32, %v11523_v21  ;;  %v11525_v54 = vadd.f32 %v11524_v2, %v11485_v6 }
 0x7f2   : > { %v11526_v58 = vpop.f32.mrf.mxu1  ;;  %v11567_v34 = vpop.f32.mrf.mxu0 }
 0x7f3   : > { %v11566_v20 = vadd.f32 %v11565_v52, %v11525_v54  ;;  %v11570_v49 = vmax.f32 %v11564_v16, 0.0 }
 0x7f4   : > { %v11527_v35 = vpop.f32.mrf.mxu1  ;;  %v11568_v57 = vpop.f32.mrf.mxu0 }
 0x7f5   : > { %v11571_v3 = vmax.f32 %v11566_v20, 0.0  ;;  %v11572_v17 = vpack.c.bf16 %v11570_v49, %v11570_v49 }
 0x7f7   : > { %v11573_v38 = vpack.c.bf16 %v11571_v3, %v11571_v3 }
 0x7f9   : > { %11735 = vmatprep.mubr.bf16.mxu1 %v11573_v38 }
 0x7fa   : > { %11736 = vmatmul.mubr.bf16.vlgmr.msra.gmra.mxu1 %v11572_v17 }
 0x8ba   : > { %v13046_v61 = vpop.f32.mrf.mxu1 }
 0x8bc   : > { %v13047_v11 = vpop.f32.mrf.mxu1 }
 0x8bd   : > { %v13048_v62 = vadd.f32 %v13047_v11, %v13046_v61 }
 0x8be   : > { %v13049_v4 = vpop.f32.mrf.mxu1 }
 0x8bf   : > { %v11738_v51 = vadd.f32 %v13048_v62, %v11606_v59 }
 0x8c0   : > { %v13050_v41 = vpop.f32.mrf.mxu1 }
 0x8c1   : > { %11743 = vst [vmem:[%s382_s21] sm:$0x1] %v11738_v51 }
 0x8c2 PF: > { %s21_s17 = sadd.s32 1, %s14454_s17  }
 0x8c3   : > { %p18_p4 = scmp.ge.s32.totalorder %s21_s17, 4  }
 0x8c5   :  { %20 = sbr.rel (!%p18_p4) target bundleno = 1 (0x1), region = 98 }

</bundles_post_ra>
